<compile_context>
chip_gen: v6e
topology: v6e:2x2x1
jax: 0.10.0
libtpu: 0.0.40
codegen_flags: <defaults>
</compile_context>

<pallas_src>
import functools
import math

import jax
import jax.numpy as jnp
import numpy as np
from jax.experimental import pallas as pl
from jax.experimental.pallas import tpu as pltpu


# ----------------------------- host-side constants ----------------------------------


def _seg_matrices(C, H):
    """0/1 head-indicator matrices for segmented (per-head) reductions via MXU."""
    idx = np.arange(C) // (C // H)
    seg = (idx[:, None] == np.arange(H)[None, :]).astype(np.float32)   # (C, H)
    return jnp.asarray(seg), jnp.asarray(np.ascontiguousarray(seg.T))  # (C,H), (H,C)


def _vmem_budget():
    try:
        cap = int(pltpu.get_tpu_info().vmem_capacity_bytes)
    except Exception:
        cap = 64 * 1024 * 1024          # conservative fallback (v7x per-TC VMEM)
    return int(max(32 * 2 ** 20, min(cap - 24 * 2 ** 20, 100 * 2 ** 20)))


# ----------------------------- kernel 1: prep ----------------------------------------


def _prep_kernel(use_v_mix, C, md,
                 x_ref, vfirst_ref,
                 wrkv_ref,
                 w1_ref, w2_ref, w0_ref,
                 a1_ref, a2_ref, a0_ref,
                 v1_ref, v2_ref, v0_ref,
                 k_k_ref, k_a_ref,
                 seg_ref, segT_ref,
                 r_out, ld_out, k_out, v_out, a_out, b_out):
    f32 = jnp.float32
    x = x_ref[...]                                   # (tT, C) f32
    xm = x.astype(md)

    rkv = jnp.dot(xm, wrkv_ref[...], preferred_element_type=f32)      # (tT, 3C)
    r = rkv[:, :C]
    k = rkv[:, C:2 * C]
    v = rkv[:, 2 * C:]

    w_lora = jnp.dot(jnp.tanh(jnp.dot(xm, w1_ref[...],
                                      preferred_element_type=f32)).astype(md),
                     w2_ref[...], preferred_element_type=f32)
    w = -jax.nn.softplus(-(w0_ref[...] + w_lora)) - 0.6
    ld_out[...] = -jnp.exp(w)                        # log-decay, kept f32

    if use_v_mix:                                    # layer_id != 0
        v_lora = jnp.dot(jnp.dot(xm, v1_ref[...],
                                 preferred_element_type=f32).astype(md),
                         v2_ref[...], preferred_element_type=f32)
        v = v + (vfirst_ref[...] - v) * jax.nn.sigmoid(v0_ref[...] + v_lora)

    a_lora = jnp.dot(jnp.dot(xm, a1_ref[...], preferred_element_type=f32).astype(md),
                     a2_ref[...], preferred_element_type=f32)
    a_gate = jax.nn.sigmoid(a0_ref[...] + a_lora)

    # per-head L2-normalize of kk via 0/1 segment matmuls (no per-head slicing)
    kk = k * k_k_ref[...]
    ss = jnp.dot(kk * kk, seg_ref[...], preferred_element_type=f32)   # (tT, H)
    inv = jax.lax.rsqrt(jnp.maximum(ss, 1e-24))
    kk = kk * jnp.dot(inv, segT_ref[...], preferred_element_type=f32)

    r_out[...] = r.astype(r_out.dtype)
    k_out[...] = (k * (1.0 + (a_gate - 1.0) * k_a_ref[...])).astype(k_out.dtype)
    v_out[...] = v.astype(v_out.dtype)
    a_out[...] = (-kk).astype(a_out.dtype)
    b_out[...] = (kk * a_gate).astype(b_out.dtype)


# --------------------- kernel 2: chunked RWKV-7 recurrence ---------------------------
#
# Sequential rule (per head):  sa_t = S_{t-1} a_t
#                              S_t  = S_{t-1} diag(d_t) + sa_t b_t^T + v_t k_t^T
#                              o_t  = S_t r_t               with d_t = exp(ld_t)
# Exact chunked form: with g_t = prod_{s<=t} d_s inside the chunk,
#   a^ = a*g_{t-1}, r^ = r*g_t, k~ = k/g_t, b~ = b/g_t,
#   Z = (I - strict_tril(A^ B~^T))^{-1} (A^ S0^T + strict_tril(A^ K~^T) V)  (rows = sa)
#   O = R^ S0^T + tril(R^ K~^T) V + tril(R^ B~^T) Z
#   S' = S0 diag(g_L) + V^T (K g_L/g) + Z^T (B g_L/g)


def _rwkv7_chunk_kernel(Hg, N, L, cd,
                        incl_ref, r_ref, ld_ref, k_ref, v_ref, a_ref, b_ref, mask_ref,
                        o_ref, state_ref):
    f32 = jnp.float32

    @pl.when(pl.program_id(2) == 0)
    def _():
        state_ref[...] = jnp.zeros_like(state_ref)

    row = jax.lax.broadcasted_iota(jnp.int32, (L, L), 0)
    col = jax.lax.broadcasted_iota(jnp.int32, (L, L), 1)
    lower = row >= col                               # s <= t
    strict = row > col                               # s <  t

    ld = ld_ref[...]                                                   # (L, Cg) f32
    lc = jnp.dot(incl_ref[...], ld, preferred_element_type=f32)        # cumulative log-decay
    lc_prev = lc - ld

    g = jnp.exp(lc)                                  # decay chunk-start -> t   (<= 1)
    g_prev = jnp.exp(lc_prev)
    e_inv = jnp.exp(-lc)                             # 1 / g                    (>= 1)
    g_end = g[L - 1:L, :]                            # (1, Cg)
    e_end = g_end * e_inv                            # decay t -> chunk end     (<= 1)

    v_m = v_ref[...].astype(f32) * mask_ref[...]     # mask applied to v only (see TODO)
    r_g = r_ref[...].astype(f32) * g
    a_g = a_ref[...].astype(f32) * g_prev
    k_i = k_ref[...].astype(f32) * e_inv
    b_i = b_ref[...].astype(f32) * e_inv
    k_e = k_ref[...].astype(f32) * e_end
    b_e = b_ref[...].astype(f32) * e_end

    n_doub = int(math.ceil(math.log2(L))) if L > 1 else 0

    def mm(a, b):        # a @ b
        return jnp.dot(a.astype(cd), b.astype(cd), preferred_element_type=f32)

    def mm_nt(a, b):     # a @ b.T
        return jnp.dot(a.astype(cd), b.astype(cd).T, preferred_element_type=f32)

    def mm_tn(a, b):     # a.T @ b
        return jnp.dot(a.astype(cd).T, b.astype(cd), preferred_element_type=f32)

    for h in range(Hg):
        sl = slice(h * N, (h + 1) * N)
        st = state_ref[:, sl]                        # (N_v, N_k) f32 carried state
        Rh = r_g[:, sl].astype(cd)
        Ah = a_g[:, sl].astype(cd)
        Kih = k_i[:, sl].astype(cd)
        Bih = b_i[:, sl].astype(cd)
        Keh = k_e[:, sl].astype(cd)
        Beh = b_e[:, sl].astype(cd)
        Vh = v_m[:, sl].astype(cd)

        AK = jnp.where(strict, mm_nt(Ah, Kih), 0.0)
        AB = jnp.where(strict, mm_nt(Ah, Bih), 0.0)
        RK = jnp.where(lower, mm_nt(Rh, Kih), 0.0)
        RB = jnp.where(lower, mm_nt(Rh, Bih), 0.0)

        # Z rows = sa_t ; solve (I - AB) Z = rhs via nilpotent doubling applied to rhs
        Z = mm_nt(Ah, st) + mm(AK, Vh)               # (L, N_v) f32
        M = AB
        for d in range(n_doub):
            Z = Z + mm(M, Z)
            if d + 1 < n_doub:
                M = mm(M, M)

        o_ref[:, sl] = (mm_nt(Rh, st) + mm(RK, Vh) + mm(RB, Z)).astype(o_ref.dtype)
        state_ref[:, sl] = st * g_end[:, sl] + mm_tn(Vh, Keh) + mm_tn(Z, Beh)


# ------------------------------- kernel 3: post ---------------------------------------


def _post_kernel(N, eps, md,
                 x_ref, r_ref, k_ref, v_ref,
                 rk_ref, lnw_ref, lnb_ref, wo_ref, seg_ref, segT_ref, gain_ref,
                 o_ref):
    f32 = jnp.float32
    seg = seg_ref[...]
    segT = segT_ref[...]

    x = x_ref[...].astype(f32)                                         # (tT, C) attn out
    mean_h = jnp.dot(x, seg, preferred_element_type=f32) * (1.0 / N)   # (tT, H)
    xc = x - jnp.dot(mean_h, segT, preferred_element_type=f32)
    var_h = jnp.dot(xc * xc, seg, preferred_element_type=f32) * (1.0 / N)
    var = jnp.dot(var_h, segT, preferred_element_type=f32)
    xn = xc * jax.lax.rsqrt(var + eps) * lnw_ref[...] + lnb_ref[...]

    r = r_ref[...].astype(f32)
    k = k_ref[...].astype(f32)
    v = v_ref[...].astype(f32)
    coef_h = jnp.dot(r * k * rk_ref[...], seg, preferred_element_type=f32)  # (tT, H)
    y = xn + jnp.dot(coef_h, segT, preferred_element_type=f32) * v

    out = jnp.dot(y.astype(md), wo_ref[...], preferred_element_type=f32)
    o_ref[...] = out * gain_ref[0, 0]


# --------------------------------- wrapper --------------------------------------------


def rwkv_tmix_x070_forward(params, x, v_first, attention_mask, *,
                           layer_id, head_size,
                           matmul_dtype=jnp.bfloat16, head_groups=None):
    B, T, C = x.shape
    N = head_size
    H = C // N
    f32 = jnp.float32
    md = jnp.dtype(matmul_dtype)
    md_b = md.itemsize

    vmem_budget = _vmem_budget()

    # ---- head grouping: extra parallel grid axis (v7x 2-TC) when lane blocks stay aligned
    G = head_groups
    if G is None:
        G = 2 if (H % 2 == 0 and (C // 2) % 128 == 0) else 1
    if G < 1 or H % G != 0 or (G > 1 and (C // G) % 128 != 0):
        G = 1
    Cg = C // G
    Hg = H // G

    # ---- chunk length for the recurrence (prefer 128 for the 256-wide MXUs) ----
    def chunk_bytes(L):
        return (2 * (L * Cg * (5 * md_b + 4) + L * 4 + L * L * 4)       # inputs, 2-buffered
                + 2 * L * Cg * md_b                                     # output
                + N * Cg * 4                                            # carried state
                + (16 * L * L + 16 * L * max(N, 128)) * 4)              # working set slack

    cand_L = (128, 64, 32, 16, 8)
    L = next((c for c in cand_L if T % c == 0 and chunk_bytes(c) <= vmem_budget), None)
    if L is None:
        L = next((c for c in cand_L if T % c == 0), T)
    NC = T // L

    # ---- row tile for prep / post ----
    x = x.astype(f32)
    v_first = v_first.astype(f32)
    mask3 = attention_mask.reshape(B, T, 1).astype(f32)

    def as_md(name):
        return params[name].astype(md)

    wrkv = jnp.concatenate([as_md("Wr"), as_md("Wk"), as_md("Wv")], axis=1)   # (C, 3C)
    seg, segT = _seg_matrices(C, H)

    prep_weights = (wrkv,
                    as_md("w1"), as_md("w2"), params["w0"].astype(f32),
                    as_md("a1"), as_md("a2"), params["a0"].astype(f32),
                    as_md("v1"), as_md("v2"), params["v0"].astype(f32),
                    params["k_k"].astype(f32), params["k_a"].astype(f32),
                    seg, segT)
    fixed_prep = 2 * sum(int(w.size) * w.dtype.itemsize for w in prep_weights)
    per_row = 2 * C * (2 * 4 + 4 + 5 * md_b) + 16 * C * 4               # I/O + temporaries

    cand_T = (1024, 512, 256, 128, 64, 32, 16, 8)
    tT = next((c for c in cand_T if T % c == 0 and fixed_prep + c * per_row <= vmem_budget),
              None)
    if tT is None:
        tT = next((c for c in cand_T if T % c == 0), T)
    NT = T // tT

    row_spec = pl.BlockSpec((None, tT, C), lambda b, t: (b, t, 0))

    def wspec(arr):
        return pl.BlockSpec(arr.shape, lambda b, t: (0, 0))

    sds_md = jax.ShapeDtypeStruct((B, T, C), md)
    sds_f32 = jax.ShapeDtypeStruct((B, T, C), f32)

    # ---- prep ---------------------------------------------------------------------
    prep_inputs = (x, v_first) + prep_weights
    prep_specs = [row_spec, row_spec] + [wspec(w) for w in prep_weights]

    r, ld, k, v, aa, bb = pl.pallas_call(
        functools.partial(_prep_kernel, layer_id != 0, C, md),
        grid=(B, NT),
        in_specs=prep_specs,
        out_specs=(row_spec,) * 6,
        out_shape=(sds_md, sds_f32, sds_md, sds_md, sds_md, sds_md),
        compiler_params=pltpu.CompilerParams(
            dimension_semantics=("parallel", "parallel"),
            vmem_limit_bytes=vmem_budget),
    )(*prep_inputs)

    # ---- chunked recurrence ---------------------------------------------------------
    incl = jnp.asarray(np.tril(np.ones((L, L), np.float32)))            # cumsum matrix
    chunk_spec = pl.BlockSpec((None, L, Cg), lambda b, g, c: (b, c, g))
    mask_spec = pl.BlockSpec((None, L, 1), lambda b, g, c: (b, c, 0))
    incl_spec = pl.BlockSpec((L, L), lambda b, g, c: (0, 0))

    attn = pl.pallas_call(
        functools.partial(_rwkv7_chunk_kernel, Hg, N, L, md),
        grid=(B, G, NC),
        in_specs=[incl_spec] + [chunk_spec] * 6 + [mask_spec],
        out_specs=chunk_spec,
        out_shape=sds_md,
        scratch_shapes=[pltpu.VMEM((N, Cg), f32)],
        compiler_params=pltpu.CompilerParams(
            dimension_semantics=("parallel", "parallel", "arbitrary"),
            vmem_limit_bytes=vmem_budget),
    )(incl, r, ld, k, v, aa, bb, mask3)

    # ---- post -------------------------------------------------------------------------
    gain = (jax.nn.sigmoid(params["out_scale"]) * 100000.0).reshape(1, 1).astype(f32)
    post_weights = (params["r_k"].reshape(1, C).astype(f32),
                    params["ln_w"].reshape(1, C).astype(f32),
                    params["ln_b"].reshape(1, C).astype(f32),
                    as_md("Wo"), seg, segT)
    post_inputs = (attn, r, k, v) + post_weights + (gain,)
    post_specs = ([row_spec] * 4 + [wspec(w) for w in post_weights]
                  + [pl.BlockSpec(memory_space=pltpu.MemorySpace.SMEM)])

    out = pl.pallas_call(
        functools.partial(_post_kernel, N, 0.00064, md),
        grid=(B, NT),
        in_specs=post_specs,
        out_specs=row_spec,
        out_shape=sds_f32,
        compiler_params=pltpu.CompilerParams(
            dimension_semantics=("parallel", "parallel"),
            vmem_limit_bytes=vmem_budget),
    )(*post_inputs)

    v_first_out = v.astype(f32) if layer_id == 0 else v_first
    return out, v_first_out


# ------------------------------ pure-JAX reference -------------------------------------


def reference_forward(params, x, v_first, attention_mask, *, layer_id, head_size):
    B, T, C = x.shape
    N = head_size
    H = C // N
    r = x @ params["Wr"]
    k = x @ params["Wk"]
    v = x @ params["Wv"]
    w = -jax.nn.softplus(-(params["w0"] + jnp.tanh(x @ params["w1"]) @ params["w2"])) - 0.6
    if layer_id != 0:
        v = v + (v_first - v) * jax.nn.sigmoid(params["v0"] + x @ params["v1"] @ params["v2"])
    a = jax.nn.sigmoid(params["a0"] + x @ params["a1"] @ params["a2"])
    kk = (k * params["k_k"]).reshape(B, T, H, N)
    kk = kk / jnp.maximum(jnp.sqrt(jnp.sum(kk * kk, axis=-1, keepdims=True)), 1e-12)
    kk = kk.reshape(B, T, C)
    k_final = k * (1.0 + (a - 1.0) * params["k_a"])

    mask = attention_mask.astype(x.dtype)
    rr = r.reshape(B, T, H, N)
    ww = w.reshape(B, T, H, N)
    kx = k_final.reshape(B, T, H, N)
    vx = (v * mask[:, :, None]).reshape(B, T, H, N)
    ax = (-kk).reshape(B, T, H, N)
    bx = (kk * a).reshape(B, T, H, N)

    state = jnp.zeros((B, H, N, N), jnp.float32)
    outs = []
    for t in range(T):
        decay = jnp.exp(-jnp.exp(ww[:, t]))
        sa = jnp.einsum("bhij,bhj->bhi", state, ax[:, t])
        state = (state * decay[:, :, None, :]
                 + sa[:, :, :, None] * bx[:, t][:, :, None, :]
                 + vx[:, t][:, :, :, None] * kx[:, t][:, :, None, :])
        outs.append(jnp.einsum("bhij,bhj->bhi", state, rr[:, t]))
    attn = jnp.stack(outs, axis=1).reshape(B, T, C)

    g = attn.reshape(B * T, H, N)
    mean = g.mean(axis=-1, keepdims=True)
    var = ((g - mean) ** 2).mean(axis=-1, keepdims=True)
    g = (g - mean) / jnp.sqrt(var + 0.00064)
    xn = g.reshape(B, T, C) * params["ln_w"].reshape(1, 1, C) + params["ln_b"].reshape(1, 1, C)

    bonus = ((rr * kx * params["r_k"].reshape(1, 1, H, N)).sum(-1, keepdims=True)
             * v.reshape(B, T, H, N)).reshape(B, T, C)
    y = xn + bonus
    out = (y @ params["Wo"]) * (jax.nn.sigmoid(params["out_scale"]) * 100000.0)
    v_first_out = v if layer_id == 0 else v_first
    return out, v_first_out


# ------------------------------------ main ----------------------------------------------


if __name__ == "__main__":
    jax.config.update("jax_default_matmul_precision", "highest")

    B, T, C, N = 2, 8, 32, 16          # batch, seq, n_embd, head_size  -> H = 2 heads
    H = C // N
    n_layer, layer_id = 4, 1
    D = max(32, int(round(1.8 * C ** 0.5 / 32) * 32))    # D_DECAY_LORA == D_AAA_LORA
    Dv = max(32, int(round(1.3 * C ** 0.5 / 32) * 32))   # D_MV_LORA

    key = jax.random.PRNGKey(0)
    keys = jax.random.split(key, 14)

    def rnd(k, shape, scale):
        return jax.random.normal(k, shape, dtype=jnp.float32) * scale

    ratio_0_to_1 = layer_id / (n_layer - 1)
    n_idx = jnp.arange(C, dtype=jnp.float32)
    decay_speed = -7.0 + 5.0 * (n_idx / (C - 1)) ** (0.85 + 1.0 * ratio_0_to_1 ** 0.5)

    params = {
        "Wr": rnd(keys[0], (C, C), C ** -0.5),
        "Wk": rnd(keys[1], (C, C), C ** -0.5),
        "Wv": rnd(keys[2], (C, C), C ** -0.5),
        "Wo": rnd(keys[3], (C, C), C ** -0.5),
        "w1": rnd(keys[4], (C, D), 0.1),
        "w2": rnd(keys[5], (D, C), 0.1 / D ** 0.5),
        "w0": (decay_speed + 0.5).reshape(1, C),
        "a1": rnd(keys[6], (C, D), 0.1),
        "a2": rnd(keys[7], (D, C), 0.1 / D ** 0.5),
        "a0": jnp.zeros((1, C), jnp.float32),
        "v1": rnd(keys[8], (C, Dv), 0.1),
        "v2": rnd(keys[9], (Dv, C), 0.1 / Dv ** 0.5),
        "v0": jnp.ones((1, C), jnp.float32),
        "k_k": jnp.full((1, C), 0.85, jnp.float32),
        "k_a": jnp.ones((1, C), jnp.float32),
        "r_k": rnd(keys[10], (H, N), 0.1),
        "ln_w": jnp.ones((1, C), jnp.float32),
        "ln_b": jnp.zeros((1, C), jnp.float32),
        "out_scale": jnp.array(-11.5129, jnp.float32),
    }

    x = rnd(keys[11], (B, T, C), 0.5)
    v_first = rnd(keys[12], (B, T, C), 0.5)
    attention_mask = jnp.ones((B, T), jnp.float32).at[1, T - 2:].set(0.0)

    ref_out, ref_vf = reference_forward(params, x, v_first, attention_mask,
                                        layer_id=layer_id, head_size=N)

    # full-precision configuration: tight check vs. the sequential reference
    fwd_f32 = jax.jit(functools.partial(rwkv_tmix_x070_forward, layer_id=layer_id,
                                        head_size=N, matmul_dtype=jnp.float32))
    out, v_first_out = fwd_f32(params, x, v_first, attention_mask)
    jax.block_until_ready(out)
    np.testing.assert_allclose(np.asarray(out), np.asarray(ref_out), rtol=2e-2, atol=2e-2)
    np.testing.assert_allclose(np.asarray(v_first_out), np.asarray(ref_vf),
                               rtol=2e-2, atol=2e-2)

    # bf16 compute / bf16 intermediates (throughput configuration): loose sanity check
    fwd_bf16 = jax.jit(functools.partial(rwkv_tmix_x070_forward, layer_id=layer_id,
                                         head_size=N, matmul_dtype=jnp.bfloat16))
    out_bf, _ = fwd_bf16(params, x, v_first, attention_mask)
    jax.block_until_ready(out_bf)
    np.testing.assert_allclose(np.asarray(out_bf), np.asarray(ref_out), rtol=0.25, atol=0.25)

    print("KERNEL_OK")
</pallas_src>

<mosaic_0001>
module attributes {stable_mosaic.version = 11 : i64} {
  func.func @_rwkv7_chunk_kernel(%arg0: i32, %arg1: i32, %arg2: i32, %arg3: memref<8x8xf32, #tpu.memory_space<vmem>>, %arg4: memref<1x8x32xf32, #tpu.memory_space<vmem>>, %arg5: memref<1x8x32xf32, #tpu.memory_space<vmem>>, %arg6: memref<1x8x32xf32, #tpu.memory_space<vmem>>, %arg7: memref<1x8x32xf32, #tpu.memory_space<vmem>>, %arg8: memref<1x8x32xf32, #tpu.memory_space<vmem>>, %arg9: memref<1x8x32xf32, #tpu.memory_space<vmem>>, %arg10: memref<1x8x1xf32, #tpu.memory_space<vmem>>, %arg11: memref<1x8x32xf32, #tpu.memory_space<vmem>>, %arg12: memref<16x32xf32, #tpu.memory_space<vmem>>) attributes {dimension_semantics = [#tpu.dimension_semantics<parallel>, #tpu.dimension_semantics<parallel>, #tpu.dimension_semantics<arbitrary>], iteration_bounds = array<i64: 2, 1, 1>, scalar_prefetch = 0 : i64, scratch_operands = 1 : i64, tpu.core_type = #tpu.core_type<tc>, window_params = [{pipeline_mode = #tpu.pipeline_mode<synchronous>, transform_indices = @transform_0, window_bounds = array<i64: 8, 8>}, {transform_indices = @transform_1, window_bounds = array<i64: 1, 8, 32>}, {transform_indices = @transform_2, window_bounds = array<i64: 1, 8, 32>}, {transform_indices = @transform_3, window_bounds = array<i64: 1, 8, 32>}, {transform_indices = @transform_4, window_bounds = array<i64: 1, 8, 32>}, {transform_indices = @transform_5, window_bounds = array<i64: 1, 8, 32>}, {transform_indices = @transform_6, window_bounds = array<i64: 1, 8, 32>}, {transform_indices = @transform_7, window_bounds = array<i64: 1, 8, 1>}, {transform_indices = @transform_8, window_bounds = array<i64: 1, 8, 32>}]} {
    %c0_i32 = arith.constant 0 : i32
    %0 = arith.cmpi eq, %arg2, %c0_i32 : i32
    %1 = arith.extui %0 : i1 to i32
    %c0_i32_0 = arith.constant 0 : i32
    %2 = arith.cmpi ne, %1, %c0_i32_0 : i32
    scf.if %2 {
      %cst_83 = arith.constant 0.000000e+00 : f32
      %154 = vector.broadcast %cst_83 : f32 to vector<16x32xf32>
      %c0_84 = arith.constant 0 : index
      %c0_85 = arith.constant 0 : index
      %155 = vector.load %arg12[%c0_84, %c0_85] : memref<16x32xf32, #tpu.memory_space<vmem>>, vector<16x32xf32>
      tpu.vector_store %arg12[%c0_84, %c0_85], %154 {strides = array<i32>} : memref<16x32xf32, #tpu.memory_space<vmem>>, vector<16x32xf32>,
    } else {
    }
    %3 = tpu.iota {dimensions = array<i32: 0>} : vector<8x8xi32>
    %4 = tpu.iota {dimensions = array<i32: 1>} : vector<8x8xi32>
    %5 = arith.cmpi sge, %3, %4 : vector<8x8xi32>
    %6 = arith.cmpi sgt, %3, %4 : vector<8x8xi32>
    %c0 = arith.constant 0 : index
    %c0_1 = arith.constant 0 : index
    %c0_2 = arith.constant 0 : index
    %7 = vector.load %arg5[%c0, %c0_1, %c0_2] : memref<1x8x32xf32, #tpu.memory_space<vmem>>, vector<1x8x32xf32>
    %8 = vector.shape_cast %7 : vector<1x8x32xf32> to vector<8x32xf32>
    %c0_3 = arith.constant 0 : index
    %c0_4 = arith.constant 0 : index
    %9 = vector.load %arg3[%c0_3, %c0_4] : memref<8x8xf32, #tpu.memory_space<vmem>>, vector<8x8xf32>
    %cst = arith.constant dense<0.000000e+00> : vector<8x32xf32>
    %10 = tpu.matmul %9, %8, %cst {dimension_numbers = #tpu.dot_dimension_numbers<[1], [0], [0], [1], [0, 0, 1, 1], [], []>, precision = #tpu.contract_precision<fp32>} : vector<8x8xf32>, vector<8x32xf32>, vector<8x32xf32> -> vector<8x32xf32>
    %11 = arith.subf %10, %8 : vector<8x32xf32>
    %12 = math.exp %10 : vector<8x32xf32>
    %13 = math.exp %11 : vector<8x32xf32>
    %cst_5 = arith.constant 0.000000e+00 : f32
    %14 = vector.broadcast %cst_5 : f32 to vector<8x32xf32>
    %15 = arith.subf %14, %10 : vector<8x32xf32>
    %16 = math.exp %15 : vector<8x32xf32>
    %17 = vector.extract_strided_slice %12 {offsets = [7, 0], sizes = [1, 32], strides = [1, 1]} : vector<8x32xf32> to vector<1x32xf32>
    %18 = vector.broadcast %17 : vector<1x32xf32> to vector<8x32xf32>
    %19 = arith.mulf %18, %16 : vector<8x32xf32>
    %c0_6 = arith.constant 0 : index
    %c0_7 = arith.constant 0 : index
    %c0_8 = arith.constant 0 : index
    %20 = vector.load %arg7[%c0_6, %c0_7, %c0_8] : memref<1x8x32xf32, #tpu.memory_space<vmem>>, vector<1x8x32xf32>
    %21 = vector.shape_cast %20 : vector<1x8x32xf32> to vector<8x32xf32>
    %c0_9 = arith.constant 0 : index
    %c0_10 = arith.constant 0 : index
    %c0_11 = arith.constant 0 : index
    %22 = vector.load %arg10[%c0_9, %c0_10, %c0_11] : memref<1x8x1xf32, #tpu.memory_space<vmem>>, vector<1x8x1xf32>
    %23 = vector.shape_cast %22 : vector<1x8x1xf32> to vector<8x1xf32>
    %24 = vector.broadcast %23 : vector<8x1xf32> to vector<8x32xf32>
    %25 = arith.mulf %21, %24 : vector<8x32xf32>
    %c0_12 = arith.constant 0 : index
    %c0_13 = arith.constant 0 : index
    %c0_14 = arith.constant 0 : index
    %26 = vector.load %arg4[%c0_12, %c0_13, %c0_14] : memref<1x8x32xf32, #tpu.memory_space<vmem>>, vector<1x8x32xf32>
    %27 = vector.shape_cast %26 : vector<1x8x32xf32> to vector<8x32xf32>
    %28 = arith.mulf %27, %12 : vector<8x32xf32>
    %c0_15 = arith.constant 0 : index
    %c0_16 = arith.constant 0 : index
    %c0_17 = arith.constant 0 : index
    %29 = vector.load %arg8[%c0_15, %c0_16, %c0_17] : memref<1x8x32xf32, #tpu.memory_space<vmem>>, vector<1x8x32xf32>
    %30 = vector.shape_cast %29 : vector<1x8x32xf32> to vector<8x32xf32>
    %31 = arith.mulf %30, %13 : vector<8x32xf32>
    %c0_18 = arith.constant 0 : index
    %c0_19 = arith.constant 0 : index
    %c0_20 = arith.constant 0 : index
    %32 = vector.load %arg6[%c0_18, %c0_19, %c0_20] : memref<1x8x32xf32, #tpu.memory_space<vmem>>, vector<1x8x32xf32>
    %33 = vector.shape_cast %32 : vector<1x8x32xf32> to vector<8x32xf32>
    %34 = arith.mulf %33, %16 : vector<8x32xf32>
    %c0_21 = arith.constant 0 : index
    %c0_22 = arith.constant 0 : index
    %c0_23 = arith.constant 0 : index
    %35 = vector.load %arg9[%c0_21, %c0_22, %c0_23] : memref<1x8x32xf32, #tpu.memory_space<vmem>>, vector<1x8x32xf32>
    %36 = vector.shape_cast %35 : vector<1x8x32xf32> to vector<8x32xf32>
    %37 = arith.mulf %36, %16 : vector<8x32xf32>
    %c0_24 = arith.constant 0 : index
    %c0_25 = arith.constant 0 : index
    %c0_26 = arith.constant 0 : index
    %38 = vector.load %arg6[%c0_24, %c0_25, %c0_26] : memref<1x8x32xf32, #tpu.memory_space<vmem>>, vector<1x8x32xf32>
    %39 = vector.shape_cast %38 : vector<1x8x32xf32> to vector<8x32xf32>
    %40 = arith.mulf %39, %19 : vector<8x32xf32>
    %c0_27 = arith.constant 0 : index
    %c0_28 = arith.constant 0 : index
    %c0_29 = arith.constant 0 : index
    %41 = vector.load %arg9[%c0_27, %c0_28, %c0_29] : memref<1x8x32xf32, #tpu.memory_space<vmem>>, vector<1x8x32xf32>
    %42 = vector.shape_cast %41 : vector<1x8x32xf32> to vector<8x32xf32>
    %43 = arith.mulf %42, %19 : vector<8x32xf32>
    %c0_30 = arith.constant 0 : index
    %c0_31 = arith.constant 0 : index
    %44 = vector.load %arg12[%c0_30, %c0_31] : memref<16x32xf32, #tpu.memory_space<vmem>>, vector<16x16xf32>
    %45 = vector.extract_strided_slice %28 {offsets = [0, 0], sizes = [8, 16], strides = [1, 1]} : vector<8x32xf32> to vector<8x16xf32>
    %46 = vector.extract_strided_slice %31 {offsets = [0, 0], sizes = [8, 16], strides = [1, 1]} : vector<8x32xf32> to vector<8x16xf32>
    %47 = vector.extract_strided_slice %34 {offsets = [0, 0], sizes = [8, 16], strides = [1, 1]} : vector<8x32xf32> to vector<8x16xf32>
    %48 = vector.extract_strided_slice %37 {offsets = [0, 0], sizes = [8, 16], strides = [1, 1]} : vector<8x32xf32> to vector<8x16xf32>
    %49 = vector.extract_strided_slice %40 {offsets = [0, 0], sizes = [8, 16], strides = [1, 1]} : vector<8x32xf32> to vector<8x16xf32>
    %50 = vector.extract_strided_slice %43 {offsets = [0, 0], sizes = [8, 16], strides = [1, 1]} : vector<8x32xf32> to vector<8x16xf32>
    %51 = vector.extract_strided_slice %25 {offsets = [0, 0], sizes = [8, 16], strides = [1, 1]} : vector<8x32xf32> to vector<8x16xf32>
    %52 = tpu.transpose %47, [1, 0] : vector<8x16xf32> -> vector<16x8xf32>
    %cst_32 = arith.constant dense<0.000000e+00> : vector<8x8xf32>
    %53 = tpu.matmul %46, %52, %cst_32 {dimension_numbers = #tpu.dot_dimension_numbers<[1], [0], [0], [1], [0, 0, 1, 1], [], []>, precision = #tpu.contract_precision<fp32>} : vector<8x16xf32>, vector<16x8xf32>, vector<8x8xf32> -> vector<8x8xf32>
    %cst_33 = arith.constant 0.000000e+00 : f32
    %54 = vector.broadcast %cst_33 : f32 to vector<8x8xf32>
    %55 = arith.select %6, %53, %54 : vector<8x8xi1>, vector<8x8xf32>
    %56 = tpu.transpose %48, [1, 0] : vector<8x16xf32> -> vector<16x8xf32>
    %cst_34 = arith.constant dense<0.000000e+00> : vector<8x8xf32>
    %57 = tpu.matmul %46, %56, %cst_34 {dimension_numbers = #tpu.dot_dimension_numbers<[1], [0], [0], [1], [0, 0, 1, 1], [], []>, precision = #tpu.contract_precision<fp32>} : vector<8x16xf32>, vector<16x8xf32>, vector<8x8xf32> -> vector<8x8xf32>
    %cst_35 = arith.constant 0.000000e+00 : f32
    %58 = vector.broadcast %cst_35 : f32 to vector<8x8xf32>
    %59 = arith.select %6, %57, %58 : vector<8x8xi1>, vector<8x8xf32>
    %60 = tpu.transpose %47, [1, 0] : vector<8x16xf32> -> vector<16x8xf32>
    %cst_36 = arith.constant dense<0.000000e+00> : vector<8x8xf32>
    %61 = tpu.matmul %45, %60, %cst_36 {dimension_numbers = #tpu.dot_dimension_numbers<[1], [0], [0], [1], [0, 0, 1, 1], [], []>, precision = #tpu.contract_precision<fp32>} : vector<8x16xf32>, vector<16x8xf32>, vector<8x8xf32> -> vector<8x8xf32>
    %cst_37 = arith.constant 0.000000e+00 : f32
    %62 = vector.broadcast %cst_37 : f32 to vector<8x8xf32>
    %63 = arith.select %5, %61, %62 : vector<8x8xi1>, vector<8x8xf32>
    %64 = tpu.transpose %48, [1, 0] : vector<8x16xf32> -> vector<16x8xf32>
    %cst_38 = arith.constant dense<0.000000e+00> : vector<8x8xf32>
    %65 = tpu.matmul %45, %64, %cst_38 {dimension_numbers = #tpu.dot_dimension_numbers<[1], [0], [0], [1], [0, 0, 1, 1], [], []>, precision = #tpu.contract_precision<fp32>} : vector<8x16xf32>, vector<16x8xf32>, vector<8x8xf32> -> vector<8x8xf32>
    %cst_39 = arith.constant 0.000000e+00 : f32
    %66 = vector.broadcast %cst_39 : f32 to vector<8x8xf32>
    %67 = arith.select %5, %65, %66 : vector<8x8xi1>, vector<8x8xf32>
    %68 = tpu.transpose %44, [1, 0] : vector<16x16xf32> -> vector<16x16xf32>
    %cst_40 = arith.constant dense<0.000000e+00> : vector<8x16xf32>
    %69 = tpu.matmul %46, %68, %cst_40 {dimension_numbers = #tpu.dot_dimension_numbers<[1], [0], [0], [1], [0, 0, 1, 1], [], []>, precision = #tpu.contract_precision<fp32>} : vector<8x16xf32>, vector<16x16xf32>, vector<8x16xf32> -> vector<8x16xf32>
    %cst_41 = arith.constant dense<0.000000e+00> : vector<8x16xf32>
    %70 = tpu.matmul %55, %51, %cst_41 {dimension_numbers = #tpu.dot_dimension_numbers<[1], [0], [0], [1], [0, 0, 1, 1], [], []>, precision = #tpu.contract_precision<fp32>} : vector<8x8xf32>, vector<8x16xf32>, vector<8x16xf32> -> vector<8x16xf32>
    %71 = arith.addf %69, %70 : vector<8x16xf32>
    %cst_42 = arith.constant dense<0.000000e+00> : vector<8x16xf32>
    %72 = tpu.matmul %59, %71, %cst_42 {dimension_numbers = #tpu.dot_dimension_numbers<[1], [0], [0], [1], [0, 0, 1, 1], [], []>, precision = #tpu.contract_precision<fp32>} : vector<8x8xf32>, vector<8x16xf32>, vector<8x16xf32> -> vector<8x16xf32>
    %73 = arith.addf %71, %72 : vector<8x16xf32>
    %cst_43 = arith.constant dense<0.000000e+00> : vector<8x8xf32>
    %74 = tpu.matmul %59, %59, %cst_43 {dimension_numbers = #tpu.dot_dimension_numbers<[1], [0], [0], [1], [0, 0, 1, 1], [], []>, precision = #tpu.contract_precision<fp32>} : vector<8x8xf32>, vector<8x8xf32>, vector<8x8xf32> -> vector<8x8xf32>
    %cst_44 = arith.constant dense<0.000000e+00> : vector<8x16xf32>
    %75 = tpu.matmul %74, %73, %cst_44 {dimension_numbers = #tpu.dot_dimension_numbers<[1], [0], [0], [1], [0, 0, 1, 1], [], []>, precision = #tpu.contract_precision<fp32>} : vector<8x8xf32>, vector<8x16xf32>, vector<8x16xf32> -> vector<8x16xf32>
    %76 = arith.addf %73, %75 : vector<8x16xf32>
    %cst_45 = arith.constant dense<0.000000e+00> : vector<8x8xf32>
    %77 = tpu.matmul %74, %74, %cst_45 {dimension_numbers = #tpu.dot_dimension_numbers<[1], [0], [0], [1], [0, 0, 1, 1], [], []>, precision = #tpu.contract_precision<fp32>} : vector<8x8xf32>, vector<8x8xf32>, vector<8x8xf32> -> vector<8x8xf32>
    %cst_46 = arith.constant dense<0.000000e+00> : vector<8x16xf32>
    %78 = tpu.matmul %77, %76, %cst_46 {dimension_numbers = #tpu.dot_dimension_numbers<[1], [0], [0], [1], [0, 0, 1, 1], [], []>, precision = #tpu.contract_precision<fp32>} : vector<8x8xf32>, vector<8x16xf32>, vector<8x16xf32> -> vector<8x16xf32>
    %79 = arith.addf %76, %78 : vector<8x16xf32>
    %80 = tpu.transpose %44, [1, 0] : vector<16x16xf32> -> vector<16x16xf32>
    %cst_47 = arith.constant dense<0.000000e+00> : vector<8x16xf32>
    %81 = tpu.matmul %45, %80, %cst_47 {dimension_numbers = #tpu.dot_dimension_numbers<[1], [0], [0], [1], [0, 0, 1, 1], [], []>, precision = #tpu.contract_precision<fp32>} : vector<8x16xf32>, vector<16x16xf32>, vector<8x16xf32> -> vector<8x16xf32>
    %cst_48 = arith.constant dense<0.000000e+00> : vector<8x16xf32>
    %82 = tpu.matmul %63, %51, %cst_48 {dimension_numbers = #tpu.dot_dimension_numbers<[1], [0], [0], [1], [0, 0, 1, 1], [], []>, precision = #tpu.contract_precision<fp32>} : vector<8x8xf32>, vector<8x16xf32>, vector<8x16xf32> -> vector<8x16xf32>
    %83 = arith.addf %81, %82 : vector<8x16xf32>
    %cst_49 = arith.constant dense<0.000000e+00> : vector<8x16xf32>
    %84 = tpu.matmul %67, %79, %cst_49 {dimension_numbers = #tpu.dot_dimension_numbers<[1], [0], [0], [1], [0, 0, 1, 1], [], []>, precision = #tpu.contract_precision<fp32>} : vector<8x8xf32>, vector<8x16xf32>, vector<8x16xf32> -> vector<8x16xf32>
    %85 = arith.addf %83, %84 : vector<8x16xf32>
    %c0_50 = arith.constant 0 : index
    %c0_51 = arith.constant 0 : index
    %c0_52 = arith.constant 0 : index
    %86 = vector.load %arg11[%c0_50, %c0_51, %c0_52] : memref<1x8x32xf32, #tpu.memory_space<vmem>>, vector<1x8x16xf32>
    %87 = vector.shape_cast %86 : vector<1x8x16xf32> to vector<8x16xf32>
    %88 = vector.shape_cast %85 : vector<8x16xf32> to vector<1x8x16xf32>
    tpu.vector_store %arg11[%c0_50, %c0_51, %c0_52], %88 {strides = array<i32>} : memref<1x8x32xf32, #tpu.memory_space<vmem>>, vector<1x8x16xf32>,
    %89 = vector.extract_strided_slice %17 {offsets = [0, 0], sizes = [1, 16], strides = [1, 1]} : vector<1x32xf32> to vector<1x16xf32>
    %90 = vector.broadcast %89 : vector<1x16xf32> to vector<16x16xf32>
    %91 = arith.mulf %44, %90 : vector<16x16xf32>
    %92 = tpu.transpose %51, [1, 0] : vector<8x16xf32> -> vector<16x8xf32>
    %cst_53 = arith.constant dense<0.000000e+00> : vector<16x16xf32>
    %93 = tpu.matmul %92, %49, %cst_53 {dimension_numbers = #tpu.dot_dimension_numbers<[1], [0], [0], [1], [0, 0, 1, 1], [], []>, precision = #tpu.contract_precision<fp32>} : vector<16x8xf32>, vector<8x16xf32>, vector<16x16xf32> -> vector<16x16xf32>
    %94 = arith.addf %91, %93 : vector<16x16xf32>
    %95 = tpu.transpose %79, [1, 0] : vector<8x16xf32> -> vector<16x8xf32>
    %cst_54 = arith.constant dense<0.000000e+00> : vector<16x16xf32>
    %96 = tpu.matmul %95, %50, %cst_54 {dimension_numbers = #tpu.dot_dimension_numbers<[1], [0], [0], [1], [0, 0, 1, 1], [], []>, precision = #tpu.contract_precision<fp32>} : vector<16x8xf32>, vector<8x16xf32>, vector<16x16xf32> -> vector<16x16xf32>
    %97 = arith.addf %94, %96 : vector<16x16xf32>
    %c0_55 = arith.constant 0 : index
    %c0_56 = arith.constant 0 : index
    %98 = vector.load %arg12[%c0_55, %c0_56] : memref<16x32xf32, #tpu.memory_space<vmem>>, vector<16x16xf32>
    tpu.vector_store %arg12[%c0_55, %c0_56], %97 {strides = array<i32>} : memref<16x32xf32, #tpu.memory_space<vmem>>, vector<16x16xf32>,
    %c0_57 = arith.constant 0 : index
    %c16 = arith.constant 16 : index
    %99 = vector.load %arg12[%c0_57, %c16] : memref<16x32xf32, #tpu.memory_space<vmem>>, vector<16x16xf32>
    %100 = vector.extract_strided_slice %28 {offsets = [0, 16], sizes = [8, 16], strides = [1, 1]} : vector<8x32xf32> to vector<8x16xf32>
    %101 = vector.extract_strided_slice %31 {offsets = [0, 16], sizes = [8, 16], strides = [1, 1]} : vector<8x32xf32> to vector<8x16xf32>
    %102 = vector.extract_strided_slice %34 {offsets = [0, 16], sizes = [8, 16], strides = [1, 1]} : vector<8x32xf32> to vector<8x16xf32>
    %103 = vector.extract_strided_slice %37 {offsets = [0, 16], sizes = [8, 16], strides = [1, 1]} : vector<8x32xf32> to vector<8x16xf32>
    %104 = vector.extract_strided_slice %40 {offsets = [0, 16], sizes = [8, 16], strides = [1, 1]} : vector<8x32xf32> to vector<8x16xf32>
    %105 = vector.extract_strided_slice %43 {offsets = [0, 16], sizes = [8, 16], strides = [1, 1]} : vector<8x32xf32> to vector<8x16xf32>
    %106 = vector.extract_strided_slice %25 {offsets = [0, 16], sizes = [8, 16], strides = [1, 1]} : vector<8x32xf32> to vector<8x16xf32>
    %107 = tpu.transpose %102, [1, 0] : vector<8x16xf32> -> vector<16x8xf32>
    %cst_58 = arith.constant dense<0.000000e+00> : vector<8x8xf32>
    %108 = tpu.matmul %101, %107, %cst_58 {dimension_numbers = #tpu.dot_dimension_numbers<[1], [0], [0], [1], [0, 0, 1, 1], [], []>, precision = #tpu.contract_precision<fp32>} : vector<8x16xf32>, vector<16x8xf32>, vector<8x8xf32> -> vector<8x8xf32>
    %cst_59 = arith.constant 0.000000e+00 : f32
    %109 = vector.broadcast %cst_59 : f32 to vector<8x8xf32>
    %110 = arith.select %6, %108, %109 : vector<8x8xi1>, vector<8x8xf32>
    %111 = tpu.transpose %103, [1, 0] : vector<8x16xf32> -> vector<16x8xf32>
    %cst_60 = arith.constant dense<0.000000e+00> : vector<8x8xf32>
    %112 = tpu.matmul %101, %111, %cst_60 {dimension_numbers = #tpu.dot_dimension_numbers<[1], [0], [0], [1], [0, 0, 1, 1], [], []>, precision = #tpu.contract_precision<fp32>} : vector<8x16xf32>, vector<16x8xf32>, vector<8x8xf32> -> vector<8x8xf32>
    %cst_61 = arith.constant 0.000000e+00 : f32
    %113 = vector.broadcast %cst_61 : f32 to vector<8x8xf32>
    %114 = arith.select %6, %112, %113 : vector<8x8xi1>, vector<8x8xf32>
    %115 = tpu.transpose %102, [1, 0] : vector<8x16xf32> -> vector<16x8xf32>
    %cst_62 = arith.constant dense<0.000000e+00> : vector<8x8xf32>
    %116 = tpu.matmul %100, %115, %cst_62 {dimension_numbers = #tpu.dot_dimension_numbers<[1], [0], [0], [1], [0, 0, 1, 1], [], []>, precision = #tpu.contract_precision<fp32>} : vector<8x16xf32>, vector<16x8xf32>, vector<8x8xf32> -> vector<8x8xf32>
    %cst_63 = arith.constant 0.000000e+00 : f32
    %117 = vector.broadcast %cst_63 : f32 to vector<8x8xf32>
    %118 = arith.select %5, %116, %117 : vector<8x8xi1>, vector<8x8xf32>
    %119 = tpu.transpose %103, [1, 0] : vector<8x16xf32> -> vector<16x8xf32>
    %cst_64 = arith.constant dense<0.000000e+00> : vector<8x8xf32>
    %120 = tpu.matmul %100, %119, %cst_64 {dimension_numbers = #tpu.dot_dimension_numbers<[1], [0], [0], [1], [0, 0, 1, 1], [], []>, precision = #tpu.contract_precision<fp32>} : vector<8x16xf32>, vector<16x8xf32>, vector<8x8xf32> -> vector<8x8xf32>
    %cst_65 = arith.constant 0.000000e+00 : f32
    %121 = vector.broadcast %cst_65 : f32 to vector<8x8xf32>
    %122 = arith.select %5, %120, %121 : vector<8x8xi1>, vector<8x8xf32>
    %123 = tpu.transpose %99, [1, 0] : vector<16x16xf32> -> vector<16x16xf32>
    %cst_66 = arith.constant dense<0.000000e+00> : vector<8x16xf32>
    %124 = tpu.matmul %101, %123, %cst_66 {dimension_numbers = #tpu.dot_dimension_numbers<[1], [0], [0], [1], [0, 0, 1, 1], [], []>, precision = #tpu.contract_precision<fp32>} : vector<8x16xf32>, vector<16x16xf32>, vector<8x16xf32> -> vector<8x16xf32>
    %cst_67 = arith.constant dense<0.000000e+00> : vector<8x16xf32>
    %125 = tpu.matmul %110, %106, %cst_67 {dimension_numbers = #tpu.dot_dimension_numbers<[1], [0], [0], [1], [0, 0, 1, 1], [], []>, precision = #tpu.contract_precision<fp32>} : vector<8x8xf32>, vector<8x16xf32>, vector<8x16xf32> -> vector<8x16xf32>
    %126 = arith.addf %124, %125 : vector<8x16xf32>
    %cst_68 = arith.constant dense<0.000000e+00> : vector<8x16xf32>
    %127 = tpu.matmul %114, %126, %cst_68 {dimension_numbers = #tpu.dot_dimension_numbers<[1], [0], [0], [1], [0, 0, 1, 1], [], []>, precision = #tpu.contract_precision<fp32>} : vector<8x8xf32>, vector<8x16xf32>, vector<8x16xf32> -> vector<8x16xf32>
    %128 = arith.addf %126, %127 : vector<8x16xf32>
    %cst_69 = arith.constant dense<0.000000e+00> : vector<8x8xf32>
    %129 = tpu.matmul %114, %114, %cst_69 {dimension_numbers = #tpu.dot_dimension_numbers<[1], [0], [0], [1], [0, 0, 1, 1], [], []>, precision = #tpu.contract_precision<fp32>} : vector<8x8xf32>, vector<8x8xf32>, vector<8x8xf32> -> vector<8x8xf32>
    %cst_70 = arith.constant dense<0.000000e+00> : vector<8x16xf32>
    %130 = tpu.matmul %129, %128, %cst_70 {dimension_numbers = #tpu.dot_dimension_numbers<[1], [0], [0], [1], [0, 0, 1, 1], [], []>, precision = #tpu.contract_precision<fp32>} : vector<8x8xf32>, vector<8x16xf32>, vector<8x16xf32> -> vector<8x16xf32>
    %131 = arith.addf %128, %130 : vector<8x16xf32>
    %cst_71 = arith.constant dense<0.000000e+00> : vector<8x8xf32>
    %132 = tpu.matmul %129, %129, %cst_71 {dimension_numbers = #tpu.dot_dimension_numbers<[1], [0], [0], [1], [0, 0, 1, 1], [], []>, precision = #tpu.contract_precision<fp32>} : vector<8x8xf32>, vector<8x8xf32>, vector<8x8xf32> -> vector<8x8xf32>
    %cst_72 = arith.constant dense<0.000000e+00> : vector<8x16xf32>
    %133 = tpu.matmul %132, %131, %cst_72 {dimension_numbers = #tpu.dot_dimension_numbers<[1], [0], [0], [1], [0, 0, 1, 1], [], []>, precision = #tpu.contract_precision<fp32>} : vector<8x8xf32>, vector<8x16xf32>, vector<8x16xf32> -> vector<8x16xf32>
    %134 = arith.addf %131, %133 : vector<8x16xf32>
    %135 = tpu.transpose %99, [1, 0] : vector<16x16xf32> -> vector<16x16xf32>
    %cst_73 = arith.constant dense<0.000000e+00> : vector<8x16xf32>
    %136 = tpu.matmul %100, %135, %cst_73 {dimension_numbers = #tpu.dot_dimension_numbers<[1], [0], [0], [1], [0, 0, 1, 1], [], []>, precision = #tpu.contract_precision<fp32>} : vector<8x16xf32>, vector<16x16xf32>, vector<8x16xf32> -> vector<8x16xf32>
    %cst_74 = arith.constant dense<0.000000e+00> : vector<8x16xf32>
    %137 = tpu.matmul %118, %106, %cst_74 {dimension_numbers = #tpu.dot_dimension_numbers<[1], [0], [0], [1], [0, 0, 1, 1], [], []>, precision = #tpu.contract_precision<fp32>} : vector<8x8xf32>, vector<8x16xf32>, vector<8x16xf32> -> vector<8x16xf32>
    %138 = arith.addf %136, %137 : vector<8x16xf32>
    %cst_75 = arith.constant dense<0.000000e+00> : vector<8x16xf32>
    %139 = tpu.matmul %122, %134, %cst_75 {dimension_numbers = #tpu.dot_dimension_numbers<[1], [0], [0], [1], [0, 0, 1, 1], [], []>, precision = #tpu.contract_precision<fp32>} : vector<8x8xf32>, vector<8x16xf32>, vector<8x16xf32> -> vector<8x16xf32>
    %140 = arith.addf %138, %139 : vector<8x16xf32>
    %c0_76 = arith.constant 0 : index
    %c0_77 = arith.constant 0 : index
    %c16_78 = arith.constant 16 : index
    %141 = vector.load %arg11[%c0_76, %c0_77, %c16_78] : memref<1x8x32xf32, #tpu.memory_space<vmem>>, vector<1x8x16xf32>
    %142 = vector.shape_cast %141 : vector<1x8x16xf32> to vector<8x16xf32>
    %143 = vector.shape_cast %140 : vector<8x16xf32> to vector<1x8x16xf32>
    tpu.vector_store %arg11[%c0_76, %c0_77, %c16_78], %143 {strides = array<i32>} : memref<1x8x32xf32, #tpu.memory_space<vmem>>, vector<1x8x16xf32>,
    %144 = vector.extract_strided_slice %17 {offsets = [0, 16], sizes = [1, 16], strides = [1, 1]} : vector<1x32xf32> to vector<1x16xf32>
    %145 = vector.broadcast %144 : vector<1x16xf32> to vector<16x16xf32>
    %146 = arith.mulf %99, %145 : vector<16x16xf32>
    %147 = tpu.transpose %106, [1, 0] : vector<8x16xf32> -> vector<16x8xf32>
    %cst_79 = arith.constant dense<0.000000e+00> : vector<16x16xf32>
    %148 = tpu.matmul %147, %104, %cst_79 {dimension_numbers = #tpu.dot_dimension_numbers<[1], [0], [0], [1], [0, 0, 1, 1], [], []>, precision = #tpu.contract_precision<fp32>} : vector<16x8xf32>, vector<8x16xf32>, vector<16x16xf32> -> vector<16x16xf32>
    %149 = arith.addf %146, %148 : vector<16x16xf32>
    %150 = tpu.transpose %134, [1, 0] : vector<8x16xf32> -> vector<16x8xf32>
    %cst_80 = arith.constant dense<0.000000e+00> : vector<16x16xf32>
    %151 = tpu.matmul %150, %105, %cst_80 {dimension_numbers = #tpu.dot_dimension_numbers<[1], [0], [0], [1], [0, 0, 1, 1], [], []>, precision = #tpu.contract_precision<fp32>} : vector<16x8xf32>, vector<8x16xf32>, vector<16x16xf32> -> vector<16x16xf32>
    %152 = arith.addf %149, %151 : vector<16x16xf32>
    %c0_81 = arith.constant 0 : index
    %c16_82 = arith.constant 16 : index
    %153 = vector.load %arg12[%c0_81, %c16_82] : memref<16x32xf32, #tpu.memory_space<vmem>>, vector<16x16xf32>
    tpu.vector_store %arg12[%c0_81, %c16_82], %152 {strides = array<i32>} : memref<16x32xf32, #tpu.memory_space<vmem>>, vector<16x16xf32>,
    return
  }
  func.func @transform_0(%arg0: i32, %arg1: i32, %arg2: i32) -> (i32, i32) {
    %c0_i32 = arith.constant 0 : i32
    %c0_i32_0 = arith.constant 0 : i32
    %c0_i32_1 = arith.constant 0 : i32
    return %c0_i32, %c0_i32_0 : i32, i32
  }
  func.func @transform_1(%arg0: i32, %arg1: i32, %arg2: i32) -> (i32, i32, i32) {
    %c0_i32 = arith.constant 0 : i32
    return %arg0, %arg2, %arg1 : i32, i32, i32
  }
  func.func @transform_2(%arg0: i32, %arg1: i32, %arg2: i32) -> (i32, i32, i32) {
    %c0_i32 = arith.constant 0 : i32
    return %arg0, %arg2, %arg1 : i32, i32, i32
  }
  func.func @transform_3(%arg0: i32, %arg1: i32, %arg2: i32) -> (i32, i32, i32) {
    %c0_i32 = arith.constant 0 : i32
    return %arg0, %arg2, %arg1 : i32, i32, i32
  }
  func.func @transform_4(%arg0: i32, %arg1: i32, %arg2: i32) -> (i32, i32, i32) {
    %c0_i32 = arith.constant 0 : i32
    return %arg0, %arg2, %arg1 : i32, i32, i32
  }
  func.func @transform_5(%arg0: i32, %arg1: i32, %arg2: i32) -> (i32, i32, i32) {
    %c0_i32 = arith.constant 0 : i32
    return %arg0, %arg2, %arg1 : i32, i32, i32
  }
  func.func @transform_6(%arg0: i32, %arg1: i32, %arg2: i32) -> (i32, i32, i32) {
    %c0_i32 = arith.constant 0 : i32
    return %arg0, %arg2, %arg1 : i32, i32, i32
  }
  func.func @transform_7(%arg0: i32, %arg1: i32, %arg2: i32) -> (i32, i32, i32) {
    %c0_i32 = arith.constant 0 : i32
    %c0_i32_0 = arith.constant 0 : i32
    return %arg0, %arg2, %c0_i32 : i32, i32, i32
  }
  func.func @transform_8(%arg0: i32, %arg1: i32, %arg2: i32) -> (i32, i32, i32) {
    %c0_i32 = arith.constant 0 : i32
    return %arg0, %arg2, %arg1 : i32, i32, i32
  }
}

module attributes {stable_mosaic.version = 11 : i64} {
  func.func @_prep_kernel(%arg0: i32, %arg1: i32, %arg2: memref<1x8x32xf32, #tpu.memory_space<vmem>>, %arg3: memref<1x8x32xf32, #tpu.memory_space<vmem>>, %arg4: memref<32x96xf32, #tpu.memory_space<vmem>>, %arg5: memref<32x32xf32, #tpu.memory_space<vmem>>, %arg6: memref<32x32xf32, #tpu.memory_space<vmem>>, %arg7: memref<1x32xf32, #tpu.memory_space<vmem>>, %arg8: memref<32x32xf32, #tpu.memory_space<vmem>>, %arg9: memref<32x32xf32, #tpu.memory_space<vmem>>, %arg10: memref<1x32xf32, #tpu.memory_space<vmem>>, %arg11: memref<32x32xf32, #tpu.memory_space<vmem>>, %arg12: memref<32x32xf32, #tpu.memory_space<vmem>>, %arg13: memref<1x32xf32, #tpu.memory_space<vmem>>, %arg14: memref<1x32xf32, #tpu.memory_space<vmem>>, %arg15: memref<1x32xf32, #tpu.memory_space<vmem>>, %arg16: memref<32x2xf32, #tpu.memory_space<vmem>>, %arg17: memref<2x32xf32, #tpu.memory_space<vmem>>, %arg18: memref<1x8x32xf32, #tpu.memory_space<vmem>>, %arg19: memref<1x8x32xf32, #tpu.memory_space<vmem>>, %arg20: memref<1x8x32xf32, #tpu.memory_space<vmem>>, %arg21: memref<1x8x32xf32, #tpu.memory_space<vmem>>, %arg22: memref<1x8x32xf32, #tpu.memory_space<vmem>>, %arg23: memref<1x8x32xf32, #tpu.memory_space<vmem>>) attributes {dimension_semantics = [#tpu.dimension_semantics<parallel>, #tpu.dimension_semantics<parallel>], iteration_bounds = array<i64: 2, 1>, scalar_prefetch = 0 : i64, scratch_operands = 0 : i64, tpu.core_type = #tpu.core_type<tc>, window_params = [{transform_indices = @transform_0, window_bounds = array<i64: 1, 8, 32>}, {transform_indices = @transform_1, window_bounds = array<i64: 1, 8, 32>}, {pipeline_mode = #tpu.pipeline_mode<synchronous>, transform_indices = @transform_2, window_bounds = array<i64: 32, 96>}, {pipeline_mode = #tpu.pipeline_mode<synchronous>, transform_indices = @transform_3, window_bounds = array<i64: 32, 32>}, {pipeline_mode = #tpu.pipeline_mode<synchronous>, transform_indices = @transform_4, window_bounds = array<i64: 32, 32>}, {pipeline_mode = #tpu.pipeline_mode<synchronous>, transform_indices = @transform_5, window_bounds = array<i64: 1, 32>}, {pipeline_mode = #tpu.pipeline_mode<synchronous>, transform_indices = @transform_6, window_bounds = array<i64: 32, 32>}, {pipeline_mode = #tpu.pipeline_mode<synchronous>, transform_indices = @transform_7, window_bounds = array<i64: 32, 32>}, {pipeline_mode = #tpu.pipeline_mode<synchronous>, transform_indices = @transform_8, window_bounds = array<i64: 1, 32>}, {pipeline_mode = #tpu.pipeline_mode<synchronous>, transform_indices = @transform_9, window_bounds = array<i64: 32, 32>}, {pipeline_mode = #tpu.pipeline_mode<synchronous>, transform_indices = @transform_10, window_bounds = array<i64: 32, 32>}, {pipeline_mode = #tpu.pipeline_mode<synchronous>, transform_indices = @transform_11, window_bounds = array<i64: 1, 32>}, {pipeline_mode = #tpu.pipeline_mode<synchronous>, transform_indices = @transform_12, window_bounds = array<i64: 1, 32>}, {pipeline_mode = #tpu.pipeline_mode<synchronous>, transform_indices = @transform_13, window_bounds = array<i64: 1, 32>}, {pipeline_mode = #tpu.pipeline_mode<synchronous>, transform_indices = @transform_14, window_bounds = array<i64: 32, 2>}, {pipeline_mode = #tpu.pipeline_mode<synchronous>, transform_indices = @transform_15, window_bounds = array<i64: 2, 32>}, {transform_indices = @transform_16, window_bounds = array<i64: 1, 8, 32>}, {transform_indices = @transform_17, window_bounds = array<i64: 1, 8, 32>}, {transform_indices = @transform_18, window_bounds = array<i64: 1, 8, 32>}, {transform_indices = @transform_19, window_bounds = array<i64: 1, 8, 32>}, {transform_indices = @transform_20, window_bounds = array<i64: 1, 8, 32>}, {transform_indices = @transform_21, window_bounds = array<i64: 1, 8, 32>}]} {
    %c0 = arith.constant 0 : index
    %c0_0 = arith.constant 0 : index
    %c0_1 = arith.constant 0 : index
    %0 = vector.load %arg2[%c0, %c0_0, %c0_1] : memref<1x8x32xf32, #tpu.memory_space<vmem>>, vector<1x8x32xf32>
    %1 = vector.shape_cast %0 : vector<1x8x32xf32> to vector<8x32xf32>
    %c0_2 = arith.constant 0 : index
    %c0_3 = arith.constant 0 : index
    %2 = vector.load %arg4[%c0_2, %c0_3] : memref<32x96xf32, #tpu.memory_space<vmem>>, vector<32x96xf32>
    %cst = arith.constant dense<0.000000e+00> : vector<8x96xf32>
    %3 = tpu.matmul %1, %2, %cst {dimension_numbers = #tpu.dot_dimension_numbers<[1], [0], [0], [1], [0, 0, 1, 1], [], []>, precision = #tpu.contract_precision<fp32>} : vector<8x32xf32>, vector<32x96xf32>, vector<8x96xf32> -> vector<8x96xf32>
    %4 = vector.extract_strided_slice %3 {offsets = [0, 0], sizes = [8, 32], strides = [1, 1]} : vector<8x96xf32> to vector<8x32xf32>
    %5 = vector.extract_strided_slice %3 {offsets = [0, 32], sizes = [8, 32], strides = [1, 1]} : vector<8x96xf32> to vector<8x32xf32>
    %6 = vector.extract_strided_slice %3 {offsets = [0, 64], sizes = [8, 32], strides = [1, 1]} : vector<8x96xf32> to vector<8x32xf32>
    %c0_4 = arith.constant 0 : index
    %c0_5 = arith.constant 0 : index
    %7 = vector.load %arg5[%c0_4, %c0_5] : memref<32x32xf32, #tpu.memory_space<vmem>>, vector<32x32xf32>
    %cst_6 = arith.constant dense<0.000000e+00> : vector<8x32xf32>
    %8 = tpu.matmul %1, %7, %cst_6 {dimension_numbers = #tpu.dot_dimension_numbers<[1], [0], [0], [1], [0, 0, 1, 1], [], []>, precision = #tpu.contract_precision<fp32>} : vector<8x32xf32>, vector<32x32xf32>, vector<8x32xf32> -> vector<8x32xf32>
    %9 = math.tanh %8 : vector<8x32xf32>
    %c0_7 = arith.constant 0 : index
    %c0_8 = arith.constant 0 : index
    %10 = vector.load %arg6[%c0_7, %c0_8] : memref<32x32xf32, #tpu.memory_space<vmem>>, vector<32x32xf32>
    %cst_9 = arith.constant dense<0.000000e+00> : vector<8x32xf32>
    %11 = tpu.matmul %9, %10, %cst_9 {dimension_numbers = #tpu.dot_dimension_numbers<[1], [0], [0], [1], [0, 0, 1, 1], [], []>, precision = #tpu.contract_precision<fp32>} : vector<8x32xf32>, vector<32x32xf32>, vector<8x32xf32> -> vector<8x32xf32>
    %c0_10 = arith.constant 0 : index
    %c0_11 = arith.constant 0 : index
    %12 = vector.load %arg7[%c0_10, %c0_11] : memref<1x32xf32, #tpu.memory_space<vmem>>, vector<1x32xf32>
    %13 = vector.broadcast %12 : vector<1x32xf32> to vector<8x32xf32>
    %14 = arith.addf %13, %11 : vector<8x32xf32>
    %cst_12 = arith.constant 0.000000e+00 : f32
    %15 = vector.broadcast %cst_12 : f32 to vector<8x32xf32>
    %16 = arith.subf %15, %14 : vector<8x32xf32>
    %cst_13 = arith.constant 0.000000e+00 : f32
    %17 = vector.broadcast %cst_13 : f32 to vector<8x32xf32>
    %18 = arith.maximumf %16, %17 : vector<8x32xf32>
    %19 = vector.broadcast %cst_13 : f32 to vector<8x32xf32>
    %20 = arith.subf %16, %19 : vector<8x32xf32>
    %21 = arith.cmpf one, %20, %20 : vector<8x32xf32>
    %22 = vector.broadcast %cst_13 : f32 to vector<8x32xf32>
    %23 = arith.addf %16, %22 : vector<8x32xf32>
    %24 = math.absf %20 : vector<8x32xf32>
    %cst_14 = arith.constant 0.000000e+00 : f32
    %25 = vector.broadcast %cst_14 : f32 to vector<8x32xf32>
    %26 = arith.subf %25, %24 : vector<8x32xf32>
    %27 = math.exp %26 : vector<8x32xf32>
    %28 = math.log1p %27 : vector<8x32xf32>
    %29 = arith.addf %18, %28 : vector<8x32xf32>
    %30 = arith.select %21, %23, %29 : vector<8x32xi1>, vector<8x32xf32>
    %cst_15 = arith.constant 0.000000e+00 : f32
    %31 = vector.broadcast %cst_15 : f32 to vector<8x32xf32>
    %32 = arith.subf %31, %30 : vector<8x32xf32>
    %cst_16 = arith.constant 6.000000e-01 : f32
    %33 = vector.broadcast %cst_16 : f32 to vector<8x32xf32>
    %34 = arith.subf %32, %33 : vector<8x32xf32>
    %35 = math.exp %34 : vector<8x32xf32>
    %cst_17 = arith.constant 0.000000e+00 : f32
    %36 = vector.broadcast %cst_17 : f32 to vector<8x32xf32>
    %37 = arith.subf %36, %35 : vector<8x32xf32>
    %c0_18 = arith.constant 0 : index
    %c0_19 = arith.constant 0 : index
    %c0_20 = arith.constant 0 : index
    %38 = vector.load %arg19[%c0_18, %c0_19, %c0_20] : memref<1x8x32xf32, #tpu.memory_space<vmem>>, vector<1x8x32xf32>
    %39 = vector.shape_cast %38 : vector<1x8x32xf32> to vector<8x32xf32>
    %40 = vector.shape_cast %37 : vector<8x32xf32> to vector<1x8x32xf32>
    tpu.vector_store %arg19[%c0_18, %c0_19, %c0_20], %40 {strides = array<i32>} : memref<1x8x32xf32, #tpu.memory_space<vmem>>, vector<1x8x32xf32>,
    %c0_21 = arith.constant 0 : index
    %c0_22 = arith.constant 0 : index
    %41 = vector.load %arg11[%c0_21, %c0_22] : memref<32x32xf32, #tpu.memory_space<vmem>>, vector<32x32xf32>
    %cst_23 = arith.constant dense<0.000000e+00> : vector<8x32xf32>
    %42 = tpu.matmul %1, %41, %cst_23 {dimension_numbers = #tpu.dot_dimension_numbers<[1], [0], [0], [1], [0, 0, 1, 1], [], []>, precision = #tpu.contract_precision<fp32>} : vector<8x32xf32>, vector<32x32xf32>, vector<8x32xf32> -> vector<8x32xf32>
    %c0_24 = arith.constant 0 : index
    %c0_25 = arith.constant 0 : index
    %43 = vector.load %arg12[%c0_24, %c0_25] : memref<32x32xf32, #tpu.memory_space<vmem>>, vector<32x32xf32>
    %cst_26 = arith.constant dense<0.000000e+00> : vector<8x32xf32>
    %44 = tpu.matmul %42, %43, %cst_26 {dimension_numbers = #tpu.dot_dimension_numbers<[1], [0], [0], [1], [0, 0, 1, 1], [], []>, precision = #tpu.contract_precision<fp32>} : vector<8x32xf32>, vector<32x32xf32>, vector<8x32xf32> -> vector<8x32xf32>
    %c0_27 = arith.constant 0 : index
    %c0_28 = arith.constant 0 : index
    %c0_29 = arith.constant 0 : index
    %45 = vector.load %arg3[%c0_27, %c0_28, %c0_29] : memref<1x8x32xf32, #tpu.memory_space<vmem>>, vector<1x8x32xf32>
    %46 = vector.shape_cast %45 : vector<1x8x32xf32> to vector<8x32xf32>
    %47 = arith.subf %46, %6 : vector<8x32xf32>
    %c0_30 = arith.constant 0 : index
    %c0_31 = arith.constant 0 : index
    %48 = vector.load %arg13[%c0_30, %c0_31] : memref<1x32xf32, #tpu.memory_space<vmem>>, vector<1x32xf32>
    %49 = vector.broadcast %48 : vector<1x32xf32> to vector<8x32xf32>
    %50 = arith.addf %49, %44 : vector<8x32xf32>
    %51 = arith.negf %50 : vector<8x32xf32>
    %52 = math.exp %51 : vector<8x32xf32>
    %cst_32 = arith.constant 1.000000e+00 : f32
    %53 = vector.broadcast %cst_32 : f32 to vector<8x32xf32>
    %54 = arith.addf %53, %52 : vector<8x32xf32>
    %55 = arith.divf %53, %54 : vector<8x32xf32>
    %56 = arith.mulf %47, %55 : vector<8x32xf32>
    %57 = arith.addf %6, %56 : vector<8x32xf32>
    %c0_33 = arith.constant 0 : index
    %c0_34 = arith.constant 0 : index
    %58 = vector.load %arg8[%c0_33, %c0_34] : memref<32x32xf32, #tpu.memory_space<vmem>>, vector<32x32xf32>
    %cst_35 = arith.constant dense<0.000000e+00> : vector<8x32xf32>
    %59 = tpu.matmul %1, %58, %cst_35 {dimension_numbers = #tpu.dot_dimension_numbers<[1], [0], [0], [1], [0, 0, 1, 1], [], []>, precision = #tpu.contract_precision<fp32>} : vector<8x32xf32>, vector<32x32xf32>, vector<8x32xf32> -> vector<8x32xf32>
    %c0_36 = arith.constant 0 : index
    %c0_37 = arith.constant 0 : index
    %60 = vector.load %arg9[%c0_36, %c0_37] : memref<32x32xf32, #tpu.memory_space<vmem>>, vector<32x32xf32>
    %cst_38 = arith.constant dense<0.000000e+00> : vector<8x32xf32>
    %61 = tpu.matmul %59, %60, %cst_38 {dimension_numbers = #tpu.dot_dimension_numbers<[1], [0], [0], [1], [0, 0, 1, 1], [], []>, precision = #tpu.contract_precision<fp32>} : vector<8x32xf32>, vector<32x32xf32>, vector<8x32xf32> -> vector<8x32xf32>
    %c0_39 = arith.constant 0 : index
    %c0_40 = arith.constant 0 : index
    %62 = vector.load %arg10[%c0_39, %c0_40] : memref<1x32xf32, #tpu.memory_space<vmem>>, vector<1x32xf32>
    %63 = vector.broadcast %62 : vector<1x32xf32> to vector<8x32xf32>
    %64 = arith.addf %63, %61 : vector<8x32xf32>
    %65 = arith.negf %64 : vector<8x32xf32>
    %66 = math.exp %65 : vector<8x32xf32>
    %cst_41 = arith.constant 1.000000e+00 : f32
    %67 = vector.broadcast %cst_41 : f32 to vector<8x32xf32>
    %68 = arith.addf %67, %66 : vector<8x32xf32>
    %69 = arith.divf %67, %68 : vector<8x32xf32>
    %c0_42 = arith.constant 0 : index
    %c0_43 = arith.constant 0 : index
    %70 = vector.load %arg14[%c0_42, %c0_43] : memref<1x32xf32, #tpu.memory_space<vmem>>, vector<1x32xf32>
    %71 = vector.broadcast %70 : vector<1x32xf32> to vector<8x32xf32>
    %72 = arith.mulf %5, %71 : vector<8x32xf32>
    %73 = arith.mulf %72, %72 : vector<8x32xf32>
    %c0_44 = arith.constant 0 : index
    %c0_45 = arith.constant 0 : index
    %74 = vector.load %arg16[%c0_44, %c0_45] : memref<32x2xf32, #tpu.memory_space<vmem>>, vector<32x2xf32>
    %cst_46 = arith.constant dense<0.000000e+00> : vector<8x2xf32>
    %75 = tpu.matmul %73, %74, %cst_46 {dimension_numbers = #tpu.dot_dimension_numbers<[1], [0], [0], [1], [0, 0, 1, 1], [], []>, precision = #tpu.contract_precision<fp32>} : vector<8x32xf32>, vector<32x2xf32>, vector<8x2xf32> -> vector<8x2xf32>
    %cst_47 = arith.constant 1.000000e-24 : f32
    %76 = vector.broadcast %cst_47 : f32 to vector<8x2xf32>
    %77 = arith.maximumf %75, %76 : vector<8x2xf32>
    %78 = math.rsqrt %77 : vector<8x2xf32>
    %c0_48 = arith.constant 0 : index
    %c0_49 = arith.constant 0 : index
    %79 = vector.load %arg17[%c0_48, %c0_49] : memref<2x32xf32, #tpu.memory_space<vmem>>, vector<2x32xf32>
    %cst_50 = arith.constant dense<0.000000e+00> : vector<8x32xf32>
    %80 = tpu.matmul %78, %79, %cst_50 {dimension_numbers = #tpu.dot_dimension_numbers<[1], [0], [0], [1], [0, 0, 1, 1], [], []>, precision = #tpu.contract_precision<fp32>} : vector<8x2xf32>, vector<2x32xf32>, vector<8x32xf32> -> vector<8x32xf32>
    %81 = arith.mulf %72, %80 : vector<8x32xf32>
    %c0_51 = arith.constant 0 : index
    %c0_52 = arith.constant 0 : index
    %c0_53 = arith.constant 0 : index
    %82 = vector.load %arg18[%c0_51, %c0_52, %c0_53] : memref<1x8x32xf32, #tpu.memory_space<vmem>>, vector<1x8x32xf32>
    %83 = vector.shape_cast %82 : vector<1x8x32xf32> to vector<8x32xf32>
    %84 = vector.shape_cast %4 : vector<8x32xf32> to vector<1x8x32xf32>
    tpu.vector_store %arg18[%c0_51, %c0_52, %c0_53], %84 {strides = array<i32>} : memref<1x8x32xf32, #tpu.memory_space<vmem>>, vector<1x8x32xf32>,
    %cst_54 = arith.constant 1.000000e+00 : f32
    %85 = vector.broadcast %cst_54 : f32 to vector<8x32xf32>
    %86 = arith.subf %69, %85 : vector<8x32xf32>
    %c0_55 = arith.constant 0 : index
    %c0_56 = arith.constant 0 : index
    %87 = vector.load %arg15[%c0_55, %c0_56] : memref<1x32xf32, #tpu.memory_space<vmem>>, vector<1x32xf32>
    %88 = vector.broadcast %87 : vector<1x32xf32> to vector<8x32xf32>
    %89 = arith.mulf %86, %88 : vector<8x32xf32>
    %cst_57 = arith.constant 1.000000e+00 : f32
    %90 = vector.broadcast %cst_57 : f32 to vector<8x32xf32>
    %91 = arith.addf %90, %89 : vector<8x32xf32>
    %92 = arith.mulf %5, %91 : vector<8x32xf32>
    %c0_58 = arith.constant 0 : index
    %c0_59 = arith.constant 0 : index
    %c0_60 = arith.constant 0 : index
    %93 = vector.load %arg20[%c0_58, %c0_59, %c0_60] : memref<1x8x32xf32, #tpu.memory_space<vmem>>, vector<1x8x32xf32>
    %94 = vector.shape_cast %93 : vector<1x8x32xf32> to vector<8x32xf32>
    %95 = vector.shape_cast %92 : vector<8x32xf32> to vector<1x8x32xf32>
    tpu.vector_store %arg20[%c0_58, %c0_59, %c0_60], %95 {strides = array<i32>} : memref<1x8x32xf32, #tpu.memory_space<vmem>>, vector<1x8x32xf32>,
    %c0_61 = arith.constant 0 : index
    %c0_62 = arith.constant 0 : index
    %c0_63 = arith.constant 0 : index
    %96 = vector.load %arg21[%c0_61, %c0_62, %c0_63] : memref<1x8x32xf32, #tpu.memory_space<vmem>>, vector<1x8x32xf32>
    %97 = vector.shape_cast %96 : vector<1x8x32xf32> to vector<8x32xf32>
    %98 = vector.shape_cast %57 : vector<8x32xf32> to vector<1x8x32xf32>
    tpu.vector_store %arg21[%c0_61, %c0_62, %c0_63], %98 {strides = array<i32>} : memref<1x8x32xf32, #tpu.memory_space<vmem>>, vector<1x8x32xf32>,
    %cst_64 = arith.constant 0.000000e+00 : f32
    %99 = vector.broadcast %cst_64 : f32 to vector<8x32xf32>
    %100 = arith.subf %99, %81 : vector<8x32xf32>
    %c0_65 = arith.constant 0 : index
    %c0_66 = arith.constant 0 : index
    %c0_67 = arith.constant 0 : index
    %101 = vector.load %arg22[%c0_65, %c0_66, %c0_67] : memref<1x8x32xf32, #tpu.memory_space<vmem>>, vector<1x8x32xf32>
    %102 = vector.shape_cast %101 : vector<1x8x32xf32> to vector<8x32xf32>
    %103 = vector.shape_cast %100 : vector<8x32xf32> to vector<1x8x32xf32>
    tpu.vector_store %arg22[%c0_65, %c0_66, %c0_67], %103 {strides = array<i32>} : memref<1x8x32xf32, #tpu.memory_space<vmem>>, vector<1x8x32xf32>,
    %104 = arith.mulf %81, %69 : vector<8x32xf32>
    %c0_68 = arith.constant 0 : index
    %c0_69 = arith.constant 0 : index
    %c0_70 = arith.constant 0 : index
    %105 = vector.load %arg23[%c0_68, %c0_69, %c0_70] : memref<1x8x32xf32, #tpu.memory_space<vmem>>, vector<1x8x32xf32>
    %106 = vector.shape_cast %105 : vector<1x8x32xf32> to vector<8x32xf32>
    %107 = vector.shape_cast %104 : vector<8x32xf32> to vector<1x8x32xf32>
    tpu.vector_store %arg23[%c0_68, %c0_69, %c0_70], %107 {strides = array<i32>} : memref<1x8x32xf32, #tpu.memory_space<vmem>>, vector<1x8x32xf32>,
    return
  }
  func.func @transform_0(%arg0: i32, %arg1: i32) -> (i32, i32, i32) {
    %c0_i32 = arith.constant 0 : i32
    %c0_i32_0 = arith.constant 0 : i32
    return %arg0, %arg1, %c0_i32 : i32, i32, i32
  }
  func.func @transform_1(%arg0: i32, %arg1: i32) -> (i32, i32, i32) {
    %c0_i32 = arith.constant 0 : i32
    %c0_i32_0 = arith.constant 0 : i32
    return %arg0, %arg1, %c0_i32 : i32, i32, i32
  }
  func.func @transform_2(%arg0: i32, %arg1: i32) -> (i32, i32) {
    %c0_i32 = arith.constant 0 : i32
    %c0_i32_0 = arith.constant 0 : i32
    %c0_i32_1 = arith.constant 0 : i32
    return %c0_i32, %c0_i32_0 : i32, i32
  }
  func.func @transform_3(%arg0: i32, %arg1: i32) -> (i32, i32) {
    %c0_i32 = arith.constant 0 : i32
    %c0_i32_0 = arith.constant 0 : i32
    %c0_i32_1 = arith.constant 0 : i32
    return %c0_i32, %c0_i32_0 : i32, i32
  }
  func.func @transform_4(%arg0: i32, %arg1: i32) -> (i32, i32) {
    %c0_i32 = arith.constant 0 : i32
    %c0_i32_0 = arith.constant 0 : i32
    %c0_i32_1 = arith.constant 0 : i32
    return %c0_i32, %c0_i32_0 : i32, i32
  }
  func.func @transform_5(%arg0: i32, %arg1: i32) -> (i32, i32) {
    %c0_i32 = arith.constant 0 : i32
    %c0_i32_0 = arith.constant 0 : i32
    %c0_i32_1 = arith.constant 0 : i32
    return %c0_i32, %c0_i32_0 : i32, i32
  }
  func.func @transform_6(%arg0: i32, %arg1: i32) -> (i32, i32) {
    %c0_i32 = arith.constant 0 : i32
    %c0_i32_0 = arith.constant 0 : i32
    %c0_i32_1 = arith.constant 0 : i32
    return %c0_i32, %c0_i32_0 : i32, i32
  }
  func.func @transform_7(%arg0: i32, %arg1: i32) -> (i32, i32) {
    %c0_i32 = arith.constant 0 : i32
    %c0_i32_0 = arith.constant 0 : i32
    %c0_i32_1 = arith.constant 0 : i32
    return %c0_i32, %c0_i32_0 : i32, i32
  }
  func.func @transform_8(%arg0: i32, %arg1: i32) -> (i32, i32) {
    %c0_i32 = arith.constant 0 : i32
    %c0_i32_0 = arith.constant 0 : i32
    %c0_i32_1 = arith.constant 0 : i32
    return %c0_i32, %c0_i32_0 : i32, i32
  }
  func.func @transform_9(%arg0: i32, %arg1: i32) -> (i32, i32) {
    %c0_i32 = arith.constant 0 : i32
    %c0_i32_0 = arith.constant 0 : i32
    %c0_i32_1 = arith.constant 0 : i32
    return %c0_i32, %c0_i32_0 : i32, i32
  }
  func.func @transform_10(%arg0: i32, %arg1: i32) -> (i32, i32) {
    %c0_i32 = arith.constant 0 : i32
    %c0_i32_0 = arith.constant 0 : i32
    %c0_i32_1 = arith.constant 0 : i32
    return %c0_i32, %c0_i32_0 : i32, i32
  }
  func.func @transform_11(%arg0: i32, %arg1: i32) -> (i32, i32) {
    %c0_i32 = arith.constant 0 : i32
    %c0_i32_0 = arith.constant 0 : i32
    %c0_i32_1 = arith.constant 0 : i32
    return %c0_i32, %c0_i32_0 : i32, i32
  }
  func.func @transform_12(%arg0: i32, %arg1: i32) -> (i32, i32) {
    %c0_i32 = arith.constant 0 : i32
    %c0_i32_0 = arith.constant 0 : i32
    %c0_i32_1 = arith.constant 0 : i32
    return %c0_i32, %c0_i32_0 : i32, i32
  }
  func.func @transform_13(%arg0: i32, %arg1: i32) -> (i32, i32) {
    %c0_i32 = arith.constant 0 : i32
    %c0_i32_0 = arith.constant 0 : i32
    %c0_i32_1 = arith.constant 0 : i32
    return %c0_i32, %c0_i32_0 : i32, i32
  }
  func.func @transform_14(%arg0: i32, %arg1: i32) -> (i32, i32) {
    %c0_i32 = arith.constant 0 : i32
    %c0_i32_0 = arith.constant 0 : i32
    %c0_i32_1 = arith.constant 0 : i32
    return %c0_i32, %c0_i32_0 : i32, i32
  }
  func.func @transform_15(%arg0: i32, %arg1: i32) -> (i32, i32) {
    %c0_i32 = arith.constant 0 : i32
    %c0_i32_0 = arith.constant 0 : i32
    %c0_i32_1 = arith.constant 0 : i32
    return %c0_i32, %c0_i32_0 : i32, i32
  }
  func.func @transform_16(%arg0: i32, %arg1: i32) -> (i32, i32, i32) {
    %c0_i32 = arith.constant 0 : i32
    %c0_i32_0 = arith.constant 0 : i32
    return %arg0, %arg1, %c0_i32 : i32, i32, i32
  }
  func.func @transform_17(%arg0: i32, %arg1: i32) -> (i32, i32, i32) {
    %c0_i32 = arith.constant 0 : i32
    %c0_i32_0 = arith.constant 0 : i32
    return %arg0, %arg1, %c0_i32 : i32, i32, i32
  }
  func.func @transform_18(%arg0: i32, %arg1: i32) -> (i32, i32, i32) {
    %c0_i32 = arith.constant 0 : i32
    %c0_i32_0 = arith.constant 0 : i32
    return %arg0, %arg1, %c0_i32 : i32, i32, i32
  }
  func.func @transform_19(%arg0: i32, %arg1: i32) -> (i32, i32, i32) {
    %c0_i32 = arith.constant 0 : i32
    %c0_i32_0 = arith.constant 0 : i32
    return %arg0, %arg1, %c0_i32 : i32, i32, i32
  }
  func.func @transform_20(%arg0: i32, %arg1: i32) -> (i32, i32, i32) {
    %c0_i32 = arith.constant 0 : i32
    %c0_i32_0 = arith.constant 0 : i32
    return %arg0, %arg1, %c0_i32 : i32, i32, i32
  }
  func.func @transform_21(%arg0: i32, %arg1: i32) -> (i32, i32, i32) {
    %c0_i32 = arith.constant 0 : i32
    %c0_i32_0 = arith.constant 0 : i32
    return %arg0, %arg1, %c0_i32 : i32, i32, i32
  }
}

module attributes {stable_mosaic.version = 11 : i64} {
  func.func @_post_kernel(%arg0: i32, %arg1: i32, %arg2: memref<1x8x32xf32, #tpu.memory_space<vmem>>, %arg3: memref<1x8x32xf32, #tpu.memory_space<vmem>>, %arg4: memref<1x8x32xf32, #tpu.memory_space<vmem>>, %arg5: memref<1x8x32xf32, #tpu.memory_space<vmem>>, %arg6: memref<1x32xf32, #tpu.memory_space<vmem>>, %arg7: memref<1x32xf32, #tpu.memory_space<vmem>>, %arg8: memref<1x32xf32, #tpu.memory_space<vmem>>, %arg9: memref<32x32xf32, #tpu.memory_space<vmem>>, %arg10: memref<32x2xf32, #tpu.memory_space<vmem>>, %arg11: memref<2x32xf32, #tpu.memory_space<vmem>>, %arg12: memref<1x1xf32, #tpu.memory_space<smem>>, %arg13: memref<1x8x32xf32, #tpu.memory_space<vmem>>) attributes {dimension_semantics = [#tpu.dimension_semantics<parallel>, #tpu.dimension_semantics<parallel>], iteration_bounds = array<i64: 2, 1>, scalar_prefetch = 0 : i64, scratch_operands = 0 : i64, tpu.core_type = #tpu.core_type<tc>, window_params = [{transform_indices = @transform_0, window_bounds = array<i64: 1, 8, 32>}, {transform_indices = @transform_1, window_bounds = array<i64: 1, 8, 32>}, {transform_indices = @transform_2, window_bounds = array<i64: 1, 8, 32>}, {transform_indices = @transform_3, window_bounds = array<i64: 1, 8, 32>}, {pipeline_mode = #tpu.pipeline_mode<synchronous>, transform_indices = @transform_4, window_bounds = array<i64: 1, 32>}, {pipeline_mode = #tpu.pipeline_mode<synchronous>, transform_indices = @transform_5, window_bounds = array<i64: 1, 32>}, {pipeline_mode = #tpu.pipeline_mode<synchronous>, transform_indices = @transform_6, window_bounds = array<i64: 1, 32>}, {pipeline_mode = #tpu.pipeline_mode<synchronous>, transform_indices = @transform_7, window_bounds = array<i64: 32, 32>}, {pipeline_mode = #tpu.pipeline_mode<synchronous>, transform_indices = @transform_8, window_bounds = array<i64: 32, 2>}, {pipeline_mode = #tpu.pipeline_mode<synchronous>, transform_indices = @transform_9, window_bounds = array<i64: 2, 32>}, {transform_indices = @transform_10, window_bounds = array<i64: 1, 1>}, {transform_indices = @transform_11, window_bounds = array<i64: 1, 8, 32>}]} {
    %c0 = arith.constant 0 : index
    %c0_0 = arith.constant 0 : index
    %0 = vector.load %arg10[%c0, %c0_0] : memref<32x2xf32, #tpu.memory_space<vmem>>, vector<32x2xf32>
    %c0_1 = arith.constant 0 : index
    %c0_2 = arith.constant 0 : index
    %1 = vector.load %arg11[%c0_1, %c0_2] : memref<2x32xf32, #tpu.memory_space<vmem>>, vector<2x32xf32>
    %c0_3 = arith.constant 0 : index
    %c0_4 = arith.constant 0 : index
    %c0_5 = arith.constant 0 : index
    %2 = vector.load %arg2[%c0_3, %c0_4, %c0_5] : memref<1x8x32xf32, #tpu.memory_space<vmem>>, vector<1x8x32xf32>
    %3 = vector.shape_cast %2 : vector<1x8x32xf32> to vector<8x32xf32>
    %cst = arith.constant dense<0.000000e+00> : vector<8x2xf32>
    %4 = tpu.matmul %3, %0, %cst {dimension_numbers = #tpu.dot_dimension_numbers<[1], [0], [0], [1], [0, 0, 1, 1], [], []>, precision = #tpu.contract_precision<fp32>} : vector<8x32xf32>, vector<32x2xf32>, vector<8x2xf32> -> vector<8x2xf32>
    %cst_6 = arith.constant 6.250000e-02 : f32
    %5 = vector.broadcast %cst_6 : f32 to vector<8x2xf32>
    %6 = arith.mulf %4, %5 : vector<8x2xf32>
    %cst_7 = arith.constant dense<0.000000e+00> : vector<8x32xf32>
    %7 = tpu.matmul %6, %1, %cst_7 {dimension_numbers = #tpu.dot_dimension_numbers<[1], [0], [0], [1], [0, 0, 1, 1], [], []>, precision = #tpu.contract_precision<fp32>} : vector<8x2xf32>, vector<2x32xf32>, vector<8x32xf32> -> vector<8x32xf32>
    %8 = arith.subf %3, %7 : vector<8x32xf32>
    %9 = arith.mulf %8, %8 : vector<8x32xf32>
    %cst_8 = arith.constant dense<0.000000e+00> : vector<8x2xf32>
    %10 = tpu.matmul %9, %0, %cst_8 {dimension_numbers = #tpu.dot_dimension_numbers<[1], [0], [0], [1], [0, 0, 1, 1], [], []>, precision = #tpu.contract_precision<fp32>} : vector<8x32xf32>, vector<32x2xf32>, vector<8x2xf32> -> vector<8x2xf32>
    %cst_9 = arith.constant 6.250000e-02 : f32
    %11 = vector.broadcast %cst_9 : f32 to vector<8x2xf32>
    %12 = arith.mulf %10, %11 : vector<8x2xf32>
    %cst_10 = arith.constant dense<0.000000e+00> : vector<8x32xf32>
    %13 = tpu.matmul %12, %1, %cst_10 {dimension_numbers = #tpu.dot_dimension_numbers<[1], [0], [0], [1], [0, 0, 1, 1], [], []>, precision = #tpu.contract_precision<fp32>} : vector<8x2xf32>, vector<2x32xf32>, vector<8x32xf32> -> vector<8x32xf32>
    %cst_11 = arith.constant 6.400000e-04 : f32
    %14 = vector.broadcast %cst_11 : f32 to vector<8x32xf32>
    %15 = arith.addf %13, %14 : vector<8x32xf32>
    %16 = math.rsqrt %15 : vector<8x32xf32>
    %17 = arith.mulf %8, %16 : vector<8x32xf32>
    %c0_12 = arith.constant 0 : index
    %c0_13 = arith.constant 0 : index
    %18 = vector.load %arg7[%c0_12, %c0_13] : memref<1x32xf32, #tpu.memory_space<vmem>>, vector<1x32xf32>
    %19 = vector.broadcast %18 : vector<1x32xf32> to vector<8x32xf32>
    %20 = arith.mulf %17, %19 : vector<8x32xf32>
    %c0_14 = arith.constant 0 : index
    %c0_15 = arith.constant 0 : index
    %21 = vector.load %arg8[%c0_14, %c0_15] : memref<1x32xf32, #tpu.memory_space<vmem>>, vector<1x32xf32>
    %22 = vector.broadcast %21 : vector<1x32xf32> to vector<8x32xf32>
    %23 = arith.addf %20, %22 : vector<8x32xf32>
    %c0_16 = arith.constant 0 : index
    %c0_17 = arith.constant 0 : index
    %c0_18 = arith.constant 0 : index
    %24 = vector.load %arg3[%c0_16, %c0_17, %c0_18] : memref<1x8x32xf32, #tpu.memory_space<vmem>>, vector<1x8x32xf32>
    %25 = vector.shape_cast %24 : vector<1x8x32xf32> to vector<8x32xf32>
    %c0_19 = arith.constant 0 : index
    %c0_20 = arith.constant 0 : index
    %c0_21 = arith.constant 0 : index
    %26 = vector.load %arg4[%c0_19, %c0_20, %c0_21] : memref<1x8x32xf32, #tpu.memory_space<vmem>>, vector<1x8x32xf32>
    %27 = vector.shape_cast %26 : vector<1x8x32xf32> to vector<8x32xf32>
    %c0_22 = arith.constant 0 : index
    %c0_23 = arith.constant 0 : index
    %c0_24 = arith.constant 0 : index
    %28 = vector.load %arg5[%c0_22, %c0_23, %c0_24] : memref<1x8x32xf32, #tpu.memory_space<vmem>>, vector<1x8x32xf32>
    %29 = vector.shape_cast %28 : vector<1x8x32xf32> to vector<8x32xf32>
    %30 = arith.mulf %25, %27 : vector<8x32xf32>
    %c0_25 = arith.constant 0 : index
    %c0_26 = arith.constant 0 : index
    %31 = vector.load %arg6[%c0_25, %c0_26] : memref<1x32xf32, #tpu.memory_space<vmem>>, vector<1x32xf32>
    %32 = vector.broadcast %31 : vector<1x32xf32> to vector<8x32xf32>
    %33 = arith.mulf %30, %32 : vector<8x32xf32>
    %cst_27 = arith.constant dense<0.000000e+00> : vector<8x2xf32>
    %34 = tpu.matmul %33, %0, %cst_27 {dimension_numbers = #tpu.dot_dimension_numbers<[1], [0], [0], [1], [0, 0, 1, 1], [], []>, precision = #tpu.contract_precision<fp32>} : vector<8x32xf32>, vector<32x2xf32>, vector<8x2xf32> -> vector<8x2xf32>
    %cst_28 = arith.constant dense<0.000000e+00> : vector<8x32xf32>
    %35 = tpu.matmul %34, %1, %cst_28 {dimension_numbers = #tpu.dot_dimension_numbers<[1], [0], [0], [1], [0, 0, 1, 1], [], []>, precision = #tpu.contract_precision<fp32>} : vector<8x2xf32>, vector<2x32xf32>, vector<8x32xf32> -> vector<8x32xf32>
    %36 = arith.mulf %35, %29 : vector<8x32xf32>
    %37 = arith.addf %23, %36 : vector<8x32xf32>
    %c0_29 = arith.constant 0 : index
    %c0_30 = arith.constant 0 : index
    %38 = vector.load %arg9[%c0_29, %c0_30] : memref<32x32xf32, #tpu.memory_space<vmem>>, vector<32x32xf32>
    %cst_31 = arith.constant dense<0.000000e+00> : vector<8x32xf32>
    %39 = tpu.matmul %37, %38, %cst_31 {dimension_numbers = #tpu.dot_dimension_numbers<[1], [0], [0], [1], [0, 0, 1, 1], [], []>, precision = #tpu.contract_precision<fp32>} : vector<8x32xf32>, vector<32x32xf32>, vector<8x32xf32> -> vector<8x32xf32>
    %c0_32 = arith.constant 0 : index
    %c0_33 = arith.constant 0 : index
    %40 = memref.load %arg12[%c0_32, %c0_33] : memref<1x1xf32, #tpu.memory_space<smem>>
    %41 = vector.broadcast %40 : f32 to vector<8x32xf32>
    %42 = arith.mulf %39, %41 : vector<8x32xf32>
    %c0_34 = arith.constant 0 : index
    %c0_35 = arith.constant 0 : index
    %c0_36 = arith.constant 0 : index
    %43 = vector.load %arg13[%c0_34, %c0_35, %c0_36] : memref<1x8x32xf32, #tpu.memory_space<vmem>>, vector<1x8x32xf32>
    %44 = vector.shape_cast %43 : vector<1x8x32xf32> to vector<8x32xf32>
    %45 = vector.shape_cast %42 : vector<8x32xf32> to vector<1x8x32xf32>
    tpu.vector_store %arg13[%c0_34, %c0_35, %c0_36], %45 {strides = array<i32>} : memref<1x8x32xf32, #tpu.memory_space<vmem>>, vector<1x8x32xf32>,
    return
  }
  func.func @transform_0(%arg0: i32, %arg1: i32) -> (i32, i32, i32) {
    %c0_i32 = arith.constant 0 : i32
    %c0_i32_0 = arith.constant 0 : i32
    return %arg0, %arg1, %c0_i32 : i32, i32, i32
  }
  func.func @transform_1(%arg0: i32, %arg1: i32) -> (i32, i32, i32) {
    %c0_i32 = arith.constant 0 : i32
    %c0_i32_0 = arith.constant 0 : i32
    return %arg0, %arg1, %c0_i32 : i32, i32, i32
  }
  func.func @transform_2(%arg0: i32, %arg1: i32) -> (i32, i32, i32) {
    %c0_i32 = arith.constant 0 : i32
    %c0_i32_0 = arith.constant 0 : i32
    return %arg0, %arg1, %c0_i32 : i32, i32, i32
  }
  func.func @transform_3(%arg0: i32, %arg1: i32) -> (i32, i32, i32) {
    %c0_i32 = arith.constant 0 : i32
    %c0_i32_0 = arith.constant 0 : i32
    return %arg0, %arg1, %c0_i32 : i32, i32, i32
  }
  func.func @transform_4(%arg0: i32, %arg1: i32) -> (i32, i32) {
    %c0_i32 = arith.constant 0 : i32
    %c0_i32_0 = arith.constant 0 : i32
    %c0_i32_1 = arith.constant 0 : i32
    return %c0_i32, %c0_i32_0 : i32, i32
  }
  func.func @transform_5(%arg0: i32, %arg1: i32) -> (i32, i32) {
    %c0_i32 = arith.constant 0 : i32
    %c0_i32_0 = arith.constant 0 : i32
    %c0_i32_1 = arith.constant 0 : i32
    return %c0_i32, %c0_i32_0 : i32, i32
  }
  func.func @transform_6(%arg0: i32, %arg1: i32) -> (i32, i32) {
    %c0_i32 = arith.constant 0 : i32
    %c0_i32_0 = arith.constant 0 : i32
    %c0_i32_1 = arith.constant 0 : i32
    return %c0_i32, %c0_i32_0 : i32, i32
  }
  func.func @transform_7(%arg0: i32, %arg1: i32) -> (i32, i32) {
    %c0_i32 = arith.constant 0 : i32
    %c0_i32_0 = arith.constant 0 : i32
    %c0_i32_1 = arith.constant 0 : i32
    return %c0_i32, %c0_i32_0 : i32, i32
  }
  func.func @transform_8(%arg0: i32, %arg1: i32) -> (i32, i32) {
    %c0_i32 = arith.constant 0 : i32
    %c0_i32_0 = arith.constant 0 : i32
    %c0_i32_1 = arith.constant 0 : i32
    return %c0_i32, %c0_i32_0 : i32, i32
  }
  func.func @transform_9(%arg0: i32, %arg1: i32) -> (i32, i32) {
    %c0_i32 = arith.constant 0 : i32
    %c0_i32_0 = arith.constant 0 : i32
    %c0_i32_1 = arith.constant 0 : i32
    return %c0_i32, %c0_i32_0 : i32, i32
  }
  func.func @transform_10(%arg0: i32, %arg1: i32) -> (i32, i32) {
    %c0_i32 = arith.constant 0 : i32
    %c0_i32_0 = arith.constant 0 : i32
    %c0_i32_1 = arith.constant 0 : i32
    return %c0_i32, %c0_i32_0 : i32, i32
  }
  func.func @transform_11(%arg0: i32, %arg1: i32) -> (i32, i32, i32) {
    %c0_i32 = arith.constant 0 : i32
    %c0_i32_0 = arith.constant 0 : i32
    return %arg0, %arg1, %c0_i32 : i32, i32, i32
  }
}

</mosaic_0001>

<bundles_post_ra>
// kernel: rwkv_tmix_x070_forward.5
= control target key start
LH: loop header
LB: loop body
LE: loop exit
PB: predicated region body
PF: predicated region fallthrough
CT: control target
= control target key end

     0   :  { %s5292_s0 = inlined_call_operand.vmem [shape: f32[2,8,32], index: 0, kind: input, shape index: {}]   ;;  %s5293_s1 = inlined_call_operand.vmem [shape: f32[2,8,32], index: 1, kind: input, shape index: {}]   ;;  %s5294_s2 = inlined_call_operand.vmem [shape: f32[2,8,32], index: 2, kind: input, shape index: {}]   ;;  %s5295_s3 = inlined_call_operand.vmem [shape: f32[2,8,32], index: 3, kind: input, shape index: {}]   ;;  %s5296_s4 = inlined_call_operand.vmem [shape: f32[1,32], index: 4, kind: input, shape index: {}]   ;;  %s5297_s5 = inlined_call_operand.vmem [shape: f32[1,32], index: 5, kind: input, shape index: {}]   ;;  %s5298_s6 = inlined_call_operand.vmem [shape: f32[1,32], index: 6, kind: input, shape index: {}]   ;;  %s5299_s7 = inlined_call_operand.vmem [shape: f32[32,32], index: 7, kind: input, shape index: {}]   ;;  %s5300_s8 = inlined_call_operand.vmem [shape: f32[32,2], index: 8, kind: input, shape index: {}]   ;;  %s5301_s9 = inlined_call_operand.vmem [shape: f32[2,32], index: 9, kind: input, shape index: {}]   ;;  %s5302_s10 = inlined_call_operand.<no memory space> [shape: f32[1,1], index: 10, kind: input, shape index: {}]   ;;  %s5303_s11 = inlined_call_operand.hbm [shape: f32[2,8,32], index: 11, kind: output, shape index: {}]  }
   0x1   :  { %5304 = sst [smem:[#allocation6_spill]] %s5292_s0 }
   0x2   :  { %5305 = sst [smem:[#allocation7_spill]] %s5293_s1 }
   0x3   :  { %16 = sst [smem:[#allocation2]] %s5302_s10 }
   0x4   :  { %17 = vsyncpa [#allocation4], 0 }
   0x5   :  { %19 = vsyncpa [#allocation4 + $0x1], 0  ;;  %s4708_s19 = smov 0   ;;  %s4710_s20 = smov 0  }
   0x6   :  { %s4712_s21 = smov 0   ;;  %s4714_s22 = smov 0  }
   0x7   :  { %s4716_s23 = smov 0   ;;  %s4718_s24 = smov 0  }
   0x8 LB: > { %s3978_s10 = sadd.s32 4294967295, %s4640_s24   ;;  %s3979_s25 = sadd.s32 4294967294, %s4640_s24   ;;  %s4640_s24 = sphi %s4718_s24, %s25_s24   ;;  %s4636_s23 = sphi %s4716_s23, %s5314_s23   ;;  %s4632_s22 = sphi %s4714_s22, %s5313_s22   ;;  %s4628_s21 = sphi %s4712_s21, %s5312_s21   ;;  %s4624_s20 = sphi %s4710_s20, %s5311_s20   ;;  %s4620_s19 = sphi %s4708_s19, %s5310_s19  }
   0x9   : > { %s37_s26 = sadd.s32 1, %s4636_s23  ;;  %s305_s27 = sadd.s32 1, %s4628_s21 }
   0xa   : > { %p39_p0 = scmp.ge.s32.totalorder %s37_s26, 2  ;;  %p315_p1 = scmp.ne.s32.totalorder %s4628_s21, %s4624_s20 }
   0xb   : > { %p316_p2 = scmp.eq.s32.totalorder %s3978_s10, 1  ;;  %p321_p3 = scmp.ne.s32.totalorder %s4624_s20, %s4620_s19 }
   0xc   : > { %s5316_s26 = smov (%p39_p0, %s37_s26), 0  ;;  %p322_p5 = scmp.eq.s32.totalorder %s3979_s25, 1 }
   0xd   : > { %p4748_p4 = por %p316_p2, %p315_p1  ;;  %s300_s29 = ssub.s32 %s4636_s23, %s5316_s26 }
   0xe   : > { %p3982_p6 = scmp.ge.s32.totalorder %s4640_s24, 1  ;;  %p303_p7 = scmp.eq.s32.totalorder %s300_s29, 0 }
   0xf   : > { %p4755_p8 = por %p322_p5, %p321_p3  ;;  %p401_p9 = scmp.lt.s32.totalorder %s4640_s24, 3 }
  0x10   : > { %s4761_s12 = scalar_select %p303_p7, %s4628_s21, %s305_s27  }
  0x11   : > { %p402_p10 = pnand %p3982_p6, %p401_p9 }
  0x12   : > { %p464_p11 = scmp.lt.s32.totalorder (!%p402_p10), %s4632_s22, 1  ;;  %s5308_s0 = sld [smem:[#allocation6_spill]] (!%p402_p10) }
  0x13   : > { %405 = sbr.rel (%p402_p10) target bundleno = 1408 (0x580), region = 64  ;;  %s5309_s1 = sld [smem:[#allocation7_spill]] (!%p402_p10) }
  0x14   : > { %s3992_s16 = sshll.u32 (!%p402_p10), %s4632_s22, 7 }
  0x18   : > { %v495_v0 = vld [vmem:[%s5300_s8 + $0x18] sm:$0xff]  ;;  %v494_v1 = vld [vmem:[%s5300_s8 + $0x10] sm:$0xff]  ;;  %v493_v2 = vld [vmem:[%s5300_s8 + $0x8] sm:$0xff]  ;;  %v4642_v3 = vmov 0.0   ;;  %vm4643_vm0 = vmmov 0   ;;  %s465_s27 = scalar_select %p464_p11, %s4632_s22, 1 }
  0x19   : > { %4151 = vmatprep.subr.mxu0 %v4642_v3  ;;  %v4774_v4 = vand.u32 4294901760, %v495_v0  ;;  %4162 = vmatprep.subr.mxu1 %v4642_v3  ;;  %v4777_v5 = vand.u32 4294901760, %v494_v1  ;;  %v4779_v6 = vand.u32 4294901760, %v493_v2  ;;  %v492_v7 = vld [vmem:[%s5300_s8] sm:$0xff]  ;;  %vm498_vm1 = vcmask 261120  }
  0x1a   : > { %v4784_v8 = vand.u32 4294901760, %v492_v7  ;;  %4159 = vmatprep.mubr.msk.f32.mxu0 %vm4643_vm0, %v4642_v3  ;;  %4170 = vmatprep.mubr.msk.f32.mxu1 %vm4643_vm0, %v4642_v3  ;;  %s4805_s29 = sshll.u32 %s465_s27, 3  ;;  %v496_v32 = vld [vmem:[%s5301_s9] sm:$0x3]  ;;  %vm992_vm2 = vcmask 1041408   ;;  %vm988_vm3 = vcmask 15360   ;;  %s3860_s27 = scalar_lea.hbm %s5303_s11, %s3992_s16 }
  0x1b   : > { %4152 = vmatpush3.msra.mxu0 %v4774_v4  ;;  %v4793_v9 = vsub.f32 %v495_v0, %v4774_v4  ;;  %v4796_v10 = vsub.f32 %v494_v1, %v4777_v5  ;;  %v4799_v11 = vsub.f32 %v493_v2, %v4779_v6  ;;  %s470_s15 = scalar_lea.vmem %s5308_s0, %s4805_s29  ;;  %v994_v33 = vsel %vm992_vm2, %v496_v32, 0  ;;  %s477_s25 = scalar_lea.vmem %s5309_s1, %s4805_s29 }
  0x1c   : > { %4153 = vmatprep.subr.mxu0 %v4642_v3  ;;  %v4803_v12 = vsub.f32 %v492_v7, %v4784_v8  ;;  %v4825_v17 = vld [vmem:[%s470_s15] sm:$0xff]  ;;  %v4904_v34 = vand.u32 4294901760, %v994_v33  ;;  %s484_s14 = scalar_lea.vmem %s5294_s2, %s4805_s29 }
  0x1d   : > { %v4808_v13 = vand.u32 4294901760, %v4793_v9  ;;  %4154 = vmatpush3.msra.mxu0 %v4777_v5  ;;  %v4812_v14 = vand.u32 4294901760, %v4796_v10  ;;  %v4815_v15 = vand.u32 4294901760, %v4799_v11  ;;  %v500_v21 = vsel %vm498_vm1, %v4825_v17, 0 }
  0x1e   : > { %4155 = vmatprep.subr.mxu0 %v4642_v3  ;;  %v4823_v16 = vand.u32 4294901760, %v4803_v12  ;;  %v571_v22 = vand.u32 4294901760, %v500_v21  ;;  %v4907_v35 = vsub.f32 %v994_v33, %v4904_v34 }
  0x1f   : > { %v609_v18 = vsub.f32 %v4793_v9, %v4808_v13  ;;  %v616_v19 = vsub.f32 %v4796_v10, %v4812_v14  ;;  %4156 = vmatpush3.msra.mxu0 %v4779_v6  ;;  %v623_v20 = vsub.f32 %v4799_v11, %v4815_v15 }
  0x20   : > { %4157 = vmatprep.subr.mxu0 %v4642_v3  ;;  %v630_v25 = vsub.f32 %v4803_v12, %v4823_v16  ;;  %v572_v26 = vsub.f32 %v500_v21, %v571_v22  ;;  %v4912_v36 = vand.u32 4294901760, %v4907_v35 }
  0x21   : > { %v4837_v23 = vand.u32 4294901760, %v609_v18  ;;  %v4839_v24 = vand.u32 4294901760, %v616_v19  ;;  %4158 = vmatpush3.msra.mxu0 %v4784_v8  ;;  %v4846_v27 = vand.u32 4294901760, %v623_v20 }
  0x22   : > { %4173 = vmatprep.subr.mxu0 %v4642_v3  ;;  %v573_v28 = vand.u32 4294901760, %v572_v26  ;;  %v4850_v29 = vand.u32 4294901760, %v630_v25  ;;  %v1106_v37 = vsub.f32 %v4907_v35, %v4912_v36 }
  0x23   : > { %4163 = vmatpush3.msra.mxu1 %v4837_v23 }
  0x24   : > { %4164 = vmatprep.subr.mxu1 %v4642_v3  ;;  %v574_v30 = vsub.f32 %v572_v26, %v573_v28  ;;  %v4916_v38 = vand.u32 4294901760, %v1106_v37 }
  0x25   : > { %4165 = vmatpush3.msra.mxu1 %v4839_v24 }
  0x26   : > { %4166 = vmatprep.subr.mxu1 %v4642_v3  ;;  %v575_v31 = vand.u32 4294901760, %v574_v30 }
  0x27   : > { %4167 = vmatpush3.msra.mxu1 %v4846_v27 }
  0x28   : > { %4168 = vmatprep.subr.mxu1 %v4642_v3  ;;  %4160 = vmatmul.mubr.f32.vlgmr.msra.gmra.mxu0 %v575_v31 }
  0x29   : > { %4169 = vmatpush3.msra.mxu1 %v4850_v29  ;;  %4174 = vmatpush3.msra.mxu0 %v4793_v9 }
  0x2a   : > { %4171 = vmatmul.mubr.f32.vlgmr.msra.gmra.mxu1 %v571_v22  ;;  %4184 = vmatprep.subr.mxu1 %v4642_v3 }
  0x2b   : > { %4175 = vmatprep.subr.mxu0 %v4642_v3  ;;  %4185 = vmatpush3.msra.mxu1 %v4774_v4 }
  0x2c   : > { %4176 = vmatpush3.msra.mxu0 %v4796_v10  ;;  %4186 = vmatprep.subr.mxu1 %v4642_v3 }
  0x2d   : > { %4177 = vmatprep.subr.mxu0 %v4642_v3  ;;  %4187 = vmatpush3.msra.mxu1 %v4777_v5 }
  0x2e   : > { %4178 = vmatpush3.msra.mxu0 %v4799_v11  ;;  %4188 = vmatprep.subr.mxu1 %v4642_v3 }
  0x2f   : > { %4179 = vmatprep.subr.mxu0 %v4642_v3  ;;  %4189 = vmatpush3.msra.mxu1 %v4779_v6 }
  0x30   : > { %4180 = vmatpush3.msra.mxu0 %v4803_v12  ;;  %4181 = vmatprep.mubr.msk.f32.mxu0 %vm4643_vm0, %v4642_v3 }
  0x31   : > { %4190 = vmatprep.subr.mxu1 %v4642_v3  ;;  %4182 = vmatmul.mubr.f32.vlgmr.msra.gmra.mxu0 %v572_v26 }
  0x32   : > { %4191 = vmatpush3.msra.mxu1 %v4784_v8  ;;  %4192 = vmatprep.mubr.msk.f32.mxu1 %vm4643_vm0, %v4642_v3 }
  0x33   : > { %4195 = vmatprep.subr.mxu0 %v4642_v3  ;;  %4193 = vmatmul.mubr.f32.vlgmr.msra.gmra.mxu1 %v573_v28 }
  0x34   : > { %4196 = vmatpush3.msra.mxu0 %v4808_v13  ;;  %4206 = vmatprep.subr.mxu1 %v4642_v3 }
  0x35   : > { %4197 = vmatprep.subr.mxu0 %v4642_v3  ;;  %4207 = vmatpush3.msra.mxu1 %v4774_v4 }
  0x36   : > { %4198 = vmatpush3.msra.mxu0 %v4812_v14  ;;  %4208 = vmatprep.subr.mxu1 %v4642_v3 }
  0x37   : > { %4199 = vmatprep.subr.mxu0 %v4642_v3  ;;  %4209 = vmatpush3.msra.mxu1 %v4777_v5 }
  0x38   : > { %4200 = vmatpush3.msra.mxu0 %v4815_v15  ;;  %4210 = vmatprep.subr.mxu1 %v4642_v3 }
  0x39   : > { %4201 = vmatprep.subr.mxu0 %v4642_v3  ;;  %4211 = vmatpush3.msra.mxu1 %v4779_v6 }
  0x3a   : > { %4202 = vmatpush3.msra.mxu0 %v4823_v16  ;;  %4203 = vmatprep.mubr.msk.f32.mxu0 %vm4643_vm0, %v4642_v3 }
  0x3b   : > { %4212 = vmatprep.subr.mxu1 %v4642_v3  ;;  %4204 = vmatmul.mubr.f32.vlgmr.msra.gmra.mxu0 %v571_v22 }
  0x3c   : > { %4213 = vmatpush3.msra.mxu1 %v4784_v8  ;;  %4214 = vmatprep.mubr.msk.f32.mxu1 %vm4643_vm0, %v4642_v3 }
  0x3d   : > { %4215 = vmatmul.mubr.f32.vlgmr.msra.gmra.mxu1 %v571_v22  ;;  %4222 = vmatprep.subr.mxu1 %v4642_v3 }
  0x3e   : > { %4224 = vmatprep.mubr.msk.f32.mxu1 %vm4643_vm0, %v4642_v3  ;;  %4217 = vmatprep.subr.mxu0 %v4642_v3 }
  0x3f   : > { %4219 = vmatprep.mubr.msk.f32.mxu0 %vm4643_vm0, %v4642_v3  ;;  %4218 = vmatpush3.msra.mxu0 %v4904_v34 }
  0x40   : > { %4227 = vmatprep.subr.mxu0 %v4642_v3  ;;  %4223 = vmatpush3.msra.mxu1 %v4916_v38 }
  0x41   : > { %4232 = vmatprep.subr.mxu1 %v4642_v3 }
  0xe8   : > { %v577_v39 = vpop.f32.mrf.mxu0 }
  0xea   : > { %v668_v40 = vpop.f32.mrf.mxu1  ;;  %v4161_v41 = vpop.f32.mrf.mxu0 }
  0xeb   : > { %v669_v46 = vadd.f32 %v668_v40, %v577_v39 }
  0xec   : > { %v4172_v42 = vpop.f32.mrf.mxu1 }
  0xf1   : > { %v748_v43 = vpop.f32.mrf.mxu0 }
  0xf2   : > { %v749_v48 = vadd.f32 %v748_v43, %v669_v46 }
  0xf3   : > { %v825_v44 = vpop.f32.mrf.mxu1  ;;  %v4183_v45 = vpop.f32.mrf.mxu0 }
  0xf4   : > { %v826_v49 = vadd.f32 %v825_v44, %v749_v48 }
  0xf5   : > { %v4194_v47 = vpop.f32.mrf.mxu1 }
  0xfb   : > { %v908_v50 = vpop.f32.mrf.mxu0 }
  0xfc   : > { %v909_v51 = vadd.f32 %v908_v50, %v826_v49 }
  0xfd   : > { %v983_v52 = vpop.f32.mrf.mxu1  ;;  %v4205_v53 = vpop.f32.mrf.mxu0 }
  0xfe   : > { %v984_v54 = vadd.f32 %v983_v52, %v909_v51 }
  0xff   : > { %v4216_v55 = vpop.f32.mrf.mxu1 }
 0x100   : > { %v987_v56 = vmul.f32 0.0625, %v984_v54 }
 0x102   : > { %v990_v57 = vsel %vm988_vm3, %v987_v56, 0 }
 0x103   : > { %v1062_v58 = vand.u32 4294901760, %v990_v57 }
 0x105   : > { %v1063_v59 = vsub.f32 %v990_v57, %v1062_v58  ;;  %4225 = vmatmul.mubr.f32.vlgmr.msra.gmra.mxu1 %v1062_v58 }
 0x106   : > { %4233 = vmatpush3.msra.mxu1 %v4904_v34  ;;  %4234 = vmatprep.mubr.msk.f32.mxu1 %vm4643_vm0, %v4642_v3 }
 0x107   : > { %v1064_v60 = vand.u32 4294901760, %v1063_v59  ;;  %4242 = vmatprep.subr.mxu1 %v4642_v3 }
 0x109   : > { %4235 = vmatmul.mubr.f32.vlgmr.msra.gmra.mxu1 %v1064_v60  ;;  %v1065_v61 = vsub.f32 %v1063_v59, %v1064_v60  ;;  %v2401_v60 = vld [vmem:[%s484_s14] sm:$0xff]  ;;  %s3843_s14 = sld [smem:[#allocation2]] }
 0x10a   : > { %4243 = vmatpush3.msra.mxu1 %v4904_v34  ;;  %4244 = vmatprep.mubr.msk.f32.mxu1 %vm4643_vm0, %v4642_v3 }
 0x10b   : > { %v1066_v62 = vand.u32 4294901760, %v1065_v61  ;;  %4258 = vmatprep.subr.mxu1 %v4642_v3 }
 0x10d   : > { %4220 = vmatmul.mubr.f32.vlgmr.msra.gmra.mxu0 %v1066_v62  ;;  %4245 = vmatmul.mubr.f32.vlgmr.msra.gmra.mxu1 %v1062_v58 }
 0x10e   : > { %4228 = vmatpush3.msra.mxu0 %v4907_v35  ;;  %4229 = vmatprep.mubr.msk.f32.mxu0 %vm4643_vm0, %v4642_v3 }
 0x10f   : > { %4237 = vmatprep.subr.mxu0 %v4642_v3  ;;  %4259 = vmatpush3.msra.mxu1 %v4837_v23 }
 0x110   : > { %4260 = vmatprep.subr.mxu1 %v4642_v3  ;;  %4266 = vmatprep.mubr.msk.f32.mxu1 %vm4643_vm0, %v4642_v3 }
 0x111   : > { %4230 = vmatmul.mubr.f32.vlgmr.msra.gmra.mxu0 %v1063_v59  ;;  %4261 = vmatpush3.msra.mxu1 %v4839_v24  ;;  %v2400_v59 = vld [vmem:[%s477_s25] sm:$0xff]  ;;  %s491_s25 = scalar_lea.vmem %s5295_s3, %s4805_s29  ;;  %s461_s29 = sand.u32 1, %s4624_s20  }
 0x112   : > { %4238 = vmatpush3.msra.mxu0 %v4912_v36  ;;  %4239 = vmatprep.mubr.msk.f32.mxu0 %vm4643_vm0, %v4642_v3  ;;  %s3983_s15 = sshll.u32 %s461_s29, 3  ;;  %s3848_s13 = scalar_lea.sflag [#allocation4], %s461_s29 }
 0x113   : > { %4262 = vmatprep.subr.mxu1 %v4642_v3  ;;  %4247 = vmatprep.subr.mxu0 %v4642_v3  ;;  %s463_s17 = scalar_lea.vmem [#allocation3], %s3983_s15 }
 0x114   : > { %4263 = vmatpush3.msra.mxu1 %v4846_v27  ;;  %s3862_s18 = sshll.u32 %s463_s17, 4  ;;  %s3863_s18 = int_to_ptr.vmem [resolvable:$true] %s3862_s18 }
 0x115   : > { %4240 = vmatmul.mubr.f32.vlgmr.msra.gmra.mxu0 %v1062_v58  ;;  %4264 = vmatprep.subr.mxu1 %v4642_v3  ;;  %s4564_s0 = scalar_lea.vmem %s3863_s18, 128 }
 0x116   : > { %4265 = vmatpush3.msra.mxu1 %v4850_v29  ;;  %4248 = vmatpush3.msra.mxu0 %v4774_v4  ;;  %p4565_p12 = scmp.ne.s32.totalorder %s3863_s18, %s4564_s0 }
 0x117   : > { %4280 = vmatprep.subr.mxu1 %v4642_v3  ;;  %4249 = vmatprep.subr.mxu0 %v4642_v3 }
 0x118   : > { %4250 = vmatpush3.msra.mxu0 %v4777_v5  ;;  %4255 = vmatprep.mubr.msk.f32.mxu0 %vm4643_vm0, %v4642_v3  ;;  %p4566_p13 = pnand %p4565_p12, %p4748_p4 }
 0x119   : > { %4251 = vmatprep.subr.mxu0 %v4642_v3 }
 0x11a   : > { %4252 = vmatpush3.msra.mxu0 %v4779_v6  ;;  %p4567_p0 = pneg %p4566_p13 }
 0x11b   : > { %4253 = vmatprep.subr.mxu0 %v4642_v3 }
 0x11c   : > { %4254 = vmatpush3.msra.mxu0 %v4784_v8 }
 0x11d   : > { %4269 = vmatprep.subr.mxu0 %v4642_v3 }
 0x1c5   : > { %v1144_v63 = vpop.f32.mrf.mxu1 }
 0x1c7   : > { %v4226_v0 = vpop.f32.mrf.mxu1 }
 0x1c8   : > { %v2403_v0 = vmul.f32 %v2401_v60, %v2400_v59 }
 0x1c9   : > { %v1292_v1 = vpop.f32.mrf.mxu1 }
 0x1cb   : > { %v4236_v2 = vpop.f32.mrf.mxu1 }
 0x1cd   : > { %v1068_v7 = vpop.f32.mrf.mxu0  ;;  %v1438_v18 = vpop.f32.mrf.mxu1 }
 0x1ce   : > { %v1145_v21 = vadd.f32 %v1144_v63, %v1068_v7 }
 0x1cf   : > { %v4221_v19 = vpop.f32.mrf.mxu0  ;;  %v4246_v20 = vpop.f32.mrf.mxu1 }
 0x1d1   : > { %v1218_v22 = vpop.f32.mrf.mxu0 }
 0x1d2   : > { %v1219_v25 = vadd.f32 %v1218_v22, %v1145_v21 }
 0x1d3   : > { %v4231_v26 = vpop.f32.mrf.mxu0 }
 0x1d4   : > { %v1293_v28 = vadd.f32 %v1292_v1, %v1219_v25  ;;  %v3990_v1 = vld [vmem:[%s5296_s4] ss:$0 sm:$0xff] }
 0x1d5   : > { %v1366_v30 = vpop.f32.mrf.mxu0 }
 0x1d6   : > { %v1367_v31 = vadd.f32 %v1366_v30, %v1293_v28 }
 0x1d7   : > { %v4241_v32 = vpop.f32.mrf.mxu0 }
 0x1d8   : > { %v1439_v33 = vadd.f32 %v1438_v18, %v1367_v31  ;;  %v2411_v18 = vmul.f32 %v3990_v1, %v2403_v0  ;;  %v3352_v0 = vld [vmem:[%s5299_s7 + $0x8] sm:$0xff] }
 0x1da   : > { %v4958_v37 = vsub.f32 %v4825_v17, %v1439_v33  ;;  %v2413_v21 = vsel %vm498_vm1, %v2411_v18, 0  ;;  %v3351_v18 = vld [vmem:[%s5299_s7] sm:$0xff] }
 0x1db   : > { %v5028_v26 = vand.u32 4294901760, %v2413_v21 }
 0x1dc   : > { %v1443_v39 = vmul.f32 %v4958_v37, %v4958_v37 }
 0x1dd   : > { %v2485_v30 = vsub.f32 %v2413_v21, %v5028_v26 }
 0x1de   : > { %v1445_v40 = vsel %vm498_vm1, %v1443_v39, 0 }
 0x1df   : > { %v1516_v41 = vand.u32 4294901760, %v1445_v40  ;;  %v2486_v31 = vand.u32 4294901760, %v2485_v30 }
 0x1e1   : > { %v1517_v42 = vsub.f32 %v1445_v40, %v1516_v41  ;;  %4267 = vmatmul.mubr.f32.vlgmr.msra.gmra.mxu1 %v1516_v41 }
 0x1e2   : > { %4281 = vmatpush3.msra.mxu1 %v4774_v4  ;;  %4288 = vmatprep.mubr.msk.f32.mxu1 %vm4643_vm0, %v4642_v3 }
 0x1e3   : > { %4282 = vmatprep.subr.mxu1 %v4642_v3  ;;  %v1518_v43 = vand.u32 4294901760, %v1517_v42 }
 0x1e4   : > { %4283 = vmatpush3.msra.mxu1 %v4777_v5 }
 0x1e5   : > { %4284 = vmatprep.subr.mxu1 %v4642_v3  ;;  %v1519_v17 = vsub.f32 %v1517_v42, %v1518_v43 }
 0x1e6   : > { %4285 = vmatpush3.msra.mxu1 %v4779_v6 }
 0x1e7   : > { %4286 = vmatprep.subr.mxu1 %v4642_v3  ;;  %v1520_v44 = vand.u32 4294901760, %v1519_v17 }
 0x1e8   : > { %4287 = vmatpush3.msra.mxu1 %v4784_v8 }
 0x1e9   : > { %4289 = vmatmul.mubr.f32.vlgmr.msra.gmra.mxu1 %v1518_v43  ;;  %4302 = vmatprep.subr.mxu1 %v4642_v3 }
 0x1ea   : > { %4256 = vmatmul.mubr.f32.vlgmr.msra.gmra.mxu0 %v1520_v44  ;;  %4303 = vmatpush3.msra.mxu1 %v4774_v4 }
 0x1eb   : > { %4270 = vmatpush3.msra.mxu0 %v4793_v9  ;;  %4304 = vmatprep.subr.mxu1 %v4642_v3 }
 0x1ec   : > { %4271 = vmatprep.subr.mxu0 %v4642_v3  ;;  %4305 = vmatpush3.msra.mxu1 %v4777_v5 }
 0x1ed   : > { %4272 = vmatpush3.msra.mxu0 %v4796_v10  ;;  %4306 = vmatprep.subr.mxu1 %v4642_v3 }
 0x1ee   : > { %4273 = vmatprep.subr.mxu0 %v4642_v3  ;;  %4307 = vmatpush3.msra.mxu1 %v4779_v6 }
 0x1ef   : > { %4274 = vmatpush3.msra.mxu0 %v4799_v11  ;;  %4308 = vmatprep.subr.mxu1 %v4642_v3 }
 0x1f0   : > { %4275 = vmatprep.subr.mxu0 %v4642_v3  ;;  %4277 = vmatprep.mubr.msk.f32.mxu0 %vm4643_vm0, %v4642_v3 }
 0x1f1   : > { %4276 = vmatpush3.msra.mxu0 %v4803_v12  ;;  %4309 = vmatpush3.msra.mxu1 %v4784_v8 }
 0x1f2   : > { %4310 = vmatprep.mubr.msk.f32.mxu1 %vm4643_vm0, %v4642_v3  ;;  %4278 = vmatmul.mubr.f32.vlgmr.msra.gmra.mxu0 %v1517_v42 }
 0x1f3   : > { %4291 = vmatprep.subr.mxu0 %v4642_v3  ;;  %4311 = vmatmul.mubr.f32.vlgmr.msra.gmra.mxu1 %v1516_v41 }
 0x1f4   : > { %4292 = vmatpush3.msra.mxu0 %v4808_v13  ;;  %4299 = vmatprep.mubr.msk.f32.mxu0 %vm4643_vm0, %v4642_v3 }
 0x1f5   : > { %4293 = vmatprep.subr.mxu0 %v4642_v3  ;;  %4318 = vmatprep.subr.mxu1 %v4642_v3 }
 0x1f6   : > { %4294 = vmatpush3.msra.mxu0 %v4812_v14  ;;  %4319 = vmatpush3.msra.mxu1 %v4916_v38 }
 0x1f7   : > { %4295 = vmatprep.subr.mxu0 %v4642_v3  ;;  %4320 = vmatprep.mubr.msk.f32.mxu1 %vm4643_vm0, %v4642_v3 }
 0x1f8   : > { %4296 = vmatpush3.msra.mxu0 %v4815_v15  ;;  %4328 = vmatprep.subr.mxu1 %v4642_v3 }
 0x1f9   : > { %4297 = vmatprep.subr.mxu0 %v4642_v3 }
 0x1fa   : > { %4298 = vmatpush3.msra.mxu0 %v4823_v16 }
 0x1fb   : > { %4300 = vmatmul.mubr.f32.vlgmr.msra.gmra.mxu0 %v1516_v41  ;;  %4313 = vmatprep.subr.mxu0 %v4642_v3 }
 0x1fc   : > { %4314 = vmatpush3.msra.mxu0 %v4904_v34  ;;  %4315 = vmatprep.mubr.msk.f32.mxu0 %vm4643_vm0, %v4642_v3 }
 0x1fd   : > { %4323 = vmatprep.subr.mxu0 %v4642_v3 }
 0x2a1   : > { %v1613_v45 = vpop.f32.mrf.mxu1 }
 0x2a3   : > { %v4268_v46 = vpop.f32.mrf.mxu1 }
 0x2a9   : > { %v1770_v47 = vpop.f32.mrf.mxu1 }
 0x2aa   : > { %v1522_v48 = vpop.f32.mrf.mxu0 }
 0x2ab   : > { %v4290_v49 = vpop.f32.mrf.mxu1  ;;  %v1614_v53 = vadd.f32 %v1613_v45, %v1522_v48 }
 0x2ac   : > { %v4257_v50 = vpop.f32.mrf.mxu0 }
 0x2b2   : > { %v1693_v51 = vpop.f32.mrf.mxu0 }
 0x2b3   : > { %v1928_v52 = vpop.f32.mrf.mxu1  ;;  %v1694_v56 = vadd.f32 %v1693_v51, %v1614_v53 }
 0x2b4   : > { %v4279_v54 = vpop.f32.mrf.mxu0 }
 0x2b5   : > { %v4312_v55 = vpop.f32.mrf.mxu1  ;;  %v1771_v57 = vadd.f32 %v1770_v47, %v1694_v56 }
 0x2bb   : > { %v1853_v58 = vpop.f32.mrf.mxu0 }
 0x2bc   : > { %v1854_v61 = vadd.f32 %v1853_v58, %v1771_v57 }
 0x2bd   : > { %v4301_v62 = vpop.f32.mrf.mxu0 }
 0x2be   : > { %v1929_v63 = vadd.f32 %v1928_v52, %v1854_v61  ;;  %v3353_v62 = vld [vmem:[%s5299_s7 + $0x10] sm:$0xff] }
 0x2c0   : > { %v1932_v2 = vmul.f32 0.0625, %v1929_v63  ;;  %v5148_v63 = vand.u32 4294901760, %v3353_v62 }
 0x2c2   : > { %v1934_v7 = vsel %vm988_vm3, %v1932_v2, 0  ;;  %v5157_v2 = vsub.f32 %v3353_v62, %v5148_v63 }
 0x2c3   : > { %v2002_v19 = vand.u32 4294901760, %v1934_v7 }
 0x2c5   : > { %v2003_v20 = vsub.f32 %v1934_v7, %v2002_v19  ;;  %4321 = vmatmul.mubr.f32.vlgmr.msra.gmra.mxu1 %v2002_v19  ;;  %v5159_v7 = vand.u32 4294901760, %v3352_v0 }
 0x2c6   : > { %4329 = vmatpush3.msra.mxu1 %v4904_v34  ;;  %4330 = vmatprep.mubr.msk.f32.mxu1 %vm4643_vm0, %v4642_v3 }
 0x2c7   : > { %v2004_v22 = vand.u32 4294901760, %v2003_v20  ;;  %4338 = vmatprep.subr.mxu1 %v4642_v3  ;;  %v5171_v21 = vsub.f32 %v3352_v0, %v5159_v7 }
 0x2c9   : > { %4331 = vmatmul.mubr.f32.vlgmr.msra.gmra.mxu1 %v2004_v22  ;;  %v2005_v25 = vsub.f32 %v2003_v20, %v2004_v22  ;;  %v5173_v22 = vand.u32 4294901760, %v3351_v18 }
 0x2ca   : > { %4339 = vmatpush3.msra.mxu1 %v4904_v34  ;;  %4340 = vmatprep.mubr.msk.f32.mxu1 %vm4643_vm0, %v4642_v3 }
 0x2cb   : > { %v2006_v28 = vand.u32 4294901760, %v2005_v25  ;;  %4354 = vmatprep.subr.mxu1 %v4642_v3 }
 0x2cd   : > { %4316 = vmatmul.mubr.f32.vlgmr.msra.gmra.mxu0 %v2006_v28  ;;  %4341 = vmatmul.mubr.f32.vlgmr.msra.gmra.mxu1 %v2002_v19  ;;  %v3478_v28 = vand.u32 4294901760, %v5171_v21 }
 0x2ce   : > { %4324 = vmatpush3.msra.mxu0 %v4907_v35  ;;  %4325 = vmatprep.mubr.msk.f32.mxu0 %vm4643_vm0, %v4642_v3 }
 0x2cf   : > { %4333 = vmatprep.subr.mxu0 %v4642_v3  ;;  %4355 = vmatpush3.msra.mxu1 %v4837_v23  ;;  %v2487_v23 = vsub.f32 %v2485_v30, %v2486_v31 }
 0x2d0   : > { %4356 = vmatprep.subr.mxu1 %v4642_v3  ;;  %4362 = vmatprep.mubr.msk.f32.mxu1 %vm4643_vm0, %v4642_v3 }
 0x2d1   : > { %4326 = vmatmul.mubr.f32.vlgmr.msra.gmra.mxu0 %v2003_v20  ;;  %4357 = vmatpush3.msra.mxu1 %v4839_v24  ;;  %v2488_v24 = vand.u32 4294901760, %v2487_v23  ;;  %v3471_v20 = vand.u32 4294901760, %v5157_v2  ;;  %v3479_v23 = vsub.f32 %v5171_v21, %v3478_v28 }
 0x2d2   : > { %4334 = vmatpush3.msra.mxu0 %v4912_v36  ;;  %4335 = vmatprep.mubr.msk.f32.mxu0 %vm4643_vm0, %v4642_v3 }
 0x2d3   : > { %4343 = vmatprep.subr.mxu0 %v4642_v3  ;;  %4358 = vmatprep.subr.mxu1 %v4642_v3 }
 0x2d4   : > { %4359 = vmatpush3.msra.mxu1 %v4846_v27 }
 0x2d5   : > { %4336 = vmatmul.mubr.f32.vlgmr.msra.gmra.mxu0 %v2002_v19  ;;  %4360 = vmatprep.subr.mxu1 %v4642_v3 }
 0x2d6   : > { %4344 = vmatpush3.msra.mxu0 %v4774_v4  ;;  %4351 = vmatprep.mubr.msk.f32.mxu0 %vm4643_vm0, %v4642_v3 }
 0x2d7   : > { %4345 = vmatprep.subr.mxu0 %v4642_v3  ;;  %4361 = vmatpush3.msra.mxu1 %v4850_v29 }
 0x2d8   : > { %4346 = vmatpush3.msra.mxu0 %v4777_v5  ;;  %4376 = vmatprep.subr.mxu1 %v4642_v3 }
 0x2d9   : > { %4347 = vmatprep.subr.mxu0 %v4642_v3  ;;  %4363 = vmatmul.mubr.f32.vlgmr.msra.gmra.mxu1 %v5028_v26 }
 0x2da   : > { %4348 = vmatpush3.msra.mxu0 %v4779_v6  ;;  %4377 = vmatpush3.msra.mxu1 %v4774_v4 }
 0x2db   : > { %4349 = vmatprep.subr.mxu0 %v4642_v3  ;;  %4378 = vmatprep.subr.mxu1 %v4642_v3 }
 0x2dc   : > { %4350 = vmatpush3.msra.mxu0 %v4784_v8  ;;  %4379 = vmatpush3.msra.mxu1 %v4777_v5 }
 0x2dd   : > { %4352 = vmatmul.mubr.f32.vlgmr.msra.gmra.mxu0 %v2488_v24  ;;  %4365 = vmatprep.subr.mxu0 %v4642_v3 }
 0x2de   : > { %4366 = vmatpush3.msra.mxu0 %v4793_v9  ;;  %4380 = vmatprep.subr.mxu1 %v4642_v3 }
 0x2df   : > { %4367 = vmatprep.subr.mxu0 %v4642_v3  ;;  %4381 = vmatpush3.msra.mxu1 %v4779_v6 }
 0x2e0   : > { %4368 = vmatpush3.msra.mxu0 %v4796_v10  ;;  %4382 = vmatprep.subr.mxu1 %v4642_v3 }
 0x2e1   : > { %4369 = vmatprep.subr.mxu0 %v4642_v3  ;;  %4373 = vmatprep.mubr.msk.f32.mxu0 %vm4643_vm0, %v4642_v3 }
 0x2e2   : > { %4370 = vmatpush3.msra.mxu0 %v4799_v11  ;;  %4383 = vmatpush3.msra.mxu1 %v4784_v8 }
 0x2e3   : > { %4371 = vmatprep.subr.mxu0 %v4642_v3  ;;  %4384 = vmatprep.mubr.msk.f32.mxu1 %vm4643_vm0, %v4642_v3 }
 0x2e4   : > { %4372 = vmatpush3.msra.mxu0 %v4803_v12  ;;  %4398 = vmatprep.subr.mxu1 %v4642_v3 }
 0x2e5   : > { %4374 = vmatmul.mubr.f32.vlgmr.msra.gmra.mxu0 %v2485_v30  ;;  %4387 = vmatprep.subr.mxu0 %v4642_v3  ;;  %v5182_v30 = vsub.f32 %v3351_v18, %v5173_v22 }
 0x2e6   : > { %4385 = vmatmul.mubr.f32.vlgmr.msra.gmra.mxu1 %v2486_v31  ;;  %4388 = vmatpush3.msra.mxu0 %v4808_v13 }
 0x2e7   : > { %4399 = vmatpush3.msra.mxu1 %v4774_v4  ;;  %4389 = vmatprep.subr.mxu0 %v4642_v3  ;;  %v3485_v24 = vand.u32 4294901760, %v5182_v30 }
 0x2e8   : > { %4400 = vmatprep.subr.mxu1 %v4642_v3  ;;  %4390 = vmatpush3.msra.mxu0 %v4812_v14 }
 0x2e9   : > { %4401 = vmatpush3.msra.mxu1 %v4777_v5  ;;  %4391 = vmatprep.subr.mxu0 %v4642_v3 }
 0x2ea   : > { %4402 = vmatprep.subr.mxu1 %v4642_v3  ;;  %4392 = vmatpush3.msra.mxu0 %v4815_v15 }
 0x2eb   : > { %4403 = vmatpush3.msra.mxu1 %v4779_v6  ;;  %4393 = vmatprep.subr.mxu0 %v4642_v3 }
 0x2ec   : > { %4404 = vmatprep.subr.mxu1 %v4642_v3  ;;  %4394 = vmatpush3.msra.mxu0 %v4823_v16 }
 0x2ed   : > { %4395 = vmatprep.mubr.msk.f32.mxu0 %vm4643_vm0, %v4642_v3  ;;  %4405 = vmatpush3.msra.mxu1 %v4784_v8 }
 0x2ee   : > { %4406 = vmatprep.mubr.msk.f32.mxu1 %vm4643_vm0, %v4642_v3  ;;  %4396 = vmatmul.mubr.f32.vlgmr.msra.gmra.mxu0 %v5028_v26 }
 0x2ef   : > { %4407 = vmatmul.mubr.f32.vlgmr.msra.gmra.mxu1 %v5028_v26  ;;  %4414 = vmatprep.subr.mxu1 %v4642_v3  ;;  %v3472_v26 = vsub.f32 %v5157_v2, %v3471_v20 }
 0x2f0   : > { %4415 = vmatpush3.msra.mxu1 %v4916_v38  ;;  %4416 = vmatprep.mubr.msk.f32.mxu1 %vm4643_vm0, %v4642_v3 }
 0x2f1   : > { %4424 = vmatprep.subr.mxu1 %v4642_v3  ;;  %4409 = vmatprep.subr.mxu0 %v4642_v3  ;;  %v3473_v31 = vand.u32 4294901760, %v3472_v26 }
 0x2f2   : > { %4410 = vmatpush3.msra.mxu0 %v4904_v34  ;;  %4411 = vmatprep.mubr.msk.f32.mxu0 %vm4643_vm0, %v4642_v3 }
 0x2f3   : > { %4419 = vmatprep.subr.mxu0 %v4642_v3 }
 0x385   : > { %v2084_v4 = vpop.f32.mrf.mxu1 }
 0x387   : > { %v4322_v5 = vpop.f32.mrf.mxu1 }
 0x388   : > { %v3486_v5 = vsub.f32 %v5182_v30, %v3485_v24 }
 0x389   : > { %v2232_v6 = vpop.f32.mrf.mxu1 }
 0x38b   : > { %v4332_v8 = vpop.f32.mrf.mxu1 }
 0x38d   : > { %v2008_v9 = vpop.f32.mrf.mxu0  ;;  %v2378_v10 = vpop.f32.mrf.mxu1 }
 0x38e   : > { %v2009_v11 = vadd.f32 0.00064, %v2008_v9 }
 0x38f   : > { %v4317_v12 = vpop.f32.mrf.mxu0  ;;  %v4342_v13 = vpop.f32.mrf.mxu1 }
 0x390   : > { %v2085_v14 = vadd.f32 %v2084_v4, %v2009_v11  ;;  %v3480_v4 = vand.u32 4294901760, %v3479_v23 }
 0x391   : > { %v2158_v15 = vpop.f32.mrf.mxu0 }
 0x392   : > { %v2159_v16 = vadd.f32 %v2158_v15, %v2085_v14 }
 0x393   : > { %v4327_v27 = vpop.f32.mrf.mxu0 }
 0x394   : > { %v2233_v29 = vadd.f32 %v2232_v6, %v2159_v16  ;;  %v3487_v6 = vand.u32 4294901760, %v3486_v5 }
 0x395   : > { %v2306_v38 = vpop.f32.mrf.mxu0 }
 0x396   : > { %v2307_v32 = vadd.f32 %v2306_v38, %v2233_v29 }
 0x397   : > { %v4337_v33 = vpop.f32.mrf.mxu0 }
 0x398   : > { %v5114_v39 = vadd.f32 %v2378_v10, %v2307_v32 }
 0x399   : > { %v2581_v40 = vpop.f32.mrf.mxu1 }
 0x39a   : > { %4562 = vrsqrt.f32 %v5114_v39  ;;  %v3988_v39 = vld [vmem:[%s5297_s5] ss:$0 sm:$0xff] }
 0x39b   : > { %v4364_v41 = vpop.f32.mrf.mxu1 }
 0x39d   : > { %v2490_v42 = vpop.f32.mrf.mxu0 }
 0x39e   : > { %v2582_v45 = vadd.f32 %v2581_v40, %v2490_v42 }
 0x39f   : > { %v4353_v43 = vpop.f32.mrf.mxu0 }
 0x3a5   : > { %v2661_v17 = vpop.f32.mrf.mxu0 }
 0x3a6   : > { %v2738_v44 = vpop.f32.mrf.mxu1  ;;  %v2662_v48 = vadd.f32 %v2661_v17, %v2582_v45  ;;  %v3989_v17 = vld [vmem:[%s5298_s6] ss:$0 sm:$0xff] }
 0x3a7   : > { %v4375_v46 = vpop.f32.mrf.mxu0  ;;  %v4563_v14 = vpop.eup %4562 }
 0x3a8   : > { %v4386_v47 = vpop.f32.mrf.mxu1  ;;  %v2739_v49 = vadd.f32 %v2738_v44, %v2662_v48  ;;  %v2383_v32 = vmul.f32 %v4563_v14, %v4958_v37  ;;  %v2402_v44 = vld [vmem:[%s491_s25] sm:$0xff] }
 0x3aa   : > { %v2391_v42 = vmul.f32 %v3988_v39, %v2383_v32 }
 0x3ac   : > { %v2399_v46 = vadd.f32 %v3989_v17, %v2391_v42 }
 0x3ae   : > { %v2821_v50 = vpop.f32.mrf.mxu0 }
 0x3af   : > { %v2822_v51 = vadd.f32 %v2821_v50, %v2739_v49  ;;  %v2896_v52 = vpop.f32.mrf.mxu1 }
 0x3b0   : > { %v4397_v53 = vpop.f32.mrf.mxu0 }
 0x3b1   : > { %v2897_v54 = vadd.f32 %v2896_v52, %v2822_v51  ;;  %v4408_v55 = vpop.f32.mrf.mxu1 }
 0x3b3   : > { %v2901_v56 = vsel %vm988_vm3, %v2897_v54, 0 }
 0x3b4   : > { %v2969_v57 = vand.u32 4294901760, %v2901_v56 }
 0x3b6   : > { %v2970_v58 = vsub.f32 %v2901_v56, %v2969_v57  ;;  %4417 = vmatmul.mubr.f32.vlgmr.msra.gmra.mxu1 %v2969_v57 }
 0x3b7   : > { %4425 = vmatpush3.msra.mxu1 %v4904_v34  ;;  %4426 = vmatprep.mubr.msk.f32.mxu1 %vm4643_vm0, %v4642_v3 }
 0x3b8   : > { %v2971_v59 = vand.u32 4294901760, %v2970_v58  ;;  %4434 = vmatprep.subr.mxu1 %v4642_v3 }
 0x3ba   : > { %4427 = vmatmul.mubr.f32.vlgmr.msra.gmra.mxu1 %v2971_v59  ;;  %v2972_v60 = vsub.f32 %v2970_v58, %v2971_v59 }
 0x3bb   : > { %4435 = vmatpush3.msra.mxu1 %v4904_v34  ;;  %4436 = vmatprep.mubr.msk.f32.mxu1 %vm4643_vm0, %v4642_v3  ;;  %v3354_v34 = vld [vmem:[%s5299_s7 + $0x18] sm:$0xff] }
 0x3bc   : > { %v2973_v61 = vand.u32 4294901760, %v2972_v60  ;;  %4450 = vmatprep.subr.mxu1 %v4642_v3 }
 0x3be   : > { %4412 = vmatmul.mubr.f32.vlgmr.msra.gmra.mxu0 %v2973_v61  ;;  %4437 = vmatmul.mubr.f32.vlgmr.msra.gmra.mxu1 %v2969_v57 }
 0x3bf   : > { %4420 = vmatpush3.msra.mxu0 %v4907_v35  ;;  %4421 = vmatprep.mubr.msk.f32.mxu0 %vm4643_vm0, %v4642_v3  ;;  %v5140_v35 = vand.u32 4294901760, %v3354_v34 }
 0x3c0   : > { %4429 = vmatprep.subr.mxu0 %v4642_v3  ;;  %4458 = vmatprep.mubr.msk.f32.mxu1 %vm4643_vm0, %v4642_v3 }
 0x3c2   : > { %4422 = vmatmul.mubr.f32.vlgmr.msra.gmra.mxu0 %v2970_v58 }
 0x3c3   : > { %4430 = vmatpush3.msra.mxu0 %v4912_v36  ;;  %4431 = vmatprep.mubr.msk.f32.mxu0 %vm4643_vm0, %v4642_v3  ;;  %v5146_v36 = vsub.f32 %v3354_v34, %v5140_v35 }
 0x3c4   : > { %4439 = vmatprep.subr.mxu0 %v4642_v3 }
 0x3c5   : > { %v3464_v1 = vand.u32 4294901760, %v5146_v36 }
 0x3c6   : > { %4432 = vmatmul.mubr.f32.vlgmr.msra.gmra.mxu0 %v2969_v57 }
 0x3c7   : > { %4447 = vmatprep.mubr.msk.f32.mxu0 %vm4643_vm0, %v4642_v3  ;;  %4440 = vmatpush3.msra.mxu0 %v5140_v35  ;;  %v3465_v19 = vsub.f32 %v5146_v36, %v3464_v1 }
 0x3c8   : > { %4441 = vmatprep.subr.mxu0 %v4642_v3 }
 0x3c9   : > { %4442 = vmatpush3.msra.mxu0 %v5148_v63  ;;  %v3466_v25 = vand.u32 4294901760, %v3465_v19 }
 0x3ca   : > { %4443 = vmatprep.subr.mxu0 %v4642_v3 }
 0x3cb   : > { %4444 = vmatpush3.msra.mxu0 %v5159_v7  ;;  %4451 = vmatpush3.msra.mxu1 %v3466_v25 }
 0x3cc   : > { %4445 = vmatprep.subr.mxu0 %v4642_v3  ;;  %4452 = vmatprep.subr.mxu1 %v4642_v3 }
 0x3cd   : > { %4446 = vmatpush3.msra.mxu0 %v5173_v22  ;;  %4453 = vmatpush3.msra.mxu1 %v3473_v31 }
 0x3ce   : > { %4461 = vmatprep.subr.mxu0 %v4642_v3  ;;  %4454 = vmatprep.subr.mxu1 %v4642_v3 }
 0x3cf   : > { %4455 = vmatpush3.msra.mxu1 %v3480_v4 }
 0x3d0   : > { %4456 = vmatprep.subr.mxu1 %v4642_v3 }
 0x3d1   : > { %4457 = vmatpush3.msra.mxu1 %v3487_v6 }
 0x3d2   : > { %4472 = vmatprep.subr.mxu1 %v4642_v3 }
 0x476   : > { %v3051_v8 = vpop.f32.mrf.mxu1 }
 0x478   : > { %v4418_v9 = vpop.f32.mrf.mxu1 }
 0x47a   : > { %v3199_v10 = vpop.f32.mrf.mxu1 }
 0x47c   : > { %v4428_v11 = vpop.f32.mrf.mxu1 }
 0x47e   : > { %v2975_v12 = vpop.f32.mrf.mxu0  ;;  %v3345_v13 = vpop.f32.mrf.mxu1 }
 0x47f   : > { %v3052_v27 = vadd.f32 %v3051_v8, %v2975_v12 }
 0x480   : > { %v4413_v15 = vpop.f32.mrf.mxu0  ;;  %v4438_v16 = vpop.f32.mrf.mxu1 }
 0x482   : > { %v3125_v29 = vpop.f32.mrf.mxu0 }
 0x483   : > { %v3126_v38 = vadd.f32 %v3125_v29, %v3052_v27 }
 0x484   : > { %v4423_v33 = vpop.f32.mrf.mxu0 }
 0x485   : > { %v3200_v40 = vadd.f32 %v3199_v10, %v3126_v38 }
 0x486   : > { %v3273_v41 = vpop.f32.mrf.mxu0 }
 0x487   : > { %v3274_v43 = vadd.f32 %v3273_v41, %v3200_v40 }
 0x488   : > { %v4433_v45 = vpop.f32.mrf.mxu0 }
 0x489   : > { %v3346_v37 = vadd.f32 %v3345_v13, %v3274_v43 }
 0x48b   : > { %v3349_v47 = vmul.f32 %v3346_v37, %v2402_v44 }
 0x48d   : > { %v3350_v48 = vadd.f32 %v3349_v47, %v2399_v46 }
 0x48f   : > { %v3356_v49 = vsel %vm498_vm1, %v3350_v48, 0 }
 0x490   : > { %v3427_v50 = vand.u32 4294901760, %v3356_v49 }
 0x492   : > { %v3428_v51 = vsub.f32 %v3356_v49, %v3427_v50  ;;  %4459 = vmatmul.mubr.f32.vlgmr.msra.gmra.mxu1 %v3427_v50 }
 0x493   : > { %4473 = vmatpush3.msra.mxu1 %v5140_v35  ;;  %4480 = vmatprep.mubr.msk.f32.mxu1 %vm4643_vm0, %v4642_v3 }
 0x494   : > { %4474 = vmatprep.subr.mxu1 %v4642_v3  ;;  %v3429_v52 = vand.u32 4294901760, %v3428_v51 }
 0x495   : > { %4475 = vmatpush3.msra.mxu1 %v5148_v63 }
 0x496   : > { %4476 = vmatprep.subr.mxu1 %v4642_v3  ;;  %v3430_v53 = vsub.f32 %v3428_v51, %v3429_v52 }
 0x497   : > { %4477 = vmatpush3.msra.mxu1 %v5159_v7 }
 0x498   : > { %4478 = vmatprep.subr.mxu1 %v4642_v3  ;;  %v3431_v54 = vand.u32 4294901760, %v3430_v53 }
 0x499   : > { %4479 = vmatpush3.msra.mxu1 %v5173_v22 }
 0x49a   : > { %4481 = vmatmul.mubr.f32.vlgmr.msra.gmra.mxu1 %v3429_v52  ;;  %4494 = vmatprep.subr.mxu1 %v4642_v3 }
 0x49b   : > { %4448 = vmatmul.mubr.f32.vlgmr.msra.gmra.mxu0 %v3431_v54  ;;  %4495 = vmatpush3.msra.mxu1 %v5140_v35 }
 0x49c   : > { %4462 = vmatpush3.msra.mxu0 %v5146_v36  ;;  %4496 = vmatprep.subr.mxu1 %v4642_v3 }
 0x49d   : > { %4463 = vmatprep.subr.mxu0 %v4642_v3  ;;  %4497 = vmatpush3.msra.mxu1 %v5148_v63 }
 0x49e   : > { %4464 = vmatpush3.msra.mxu0 %v5157_v2  ;;  %4498 = vmatprep.subr.mxu1 %v4642_v3  ;;  %v3844_v2 = vstv %s3843_s14  ;;  %s4644_s14 = smov [#allocation3]  }
 0x49f   : > { %4465 = vmatprep.subr.mxu0 %v4642_v3  ;;  %4499 = vmatpush3.msra.mxu1 %v5159_v7  ;;  %s4568_s1 = sshll.u32 %s4644_s14, 4  ;;  %s4569_s1 = int_to_ptr.vmem [resolvable:$false] %s4568_s1 }
 0x4a0   : > { %4466 = vmatpush3.msra.mxu0 %v5171_v21  ;;  %4500 = vmatprep.subr.mxu1 %v4642_v3  ;;  %s4570_s22 = scalar_lea.vmem %s4569_s1, 256  ;;  %p4571_p1 = scmp.lt.s32.totalorder %s3863_s18, %s4569_s1 }
 0x4a1   : > { %4467 = vmatprep.subr.mxu0 %v4642_v3  ;;  %4469 = vmatprep.mubr.msk.f32.mxu0 %vm4643_vm0, %v4642_v3  ;;  %p4572_p2 = scmp.lt.s32.totalorder %s4570_s22, %s4564_s0 }
 0x4a2   : > { %4468 = vmatpush3.msra.mxu0 %v5182_v30  ;;  %4501 = vmatpush3.msra.mxu1 %v5173_v22 }
 0x4a3   : > { %4502 = vmatprep.mubr.msk.f32.mxu1 %vm4643_vm0, %v4642_v3  ;;  %4470 = vmatmul.mubr.f32.vlgmr.msra.gmra.mxu0 %v3428_v51  ;;  %p4573_p3 = por %p4572_p2, %p4571_p1 }
 0x4a4   : > { %4483 = vmatprep.subr.mxu0 %v4642_v3  ;;  %4503 = vmatmul.mubr.f32.vlgmr.msra.gmra.mxu1 %v3427_v50 }
 0x4a5   : > { %4484 = vmatpush3.msra.mxu0 %v3464_v1  ;;  %4491 = vmatprep.mubr.msk.f32.mxu0 %vm4643_vm0, %v4642_v3  ;;  %p4574_p5 = pnand %p4573_p3, %p4567_p0 }
 0x4a6   : > { %4485 = vmatprep.subr.mxu0 %v4642_v3 }
 0x4a7   : > { %4486 = vmatpush3.msra.mxu0 %v3471_v20 }
 0x4a8   : > { %4487 = vmatprep.subr.mxu0 %v4642_v3 }
 0x4a9   : > { %4488 = vmatpush3.msra.mxu0 %v3478_v28 }
 0x4aa   : > { %4489 = vmatprep.subr.mxu0 %v4642_v3 }
 0x4ab   : > { %4490 = vmatpush3.msra.mxu0 %v3485_v24 }
 0x4ac   : > { %4492 = vmatmul.mubr.f32.vlgmr.msra.gmra.mxu0 %v3427_v50 }
 0x552   : > { %v3524_v55 = vpop.f32.mrf.mxu1 }
 0x554   : > { %v4460_v56 = vpop.f32.mrf.mxu1 }
 0x55a   : > { %v3681_v57 = vpop.f32.mrf.mxu1 }
 0x55b   : > { %v3433_v58 = vpop.f32.mrf.mxu0 }
 0x55c   : > { %v4482_v59 = vpop.f32.mrf.mxu1  ;;  %v3525_v35 = vadd.f32 %v3524_v55, %v3433_v58 }
 0x55d   : > { %v4449_v60 = vpop.f32.mrf.mxu0 }
 0x563   : > { %v3604_v61 = vpop.f32.mrf.mxu0 }
 0x564   : > { %v3839_v34 = vpop.f32.mrf.mxu1  ;;  %v3605_v63 = vadd.f32 %v3604_v61, %v3525_v35 }
 0x565   : > { %v4471_v62 = vpop.f32.mrf.mxu0 }
 0x566   : > { %v4504_v36 = vpop.f32.mrf.mxu1  ;;  %v3682_v3 = vadd.f32 %v3681_v57, %v3605_v63 }
 0x56c   : > { %v3764_v0 = vpop.f32.mrf.mxu0 }
 0x56d   : > { %v3765_v1 = vadd.f32 %v3764_v0, %v3682_v3 }
 0x56e   : > { %v4493_v7 = vpop.f32.mrf.mxu0 }
 0x56f   : > { %v3840_v18 = vadd.f32 %v3839_v34, %v3765_v1 }
 0x571   : > { %v3845_v19 = vmul.f32 %v3844_v2, %v3840_v18 }
 0x573   : > { %3846 = vst.msk [vmem:[%s463_s17] sm:$0xff] %vm498_vm1, %v3845_v19 }
 0x574   : > { %4577 = shalt.err (!%p4574_p5)
}
 0x575   : > { %s4578_s15 = scalar_lea.hbm %s3860_s27, 128  ;;  %s4582_s17 = scalar_lea.hbm %s5303_s11, 256 }
 0x576   : > { %p4579_p6 = scmp.ne.s32.totalorder %s3860_s27, %s4578_s15  ;;  %p4583_p10 = scmp.lt.s32.totalorder %s3860_s27, %s5303_s11 }
 0x577   : > { %p4584_p11 = scmp.lt.s32.totalorder %s4582_s17, %s4578_s15 }
 0x578   : > { %p4580_p7 = pnand %p4579_p6, %p4748_p4 }
 0x579   : > { %p4585_p12 = por %p4584_p11, %p4583_p10 }
 0x57a   : > { %p4581_p9 = pneg %p4580_p7 }
 0x57c   : > { %p4586_p13 = pnand %p4585_p12, %p4581_p9 }
 0x57e   : > { %4589 = shalt.err (!%p4586_p13)
}
 0x57f   : > { %4505 = dma.vmem_to_hbm [thread:$0]  (%p4748_p4), %s3863_s18, 128, %s3860_s27, %s3848_s13  }
 0x580 PF: > { %p4511_p0 = scmp.ge.s32.totalorder %s4640_s24, 2  ;;  %s3874_s0 = sand.u32 1, %s4620_s19  }
 0x581   : > { %s3875_s1 = scalar_lea.sflag [#allocation4], %s3874_s0 }
 0x582   : > { %p4508_p1 = pnand %p4511_p0, %p4755_p8 }
 0x584   : > { %p4509_p2 = pneg %p4508_p1 }
 0x586   : > { %4615 = dma.done.wait (%p4509_p2), %s3875_s1, 128  }
 0x587   : > { %4617 = vsyncadd (%p4509_p2), %s3875_s1, 4294967168  ;;  %s25_s24 = sadd.s32 1, %s4640_s24   ;;  %s5310_s19 = smov %s4624_s20 }
 0x588   : > { %p22_p3 = scmp.ge.s32.totalorder %s25_s24, 4   ;;  %s5311_s20 = smov %s4628_s21 }
 0x589   : > { %s5312_s21 = smov %s4761_s12  ;;  %s5313_s22 = smov %s4636_s23 }
 0x58a   : > { %s5314_s23 = smov %s5316_s26  ;;  %24 = sbr.rel (!%p22_p3) target bundleno = 8 (0x8), region = 108 }
 0x58f   :  { %3880 = vsyncpa [#allocation4], 1 }
 0x590   :  { %3882 = vsyncpa [#allocation4 + $0x1], 1 }

// kernel: rwkv_tmix_x070_forward.3
= control target key start
LH: loop header
LB: loop body
LE: loop exit
PB: predicated region body
PF: predicated region fallthrough
CT: control target
= control target key end

     0   :  { %s8345_s0 = inlined_call_operand.vmem [shape: f32[2,8,32], index: 0, kind: input, shape index: {}]   ;;  %s8346_s1 = inlined_call_operand.vmem [shape: f32[2,8,32], index: 1, kind: input, shape index: {}]   ;;  %s8347_s2 = inlined_call_operand.vmem [shape: f32[32,96], index: 2, kind: input, shape index: {}]   ;;  %s8348_s3 = inlined_call_operand.vmem [shape: f32[32,32], index: 3, kind: input, shape index: {}]   ;;  %s8349_s4 = inlined_call_operand.vmem [shape: f32[32,32], index: 4, kind: input, shape index: {}]   ;;  %s8350_s5 = inlined_call_operand.hbm [shape: f32[1,32], index: 5, kind: input, shape index: {}]   ;;  %s8351_s6 = inlined_call_operand.hbm [shape: f32[32,32], index: 6, kind: input, shape index: {}]   ;;  %s8352_s7 = inlined_call_operand.hbm [shape: f32[32,32], index: 7, kind: input, shape index: {}]   ;;  %s8353_s8 = inlined_call_operand.hbm [shape: f32[1,32], index: 8, kind: input, shape index: {}]   ;;  %s8354_s9 = inlined_call_operand.hbm [shape: f32[32,32], index: 9, kind: input, shape index: {}]   ;;  %s8355_s10 = inlined_call_operand.hbm [shape: f32[32,32], index: 10, kind: input, shape index: {}]   ;;  %s8356_s11 = inlined_call_operand.hbm [shape: f32[1,32], index: 11, kind: input, shape index: {}]   ;;  %s8357_s12 = inlined_call_operand.hbm [shape: f32[1,32], index: 12, kind: input, shape index: {}]   ;;  %s8358_s13 = inlined_call_operand.hbm [shape: f32[1,32], index: 13, kind: input, shape index: {}]   ;;  %s8359_s14 = inlined_call_operand.vmem [shape: f32[32,2], index: 14, kind: input, shape index: {}]   ;;  %s8360_s15 = inlined_call_operand.vmem [shape: f32[2,32], index: 15, kind: input, shape index: {}]   ;;  %s8361_s16 = inlined_call_operand.vmem [shape: f32[2,8,32], index: 16, kind: output, shape index: {0}]   ;;  %s8362_s17 = inlined_call_operand.vmem [shape: f32[2,8,32], index: 17, kind: output, shape index: {1}]   ;;  %s8363_s18 = inlined_call_operand.vmem [shape: f32[2,8,32], index: 18, kind: output, shape index: {2}]   ;;  %s8364_s19 = inlined_call_operand.vmem [shape: f32[2,8,32], index: 19, kind: output, shape index: {3}]   ;;  %s8365_s20 = inlined_call_operand.vmem [shape: f32[2,8,32], index: 20, kind: output, shape index: {4}]   ;;  %s8366_s21 = inlined_call_operand.vmem [shape: f32[2,8,32], index: 21, kind: output, shape index: {5}]  }
   0x1   :  { %8379 = sst [smem:[#allocation22_spill]] %s8345_s0 }
   0x2   :  { %8380 = sst [smem:[#allocation23_spill]] %s8346_s1 }
   0x3   :  { %8381 = sst [smem:[#allocation24_spill]] %s8347_s2 }
   0x4   :  { %8382 = sst [smem:[#allocation25_spill]] %s8348_s3 }
   0x5   :  { %8383 = sst [smem:[#allocation26_spill]] %s8349_s4 }
   0x6   :  { %8384 = sst [smem:[#allocation27_spill]] %s8350_s5 }
   0x7   :  { %8385 = sst [smem:[#allocation28_spill]] %s8363_s18 }
   0x8   :  { %8386 = sst [smem:[#allocation29_spill]] %s8365_s20 }
   0x9   :  { %8387 = sst [smem:[#allocation30_spill]] %s8366_s21 }
   0xa   :  { %27 = vsyncpa [#allocation3], 0 }
   0xb   :  { %28 = vsyncpa [#allocation5], 0 }
   0xc   :  { %29 = vsyncpa [#allocation8], 0 }
   0xd   :  { %30 = vsyncpa [#allocation11], 0 }
   0xe   :  { %31 = vsyncpa [#allocation14], 0  ;;  %s7222_s2 = smov 0   ;;  %s7224_s25 = smov 0  }
   0xf   :  { %s7226_s26 = smov 0  }
  0x10 LB: > { %8388 = sst [smem:[#allocation21_spill]] %s7094_s26  ;;  %s7096_s27 = smov [#allocation4]   ;;  %s7094_s26 = sphi %s7226_s26, %s37_s26   ;;  %s7090_s25 = sphi %s7224_s25, %s8409_s25   ;;  %s7086_s2 = sphi %s7222_s2, %s8408_s2  }
  0x11   : > { %s604_s3 = sshll.u32 %s7096_s27, 4  ;;  %s5826_s28 = sadd.s32 4294967295, %s7094_s26   ;;  %s605_s3 = int_to_ptr.vmem [resolvable:$true] %s604_s3 }
  0x12   : > { %p5828_p0 = scmp.ge.s32.totalorder %s7094_s26, 1  ;;  %p572_p1 = scmp.lt.s32.totalorder %s7094_s26, 3 }
  0x13   : > { %p7240_p2 = scmp.eq.s32.totalorder %s5826_s28, 0  ;;  %s7097_s4 = smov [#allocation7]  }
  0x14   : > { %p7244_p3 = pnand %p5828_p0, %p572_p1  ;;  %s631_s30 = sshll.u32 %s7097_s4, 4  ;;  %s7250_s30 = int_to_ptr.vmem [resolvable:$true] %s631_s30 }
  0x15   : > { %s8389_s29 = scalar_select %p7240_p2, 1, 0 }
  0x16   : > { %s8390_s0 = scalar_select %p7244_p3, 1, 0 }
  0x17   : > { %p6714_p4 = pneg %p7244_p3  ;;  %s7098_s22 = smov [#allocation10]  }
  0x18   : > { %s654_s23 = sshll.u32 %s7098_s22, 4  ;;  %s7099_s1 = smov [#allocation13]   ;;  %s7258_s23 = int_to_ptr.vmem [resolvable:$true] %s654_s23 }
  0x19   : > { %p7254_p5 = pnand %p7240_p2, %p6714_p4  ;;  %s7260_s24 = sshll.u32 %s7099_s1, 4  ;;  %s680_s24 = int_to_ptr.vmem [resolvable:$true] %s7260_s24 }
  0x1a   : > { %s6829_s28 = scalar_lea.vmem %s605_s3, 512  ;;  %p6837_p10 = scmp.lt.s32.totalorder %s605_s3, %s605_s3 }
  0x1b   : > { %p7264_p6 = pneg %p7254_p5  ;;  %p6830_p7 = scmp.ne.s32.totalorder %s605_s3, %s6829_s28 }
  0x1c   : > { %p6838_p11 = scmp.lt.s32.totalorder %s6829_s28, %s6829_s28 }
  0x1d   : > { %p6832_p8 = pnand %p6830_p7, %p7264_p6 }
  0x1e   : > { %p6839_p12 = por %p6838_p11, %p6837_p10 }
  0x1f   : > { %p6833_p9 = pneg %p6832_p8 }
  0x21   : > { %p6840_p13 = pnand %p6839_p12, %p6833_p9 }
  0x23   : > { %6843 = shalt.err (!%p6840_p13)
}
  0x24   : > { %s8371_s4 = smov 128   ;;  %s8373_s22 = smov 8  }
  0x25   : > { %6720 = dma.hbm_to_vmem [thread:$0]  (!%p7254_p5), %s8351_s6, 512, %s605_s3, [#allocation5], %s8371_s4, %s8371_s4, %s8373_s22  }
  0x26   : > { %s6855_s28 = scalar_lea.vmem %s7250_s30, 16  ;;  %s6862_s20 = scalar_lea.vmem %s7250_s30, 32 }
  0x27   : > { %p6856_p0 = scmp.ne.s32.totalorder %s7250_s30, %s6855_s28  ;;  %p6863_p7 = scmp.lt.s32.totalorder %s7250_s30, %s7250_s30 }
  0x28   : > { %p6864_p8 = scmp.lt.s32.totalorder %s6862_s20, %s6855_s28 }
  0x29   : > { %p6858_p1 = pnand %p6856_p0, %p7264_p6 }
  0x2a   : > { %p6865_p9 = por %p6864_p8, %p6863_p7 }
  0x2b   : > { %p6859_p4 = pneg %p6858_p1 }
  0x2d   : > { %p6866_p10 = pnand %p6865_p9, %p6859_p4 }
  0x2f   : > { %6869 = shalt.err (!%p6866_p10)
}
  0x30   : > { %6726 = dma.hbm_to_vmem [thread:$0]  (!%p7254_p5), %s8353_s8, 16, %s7250_s30, [#allocation8]  }
  0x31   : > { %s6881_s26 = scalar_lea.vmem %s7258_s23, 512  ;;  %p6889_p0 = scmp.lt.s32.totalorder %s7258_s23, %s7258_s23 }
  0x32   : > { %p6882_p11 = scmp.ne.s32.totalorder %s7258_s23, %s6881_s26  ;;  %p6890_p1 = scmp.lt.s32.totalorder %s6881_s26, %s6881_s26 }
  0x34   : > { %p6884_p12 = pnand %p6882_p11, %p7264_p6  ;;  %p6891_p4 = por %p6890_p1, %p6889_p0 }
  0x36   : > { %p6885_p13 = pneg %p6884_p12 }
  0x38   : > { %p6892_p7 = pnand %p6891_p4, %p6885_p13 }
  0x3a   : > { %6895 = shalt.err (!%p6892_p7)
}
  0x3b   : > { %6732 = dma.hbm_to_vmem [thread:$0]  (!%p7254_p5), %s8355_s10, 512, %s7258_s23, [#allocation11], %s8371_s4, %s8371_s4, %s8373_s22  }
  0x3c   : > { %s6907_s21 = scalar_lea.vmem %s680_s24, 16  ;;  %s6914_s3 = scalar_lea.vmem %s680_s24, 32 }
  0x3d   : > { %p6908_p8 = scmp.ne.s32.totalorder %s680_s24, %s6907_s21  ;;  %p6915_p11 = scmp.lt.s32.totalorder %s680_s24, %s680_s24 }
  0x3e   : > { %p6916_p12 = scmp.lt.s32.totalorder %s6914_s3, %s6907_s21 }
  0x3f   : > { %p6910_p9 = pnand %p6908_p8, %p7264_p6 }
  0x40   : > { %p6917_p13 = por %p6916_p12, %p6915_p11 }
  0x41   : > { %p6911_p10 = pneg %p6910_p9 }
  0x43   : > { %p6918_p0 = pnand %p6917_p13, %p6911_p10 }
  0x45   : > { %6921 = shalt.err (!%p6918_p0)
}
  0x46   : > { %6738 = dma.hbm_to_vmem [thread:$0]  (!%p7254_p5), %s8357_s12, 16, %s680_s24, [#allocation14]  }
  0x47   : > { %s49_s23 = sadd.s32 1, %s7090_s25  ;;  %s7102_s28 = smov [#allocation2]  }
  0x48   : > { %s594_s26 = sshll.u32 %s7102_s28, 4  ;;  %p51_p1 = scmp.ge.s32.totalorder %s49_s23, 2  ;;  %s595_s26 = int_to_ptr.vmem [resolvable:$true] %s594_s26 }
  0x49   : > { %s6933_s18 = scalar_lea.vmem %s595_s26, 16  ;;  %s6940_s20 = scalar_lea.vmem %s595_s26, 32 }
  0x4a   : > { %p6934_p4 = scmp.ne.s32.totalorder %s595_s26, %s6933_s18  ;;  %p6941_p9 = scmp.lt.s32.totalorder %s595_s26, %s595_s26 }
  0x4b   : > { %p6942_p10 = scmp.lt.s32.totalorder %s6940_s20, %s6933_s18 }
  0x4c   : > { %p6936_p7 = pnand %p6934_p4, %p7264_p6 }
  0x4d   : > { %p6943_p11 = por %p6942_p10, %p6941_p9 }
  0x4e   : > { %p6937_p8 = pneg %p6936_p7 }
  0x50   : > { %p6944_p12 = pnand %p6943_p11, %p6937_p8 }
  0x52   : > { %6947 = shalt.err (!%p6944_p12)
}
  0x53   : > { %s8393_s3 = sld [smem:[#allocation27_spill]]  ;;  %s8411_s23 = smov (%p51_p1, %s49_s23), 0 }
  0x54   : > { %s7103_s30 = smov [#allocation6]   ;;  %s7104_s28 = smov [#allocation9]  }
  0x55   : > { %s617_s1 = sshll.u32 %s7103_s30, 4  ;;  %s641_s4 = sshll.u32 %s7104_s28, 4  ;;  %s618_s1 = int_to_ptr.vmem [resolvable:$true] %s617_s1  ;;  %s642_s4 = int_to_ptr.vmem [resolvable:$true] %s641_s4 }
  0x56   : > { %s6959_s22 = scalar_lea.vmem %s618_s1, 512  ;;  %p6967_p7 = scmp.lt.s32.totalorder %s618_s1, %s618_s1 }
  0x57   : > { %p6960_p13 = scmp.ne.s32.totalorder %s618_s1, %s6959_s22  ;;  %p6968_p8 = scmp.lt.s32.totalorder %s6959_s22, %s6959_s22 }
  0x59   : > { %6717 = dma.hbm_to_vmem [thread:$0]  (!%p7254_p5), %s8393_s3, 16, %s595_s26, [#allocation3]  }
  0x5a   : > { %p6962_p0 = pnand %p6960_p13, %p7264_p6  ;;  %p6969_p9 = por %p6968_p8, %p6967_p7 }
  0x5c   : > { %p6963_p4 = pneg %p6962_p0 }
  0x5e   : > { %p6970_p10 = pnand %p6969_p9, %p6963_p4 }
  0x60   : > { %6973 = shalt.err (!%p6970_p10)
}
  0x61   : > { %s8394_s26 = smov 8   ;;  %s8395_s18 = smov 128  }
  0x62   : > { %6723 = dma.hbm_to_vmem [thread:$0]  (!%p7254_p5), %s8352_s7, 512, %s618_s1, [#allocation5], %s8395_s18, %s8395_s18, %s8394_s26  }
  0x63   : > { %s6985_s24 = scalar_lea.vmem %s642_s4, 512  ;;  %p6993_p13 = scmp.lt.s32.totalorder %s642_s4, %s642_s4 }
  0x64   : > { %p6986_p1 = scmp.ne.s32.totalorder %s642_s4, %s6985_s24  ;;  %p6994_p0 = scmp.lt.s32.totalorder %s6985_s24, %s6985_s24 }
  0x66   : > { %p6988_p11 = pnand %p6986_p1, %p7264_p6  ;;  %p6995_p7 = por %p6994_p0, %p6993_p13 }
  0x68   : > { %p6989_p12 = pneg %p6988_p11 }
  0x6a   : > { %p6996_p4 = pnand %p6995_p7, %p6989_p12 }
  0x6c   : > { %6999 = shalt.err (!%p6996_p4)
}
  0x6d   : > { %6729 = dma.hbm_to_vmem [thread:$0]  (!%p7254_p5), %s8354_s9, 512, %s642_s4, [#allocation8], %s8395_s18, %s8395_s18, %s8394_s26  }
  0x6e   : > { %s7105_s30 = smov [#allocation12]   ;;  %s7106_s28 = smov [#allocation15]  }
  0x6f   : > { %s668_s1 = sshll.u32 %s7105_s30, 4  ;;  %s690_s20 = sshll.u32 %s7106_s28, 4  ;;  %s669_s1 = int_to_ptr.vmem [resolvable:$true] %s668_s1  ;;  %s691_s20 = int_to_ptr.vmem [resolvable:$true] %s690_s20 }
  0x70   : > { %s7011_s21 = scalar_lea.vmem %s669_s1, 16  ;;  %s7018_s24 = scalar_lea.vmem %s669_s1, 32 }
  0x71   : > { %p7012_p8 = scmp.ne.s32.totalorder %s669_s1, %s7011_s21  ;;  %p7019_p1 = scmp.lt.s32.totalorder %s669_s1, %s669_s1 }
  0x72   : > { %p7020_p11 = scmp.lt.s32.totalorder %s7018_s24, %s7011_s21 }
  0x73   : > { %p7014_p9 = pnand %p7012_p8, %p7264_p6 }
  0x74   : > { %p7021_p12 = por %p7020_p11, %p7019_p1 }
  0x75   : > { %p7015_p10 = pneg %p7014_p9 }
  0x77   : > { %p7022_p13 = pnand %p7021_p12, %p7015_p10 }
  0x79   : > { %7025 = shalt.err (!%p7022_p13)
}
  0x7a   : > { %6735 = dma.hbm_to_vmem [thread:$0]  (!%p7254_p5), %s8356_s11, 16, %s669_s1, [#allocation11]  }
  0x7b   : > { %s7037_s18 = scalar_lea.vmem %s691_s20, 16  ;;  %s7044_s22 = scalar_lea.vmem %s691_s20, 32 }
  0x7c   : > { %p7038_p0 = scmp.ne.s32.totalorder %s691_s20, %s7037_s18  ;;  %p7045_p8 = scmp.lt.s32.totalorder %s691_s20, %s691_s20 }
  0x7d   : > { %p7046_p9 = scmp.lt.s32.totalorder %s7044_s22, %s7037_s18 }
  0x7e   : > { %p7040_p7 = pnand %p7038_p0, %p7264_p6 }
  0x7f   : > { %p7047_p2 = por %p7046_p9, %p7045_p8 }
  0x80   : > { %p7041_p4 = pneg %p7040_p7 }
  0x82   : > { %p7048_p3 = pnand %p7047_p2, %p7041_p4 }
  0x84   : > { %7051 = shalt.err (!%p7048_p3)
}
  0x85   : > { %6741 = dma.hbm_to_vmem [thread:$0]  (!%p7254_p5), %s8358_s13, 16, %s691_s20, [#allocation14]  }
  0x86   : > { %p8396_p10 = scmp.ne.s32.totalorder %s8390_s0, 0 }
  0x87   : > { %p8397_p1 = scmp.ne.s32.totalorder (!%p8396_p10), %s8389_s29, 0 }
  0x88   : > { %729 = sbr.rel (%p8396_p10) target bundleno = 1667 (0x683), region = 84 }
  0x8d   : > { %7065 = dma.done.wait (%p8397_p1), [#allocation3], 16  }
  0x8e   : > { %7067 = vsyncadd (%p8397_p1), [#allocation3], 4294967280 }
  0x8f   : > { %7069 = dma.done.wait (%p8397_p1), [#allocation5], 1024  }
  0x90   : > { %7071 = vsyncadd (%p8397_p1), [#allocation5], 4294966272 }
  0x91   : > { %7073 = dma.done.wait (%p8397_p1), [#allocation8], 528  }
  0x92   : > { %7075 = vsyncadd (%p8397_p1), [#allocation8], 4294966768 }
  0x93   : > { %7077 = dma.done.wait (%p8397_p1), [#allocation11], 528  }
  0x94   : > { %7079 = vsyncadd (%p8397_p1), [#allocation11], 4294966768 }
  0x95   : > { %7081 = dma.done.wait (%p8397_p1), [#allocation14], 32  }
  0x96   : > { %7083 = vsyncadd (%p8397_p1), [#allocation14], 4294967264  ;;  %p867_p2 = scmp.lt.s32.totalorder %s7086_s2, 1  ;;  %v7107_v0 = vmov 0.0   ;;  %vm7108_vm0 = vmmov 0   ;;  %s8398_s27 = sld [smem:[#allocation22_spill]] }
  0x97   : > { %6120 = vmatprep.subr.mxu0 %v7107_v0  ;;  %6131 = vmatprep.subr.mxu1 %v7107_v0  ;;  %vm928_vm1 = vcmask 261120   ;;  %s8399_s21 = sld [smem:[#allocation24_spill]]  ;;  %v5863_v15 = vld [vmem:[#allocation13] ss:$0 sm:$0xff]  ;;  %s7109_s3 = smov 32   ;;  %vm4946_vm4 = vcmask 1041408  }
  0x98   : > { %6128 = vmatprep.mubr.msk.f32.mxu0 %vm7108_vm0, %v7107_v0  ;;  %s8413_s2 = smov (!%p867_p2, %s7086_s2), 1  ;;  %6139 = vmatprep.mubr.msk.f32.mxu1 %vm7108_vm0, %v7107_v0  ;;  %s8400_s5 = sld [smem:[#allocation25_spill]]  ;;  %vm4942_vm5 = vcmask 15360  }
  0x99   : > { %s7388_s0 = sshll.u32 %s8413_s2, 3  ;;  %4440 = vrot.lane.b32.xlu0 %v5863_v15, %s7109_s3  ;;  %s8401_s2 = sld [smem:[#allocation26_spill]] }
  0x9a   : > { %s887_s26 = scalar_lea.vmem %s8361_s16, %s7388_s0  ;;  %s7110_s18 = smov 64  }
  0x9b   : > { %s8403_s20 = sld [smem:[#allocation23_spill]]  ;;  %s908_s30 = scalar_lea.vmem %s8364_s19, %s7388_s0 }
  0x9c   : > { %s873_s1 = scalar_lea.vmem %s8398_s27, %s7388_s0  ;;  %s894_s27 = scalar_lea.vmem %s8362_s17, %s7388_s0 }
  0x9d   : > { %v927_v1 = vld [vmem:[%s8399_s21 + $0x18] sm:$0xff]  ;;  %v926_v2 = vld [vmem:[%s8399_s21 + $0x10] sm:$0xff]  ;;  %v925_v3 = vld [vmem:[%s8399_s21 + $0x8] sm:$0xff] }
  0x9e   : > { %v7403_v4 = vand.u32 4294901760, %v927_v1  ;;  %v7405_v5 = vand.u32 4294901760, %v926_v2  ;;  %v7407_v6 = vand.u32 4294901760, %v925_v3  ;;  %v924_v7 = vld [vmem:[%s8399_s21] sm:$0xff]  ;;  %v1420_v33 = vld [vmem:[%s8400_s5 + $0x18] sm:$0xff]  ;;  %v1419_v35 = vld [vmem:[%s8400_s5 + $0x10] sm:$0xff] }
  0x9f   : > { %v923_v8 = vld [vmem:[%s873_s1] sm:$0xff]  ;;  %v7412_v9 = vand.u32 4294901760, %v924_v7  ;;  %v7471_v34 = vand.u32 4294901760, %v1420_v33  ;;  %v1418_v36 = vld [vmem:[%s8400_s5 + $0x8] sm:$0xff]  ;;  %v7484_v37 = vand.u32 4294901760, %v1419_v35  ;;  %s8402_s22 = smov %s8401_s2  ;;  %v1910_v57 = vld [vmem:[%s8401_s2 + $0x18] sm:$0xff] }
  0xa0   : > { %v930_v10 = vsel %vm928_vm1, %v923_v8, 0  ;;  %6121 = vmatpush3.msra.mxu0 %v7403_v4  ;;  %v1037_v11 = vsub.f32 %v927_v1, %v7403_v4  ;;  %v7420_v13 = vsub.f32 %v926_v2, %v7405_v5  ;;  %v7423_v14 = vsub.f32 %v925_v3, %v7407_v6  ;;  %v1417_v39 = vld [vmem:[%s8400_s5] sm:$0xff]  ;;  %v1909_v59 = vld [vmem:[%s8402_s22 + $0x10] sm:$0xff]  ;;  %v1908_v60 = vld [vmem:[%s8402_s22 + $0x8] sm:$0xff]  ;;  %s7111_s2 = smov 96   ;;  %s8404_s1 = sld [smem:[#allocation30_spill]] }
  0xa1   : > { %v7417_v12 = vand.u32 4294901760, %v930_v10  ;;  %6122 = vmatprep.subr.mxu0 %v7107_v0  ;;  %v7427_v16 = vsub.f32 %v924_v7, %v7412_v9  ;;  %v7489_v38 = vsub.f32 %v1420_v33, %v7471_v34  ;;  %v7495_v40 = vand.u32 4294901760, %v1418_v36  ;;  %v1907_v61 = vld [vmem:[%s8402_s22] sm:$0xff]  ;;  %s880_s24 = scalar_lea.vmem %s8403_s20, %s7388_s0 }
  0xa2   : > { %6123 = vmatpush3.msra.mxu0 %v7405_v5  ;;  %v1038_v17 = vand.u32 4294901760, %v1037_v11  ;;  %v1045_v19 = vand.u32 4294901760, %v7420_v13  ;;  %v1052_v20 = vand.u32 4294901760, %v7423_v14  ;;  %v7503_v41 = vsub.f32 %v1419_v35, %v7484_v37 }
  0xa3   : > { %v7432_v18 = vsub.f32 %v930_v10, %v7417_v12  ;;  %6124 = vmatprep.subr.mxu0 %v7107_v0  ;;  %v1059_v21 = vand.u32 4294901760, %v7427_v16  ;;  %v7505_v42 = vand.u32 4294901760, %v1417_v39  ;;  %v1527_v43 = vand.u32 4294901760, %v7489_v38 }
  0xa4   : > { %6125 = vmatpush3.msra.mxu0 %v7407_v6  ;;  %v1039_v22 = vsub.f32 %v1037_v11, %v1038_v17  ;;  %v1046_v24 = vsub.f32 %v7420_v13, %v1045_v19  ;;  %v1053_v25 = vsub.f32 %v7423_v14, %v1052_v20  ;;  %v7512_v44 = vsub.f32 %v1418_v36, %v7495_v40 }
  0xa5   : > { %v7440_v23 = vand.u32 4294901760, %v7432_v18  ;;  %6126 = vmatprep.subr.mxu0 %v7107_v0  ;;  %v1060_v29 = vsub.f32 %v7427_v16, %v1059_v21  ;;  %v7521_v45 = vsub.f32 %v1417_v39, %v7505_v42  ;;  %v1534_v46 = vand.u32 4294901760, %v7503_v41 }
  0xa6   : > { %6127 = vmatpush3.msra.mxu0 %v7412_v9  ;;  %v1040_v26 = vand.u32 4294901760, %v1039_v22  ;;  %v1047_v28 = vand.u32 4294901760, %v1046_v24  ;;  %v1054_v31 = vand.u32 4294901760, %v1053_v25  ;;  %v1528_v47 = vsub.f32 %v7489_v38, %v1527_v43  ;;  %s922_s28 = scalar_lea.vmem %s8404_s1, %s7388_s0 }
  0xa7   : > { %v1004_v27 = vsub.f32 %v7432_v18, %v7440_v23  ;;  %6142 = vmatprep.subr.mxu0 %v7107_v0  ;;  %v1061_v32 = vand.u32 4294901760, %v1060_v29  ;;  %v1541_v48 = vand.u32 4294901760, %v7512_v44  ;;  %v1535_v49 = vsub.f32 %v7503_v41, %v1534_v46 }
  0xa8   : > { %6132 = vmatpush3.msra.mxu1 %v1040_v26  ;;  %v1548_v50 = vand.u32 4294901760, %v7521_v45  ;;  %v1529_v51 = vand.u32 4294901760, %v1528_v47  ;;  %v7606_v58 = vand.u32 4294901760, %v1910_v57  ;;  %v7620_v63 = vand.u32 4294901760, %v1909_v59 }
  0xa9   : > { %v7452_v30 = vand.u32 4294901760, %v1004_v27  ;;  %6133 = vmatprep.subr.mxu1 %v7107_v0  ;;  %v1542_v52 = vsub.f32 %v7512_v44, %v1541_v48  ;;  %v1536_v53 = vand.u32 4294901760, %v1535_v49  ;;  %v7622_v1 = vand.u32 4294901760, %v1908_v60 }
  0xaa   : > { %6134 = vmatpush3.msra.mxu1 %v1047_v28  ;;  %v1549_v54 = vsub.f32 %v7521_v45, %v1548_v50  ;;  %v7618_v62 = vsub.f32 %v1910_v57, %v7606_v58  ;;  %v7624_v2 = vand.u32 4294901760, %v1907_v61 }
  0xab   : > { %6129 = vmatmul.mubr.f32.vlgmr.msra.gmra.mxu0 %v7452_v30  ;;  %6135 = vmatprep.subr.mxu1 %v7107_v0  ;;  %v1543_v55 = vand.u32 4294901760, %v1542_v52 }
  0xac   : > { %6143 = vmatpush3.msra.mxu0 %v1037_v11  ;;  %6136 = vmatpush3.msra.mxu1 %v1054_v31  ;;  %v1550_v56 = vand.u32 4294901760, %v1549_v54  ;;  %v2020_v3 = vand.u32 4294901760, %v7618_v62 }
  0xad   : > { %6144 = vmatprep.subr.mxu0 %v7107_v0  ;;  %6137 = vmatprep.subr.mxu1 %v7107_v0 }
  0xae   : > { %6145 = vmatpush3.msra.mxu0 %v7420_v13  ;;  %6138 = vmatpush3.msra.mxu1 %v1061_v32  ;;  %v2021_v7 = vsub.f32 %v7618_v62, %v2020_v3 }
  0xaf   : > { %6146 = vmatprep.subr.mxu0 %v7107_v0  ;;  %6140 = vmatmul.mubr.f32.vlgmr.msra.gmra.mxu1 %v7417_v12 }
  0xb0   : > { %6147 = vmatpush3.msra.mxu0 %v7423_v14  ;;  %6153 = vmatprep.subr.mxu1 %v7107_v0  ;;  %v2022_v11 = vand.u32 4294901760, %v2021_v7 }
  0xb1   : > { %6148 = vmatprep.subr.mxu0 %v7107_v0  ;;  %6150 = vmatprep.mubr.msk.f32.mxu0 %vm7108_vm0, %v7107_v0 }
  0xb2   : > { %6149 = vmatpush3.msra.mxu0 %v7427_v16  ;;  %6154 = vmatpush3.msra.mxu1 %v7403_v4 }
  0xb3   : > { %6151 = vmatmul.mubr.f32.vlgmr.msra.gmra.mxu0 %v7432_v18  ;;  %6155 = vmatprep.subr.mxu1 %v7107_v0 }
  0xb4   : > { %6164 = vmatprep.subr.mxu0 %v7107_v0  ;;  %6156 = vmatpush3.msra.mxu1 %v7405_v5 }
  0xb5   : > { %6165 = vmatpush3.msra.mxu0 %v1038_v17  ;;  %6157 = vmatprep.subr.mxu1 %v7107_v0 }
  0xb6   : > { %6166 = vmatprep.subr.mxu0 %v7107_v0  ;;  %6158 = vmatpush3.msra.mxu1 %v7407_v6 }
  0xb7   : > { %6167 = vmatpush3.msra.mxu0 %v1045_v19  ;;  %6159 = vmatprep.subr.mxu1 %v7107_v0 }
  0xb8   : > { %6168 = vmatprep.subr.mxu0 %v7107_v0  ;;  %6160 = vmatpush3.msra.mxu1 %v7412_v9 }
  0xb9   : > { %6161 = vmatprep.mubr.msk.f32.mxu1 %vm7108_vm0, %v7107_v0  ;;  %6169 = vmatpush3.msra.mxu0 %v1052_v20 }
  0xba   : > { %6162 = vmatmul.mubr.f32.vlgmr.msra.gmra.mxu1 %v7440_v23  ;;  %6170 = vmatprep.subr.mxu0 %v7107_v0 }
  0xbb   : > { %6175 = vmatprep.subr.mxu1 %v7107_v0  ;;  %6171 = vmatpush3.msra.mxu0 %v1059_v21 }
  0xbc   : > { %6172 = vmatprep.mubr.msk.f32.mxu0 %vm7108_vm0, %v7107_v0  ;;  %6176 = vmatpush3.msra.mxu1 %v7403_v4  ;;  %v7630_v4 = vsub.f32 %v1909_v59, %v7620_v63 }
  0xbd   : > { %6173 = vmatmul.mubr.f32.vlgmr.msra.gmra.mxu0 %v7417_v12  ;;  %6177 = vmatprep.subr.mxu1 %v7107_v0 }
  0xbe   : > { %6186 = vmatprep.subr.mxu0 %v7107_v0  ;;  %6178 = vmatpush3.msra.mxu1 %v7405_v5  ;;  %v7633_v5 = vsub.f32 %v1908_v60, %v7622_v1  ;;  %v2027_v8 = vand.u32 4294901760, %v7630_v4 }
  0xbf   : > { %6187 = vmatpush3.msra.mxu0 %v7471_v34  ;;  %6179 = vmatprep.subr.mxu1 %v7107_v0 }
  0xc0   : > { %6188 = vmatprep.subr.mxu0 %v7107_v0  ;;  %6180 = vmatpush3.msra.mxu1 %v7407_v6  ;;  %v7636_v6 = vsub.f32 %v1907_v61, %v7624_v2  ;;  %v2028_v13 = vsub.f32 %v7630_v4, %v2027_v8 }
  0xc1   : > { %6189 = vmatpush3.msra.mxu0 %v7484_v37  ;;  %6181 = vmatprep.subr.mxu1 %v7107_v0 }
  0xc2   : > { %6190 = vmatprep.subr.mxu0 %v7107_v0  ;;  %6182 = vmatpush3.msra.mxu1 %v7412_v9  ;;  %v2034_v9 = vand.u32 4294901760, %v7633_v5  ;;  %v2041_v10 = vand.u32 4294901760, %v7636_v6  ;;  %v2029_v16 = vand.u32 4294901760, %v2028_v13 }
  0xc3   : > { %6183 = vmatprep.mubr.msk.f32.mxu1 %vm7108_vm0, %v7107_v0  ;;  %6191 = vmatpush3.msra.mxu0 %v7495_v40 }
  0xc4   : > { %6184 = vmatmul.mubr.f32.vlgmr.msra.gmra.mxu1 %v7417_v12  ;;  %6192 = vmatprep.subr.mxu0 %v7107_v0  ;;  %v2035_v14 = vsub.f32 %v7633_v5, %v2034_v9  ;;  %v2042_v15 = vsub.f32 %v7636_v6, %v2041_v10 }
  0xc5   : > { %6197 = vmatprep.subr.mxu1 %v7107_v0  ;;  %6193 = vmatpush3.msra.mxu0 %v7505_v42 }
  0xc6   : > { %6198 = vmatpush3.msra.mxu1 %v1529_v51  ;;  %6194 = vmatprep.mubr.msk.f32.mxu0 %vm7108_vm0, %v7107_v0  ;;  %v2036_v17 = vand.u32 4294901760, %v2035_v14  ;;  %v2043_v19 = vand.u32 4294901760, %v2042_v15  ;;  %v2434_v14 = vld [vmem:[#allocation9 + $0x10] sm:$0xff] }
  0xc7   : > { %6199 = vmatprep.subr.mxu1 %v7107_v0  ;;  %6208 = vmatprep.subr.mxu0 %v7107_v0 }
  0xc8   : > { %6195 = vmatmul.mubr.f32.vlgmr.msra.gmra.mxu0 %v7452_v30  ;;  %6200 = vmatpush3.msra.mxu1 %v1536_v53 }
  0xc9   : > { %6209 = vmatpush3.msra.mxu0 %v7489_v38  ;;  %6201 = vmatprep.subr.mxu1 %v7107_v0 }
  0xca   : > { %6210 = vmatprep.subr.mxu0 %v7107_v0  ;;  %6202 = vmatpush3.msra.mxu1 %v1543_v55 }
  0xcb   : > { %6211 = vmatpush3.msra.mxu0 %v7503_v41  ;;  %6203 = vmatprep.subr.mxu1 %v7107_v0 }
  0xcc   : > { %6212 = vmatprep.subr.mxu0 %v7107_v0  ;;  %6204 = vmatpush3.msra.mxu1 %v1550_v56 }
  0xcd   : > { %6205 = vmatprep.mubr.msk.f32.mxu1 %vm7108_vm0, %v7107_v0  ;;  %6213 = vmatpush3.msra.mxu0 %v7512_v44 }
  0xce   : > { %6206 = vmatmul.mubr.f32.vlgmr.msra.gmra.mxu1 %v7417_v12  ;;  %6214 = vmatprep.subr.mxu0 %v7107_v0 }
  0xcf   : > { %6219 = vmatprep.subr.mxu1 %v7107_v0  ;;  %6215 = vmatpush3.msra.mxu0 %v7521_v45 }
  0xd0   : > { %6216 = vmatprep.mubr.msk.f32.mxu0 %vm7108_vm0, %v7107_v0  ;;  %6220 = vmatpush3.msra.mxu1 %v7471_v34 }
  0xd1   : > { %6217 = vmatmul.mubr.f32.vlgmr.msra.gmra.mxu0 %v7432_v18  ;;  %6221 = vmatprep.subr.mxu1 %v7107_v0 }
  0xd2   : > { %6230 = vmatprep.subr.mxu0 %v7107_v0  ;;  %6222 = vmatpush3.msra.mxu1 %v7484_v37 }
  0xd3   : > { %6231 = vmatpush3.msra.mxu0 %v1527_v43  ;;  %6223 = vmatprep.subr.mxu1 %v7107_v0 }
  0xd4   : > { %6232 = vmatprep.subr.mxu0 %v7107_v0  ;;  %6224 = vmatpush3.msra.mxu1 %v7495_v40 }
  0xd5   : > { %6233 = vmatpush3.msra.mxu0 %v1534_v46  ;;  %6225 = vmatprep.subr.mxu1 %v7107_v0 }
  0xd6   : > { %6234 = vmatprep.subr.mxu0 %v7107_v0  ;;  %6226 = vmatpush3.msra.mxu1 %v7505_v42 }
  0xd7   : > { %6227 = vmatprep.mubr.msk.f32.mxu1 %vm7108_vm0, %v7107_v0  ;;  %6235 = vmatpush3.msra.mxu0 %v1541_v48 }
  0xd8   : > { %6228 = vmatmul.mubr.f32.vlgmr.msra.gmra.mxu1 %v7440_v23  ;;  %6236 = vmatprep.subr.mxu0 %v7107_v0 }
  0xd9   : > { %6241 = vmatprep.subr.mxu1 %v7107_v0  ;;  %6237 = vmatpush3.msra.mxu0 %v1548_v50 }
  0xda   : > { %6238 = vmatprep.mubr.msk.f32.mxu0 %vm7108_vm0, %v7107_v0  ;;  %6242 = vmatpush3.msra.mxu1 %v7471_v34 }
  0xdb   : > { %6239 = vmatmul.mubr.f32.vlgmr.msra.gmra.mxu0 %v7417_v12  ;;  %6243 = vmatprep.subr.mxu1 %v7107_v0 }
  0xdc   : > { %6249 = vmatprep.mubr.msk.f32.mxu1 %vm7108_vm0, %v7107_v0  ;;  %6244 = vmatpush3.msra.mxu1 %v7484_v37 }
  0xdd   : > { %6252 = vmatprep.subr.mxu0 %v7107_v0  ;;  %6245 = vmatprep.subr.mxu1 %v7107_v0 }
  0xde   : > { %6260 = vmatprep.mubr.msk.f32.mxu0 %vm7108_vm0, %v7107_v0  ;;  %6246 = vmatpush3.msra.mxu1 %v7495_v40 }
  0xdf   : > { %6247 = vmatprep.subr.mxu1 %v7107_v0  ;;  %6253 = vmatpush3.msra.mxu0 %v7606_v58 }
  0xe0   : > { %6248 = vmatpush3.msra.mxu1 %v7505_v42  ;;  %6254 = vmatprep.subr.mxu0 %v7107_v0 }
  0xe1   : > { %6250 = vmatmul.mubr.f32.vlgmr.msra.gmra.mxu1 %v7417_v12  ;;  %6263 = vmatprep.subr.mxu1 %v7107_v0 }
  0xe2   : > { %6271 = vmatprep.mubr.msk.f32.mxu1 %vm7108_vm0, %v7107_v0  ;;  %6255 = vmatpush3.msra.mxu0 %v7620_v63 }
  0xe3   : > { %6256 = vmatprep.subr.mxu0 %v7107_v0  ;;  %6264 = vmatpush3.msra.mxu1 %v2022_v11  ;;  %v2435_v11 = vld [vmem:[#allocation9 + $0x18] sm:$0xff] }
  0xe4   : > { %6257 = vmatpush3.msra.mxu0 %v7622_v1  ;;  %6265 = vmatprep.subr.mxu1 %v7107_v0  ;;  %v7687_v15 = vand.u32 4294901760, %v2435_v11 }
  0xe5   : > { %6258 = vmatprep.subr.mxu0 %v7107_v0  ;;  %6266 = vmatpush3.msra.mxu1 %v2029_v16 }
  0xe6   : > { %6259 = vmatpush3.msra.mxu0 %v7624_v2  ;;  %6267 = vmatprep.subr.mxu1 %v7107_v0 }
  0xe7   : > { %6274 = vmatprep.subr.mxu0 %v7107_v0  ;;  %6268 = vmatpush3.msra.mxu1 %v2036_v17  ;;  %v2433_v17 = vld [vmem:[#allocation9 + $0x8] sm:$0xff] }
  0xe8   : > { %6269 = vmatprep.subr.mxu1 %v7107_v0 }
  0xe9   : > { %6270 = vmatpush3.msra.mxu1 %v2043_v19  ;;  %v7691_v19 = vand.u32 4294901760, %v2434_v14 }
  0xea   : > { %6285 = vmatprep.subr.mxu1 %v7107_v0 }
 0x10b   : > { %v4441_v37 = vpop.permute.xlu0 %4440 }
 0x16b   : > { %v1007_v20 = vpop.f32.mrf.mxu0 }
 0x16d   : > { %v6130_v21 = vpop.f32.mrf.mxu0 }
 0x16e   : > { %v7696_v21 = vsub.f32 %v2435_v11, %v7687_v15 }
 0x16f   : > { %v1098_v22 = vpop.f32.mrf.mxu1 }
 0x170   : > { %v1099_v27 = vadd.f32 %v1098_v22, %v1007_v20  ;;  %v7698_v22 = vand.u32 4294901760, %v2433_v17 }
 0x171   : > { %v6141_v24 = vpop.f32.mrf.mxu1 }
 0x173   : > { %v1178_v25 = vpop.f32.mrf.mxu0 }
 0x174   : > { %v1179_v31 = vadd.f32 %v1178_v25, %v1099_v27  ;;  %v2432_v25 = vld [vmem:[#allocation9] sm:$0xff]  ;;  %v2542_v27 = vand.u32 4294901760, %v7696_v21 }
 0x175   : > { %v6152_v26 = vpop.f32.mrf.mxu0 }
 0x176   : > { %v7703_v26 = vsub.f32 %v2434_v14, %v7691_v19 }
 0x17a   : > { %v1255_v28 = vpop.f32.mrf.mxu1 }
 0x17b   : > { %v1256_v33 = vadd.f32 %v1255_v28, %v1179_v31  ;;  %v7709_v28 = vsub.f32 %v2433_v17, %v7698_v22  ;;  %v2549_v31 = vand.u32 4294901760, %v7703_v26 }
 0x17c   : > { %v6163_v29 = vpop.f32.mrf.mxu1 }
 0x17d   : > { %v1338_v32 = vpop.f32.mrf.mxu0  ;;  %v7711_v29 = vand.u32 4294901760, %v2432_v25 }
 0x17e   : > { %v1339_v35 = vadd.f32 %v1338_v32, %v1256_v33  ;;  %v2556_v32 = vand.u32 4294901760, %v7709_v28 }
 0x17f   : > { %v6174_v34 = vpop.f32.mrf.mxu0  ;;  %v7727_v33 = vsub.f32 %v2432_v25, %v7711_v29 }
 0x180   : > { %v2557_v34 = vsub.f32 %v7709_v28, %v2556_v32 }
 0x184   : > { %v1413_v36 = vpop.f32.mrf.mxu1 }
 0x185   : > { %v7667_v38 = vadd.f32 %v1413_v36, %v1339_v35  ;;  %v2563_v35 = vand.u32 4294901760, %v7727_v33  ;;  %v2558_v36 = vand.u32 4294901760, %v2557_v34 }
 0x186   : > { %v6185_v39 = vpop.f32.mrf.mxu1 }
 0x187   : > { %5401 = vst.msk [vmem:[%s887_s26] sm:$0xff] %vm928_vm1, %v7667_v38  ;;  %v7672_v40 = vmul.f32 %v4441_v37, %v7667_v38  ;;  %3415 = vrot.lane.b32.xlu1 %v7667_v38, %s7110_s18  ;;  %v2564_v37 = vsub.f32 %v7727_v33, %v2563_v35 }
 0x188   : > { %v1496_v41 = vpop.f32.mrf.mxu0 }
 0x189   : > { %v4444_v42 = vmul.f32 %v7672_v40, %v7672_v40 }
 0x18a   : > { %v6196_v43 = vpop.f32.mrf.mxu0 }
 0x18b   : > { %4450 = vrot.lane.b32.xlu0 %v4444_v42, %s7111_s2  ;;  %v2921_v42 = vld [vmem:[#allocation10] sm:$0xff] }
 0x18e   : > { %v1587_v44 = vpop.f32.mrf.mxu1 }
 0x18f   : > { %v1588_v48 = vadd.f32 %v1587_v44, %v1496_v41 }
 0x190   : > { %v6207_v45 = vpop.f32.mrf.mxu1 }
 0x191   : > { %v1667_v46 = vpop.f32.mrf.mxu0 }
 0x192   : > { %v1668_v51 = vadd.f32 %v1667_v46, %v1588_v48  ;;  %v7860_v46 = vand.u32 4294901760, %v2921_v42 }
 0x193   : > { %v6218_v47 = vpop.f32.mrf.mxu0 }
 0x198   : > { %v1744_v49 = vpop.f32.mrf.mxu1 }
 0x199   : > { %v1745_v53 = vadd.f32 %v1744_v49, %v1668_v51 }
 0x19a   : > { %v6229_v50 = vpop.f32.mrf.mxu1 }
 0x19b   : > { %v1827_v52 = vpop.f32.mrf.mxu0  ;;  %v7869_v50 = vsub.f32 %v2921_v42, %v7860_v46 }
 0x19c   : > { %v1828_v55 = vadd.f32 %v1827_v52, %v1745_v53 }
 0x19d   : > { %v6240_v54 = vpop.f32.mrf.mxu0  ;;  %v3055_v53 = vand.u32 4294901760, %v7869_v50 }
 0x1a1   : > { %v1902_v56 = vpop.f32.mrf.mxu1 }
 0x1a2   : > { %v1903_v57 = vadd.f32 %v1902_v56, %v1828_v55  ;;  %v3056_v55 = vsub.f32 %v7869_v50, %v3055_v53 }
 0x1a3   : > { %v6251_v59 = vpop.f32.mrf.mxu1 }
 0x1a4   : > { %6800 = vtanh.f32 %v1903_v57  ;;  %v3057_v56 = vand.u32 4294901760, %v3056_v55 }
 0x1b1   : > { %v6801_v60 = vpop.eup %6800 }
 0x1b2   : > { %v1912_v61 = vsel %vm928_vm1, %v6801_v60, 0 }
 0x1b3   : > { %v7680_v7 = vand.u32 4294901760, %v1912_v61 }
 0x1b5   : > { %v1984_v13 = vsub.f32 %v1912_v61, %v7680_v7  ;;  %6272 = vmatmul.mubr.f32.vlgmr.msra.gmra.mxu1 %v7680_v7 }
 0x1b6   : > { %6286 = vmatpush3.msra.mxu1 %v7606_v58  ;;  %6293 = vmatprep.mubr.msk.f32.mxu1 %vm7108_vm0, %v7107_v0 }
 0x1b7   : > { %6287 = vmatprep.subr.mxu1 %v7107_v0  ;;  %v1985_v16 = vand.u32 4294901760, %v1984_v13 }
 0x1b8   : > { %6288 = vmatpush3.msra.mxu1 %v7620_v63 }
 0x1b9   : > { %6289 = vmatprep.subr.mxu1 %v7107_v0  ;;  %v1986_v20 = vsub.f32 %v1984_v13, %v1985_v16 }
 0x1ba   : > { %6290 = vmatpush3.msra.mxu1 %v7622_v1 }
 0x1bb   : > { %6291 = vmatprep.subr.mxu1 %v7107_v0  ;;  %v1987_v24 = vand.u32 4294901760, %v1986_v20 }
 0x1bc   : > { %6292 = vmatpush3.msra.mxu1 %v7624_v2 }
 0x1bd   : > { %6294 = vmatmul.mubr.f32.vlgmr.msra.gmra.mxu1 %v1985_v16  ;;  %6307 = vmatprep.subr.mxu1 %v7107_v0 }
 0x1be   : > { %6261 = vmatmul.mubr.f32.vlgmr.msra.gmra.mxu0 %v1987_v24  ;;  %6308 = vmatpush3.msra.mxu1 %v7606_v58  ;;  %v2543_v58 = vsub.f32 %v7696_v21, %v2542_v27  ;;  %v5857_v24 = vld [vmem:[#allocation2] ss:$0 sm:$0xff] }
 0x1bf   : > { %6275 = vmatpush3.msra.mxu0 %v7618_v62  ;;  %6309 = vmatprep.subr.mxu1 %v7107_v0  ;;  %v2565_v62 = vand.u32 4294901760, %v2564_v37 }
 0x1c0   : > { %6276 = vmatprep.subr.mxu0 %v7107_v0  ;;  %6310 = vmatpush3.msra.mxu1 %v7620_v63  ;;  %v2550_v63 = vsub.f32 %v7703_v26, %v2549_v31 }
 0x1c1   : > { %6277 = vmatpush3.msra.mxu0 %v7630_v4  ;;  %6311 = vmatprep.subr.mxu1 %v7107_v0 }
 0x1c2   : > { %6278 = vmatprep.subr.mxu0 %v7107_v0  ;;  %6312 = vmatpush3.msra.mxu1 %v7622_v1  ;;  %v2544_v1 = vand.u32 4294901760, %v2543_v58 }
 0x1c3   : > { %6279 = vmatpush3.msra.mxu0 %v7633_v5  ;;  %6313 = vmatprep.subr.mxu1 %v7107_v0  ;;  %v2923_v5 = vld [vmem:[#allocation10 + $0x10] sm:$0xff] }
 0x1c4   : > { %6280 = vmatprep.subr.mxu0 %v7107_v0  ;;  %6282 = vmatprep.mubr.msk.f32.mxu0 %vm7108_vm0, %v7107_v0 }
 0x1c5   : > { %6281 = vmatpush3.msra.mxu0 %v7636_v6  ;;  %6314 = vmatpush3.msra.mxu1 %v7624_v2  ;;  %v2551_v2 = vand.u32 4294901760, %v2550_v63 }
 0x1c6   : > { %6315 = vmatprep.mubr.msk.f32.mxu1 %vm7108_vm0, %v7107_v0  ;;  %6283 = vmatmul.mubr.f32.vlgmr.msra.gmra.mxu0 %v1984_v13 }
 0x1c7   : > { %6296 = vmatprep.subr.mxu0 %v7107_v0  ;;  %6316 = vmatmul.mubr.f32.vlgmr.msra.gmra.mxu1 %v7680_v7 }
 0x1c8   : > { %6297 = vmatpush3.msra.mxu0 %v2020_v3  ;;  %6304 = vmatprep.mubr.msk.f32.mxu0 %vm7108_vm0, %v7107_v0  ;;  %v2924_v3 = vld [vmem:[#allocation10 + $0x18] sm:$0xff] }
 0x1c9   : > { %6298 = vmatprep.subr.mxu0 %v7107_v0  ;;  %6329 = vmatprep.subr.mxu1 %v7107_v0  ;;  %v7836_v4 = vand.u32 4294901760, %v2924_v3 }
 0x1ca   : > { %6299 = vmatpush3.msra.mxu0 %v2027_v8  ;;  %6330 = vmatpush3.msra.mxu1 %v2544_v1  ;;  %v7841_v8 = vand.u32 4294901760, %v2923_v5 }
 0x1cb   : > { %6300 = vmatprep.subr.mxu0 %v7107_v0  ;;  %6331 = vmatprep.subr.mxu1 %v7107_v0  ;;  %v7839_v6 = vsub.f32 %v2924_v3, %v7836_v4 }
 0x1cc   : > { %6301 = vmatpush3.msra.mxu0 %v2034_v9  ;;  %6332 = vmatpush3.msra.mxu1 %v2551_v2  ;;  %v2922_v9 = vld [vmem:[#allocation10 + $0x8] sm:$0xff]  ;;  %v7847_v39 = vsub.f32 %v2923_v5, %v7841_v8 }
 0x1cd   : > { %6302 = vmatprep.subr.mxu0 %v7107_v0  ;;  %6333 = vmatprep.subr.mxu1 %v7107_v0  ;;  %v7849_v41 = vand.u32 4294901760, %v2922_v9 }
 0x1ce   : > { %6303 = vmatpush3.msra.mxu0 %v2041_v10  ;;  %6334 = vmatpush3.msra.mxu1 %v2558_v36  ;;  %v3034_v10 = vand.u32 4294901760, %v7839_v6  ;;  %v3041_v44 = vand.u32 4294901760, %v7847_v39 }
 0x1cf   : > { %6305 = vmatmul.mubr.f32.vlgmr.msra.gmra.mxu0 %v7680_v7  ;;  %6318 = vmatprep.subr.mxu0 %v7107_v0  ;;  %v7858_v45 = vsub.f32 %v2922_v9, %v7849_v41 }
 0x1d0   : > { %6319 = vmatpush3.msra.mxu0 %v7687_v15  ;;  %6335 = vmatprep.subr.mxu1 %v7107_v0  ;;  %v3035_v43 = vsub.f32 %v7839_v6, %v3034_v10  ;;  %v3042_v48 = vsub.f32 %v7847_v39, %v3041_v44 }
 0x1d1   : > { %6320 = vmatprep.subr.mxu0 %v7107_v0  ;;  %6326 = vmatprep.mubr.msk.f32.mxu0 %vm7108_vm0, %v7107_v0  ;;  %v3048_v49 = vand.u32 4294901760, %v7858_v45 }
 0x1d2   : > { %6321 = vmatpush3.msra.mxu0 %v7691_v19  ;;  %6336 = vmatpush3.msra.mxu1 %v2565_v62  ;;  %v3036_v47 = vand.u32 4294901760, %v3035_v43  ;;  %v3043_v51 = vand.u32 4294901760, %v3042_v48 }
 0x1d3   : > { %6322 = vmatprep.subr.mxu0 %v7107_v0  ;;  %6337 = vmatprep.mubr.msk.f32.mxu1 %vm7108_vm0, %v7107_v0  ;;  %v3049_v52 = vsub.f32 %v7858_v45, %v3048_v49 }
 0x1d4   : > { %6323 = vmatpush3.msra.mxu0 %v7698_v22  ;;  %6351 = vmatprep.subr.mxu1 %v7107_v0 }
 0x1d5   : > { %6324 = vmatprep.subr.mxu0 %v7107_v0  ;;  %6338 = vmatmul.mubr.f32.vlgmr.msra.gmra.mxu1 %v7417_v12  ;;  %v3050_v54 = vand.u32 4294901760, %v3049_v52 }
 0x1d6   : > { %6325 = vmatpush3.msra.mxu0 %v7711_v29  ;;  %6352 = vmatpush3.msra.mxu1 %v7687_v15 }
 0x1d7   : > { %6327 = vmatmul.mubr.f32.vlgmr.msra.gmra.mxu0 %v7452_v30  ;;  %6340 = vmatprep.subr.mxu0 %v7107_v0 }
 0x1d8   : > { %6341 = vmatpush3.msra.mxu0 %v7696_v21  ;;  %6353 = vmatprep.subr.mxu1 %v7107_v0 }
 0x1d9   : > { %6342 = vmatprep.subr.mxu0 %v7107_v0  ;;  %6354 = vmatpush3.msra.mxu1 %v7691_v19 }
 0x1da   : > { %6343 = vmatpush3.msra.mxu0 %v7703_v26  ;;  %6355 = vmatprep.subr.mxu1 %v7107_v0 }
 0x1db   : > { %6344 = vmatprep.subr.mxu0 %v7107_v0  ;;  %6356 = vmatpush3.msra.mxu1 %v7698_v22 }
 0x1dc   : > { %6345 = vmatpush3.msra.mxu0 %v7709_v28  ;;  %6357 = vmatprep.subr.mxu1 %v7107_v0 }
 0x1dd   : > { %6346 = vmatprep.subr.mxu0 %v7107_v0  ;;  %6348 = vmatprep.mubr.msk.f32.mxu0 %vm7108_vm0, %v7107_v0 }
 0x1de   : > { %6347 = vmatpush3.msra.mxu0 %v7727_v33  ;;  %6358 = vmatpush3.msra.mxu1 %v7711_v29 }
 0x1df   : > { %6349 = vmatmul.mubr.f32.vlgmr.msra.gmra.mxu0 %v7432_v18  ;;  %6359 = vmatprep.mubr.msk.f32.mxu1 %vm7108_vm0, %v7107_v0 }
 0x1e0   : > { %6362 = vmatprep.subr.mxu0 %v7107_v0  ;;  %6373 = vmatprep.subr.mxu1 %v7107_v0 }
 0x1e1   : > { %6360 = vmatmul.mubr.f32.vlgmr.msra.gmra.mxu1 %v7440_v23  ;;  %6363 = vmatpush3.msra.mxu0 %v2542_v27 }
 0x1e2   : > { %6374 = vmatpush3.msra.mxu1 %v7687_v15  ;;  %6364 = vmatprep.subr.mxu0 %v7107_v0 }
 0x1e3   : > { %6375 = vmatprep.subr.mxu1 %v7107_v0  ;;  %6365 = vmatpush3.msra.mxu0 %v2549_v31 }
 0x1e4   : > { %6376 = vmatpush3.msra.mxu1 %v7691_v19  ;;  %6366 = vmatprep.subr.mxu0 %v7107_v0 }
 0x1e5   : > { %6377 = vmatprep.subr.mxu1 %v7107_v0  ;;  %6367 = vmatpush3.msra.mxu0 %v2556_v32 }
 0x1e6   : > { %6378 = vmatpush3.msra.mxu1 %v7698_v22  ;;  %6368 = vmatprep.subr.mxu0 %v7107_v0 }
 0x1e7   : > { %6379 = vmatprep.subr.mxu1 %v7107_v0  ;;  %6369 = vmatpush3.msra.mxu0 %v2563_v35 }
 0x1e8   : > { %6370 = vmatprep.mubr.msk.f32.mxu0 %vm7108_vm0, %v7107_v0  ;;  %6380 = vmatpush3.msra.mxu1 %v7711_v29 }
 0x1e9   : > { %6381 = vmatprep.mubr.msk.f32.mxu1 %vm7108_vm0, %v7107_v0  ;;  %6371 = vmatmul.mubr.f32.vlgmr.msra.gmra.mxu0 %v7417_v12 }
 0x1ea   : > { %6382 = vmatmul.mubr.f32.vlgmr.msra.gmra.mxu1 %v7417_v12  ;;  %6395 = vmatprep.subr.mxu1 %v7107_v0 }
 0x1eb   : > { %6384 = vmatprep.subr.mxu0 %v7107_v0  ;;  %6403 = vmatprep.mubr.msk.f32.mxu1 %vm7108_vm0, %v7107_v0 }
 0x1ec   : > { %6392 = vmatprep.mubr.msk.f32.mxu0 %vm7108_vm0, %v7107_v0  ;;  %6385 = vmatpush3.msra.mxu0 %v7836_v4 }
 0x1ed   : > { %6386 = vmatprep.subr.mxu0 %v7107_v0  ;;  %6396 = vmatpush3.msra.mxu1 %v3036_v47 }
 0x1ee   : > { %6387 = vmatpush3.msra.mxu0 %v7841_v8  ;;  %6397 = vmatprep.subr.mxu1 %v7107_v0 }
 0x1ef   : > { %6388 = vmatprep.subr.mxu0 %v7107_v0  ;;  %6398 = vmatpush3.msra.mxu1 %v3043_v51 }
 0x1f0   : > { %6389 = vmatpush3.msra.mxu0 %v7849_v41  ;;  %6399 = vmatprep.subr.mxu1 %v7107_v0 }
 0x1f1   : > { %6390 = vmatprep.subr.mxu0 %v7107_v0  ;;  %6400 = vmatpush3.msra.mxu1 %v3050_v54 }
 0x1f2   : > { %6391 = vmatpush3.msra.mxu0 %v7860_v46  ;;  %6401 = vmatprep.subr.mxu1 %v7107_v0 }
 0x1f3   : > { %6406 = vmatprep.subr.mxu0 %v7107_v0  ;;  %6402 = vmatpush3.msra.mxu1 %v3057_v56  ;;  %v3442_v56 = vld [vmem:[#allocation4 + $0x18] sm:$0xff] }
 0x1f4   : > { %6417 = vmatprep.subr.mxu1 %v7107_v0 }
 0x275   : > { %v2080_v57 = vpop.f32.mrf.mxu1 }
 0x277   : > { %v6273_v59 = vpop.f32.mrf.mxu1 }
 0x278   : > { %v3441_v59 = vld [vmem:[#allocation4 + $0x10] sm:$0xff] }
 0x27d   : > { %v2237_v60 = vpop.f32.mrf.mxu1 }
 0x27e   : > { %v1989_v61 = vpop.f32.mrf.mxu0 }
 0x27f   : > { %v6295_v7 = vpop.f32.mrf.mxu1  ;;  %v2081_v15 = vadd.f32 %v2080_v57, %v1989_v61 }
 0x280   : > { %v6262_v11 = vpop.f32.mrf.mxu0  ;;  %v3440_v7 = vld [vmem:[#allocation4 + $0x8] sm:$0xff] }
 0x286   : > { %v2160_v13 = vpop.f32.mrf.mxu0 }
 0x287   : > { %v2395_v14 = vpop.f32.mrf.mxu1  ;;  %v2161_v19 = vadd.f32 %v2160_v13, %v2081_v15  ;;  %v7899_v13 = vand.u32 4294901760, %v3441_v59 }
 0x288   : > { %v6284_v16 = vpop.f32.mrf.mxu0 }
 0x289   : > { %v6317_v17 = vpop.f32.mrf.mxu1  ;;  %v2238_v20 = vadd.f32 %v2237_v60, %v2161_v19  ;;  %v7895_v60 = vand.u32 4294901760, %v3442_v56  ;;  %v7906_v16 = vand.u32 4294901760, %v3440_v7  ;;  %v3439_v19 = vld [vmem:[#allocation4] sm:$0xff] }
 0x28b   : > { %v7904_v15 = vsub.f32 %v3442_v56, %v7895_v60 }
 0x28f   : > { %v2320_v21 = vpop.f32.mrf.mxu0 }
 0x290   : > { %v2321_v22 = vadd.f32 %v2320_v21, %v2238_v20  ;;  %v7911_v21 = vsub.f32 %v3441_v59, %v7899_v13 }
 0x291   : > { %v6306_v25 = vpop.f32.mrf.mxu0 }
 0x292   : > { %v2396_v26 = vadd.f32 %v2395_v14, %v2321_v22  ;;  %v7917_v25 = vsub.f32 %v3440_v7, %v7906_v16 }
 0x294   : > { %v2406_v27 = vadd.f32 %v5857_v24, %v2396_v26  ;;  %v3549_v24 = vand.u32 4294901760, %v7904_v15  ;;  %v7919_v26 = vand.u32 4294901760, %v3439_v19 }
 0x295   : > { %v2602_v28 = vpop.f32.mrf.mxu1 }
 0x296   : > { %v7884_v29 = vsub.f32 0.0, %v2406_v27 }
 0x297   : > { %v2511_v31 = vpop.f32.mrf.mxu0  ;;  %v6339_v58 = vpop.f32.mrf.mxu1 }
 0x298   : > { %v2411_v32 = vand.u32 2147483647, %v7884_v29  ;;  %v2603_v36 = vadd.f32 %v2602_v28, %v2511_v31  ;;  %v2408_v58 = vmax.f32 %v7884_v29, 0.0  ;;  %vm2409_vm3 = vcmp.ne.f32.partialorder %v7884_v29, %v7884_v29 }
 0x299   : > { %v6328_v33 = vpop.f32.mrf.mxu0 }
 0x29a   : > { %v2412_v63 = vsub.f32 0.0, %v2411_v32  ;;  %v3550_v33 = vsub.f32 %v7904_v15, %v3549_v24 }
 0x29c   : > { %v2413_v1 = vmul.f32 1.442695, %v2412_v63  ;;  %v7936_v63 = vsub.f32 %v3439_v19, %v7919_v26 }
 0x29e   : > { %6802 = vpow2.f32 %v2413_v1 }
 0x29f   : > { %v2682_v34 = vpop.f32.mrf.mxu0 }
 0x2a0   : > { %v2683_v62 = vadd.f32 %v2682_v34, %v2603_v36 }
 0x2a1   : > { %v2759_v35 = vpop.f32.mrf.mxu1  ;;  %v6350_v2 = vpop.f32.mrf.mxu0 }
 0x2a2   : > { %v2760_v3 = vadd.f32 %v2759_v35, %v2683_v62  ;;  %v3551_v2 = vand.u32 4294901760, %v3550_v33 }
 0x2a3   : > { %v6361_v37 = vpop.f32.mrf.mxu1 }
 0x2a4   : > { %v3570_v37 = vand.u32 4294901760, %v7936_v63 }
 0x2a9   : > { %v2842_v5 = vpop.f32.mrf.mxu0 }
 0x2aa   : > { %v2843_v9 = vadd.f32 %v2842_v5, %v2760_v3  ;;  %v2917_v42 = vpop.f32.mrf.mxu1  ;;  %v3571_v5 = vsub.f32 %v7936_v63, %v3570_v37 }
 0x2ab   : > { %v6803_v43 = vpop.eup %6802  ;;  %v6372_v47 = vpop.f32.mrf.mxu0 }
 0x2ac   : > { %v2415_v48 = vadd.f32 1.0, %v6803_v43  ;;  %v2918_v51 = vadd.f32 %v2917_v42, %v2843_v9  ;;  %v6383_v52 = vpop.f32.mrf.mxu1  ;;  %v2418_v11 = vmul.f32 -0.5, %v6803_v43  ;;  %v2421_v22 = vand.u32 2147483647, %v6803_v43  ;;  %v3928_v9 = vld [vmem:[#allocation6] sm:$0xff] }
 0x2ae   : > { %6804 = vlog2.f32 %v2415_v48  ;;  %v2926_v54 = vsel %vm928_vm1, %v2918_v51, 0  ;;  %v2419_v20 = vadd.f32 1.0, %v2418_v11  ;;  %vm2422_vm2 = vcmp.lt.f32.partialorder %v2421_v22, 0.0004427343 }
 0x2af   : > { %v7888_v55 = vand.u32 4294901760, %v2926_v54  ;;  %v8077_v48 = vand.u32 4294901760, %v3928_v9 }
 0x2b0   : > { %v2420_v31 = vmul.f32 %v6803_v43, %v2419_v20 }
 0x2b1   : > { %v2998_v57 = vsub.f32 %v2926_v54, %v7888_v55  ;;  %6404 = vmatmul.mubr.f32.vlgmr.msra.gmra.mxu1 %v7888_v55 }
 0x2b2   : > { %6418 = vmatpush3.msra.mxu1 %v7836_v4  ;;  %6425 = vmatprep.mubr.msk.f32.mxu1 %vm7108_vm0, %v7107_v0 }
 0x2b3   : > { %6419 = vmatprep.subr.mxu1 %v7107_v0  ;;  %v2999_v61 = vand.u32 4294901760, %v2998_v57 }
 0x2b4   : > { %6420 = vmatpush3.msra.mxu1 %v7841_v8 }
 0x2b5   : > { %6421 = vmatprep.subr.mxu1 %v7107_v0  ;;  %v3000_v14 = vsub.f32 %v2998_v57, %v2999_v61 }
 0x2b6   : > { %6422 = vmatpush3.msra.mxu1 %v7849_v41 }
 0x2b7   : > { %6423 = vmatprep.subr.mxu1 %v7107_v0  ;;  %v3001_v17 = vand.u32 4294901760, %v3000_v14 }
 0x2b8   : > { %6424 = vmatpush3.msra.mxu1 %v7860_v46 }
 0x2b9   : > { %6426 = vmatmul.mubr.f32.vlgmr.msra.gmra.mxu1 %v2999_v61  ;;  %6439 = vmatprep.subr.mxu1 %v7107_v0 }
 0x2ba   : > { %6393 = vmatmul.mubr.f32.vlgmr.msra.gmra.mxu0 %v3001_v17  ;;  %6440 = vmatpush3.msra.mxu1 %v7836_v4  ;;  %v3556_v4 = vand.u32 4294901760, %v7911_v21 }
 0x2bb   : > { %v6805_v27 = vpop.eup %6804  ;;  %6407 = vmatpush3.msra.mxu0 %v7839_v6  ;;  %6441 = vmatprep.subr.mxu1 %v7107_v0  ;;  %v3572_v6 = vand.u32 4294901760, %v3571_v5 }
 0x2bc   : > { %v2417_v28 = vmul.f32 0.6931472, %v6805_v27  ;;  %6408 = vmatprep.subr.mxu0 %v7107_v0  ;;  %6442 = vmatpush3.msra.mxu1 %v7841_v8  ;;  %v3563_v8 = vand.u32 4294901760, %v7917_v25 }
 0x2bd   : > { %6409 = vmatpush3.msra.mxu0 %v7847_v39  ;;  %6443 = vmatprep.subr.mxu1 %v7107_v0 }
 0x2be   : > { %v2423_v32 = vsel %vm2422_vm2, %v2420_v31, %v2417_v28  ;;  %6410 = vmatprep.subr.mxu0 %v7107_v0  ;;  %6444 = vmatpush3.msra.mxu1 %v7849_v41  ;;  %v3557_v41 = vsub.f32 %v7911_v21, %v3556_v4  ;;  %v3564_v36 = vsub.f32 %v7917_v25, %v3563_v8  ;;  %v5859_v31 = vld [vmem:[#allocation12] ss:$0 sm:$0xff] }
 0x2bf   : > { %v2424_v1 = vadd.f32 %v2423_v32, %v2408_v58  ;;  %6411 = vmatpush3.msra.mxu0 %v7858_v45  ;;  %6445 = vmatprep.subr.mxu1 %v7107_v0 }
 0x2c0   : > { %6412 = vmatprep.subr.mxu0 %v7107_v0  ;;  %6414 = vmatprep.mubr.msk.f32.mxu0 %vm7108_vm0, %v7107_v0  ;;  %v3565_v3 = vand.u32 4294901760, %v3564_v36 }
 0x2c1   : > { %v2425_v34 = vsel %vm2409_vm3, %v7884_v29, %v2424_v1  ;;  %6413 = vmatpush3.msra.mxu0 %v7869_v50  ;;  %6446 = vmatpush3.msra.mxu1 %v7860_v46  ;;  %v3558_v46 = vand.u32 4294901760, %v3557_v41 }
 0x2c2   : > { %v2426_v35 = vsub.f32 0.0, %v2425_v34  ;;  %6447 = vmatprep.mubr.msk.f32.mxu1 %vm7108_vm0, %v7107_v0  ;;  %6415 = vmatmul.mubr.f32.vlgmr.msra.gmra.mxu0 %v2998_v57 }
 0x2c3   : > { %6428 = vmatprep.subr.mxu0 %v7107_v0  ;;  %6448 = vmatmul.mubr.f32.vlgmr.msra.gmra.mxu1 %v7888_v55 }
 0x2c4   : > { %v5858_v29 = vadd.f32 -0.6, %v2426_v35  ;;  %6429 = vmatpush3.msra.mxu0 %v3034_v10  ;;  %6436 = vmatprep.mubr.msk.f32.mxu0 %vm7108_vm0, %v7107_v0 }
 0x2c5   : > { %6430 = vmatprep.subr.mxu0 %v7107_v0  ;;  %6461 = vmatprep.subr.mxu1 %v7107_v0 }
 0x2c6   : > { %v2428_v62 = vmul.f32 1.442695, %v5858_v29  ;;  %6431 = vmatpush3.msra.mxu0 %v3041_v44  ;;  %6462 = vmatpush3.msra.mxu1 %v3551_v2 }
 0x2c7   : > { %6432 = vmatprep.subr.mxu0 %v7107_v0  ;;  %6463 = vmatprep.subr.mxu1 %v7107_v0 }
 0x2c8   : > { %6806 = vpow2.f32 %v2428_v62  ;;  %6433 = vmatpush3.msra.mxu0 %v3048_v49  ;;  %6464 = vmatpush3.msra.mxu1 %v3558_v46 }
 0x2c9   : > { %6434 = vmatprep.subr.mxu0 %v7107_v0  ;;  %6465 = vmatprep.subr.mxu1 %v7107_v0 }
 0x2ca   : > { %6435 = vmatpush3.msra.mxu0 %v3055_v53  ;;  %6466 = vmatpush3.msra.mxu1 %v3565_v3 }
 0x2cb   : > { %6437 = vmatmul.mubr.f32.vlgmr.msra.gmra.mxu0 %v7888_v55  ;;  %6450 = vmatprep.subr.mxu0 %v7107_v0  ;;  %v8086_v55 = vsub.f32 %v3928_v9, %v8077_v48  ;;  %v4448_v9 = vld [vmem:[%s8359_s14 + $0x18] sm:$0xff] }
 0x2cc   : > { %6451 = vmatpush3.msra.mxu0 %v7895_v60  ;;  %6467 = vmatprep.subr.mxu1 %v7107_v0 }
 0x2cd   : > { %6452 = vmatprep.subr.mxu0 %v7107_v0  ;;  %6458 = vmatprep.mubr.msk.f32.mxu0 %vm7108_vm0, %v7107_v0  ;;  %v4062_v59 = vand.u32 4294901760, %v8086_v55 }
 0x2ce   : > { %6453 = vmatpush3.msra.mxu0 %v7899_v13  ;;  %6468 = vmatpush3.msra.mxu1 %v3572_v6 }
 0x2cf   : > { %6454 = vmatprep.subr.mxu0 %v7107_v0  ;;  %6469 = vmatprep.mubr.msk.f32.mxu1 %vm7108_vm0, %v7107_v0  ;;  %v4063_v61 = vsub.f32 %v8086_v55, %v4062_v59 }
 0x2d0   : > { %6455 = vmatpush3.msra.mxu0 %v7906_v16  ;;  %6483 = vmatprep.subr.mxu1 %v7107_v0 }
 0x2d1   : > { %6456 = vmatprep.subr.mxu0 %v7107_v0  ;;  %6470 = vmatmul.mubr.f32.vlgmr.msra.gmra.mxu1 %v7417_v12  ;;  %v4064_v7 = vand.u32 4294901760, %v4063_v61  ;;  %v4446_v61 = vld [vmem:[%s8359_s14 + $0x8] sm:$0xff] }
 0x2d2   : > { %6457 = vmatpush3.msra.mxu0 %v7919_v26  ;;  %6484 = vmatpush3.msra.mxu1 %v7895_v60 }
 0x2d3   : > { %6459 = vmatmul.mubr.f32.vlgmr.msra.gmra.mxu0 %v7452_v30  ;;  %6472 = vmatprep.subr.mxu0 %v7107_v0  ;;  %v3930_v30 = vld [vmem:[#allocation6 + $0x10] sm:$0xff] }
 0x2d4   : > { %6473 = vmatpush3.msra.mxu0 %v7904_v15  ;;  %6485 = vmatprep.subr.mxu1 %v7107_v0  ;;  %v8058_v45 = vand.u32 4294901760, %v3930_v30 }
 0x2d5   : > { %v6807_v10 = vpop.eup %6806  ;;  %6474 = vmatprep.subr.mxu0 %v7107_v0  ;;  %6486 = vmatpush3.msra.mxu1 %v7899_v13 }
 0x2d6   : > { %v2430_v39 = vsub.f32 0.0, %v6807_v10  ;;  %6475 = vmatpush3.msra.mxu0 %v7911_v21  ;;  %6487 = vmatprep.subr.mxu1 %v7107_v0  ;;  %v8064_v50 = vsub.f32 %v3930_v30, %v8058_v45 }
 0x2d7   : > { %6476 = vmatprep.subr.mxu0 %v7107_v0  ;;  %6488 = vmatpush3.msra.mxu1 %v7906_v16 }
 0x2d8   : > { %2431 = vst.msk [vmem:[%s894_s27] sm:$0xff] %vm928_vm1, %v2430_v39  ;;  %6477 = vmatpush3.msra.mxu0 %v7917_v25  ;;  %6489 = vmatprep.subr.mxu1 %v7107_v0  ;;  %v4048_v43 = vand.u32 4294901760, %v8064_v50 }
 0x2d9   : > { %6478 = vmatprep.subr.mxu0 %v7107_v0  ;;  %6480 = vmatprep.mubr.msk.f32.mxu0 %vm7108_vm0, %v7107_v0 }
 0x2da   : > { %6479 = vmatpush3.msra.mxu0 %v7936_v63  ;;  %6490 = vmatpush3.msra.mxu1 %v7919_v26  ;;  %v4049_v52 = vsub.f32 %v8064_v50, %v4048_v43 }
 0x2db   : > { %6481 = vmatmul.mubr.f32.vlgmr.msra.gmra.mxu0 %v7432_v18  ;;  %6491 = vmatprep.mubr.msk.f32.mxu1 %vm7108_vm0, %v7107_v0  ;;  %v3931_v18 = vld [vmem:[#allocation6 + $0x18] sm:$0xff] }
 0x2dc   : > { %6494 = vmatprep.subr.mxu0 %v7107_v0  ;;  %6505 = vmatprep.subr.mxu1 %v7107_v0  ;;  %v4050_v56 = vand.u32 4294901760, %v4049_v52  ;;  %v3413_v52 = vld [vmem:[%s880_s24] sm:$0xff]  ;;  %s8405_s24 = sld [smem:[#allocation28_spill]] }
 0x2dd   : > { %6492 = vmatmul.mubr.f32.vlgmr.msra.gmra.mxu1 %v7440_v23  ;;  %6495 = vmatpush3.msra.mxu0 %v3549_v24  ;;  %v8053_v23 = vand.u32 4294901760, %v3931_v18 }
 0x2de   : > { %6506 = vmatpush3.msra.mxu1 %v7895_v60  ;;  %6496 = vmatprep.subr.mxu0 %v7107_v0 }
 0x2df   : > { %6507 = vmatprep.subr.mxu1 %v7107_v0  ;;  %6497 = vmatpush3.msra.mxu0 %v3556_v4  ;;  %v8056_v44 = vsub.f32 %v3931_v18, %v8053_v23 }
 0x2e0   : > { %6508 = vmatpush3.msra.mxu1 %v7899_v13  ;;  %6498 = vmatprep.subr.mxu0 %v7107_v0 }
 0x2e1   : > { %6509 = vmatprep.subr.mxu1 %v7107_v0  ;;  %6499 = vmatpush3.msra.mxu0 %v3563_v8  ;;  %v4041_v49 = vand.u32 4294901760, %v8056_v44 }
 0x2e2   : > { %6510 = vmatpush3.msra.mxu1 %v7906_v16  ;;  %6500 = vmatprep.subr.mxu0 %v7107_v0  ;;  %s901_s4 = scalar_lea.vmem %s8405_s24, %s7388_s0 }
 0x2e3   : > { %6511 = vmatprep.subr.mxu1 %v7107_v0  ;;  %6501 = vmatpush3.msra.mxu0 %v3570_v37  ;;  %v4042_v42 = vsub.f32 %v8056_v44, %v4041_v49 }
 0x2e4   : > { %6502 = vmatprep.mubr.msk.f32.mxu0 %vm7108_vm0, %v7107_v0  ;;  %6512 = vmatpush3.msra.mxu1 %v7919_v26 }
 0x2e5   : > { %6513 = vmatprep.mubr.msk.f32.mxu1 %vm7108_vm0, %v7107_v0  ;;  %6503 = vmatmul.mubr.f32.vlgmr.msra.gmra.mxu0 %v7417_v12  ;;  %v4043_v51 = vand.u32 4294901760, %v4042_v42 }
 0x2e6   : > { %6514 = vmatmul.mubr.f32.vlgmr.msra.gmra.mxu1 %v7417_v12  ;;  %6527 = vmatprep.subr.mxu1 %v7107_v0  ;;  %v3929_v12 = vld [vmem:[#allocation6 + $0x8] sm:$0xff] }
 0x2e7   : > { %6516 = vmatprep.subr.mxu0 %v7107_v0  ;;  %6535 = vmatprep.mubr.msk.f32.mxu1 %vm7108_vm0, %v7107_v0  ;;  %v8066_v53 = vand.u32 4294901760, %v3929_v12 }
 0x2e8   : > { %6524 = vmatprep.mubr.msk.f32.mxu0 %vm7108_vm0, %v7107_v0  ;;  %6517 = vmatpush3.msra.mxu0 %v8053_v23 }
 0x2e9   : > { %6518 = vmatprep.subr.mxu0 %v7107_v0  ;;  %v8075_v47 = vsub.f32 %v3929_v12, %v8066_v53  ;;  %6528 = vmatpush3.msra.mxu1 %v4043_v51  ;;  %v4447_v51 = vld [vmem:[%s8359_s14 + $0x10] sm:$0xff] }
 0x2ea   : > { %6519 = vmatpush3.msra.mxu0 %v8058_v45  ;;  %6529 = vmatprep.subr.mxu1 %v7107_v0 }
 0x2eb   : > { %6520 = vmatprep.subr.mxu0 %v7107_v0  ;;  %v4055_v54 = vand.u32 4294901760, %v8075_v47  ;;  %6530 = vmatpush3.msra.mxu1 %v4050_v56  ;;  %v3416_v56 = vpop.permute.xlu1 %3415 }
 0x2ec   : > { %6521 = vmatpush3.msra.mxu0 %v8066_v53  ;;  %6531 = vmatprep.subr.mxu1 %v7107_v0 }
 0x2ed   : > { %6522 = vmatprep.subr.mxu0 %v7107_v0  ;;  %v4056_v57 = vsub.f32 %v8075_v47, %v4055_v54 }
 0x2ee   : > { %6523 = vmatpush3.msra.mxu0 %v8077_v48 }
 0x2ef   : > { %6538 = vmatprep.subr.mxu0 %v7107_v0  ;;  %v4057_v60 = vand.u32 4294901760, %v4056_v57 }
 0x2f1   : > { %6532 = vmatpush3.msra.mxu1 %v4057_v60  ;;  %v8116_v60 = vand.u32 4294901760, %v4448_v9 }
 0x2f2   : > { %6533 = vmatprep.subr.mxu1 %v7107_v0 }
 0x2f3   : > { %6534 = vmatpush3.msra.mxu1 %v4064_v7 }
 0x2f4   : > { %6549 = vmatprep.subr.mxu1 %v7107_v0 }
 0x371   : > { %v3094_v11 = vpop.f32.mrf.mxu1 }
 0x373   : > { %v6405_v13 = vpop.f32.mrf.mxu1 }
 0x374   : > { %v3418_v13 = vsub.f32 %v3413_v52, %v3416_v56  ;;  %v5861_v52 = vld [vmem:[#allocation7] ss:$0 sm:$0xff] }
 0x379   : > { %v3251_v14 = vpop.f32.mrf.mxu1 }
 0x37a   : > { %v3003_v15 = vpop.f32.mrf.mxu0 }
 0x37b   : > { %v6427_v16 = vpop.f32.mrf.mxu1  ;;  %v3095_v21 = vadd.f32 %v3094_v11, %v3003_v15  ;;  %v8125_v11 = vand.u32 4294901760, %v4447_v51 }
 0x37c   : > { %v6394_v17 = vpop.f32.mrf.mxu0 }
 0x37d   : > { %v8133_v17 = vsub.f32 %v4448_v9, %v8116_v60 }
 0x382   : > { %v3174_v19 = vpop.f32.mrf.mxu0 }
 0x383   : > { %v3409_v20 = vpop.f32.mrf.mxu1  ;;  %v3175_v25 = vadd.f32 %v3174_v19, %v3095_v21  ;;  %v8135_v19 = vand.u32 4294901760, %v4446_v61 }
 0x384   : > { %v6416_v22 = vpop.f32.mrf.mxu0 }
 0x385   : > { %v6449_v24 = vpop.f32.mrf.mxu1  ;;  %v3252_v26 = vadd.f32 %v3251_v14, %v3175_v25  ;;  %v4445_v14 = vld [vmem:[%s8359_s14] sm:$0xff]  ;;  %v8140_v22 = vsub.f32 %v4447_v51, %v8125_v11  ;;  %v4560_v25 = vand.u32 4294901760, %v8133_v17 }
 0x386   : > { %v8142_v24 = vand.u32 4294901760, %v4445_v14 }
 0x38b   : > { %v3334_v27 = vpop.f32.mrf.mxu0 }
 0x38c   : > { %v3335_v28 = vadd.f32 %v3334_v27, %v3252_v26  ;;  %v8149_v26 = vsub.f32 %v4446_v61, %v8135_v19  ;;  %v4567_v27 = vand.u32 4294901760, %v8140_v22 }
 0x38d   : > { %v6438_v4 = vpop.f32.mrf.mxu0 }
 0x38e   : > { %v3410_v58 = vadd.f32 %v3409_v20, %v3335_v28  ;;  %v8156_v28 = vsub.f32 %v4445_v14, %v8142_v24  ;;  %v4451_v4 = vpop.permute.xlu0 %4450 }
 0x390   : > { %v3426_v32 = vadd.f32 %v5859_v31, %v3410_v58  ;;  %v4574_v31 = vand.u32 4294901760, %v8149_v26  ;;  %v4581_v58 = vand.u32 4294901760, %v8156_v28 }
 0x391   : > { %v3609_v33 = vpop.f32.mrf.mxu1 }
 0x392   : > { %v5860_v8 = vmul.f32 -1.442695, %v3426_v32  ;;  %v4452_v32 = vsel %vm928_vm1, %v4451_v4, 0 }
 0x393   : > { %v3518_v63 = vpop.f32.mrf.mxu0  ;;  %v6471_v1 = vpop.f32.mrf.mxu1 }
 0x394   : > { %6808 = vpow2.f32 %v5860_v8  ;;  %v3610_v36 = vadd.f32 %v3609_v33, %v3518_v63  ;;  %v4575_v33 = vsub.f32 %v8149_v26, %v4574_v31  ;;  %v4582_v63 = vsub.f32 %v8156_v28, %v4581_v58 }
 0x395   : > { %v6460_v41 = vpop.f32.mrf.mxu0  ;;  %v8190_v1 = vand.u32 4294901760, %v4452_v32 }
 0x396   : > { %v4583_v41 = vand.u32 4294901760, %v4582_v63 }
 0x39b   : > { %v3689_v34 = vpop.f32.mrf.mxu0 }
 0x39c   : > { %v3690_v29 = vadd.f32 %v3689_v34, %v3610_v36  ;;  %v4524_v34 = vsub.f32 %v4452_v32, %v8190_v1 }
 0x39d   : > { %v3766_v35 = vpop.f32.mrf.mxu1  ;;  %v6482_v2 = vpop.f32.mrf.mxu0 }
 0x39e   : > { %v3767_v3 = vadd.f32 %v3766_v35, %v3690_v29 }
 0x39f   : > { %v6493_v37 = vpop.f32.mrf.mxu1 }
 0x3a1   : > { %v6809_v46 = vpop.eup %6808 }
 0x3a2   : > { %v3430_v62 = vadd.f32 1.0, %v6809_v46 }
 0x3a4   : > { %6810 = vrcp.f32 %v3430_v62 }
 0x3a5   : > { %v3849_v5 = vpop.f32.mrf.mxu0 }
 0x3a6   : > { %v3850_v6 = vadd.f32 %v3849_v5, %v3767_v3  ;;  %v3924_v10 = vpop.f32.mrf.mxu1 }
 0x3a7   : > { %v6504_v39 = vpop.f32.mrf.mxu0 }
 0x3a8   : > { %v3925_v18 = vadd.f32 %v3924_v10, %v3850_v6  ;;  %v6515_v30 = vpop.f32.mrf.mxu1 }
 0x3aa   : > { %v3933_v12 = vsel %vm928_vm1, %v3925_v18, 0 }
 0x3ab   : > { %v8109_v42 = vand.u32 4294901760, %v3933_v12 }
 0x3ad   : > { %v4005_v57 = vsub.f32 %v3933_v12, %v8109_v42  ;;  %6536 = vmatmul.mubr.f32.vlgmr.msra.gmra.mxu1 %v8109_v42 }
 0x3ae   : > { %6550 = vmatpush3.msra.mxu1 %v8053_v23  ;;  %6557 = vmatprep.mubr.msk.f32.mxu1 %vm7108_vm0, %v7107_v0 }
 0x3af   : > { %6551 = vmatprep.subr.mxu1 %v7107_v0  ;;  %v4006_v7 = vand.u32 4294901760, %v4005_v57 }
 0x3b0   : > { %6552 = vmatpush3.msra.mxu1 %v8058_v45 }
 0x3b1   : > { %v6811_v15 = vpop.eup %6810  ;;  %6553 = vmatprep.subr.mxu1 %v7107_v0  ;;  %v4007_v16 = vsub.f32 %v4005_v57, %v4006_v7 }
 0x3b2   : > { %6554 = vmatpush3.msra.mxu1 %v8066_v53  ;;  %v3433_v20 = vmul.f32 %v6811_v15, %v3418_v13 }
 0x3b3   : > { %6555 = vmatprep.subr.mxu1 %v7107_v0  ;;  %v4008_v21 = vand.u32 4294901760, %v4007_v16 }
 0x3b4   : > { %6556 = vmatpush3.msra.mxu1 %v8077_v48  ;;  %3435 = vrot.lane.b32.xlu0 %v3433_v20, %s7110_s18 }
 0x3b5   : > { %6558 = vmatmul.mubr.f32.vlgmr.msra.gmra.mxu1 %v4006_v7  ;;  %6571 = vmatprep.subr.mxu1 %v7107_v0 }
 0x3b6   : > { %6525 = vmatmul.mubr.f32.vlgmr.msra.gmra.mxu0 %v4008_v21  ;;  %6572 = vmatpush3.msra.mxu1 %v8053_v23  ;;  %v4561_v23 = vsub.f32 %v8133_v17, %v4560_v25 }
 0x3b7   : > { %6539 = vmatpush3.msra.mxu0 %v8056_v44  ;;  %6573 = vmatprep.subr.mxu1 %v7107_v0  ;;  %v4525_v44 = vand.u32 4294901760, %v4524_v34 }
 0x3b8   : > { %6540 = vmatprep.subr.mxu0 %v7107_v0  ;;  %6574 = vmatpush3.msra.mxu1 %v8058_v45  ;;  %v4568_v45 = vsub.f32 %v8140_v22, %v4567_v27 }
 0x3b9   : > { %6541 = vmatpush3.msra.mxu0 %v8064_v50  ;;  %6575 = vmatprep.subr.mxu1 %v7107_v0 }
 0x3ba   : > { %6542 = vmatprep.subr.mxu0 %v7107_v0  ;;  %6576 = vmatpush3.msra.mxu1 %v8066_v53  ;;  %v4562_v53 = vand.u32 4294901760, %v4561_v23  ;;  %v4569_v8 = vand.u32 4294901760, %v4568_v45 }
 0x3bb   : > { %6543 = vmatpush3.msra.mxu0 %v8075_v47  ;;  %6577 = vmatprep.subr.mxu1 %v7107_v0 }
 0x3bc   : > { %6544 = vmatprep.subr.mxu0 %v7107_v0  ;;  %6546 = vmatprep.mubr.msk.f32.mxu0 %vm7108_vm0, %v7107_v0 }
 0x3bd   : > { %6545 = vmatpush3.msra.mxu0 %v8086_v55  ;;  %6578 = vmatpush3.msra.mxu1 %v8077_v48  ;;  %v4576_v48 = vand.u32 4294901760, %v4575_v33 }
 0x3be   : > { %6579 = vmatprep.mubr.msk.f32.mxu1 %vm7108_vm0, %v7107_v0  ;;  %6547 = vmatmul.mubr.f32.vlgmr.msra.gmra.mxu0 %v4005_v57 }
 0x3bf   : > { %6560 = vmatprep.subr.mxu0 %v7107_v0  ;;  %6580 = vmatmul.mubr.f32.vlgmr.msra.gmra.mxu1 %v8109_v42 }
 0x3c0   : > { %6593 = vmatprep.subr.mxu1 %v7107_v0  ;;  %6561 = vmatpush3.msra.mxu0 %v4041_v49  ;;  %v4526_v49 = vsub.f32 %v4524_v34, %v4525_v44 }
 0x3c1   : > { %6594 = vmatpush3.msra.mxu1 %v4562_v53  ;;  %6562 = vmatprep.subr.mxu0 %v7107_v0 }
 0x3c2   : > { %6595 = vmatprep.subr.mxu1 %v7107_v0  ;;  %6563 = vmatpush3.msra.mxu0 %v4048_v43  ;;  %v4527_v50 = vand.u32 4294901760, %v4526_v49  ;;  %v4941_v43 = vld [vmem:[%s8360_s15] sm:$0x3] }
 0x3c3   : > { %6596 = vmatpush3.msra.mxu1 %v4569_v8  ;;  %6564 = vmatprep.subr.mxu0 %v7107_v0  ;;  %v4948_v47 = vsel %vm4946_vm4, %v4941_v43, 0 }
 0x3c4   : > { %6597 = vmatprep.subr.mxu1 %v7107_v0  ;;  %6565 = vmatpush3.msra.mxu0 %v4055_v54  ;;  %v8279_v54 = vand.u32 4294901760, %v4948_v47 }
 0x3c5   : > { %6598 = vmatpush3.msra.mxu1 %v4576_v48  ;;  %6566 = vmatprep.subr.mxu0 %v7107_v0 }
 0x3c6   : > { %6599 = vmatprep.subr.mxu1 %v7107_v0  ;;  %6567 = vmatpush3.msra.mxu0 %v4062_v59  ;;  %v8282_v55 = vsub.f32 %v4948_v47, %v8279_v54 }
 0x3c7   : > { %6568 = vmatprep.mubr.msk.f32.mxu0 %vm7108_vm0, %v7107_v0  ;;  %6600 = vmatpush3.msra.mxu1 %v4583_v41 }
 0x3c8   : > { %6601 = vmatprep.mubr.msk.f32.mxu1 %vm7108_vm0, %v7107_v0  ;;  %6569 = vmatmul.mubr.f32.vlgmr.msra.gmra.mxu0 %v8109_v42  ;;  %v5059_v59 = vand.u32 4294901760, %v8282_v55 }
 0x3c9   : > { %6582 = vmatprep.subr.mxu0 %v7107_v0  ;;  %6602 = vmatmul.mubr.f32.vlgmr.msra.gmra.mxu1 %v8190_v1 }
 0x3ca   : > { %6615 = vmatprep.subr.mxu1 %v7107_v0  ;;  %6583 = vmatpush3.msra.mxu0 %v8116_v60  ;;  %v5060_v35 = vsub.f32 %v8282_v55, %v5059_v59 }
 0x3cb   : > { %6616 = vmatpush3.msra.mxu1 %v8116_v60  ;;  %6584 = vmatprep.subr.mxu0 %v7107_v0 }
 0x3cc   : > { %6617 = vmatprep.subr.mxu1 %v7107_v0  ;;  %6585 = vmatpush3.msra.mxu0 %v8125_v11  ;;  %v5061_v2 = vand.u32 4294901760, %v5060_v35 }
 0x3cd   : > { %6618 = vmatpush3.msra.mxu1 %v8125_v11  ;;  %6586 = vmatprep.subr.mxu0 %v7107_v0 }
 0x3ce   : > { %6619 = vmatprep.subr.mxu1 %v7107_v0  ;;  %6587 = vmatpush3.msra.mxu0 %v8135_v19 }
 0x3cf   : > { %6620 = vmatpush3.msra.mxu1 %v8135_v19  ;;  %6588 = vmatprep.subr.mxu0 %v7107_v0 }
 0x3d0   : > { %6621 = vmatprep.subr.mxu1 %v7107_v0  ;;  %6589 = vmatpush3.msra.mxu0 %v8142_v24 }
 0x3d1   : > { %6590 = vmatprep.mubr.msk.f32.mxu0 %vm7108_vm0, %v7107_v0  ;;  %6622 = vmatpush3.msra.mxu1 %v8142_v24 }
 0x3d2   : > { %6623 = vmatprep.mubr.msk.f32.mxu1 %vm7108_vm0, %v7107_v0  ;;  %6591 = vmatmul.mubr.f32.vlgmr.msra.gmra.mxu0 %v4527_v50 }
 0x3d3   : > { %6604 = vmatprep.subr.mxu0 %v7107_v0  ;;  %6624 = vmatmul.mubr.f32.vlgmr.msra.gmra.mxu1 %v4525_v44 }
 0x3d4   : > { %6637 = vmatprep.subr.mxu1 %v7107_v0  ;;  %6605 = vmatpush3.msra.mxu0 %v8133_v17 }
 0x3d5   : > { %6638 = vmatpush3.msra.mxu1 %v8116_v60  ;;  %6606 = vmatprep.subr.mxu0 %v7107_v0 }
 0x3d6   : > { %6639 = vmatprep.subr.mxu1 %v7107_v0  ;;  %6607 = vmatpush3.msra.mxu0 %v8140_v22 }
 0x3d7   : > { %6640 = vmatpush3.msra.mxu1 %v8125_v11  ;;  %6608 = vmatprep.subr.mxu0 %v7107_v0 }
 0x3d8   : > { %6641 = vmatprep.subr.mxu1 %v7107_v0  ;;  %6609 = vmatpush3.msra.mxu0 %v8149_v26 }
 0x3d9   : > { %6642 = vmatpush3.msra.mxu1 %v8135_v19  ;;  %6610 = vmatprep.subr.mxu0 %v7107_v0 }
 0x3da   : > { %6643 = vmatprep.subr.mxu1 %v7107_v0  ;;  %6611 = vmatpush3.msra.mxu0 %v8156_v28 }
 0x3db   : > { %6612 = vmatprep.mubr.msk.f32.mxu0 %vm7108_vm0, %v7107_v0  ;;  %6644 = vmatpush3.msra.mxu1 %v8142_v24 }
 0x3dc   : > { %6645 = vmatprep.mubr.msk.f32.mxu1 %vm7108_vm0, %v7107_v0  ;;  %6613 = vmatmul.mubr.f32.vlgmr.msra.gmra.mxu0 %v4524_v34 }
 0x3dd   : > { %6626 = vmatprep.subr.mxu0 %v7107_v0  ;;  %6646 = vmatmul.mubr.f32.vlgmr.msra.gmra.mxu1 %v8190_v1 }
 0x3de   : > { %6627 = vmatpush3.msra.mxu0 %v4560_v25  ;;  %6634 = vmatprep.mubr.msk.f32.mxu0 %vm7108_vm0, %v7107_v0 }
 0x3df   : > { %6628 = vmatprep.subr.mxu0 %v7107_v0  ;;  %6653 = vmatprep.subr.mxu1 %v7107_v0 }
 0x3e0   : > { %6629 = vmatpush3.msra.mxu0 %v4567_v27  ;;  %6655 = vmatprep.mubr.msk.f32.mxu1 %vm7108_vm0, %v7107_v0 }
 0x3e1   : > { %6630 = vmatprep.subr.mxu0 %v7107_v0  ;;  %6654 = vmatpush3.msra.mxu1 %v5061_v2 }
 0x3e2   : > { %6631 = vmatpush3.msra.mxu0 %v4574_v31  ;;  %6663 = vmatprep.subr.mxu1 %v7107_v0 }
 0x3e3   : > { %6632 = vmatprep.subr.mxu0 %v7107_v0 }
 0x3e4   : > { %6633 = vmatpush3.msra.mxu0 %v4581_v58 }
 0x3e5   : > { %6635 = vmatmul.mubr.f32.vlgmr.msra.gmra.mxu0 %v8190_v1  ;;  %6648 = vmatprep.subr.mxu0 %v7107_v0 }
 0x3e6   : > { %6650 = vmatprep.mubr.msk.f32.mxu0 %vm7108_vm0, %v7107_v0  ;;  %6649 = vmatpush3.msra.mxu0 %v8279_v54 }
 0x3e7   : > { %6658 = vmatprep.subr.mxu0 %v7107_v0 }
 0x426   : > { %v3436_v58 = vpop.permute.xlu0 %3435 }
 0x427   : > { %v3438_v32 = vadd.f32 %v3436_v58, %v7667_v38 }
 0x46d   : > { %v4101_v36 = vpop.f32.mrf.mxu1 }
 0x46f   : > { %v6537_v37 = vpop.f32.mrf.mxu1 }
 0x475   : > { %v4258_v29 = vpop.f32.mrf.mxu1 }
 0x476   : > { %v4010_v46 = vpop.f32.mrf.mxu0 }
 0x477   : > { %v6559_v62 = vpop.f32.mrf.mxu1  ;;  %v4102_v39 = vadd.f32 %v4101_v36, %v4010_v46 }
 0x478   : > { %v6526_v3 = vpop.f32.mrf.mxu0 }
 0x479   : > { %v5865_v3 = vld [vmem:[#allocation15] ss:$0 sm:$0xff] }
 0x47e   : > { %v4181_v5 = vpop.f32.mrf.mxu0 }
 0x47f   : > { %v4416_v6 = vpop.f32.mrf.mxu1  ;;  %v4182_v30 = vadd.f32 %v4181_v5, %v4102_v39 }
 0x480   : > { %v6548_v10 = vpop.f32.mrf.mxu0 }
 0x481   : > { %v6581_v18 = vpop.f32.mrf.mxu1  ;;  %v4259_v12 = vadd.f32 %v4258_v29, %v4182_v30 }
 0x488   : > { %v4341_v9 = vpop.f32.mrf.mxu0 }
 0x489   : > { %v4342_v42 = vadd.f32 %v4341_v9, %v4259_v12  ;;  %v4620_v51 = vpop.f32.mrf.mxu1 }
 0x48a   : > { %v6570_v56 = vpop.f32.mrf.mxu0 }
 0x48b   : > { %v4417_v57 = vadd.f32 %v4416_v6, %v4342_v42  ;;  %v6603_v60 = vpop.f32.mrf.mxu1 }
 0x48d   : > { %v4427_v61 = vadd.f32 %v5861_v52, %v4417_v57 }
 0x48f   : > { %v5862_v7 = vmul.f32 -1.442695, %v4427_v61 }
 0x491   : > { %6812 = vpow2.f32 %v5862_v7 }
 0x492   : > { %v4529_v11 = vpop.f32.mrf.mxu0 }
 0x493   : > { %v4777_v13 = vpop.f32.mrf.mxu1  ;;  %v4621_v20 = vadd.f32 %v4620_v51, %v4529_v11 }
 0x494   : > { %v6592_v14 = vpop.f32.mrf.mxu0 }
 0x495   : > { %v6625_v15 = vpop.f32.mrf.mxu1 }
 0x49c   : > { %v4700_v16 = vpop.f32.mrf.mxu0 }
 0x49d   : > { %v4935_v17 = vpop.f32.mrf.mxu1  ;;  %v4701_v25 = vadd.f32 %v4700_v16, %v4621_v20 }
 0x49e   : > { %v6813_v19 = vpop.eup %6812  ;;  %v6614_v21 = vpop.f32.mrf.mxu0 }
 0x49f   : > { %v4431_v22 = vadd.f32 1.0, %v6813_v19  ;;  %v6647_v24 = vpop.f32.mrf.mxu1  ;;  %v4778_v26 = vadd.f32 %v4777_v13, %v4701_v25 }
 0x4a1   : > { %6814 = vrcp.f32 %v4431_v22 }
 0x4a5   : > { %v4860_v27 = vpop.f32.mrf.mxu0 }
 0x4a6   : > { %v4861_v28 = vadd.f32 %v4860_v27, %v4778_v26 }
 0x4a7   : > { %v6636_v23 = vpop.f32.mrf.mxu0 }
 0x4a8   : > { %v4936_v31 = vadd.f32 %v4935_v17, %v4861_v28 }
 0x4aa   : > { %v4939_v4 = vmax.f32 %v4936_v31, 1e-24 }
 0x4ac   : > { %6816 = vrsqrt.f32 %v4939_v4 }
 0x4ae   : > { %v6815_v45 = vpop.eup %6814 }
 0x4af   : > { %5434 = vrot.lane.b32.xlu0 %v6815_v45, %s7109_s3  ;;  %v5864_v46 = vadd.f32 -1.0, %v6815_v45 }
 0x4b1   : > { %v5410_v39 = vmul.f32 %v5865_v3, %v5864_v46 }
 0x4b3   : > { %5423 = vrot.lane.b32.xlu0 %v3438_v32, %s7110_s18  ;;  %v5411_v18 = vadd.f32 1.0, %v5410_v39 }
 0x4b9   : > { %v6817_v53 = vpop.eup %6816 }
 0x4ba   : > { %v4944_v33 = vsel %vm4942_vm5, %v6817_v53, 0 }
 0x4bb   : > { %v5016_v8 = vand.u32 4294901760, %v4944_v33 }
 0x4bd   : > { %v5017_v63 = vsub.f32 %v4944_v33, %v5016_v8  ;;  %6656 = vmatmul.mubr.f32.vlgmr.msra.gmra.mxu1 %v5016_v8 }
 0x4be   : > { %6664 = vmatpush3.msra.mxu1 %v8279_v54  ;;  %6665 = vmatprep.mubr.msk.f32.mxu1 %vm7108_vm0, %v7107_v0 }
 0x4bf   : > { %v5018_v1 = vand.u32 4294901760, %v5017_v63  ;;  %6673 = vmatprep.subr.mxu1 %v7107_v0 }
 0x4c1   : > { %6666 = vmatmul.mubr.f32.vlgmr.msra.gmra.mxu1 %v5018_v1  ;;  %v5019_v48 = vsub.f32 %v5017_v63, %v5018_v1 }
 0x4c2   : > { %6674 = vmatpush3.msra.mxu1 %v8279_v54  ;;  %6675 = vmatprep.mubr.msk.f32.mxu1 %vm7108_vm0, %v7107_v0 }
 0x4c3   : > { %v5020_v41 = vand.u32 4294901760, %v5019_v48 }
 0x4c5   : > { %6651 = vmatmul.mubr.f32.vlgmr.msra.gmra.mxu0 %v5020_v41  ;;  %6676 = vmatmul.mubr.f32.vlgmr.msra.gmra.mxu1 %v5016_v8 }
 0x4c6   : > { %6659 = vmatpush3.msra.mxu0 %v8282_v55  ;;  %6660 = vmatprep.mubr.msk.f32.mxu0 %vm7108_vm0, %v7107_v0 }
 0x4c7   : > { %6668 = vmatprep.subr.mxu0 %v7107_v0 }
 0x4c9   : > { %6661 = vmatmul.mubr.f32.vlgmr.msra.gmra.mxu0 %v5017_v63 }
 0x4ca   : > { %6669 = vmatpush3.msra.mxu0 %v5059_v59  ;;  %6670 = vmatprep.mubr.msk.f32.mxu0 %vm7108_vm0, %v7107_v0 }
 0x4cd   : > { %6671 = vmatmul.mubr.f32.vlgmr.msra.gmra.mxu0 %v5016_v8 }
 0x521   : > { %v5435_v34 = vpop.permute.xlu0 %5434 }
 0x525   : > { %v5424_v44 = vpop.permute.xlu0 %5423 }
 0x526   : > { %5426 = vst.msk [vmem:[%s908_s30] sm:$0xff] %vm928_vm1, %v5424_v44  ;;  %s8406_s30 = sld [smem:[#allocation29_spill]] }
 0x52c   : > { %s915_s5 = scalar_lea.vmem %s8406_s30, %s7388_s0 }
 0x57d   : > { %v5098_v49 = vpop.f32.mrf.mxu1 }
 0x57f   : > { %v6657_v50 = vpop.f32.mrf.mxu1 }
 0x581   : > { %v5246_v43 = vpop.f32.mrf.mxu1 }
 0x583   : > { %v6667_v47 = vpop.f32.mrf.mxu1 }
 0x585   : > { %v5022_v54 = vpop.f32.mrf.mxu0  ;;  %v5392_v35 = vpop.f32.mrf.mxu1 }
 0x586   : > { %v5099_v2 = vadd.f32 %v5098_v49, %v5022_v54 }
 0x587   : > { %v6652_v55 = vpop.f32.mrf.mxu0  ;;  %v6677_v59 = vpop.f32.mrf.mxu1 }
 0x589   : > { %v5172_v36 = vpop.f32.mrf.mxu0 }
 0x58a   : > { %v5173_v0 = vadd.f32 %v5172_v36, %v5099_v2 }
 0x58b   : > { %v6662_v37 = vpop.f32.mrf.mxu0 }
 0x58c   : > { %v5247_v29 = vadd.f32 %v5246_v43, %v5173_v0 }
 0x58d   : > { %v5320_v62 = vpop.f32.mrf.mxu0 }
 0x58e   : > { %v5321_v5 = vadd.f32 %v5320_v62, %v5247_v29 }
 0x58f   : > { %v6672_v6 = vpop.f32.mrf.mxu0 }
 0x590   : > { %v5393_v10 = vadd.f32 %v5392_v35, %v5321_v5 }
 0x592   : > { %5397 = vrot.lane.b32.xlu1 %v5393_v10, %s7109_s3 }
 0x596   : > { %5413 = vrot.lane.b32.xlu1 %v5411_v18, %s7109_s3 }
 0x604   : > { %v5398_v30 = vpop.permute.xlu1 %5397 }
 0x605   : > { %v5400_v12 = vmul.f32 %v5398_v30, %v7672_v40 }
 0x607   : > { %v5437_v9 = vmul.f32 %v5435_v34, %v5400_v12  ;;  %v5427_v52 = vsub.f32 0.0, %v5400_v12 }
 0x608   : > { %v5414_v42 = vpop.permute.xlu1 %5413 }
 0x609   : > { %v5416_v51 = vmul.f32 %v5414_v42, %v7667_v38  ;;  %5439 = vrot.lane.b32.xlu0 %v5437_v9, %s7111_s2 }
 0x60b   : > { %5418 = vrot.lane.b32.xlu1 %v5416_v51, %s7111_s2 }
 0x60f   : > { %5429 = vrot.lane.b32.xlu1 %v5427_v52, %s7111_s2 }
 0x67b   : > { %v5440_v56 = vpop.permute.xlu0 %5439 }
 0x67c   : > { %5442 = vst.msk [vmem:[%s922_s28] sm:$0xff] %vm928_vm1, %v5440_v56 }
 0x67d   : > { %v5419_v40 = vpop.permute.xlu1 %5418 }
 0x67e   : > { %5421 = vst.msk [vmem:[%s901_s4] sm:$0xff] %vm928_vm1, %v5419_v40 }
 0x681   : > { %v5430_v38 = vpop.permute.xlu1 %5429 }
 0x682   : > { %5432 = vst.msk [vmem:[%s915_s5] sm:$0xff] %vm928_vm1, %v5430_v38 }
 0x683 PF: > { %s8407_s2 = sld [smem:[#allocation21_spill]] }
 0x689   : > { %s37_s26 = sadd.s32 1, %s8407_s2   ;;  %s8408_s2 = smov %s7090_s25 }
 0x68a   : > { %p34_p3 = scmp.ge.s32.totalorder %s37_s26, 4   ;;  %s8409_s25 = smov %s8411_s23 }
 0x68c   :  { %36 = sbr.rel (!%p34_p3) target bundleno = 16 (0x10), region = 214 }
 0x691   :  { %5568 = vsyncpa [#allocation3], 1 }
 0x692   :  { %5570 = vsyncpa [#allocation3 + $0x1], 1 }
 0x693   :  { %5571 = vsyncpa [#allocation5], 1 }
 0x694   :  { %5572 = vsyncpa [#allocation8], 1 }
 0x695   :  { %5573 = vsyncpa [#allocation11], 1 }
 0x696   :  { %5574 = vsyncpa [#allocation14], 1 }

// kernel: rwkv_tmix_x070_forward.4
= control target key start
LH: loop header
LB: loop body
LE: loop exit
PB: predicated region body
PF: predicated region fallthrough
CT: control target
= control target key end

     0   :  { %s17683_s27 = smov 0   ;;  %s17685_s28 = smov 0   ;;  %s18992_s0 = inlined_call_operand.vmem [shape: f32[8,8], index: 0, kind: input, shape index: {}]   ;;  %s18993_s1 = inlined_call_operand.vmem [shape: f32[2,8,32], index: 1, kind: input, shape index: {}]   ;;  %s18994_s2 = inlined_call_operand.vmem [shape: f32[2,8,32], index: 2, kind: input, shape index: {}]   ;;  %s18995_s3 = inlined_call_operand.vmem [shape: f32[2,8,32], index: 3, kind: input, shape index: {}]   ;;  %s18996_s4 = inlined_call_operand.vmem [shape: f32[2,8,32], index: 4, kind: input, shape index: {}]   ;;  %s18997_s5 = inlined_call_operand.vmem [shape: f32[2,8,32], index: 5, kind: input, shape index: {}]   ;;  %s18998_s6 = inlined_call_operand.vmem [shape: f32[2,8,32], index: 6, kind: input, shape index: {}]   ;;  %s18999_s7 = inlined_call_operand.vmem [shape: f32[2,8,1], index: 7, kind: input, shape index: {}]   ;;  %s19000_s8 = inlined_call_operand.vmem [shape: f32[2,8,32], index: 8, kind: output, shape index: {}]  }
   0x1   :  { %s17687_s29 = smov 0  }
   0x2 LB: > { %s37_s30 = sadd.s32 1, %s17627_s28  ;;  %p16076_p0 = scmp.ge.s32.totalorder %s17631_s29, 1  ;;  %s17631_s29 = sphi %s17687_s29, %s18_s29   ;;  %s17627_s28 = sphi %s17685_s28, %s19002_s28   ;;  %s17623_s27 = sphi %s17683_s27, %s19001_s27  }
   0x3   : > { %p39_p1 = scmp.ge.s32.totalorder %s37_s30, 2  ;;  %p403_p2 = scmp.lt.s32.totalorder %s17631_s29, 3 }
   0x5   : > { %s19004_s30 = smov (%p39_p1, %s37_s30), 0  ;;  %p404_p3 = pnand %p16076_p0, %p403_p2 }
   0x6   : > { %p504_p4 = scmp.lt.s32.totalorder (!%p404_p3), %s17623_s27, 1  ;;  %s17636_s12 = smov (!%p404_p3), 112  }
   0x7   : > { %407 = sbr.rel (%p404_p3) target bundleno = 3221 (0xc95), region = 52 }
   0xc   : > { %v595_v0 = vld [vmem:[%s18992_s0] sm:$0xff]  ;;  %vm596_vm0 = vcmask 64512   ;;  %v17633_v1 = vmov 0.0   ;;  %vm17634_vm1 = vmmov 0   ;;  %s19006_s27 = smov (!%p504_p4, %s17623_s27), 1  ;;  %v17635_v4 = vmov 0  }
   0xd   : > { %16531 = vmatprep.subr.mxu0 %v17633_v1  ;;  %16533 = vmatprep.mubr.msk.f32.mxu0 %vm17634_vm1, %v17633_v1  ;;  %v598_v2 = vsel %vm596_vm0, %v595_v0, 0  ;;  %s17711_s11 = sshll.u32 %s19006_s27, 3  ;;  %vm585_vm2 = vcmask 261120   ;;  %v588_v41 = vlaneseq  ;;  %vm1079_vm3 = vcmask 130048  }
   0xe   : > { %v666_v3 = vand.u32 4294901760, %v598_v2  ;;  %16536 = vmatprep.subr.mxu1 %v17633_v1  ;;  %16538 = vmatprep.mubr.msk.f32.mxu1 %vm17634_vm1, %v17633_v1  ;;  %s523_s14 = scalar_lea.vmem %s18994_s2, %s17711_s11  ;;  %s570_s17 = scalar_lea.vmem %s18999_s7, %s17711_s11  ;;  %587 = vst.msk [vmem:[#allocation2 + $0x8] sm:$0xff] %vm585_vm2, %v17633_v1  ;;  %586 = vst.msk [vmem:[#allocation2] sm:$0xff] %vm585_vm2, %v17633_v1  ;;  %vm14789_vm6 = vcmask 261248  }
   0xf   : > { %17598 = vset.pattern.permute.xlu0 %v17635_v4  ;;  %v17721_v6 = vld [vmem:[%s523_s14] sm:$0xff]  ;;  %s543_s20 = scalar_lea.vmem %s18996_s4, %s17711_s11  ;;  %v17754_v42 = vshrl.u32 %v588_v41, 7  ;;  %s553_s23 = scalar_lea.vmem %s18997_s5, %s17711_s11 }
  0x10   : > { %v667_v5 = vsub.f32 %v598_v2, %v666_v3  ;;  %v1060_v8 = vld [vmem:[%s570_s17] sm:$0xff]  ;;  %v631_v9 = vand.u32 4294901760, %v17721_v6  ;;  %s533_s26 = scalar_lea.vmem %s18995_s3, %s17711_s11  ;;  %s563_s10 = scalar_lea.vmem %s18998_s6, %s17711_s11 }
  0x11   : > { %1063 = vperm.xlu0 %17598, %v1060_v8   ;;  %v1059_v16 = vld [vmem:[%s543_s20] sm:$0xff]  ;;  %v1056_v43 = vsub.s32 7, %v17754_v42  ;;  %s513_s15 = scalar_lea.vmem %s18993_s1, %s17711_s11  ;;  %s18572_s18 = scalar_lea.vmem %s19000_s8, %s17711_s11 }
  0x12   : > { %v668_v7 = vand.u32 4294901760, %v667_v5  ;;  %16532 = vmatpush3.msra.mxu0 %v631_v9  ;;  %v708_v11 = vsub.f32 %v17721_v6, %v631_v9  ;;  %v1069_v45 = vld [vmem:[%s553_s23] sm:$0xff]  ;;  %s17637_s11 = smov 16  }
  0x13   : > { %16541 = vmatprep.subr.mxu0 %v17633_v1  ;;  %v1071_v46 = vld [vmem:[%s533_s26] sm:$0xff] }
  0x14   : > { %v669_v10 = vsub.f32 %v667_v5, %v668_v7  ;;  %v709_v13 = vand.u32 4294901760, %v708_v11  ;;  %v1073_v47 = vld [vmem:[%s563_s10] sm:$0xff] }
  0x15   : > { %v1067_v4 = vld [vmem:[%s513_s15] sm:$0xff] }
  0x16   : > { %v670_v12 = vand.u32 4294901760, %v669_v10  ;;  %v710_v14 = vsub.f32 %v708_v11, %v709_v13 }
  0x18   : > { %16534 = vmatmul.mubr.f32.vlgmr.msra.gmra.mxu0 %v670_v12  ;;  %v711_v15 = vand.u32 4294901760, %v710_v14 }
  0x19   : > { %16542 = vmatpush3.msra.mxu0 %v708_v11  ;;  %16543 = vmatprep.mubr.msk.f32.mxu0 %vm17634_vm1, %v17633_v1 }
  0x1a   : > { %16551 = vmatprep.subr.mxu0 %v17633_v1  ;;  %16537 = vmatpush3.msra.mxu1 %v711_v15 }
  0x1b   : > { %16539 = vmatmul.mubr.f32.vlgmr.msra.gmra.mxu1 %v666_v3  ;;  %16546 = vmatprep.subr.mxu1 %v17633_v1 }
  0x1c   : > { %16544 = vmatmul.mubr.f32.vlgmr.msra.gmra.mxu0 %v667_v5  ;;  %16547 = vmatpush3.msra.mxu1 %v631_v9 }
  0x1d   : > { %16552 = vmatpush3.msra.mxu0 %v709_v13  ;;  %16548 = vmatprep.mubr.msk.f32.mxu1 %vm17634_vm1, %v17633_v1 }
  0x1e   : > { %16553 = vmatprep.mubr.msk.f32.mxu0 %vm17634_vm1, %v17633_v1  ;;  %16556 = vmatprep.subr.mxu1 %v17633_v1 }
  0x1f   : > { %16561 = vmatprep.subr.mxu0 %v17633_v1  ;;  %16549 = vmatmul.mubr.f32.vlgmr.msra.gmra.mxu1 %v668_v7 }
  0x20   : > { %16554 = vmatmul.mubr.f32.vlgmr.msra.gmra.mxu0 %v666_v3  ;;  %16557 = vmatpush3.msra.mxu1 %v631_v9 }
  0x21   : > { %16563 = vmatprep.mubr.msk.f32.mxu0 %vm17634_vm1, %v17633_v1  ;;  %16558 = vmatprep.mubr.msk.f32.mxu1 %vm17634_vm1, %v17633_v1 }
  0x22   : > { %16566 = vmatprep.subr.mxu1 %v17633_v1 }
  0x23   : > { %16559 = vmatmul.mubr.f32.vlgmr.msra.gmra.mxu1 %v666_v3 }
  0x24   : > { %16568 = vmatprep.mubr.msk.f32.mxu1 %vm17634_vm1, %v17633_v1 }
  0x8c   : > { %v1064_v17 = vpop.permute.xlu0 %1063 }
  0x8d   : > { %v17749_v18 = vmul.f32 %v1064_v17, %v1059_v16 }
  0x8f   : > { %7397 = vxpose.xlu0.b32.start.end [1/1] (short) (narrow) %v17749_v18, 16 }
  0xd8   : > { %v672_v19 = vpop.f32.mrf.mxu0 }
  0xda   : > { %v16535_v20 = vpop.f32.mrf.mxu0 }
  0xdb   : > { %v748_v22 = vpop.f32.mrf.mxu1 }
  0xdc   : > { %v822_v21 = vpop.f32.mrf.mxu0  ;;  %v749_v24 = vadd.f32 %v748_v22, %v672_v19 }
  0xdd   : > { %v16540_v25 = vpop.f32.mrf.mxu1 }
  0xde   : > { %v16545_v23 = vpop.f32.mrf.mxu0  ;;  %v823_v26 = vadd.f32 %v822_v21, %v749_v24  ;;  %v17944_v21 = vand.u32 4294901760, %v17749_v18 }
  0xdf   : > { %v896_v28 = vpop.f32.mrf.mxu1 }
  0xe0   : > { %v970_v27 = vpop.f32.mrf.mxu0  ;;  %v897_v29 = vadd.f32 %v896_v28, %v823_v26  ;;  %v17961_v22 = vsub.f32 %v17749_v18, %v17944_v21 }
  0xe1   : > { %v16550_v31 = vpop.f32.mrf.mxu1 }
  0xe2   : > { %v16555_v30 = vpop.f32.mrf.mxu0  ;;  %v971_v32 = vadd.f32 %v970_v27, %v897_v29  ;;  %v17964_v23 = vand.u32 4294901760, %v17961_v22 }
  0xe3   : > { %v1042_v33 = vpop.f32.mrf.mxu1  ;;  %v1078_v30 = vld [vmem:[#allocation2 + $0x8] sm:$0xff] }
  0xe4   : > { %v1043_v34 = vadd.f32 %v1042_v33, %v971_v32  ;;  %v2993_v24 = vsub.f32 %v17961_v22, %v17964_v23  ;;  %v3333_v32 = vsel %vm1079_vm3, %v1078_v30, 0 }
  0xe5   : > { %v16560_v35 = vpop.f32.mrf.mxu1 }
  0xe6   : > { %v1046_v36 = vsub.f32 %v1043_v34, %v17721_v6  ;;  %v1047_v37 = vmul.f32 1.442695, %v1043_v34  ;;  %v1051_v38 = vsub.f32 0.0, %v1043_v34  ;;  %v17968_v25 = vand.u32 4294901760, %v2993_v24 }
  0xe8   : > { %17599 = vpow2.f32 %v1047_v37  ;;  %v1049_v39 = vmul.f32 1.442695, %v1046_v36  ;;  %v1052_v40 = vmul.f32 1.442695, %v1051_v38  ;;  %v17974_v38 = vand.u32 127, %v588_v41 }
  0xea   : > { %17601 = vpow2.f32 %v1049_v39  ;;  %v17976_v39 = vand.u32 4294901760, %v3333_v32  ;;  %vm593_vm4 = vcmp.gt.s32.totalorder %v17754_v42, %v17974_v38  ;;  %vm592_vm5 = vcmp.ge.s32.totalorder %v17754_v42, %v17974_v38 }
  0xeb   : > { %17603 = vpow2.f32 %v1052_v40  ;;  %v1077_v40 = vld [vmem:[#allocation2] sm:$0xff] }
  0xf5   : > { %v17600_v44 = vpop.eup %17599 }
  0xf6   : > { %v17769_v48 = vrot.slane %v17600_v44, %v1056_v43  ;;  %v17816_v8 = vmul.f32 %v17600_v44, %v1067_v4  ;;  %v3330_v44 = vsel %vm1079_vm3, %v1077_v40, 0 }
  0xf7   : > { %v17602_v49 = vpop.eup %17601 }
  0xf8   : > { %v17604_v50 = vpop.eup %17603  ;;  %v1070_v51 = vmul.f32 %v17602_v49, %v1069_v45  ;;  %v1984_v12 = vsel %vm1079_vm3, %v17816_v8, 0 }
  0xf9   : > { %v17771_v52 = vmul.f32 %v17604_v50, %v1071_v46  ;;  %v17773_v53 = vmul.f32 %v17604_v50, %v1073_v47  ;;  %v1058_v54 = vmul.f32 %v17604_v50, %v17769_v48  ;;  %v17840_v13 = vand.u32 4294901760, %v1984_v12 }
  0xfa   : > { %8459 = vrot.lane.b32.xlu0 %v1070_v51, %s17636_s12  ;;  %v1081_v55 = vsel %vm1079_vm3, %v1070_v51, 0  ;;  %v17982_v51 = vsub.f32 %v3333_v32, %v17976_v39 }
  0xfb   : > { %v17778_v56 = vand.u32 4294901760, %v1081_v55  ;;  %v1084_v57 = vsel %vm1079_vm3, %v17771_v52, 0  ;;  %v17784_v59 = vmul.f32 %v1071_v46, %v1058_v54  ;;  %v17786_v60 = vmul.f32 %v1073_v47, %v1058_v54 }
  0xfc   : > { %v17782_v58 = vand.u32 4294901760, %v1084_v57  ;;  %v1534_v62 = vsel %vm1079_vm3, %v17773_v53, 0  ;;  %v17855_v15 = vsub.f32 %v1984_v12, %v17840_v13  ;;  %v17984_v54 = vand.u32 4294901760, %v3330_v44 }
  0xfd   : > { %v17789_v61 = vsub.f32 %v1081_v55, %v17778_v56  ;;  %v17808_v3 = vand.u32 4294901760, %v1534_v62 }
  0xfe   : > { %16562 = vmatpush3.xpose.msra.mxu0 %v17782_v58  ;;  %v17799_v63 = vsub.f32 %v1084_v57, %v17782_v58  ;;  %v17867_v17 = vand.u32 4294901760, %v17855_v15  ;;  %v17994_v4 = vsub.f32 %v3330_v44, %v17984_v54 }
  0xff   : > { %16571 = vmatprep.subr.mxu0 %v17633_v1  ;;  %v17803_v0 = vand.u32 4294901760, %v17789_v61  ;;  %v17819_v10 = vsub.f32 %v1534_v62, %v17808_v3 }
 0x100   : > { %v17806_v2 = vand.u32 4294901760, %v17799_v63  ;;  %v2055_v19 = vsub.f32 %v17855_v15, %v17867_v17  ;;  %v18002_v24 = vand.u32 4294901760, %v17994_v4 }
 0x101   : > { %v1155_v5 = vsub.f32 %v17789_v61, %v17803_v0  ;;  %v17828_v11 = vand.u32 4294901760, %v17819_v10 }
 0x102   : > { %v1196_v6 = vsub.f32 %v17799_v63, %v17806_v2  ;;  %v17891_v20 = vand.u32 4294901760, %v2055_v19 }
 0x103   : > { %v17814_v7 = vand.u32 4294901760, %v1155_v5  ;;  %v1646_v14 = vsub.f32 %v17819_v10, %v17828_v11 }
 0x104   : > { %v1197_v9 = vand.u32 4294901760, %v1196_v6 }
 0x105   : > { %16564 = vmatmul.mubr.f32.vlgmr.msra.gmra.mxu0 %v17814_v7  ;;  %v1647_v16 = vand.u32 4294901760, %v1646_v14 }
 0x106   : > { %16567 = vmatpush3.xpose.msra.mxu1 %v1197_v9  ;;  %16572 = vmatpush3.xpose.msra.mxu0 %v17799_v63 }
 0x107   : > { %16573 = vmatprep.mubr.msk.f32.mxu0 %vm17634_vm1, %v17633_v1  ;;  %16576 = vmatprep.subr.mxu1 %v17633_v1 }
 0x108   : > { %16581 = vmatprep.subr.mxu0 %v17633_v1 }
 0x109   : > { %16569 = vmatmul.mubr.f32.vlgmr.msra.gmra.mxu1 %v17778_v56  ;;  %16574 = vmatmul.mubr.f32.vlgmr.msra.gmra.mxu0 %v17789_v61 }
 0x10a   : > { %16577 = vmatpush3.xpose.msra.mxu1 %v17782_v58  ;;  %16582 = vmatpush3.xpose.msra.mxu0 %v17806_v2 }
 0x10b   : > { %16578 = vmatprep.mubr.msk.f32.mxu1 %vm17634_vm1, %v17633_v1  ;;  %16583 = vmatprep.mubr.msk.f32.mxu0 %vm17634_vm1, %v17633_v1 }
 0x10c   : > { %16586 = vmatprep.subr.mxu1 %v17633_v1  ;;  %16591 = vmatprep.subr.mxu0 %v17633_v1 }
 0x10d   : > { %16579 = vmatmul.mubr.f32.vlgmr.msra.gmra.mxu1 %v17803_v0  ;;  %16584 = vmatmul.mubr.f32.vlgmr.msra.gmra.mxu0 %v17778_v56 }
 0x10e   : > { %16587 = vmatpush3.xpose.msra.mxu1 %v17782_v58  ;;  %16592 = vmatpush3.xpose.msra.mxu0 %v17808_v3 }
 0x10f   : > { %16588 = vmatprep.mubr.msk.f32.mxu1 %vm17634_vm1, %v17633_v1  ;;  %16593 = vmatprep.mubr.msk.f32.mxu0 %vm17634_vm1, %v17633_v1 }
 0x110   : > { %16596 = vmatprep.subr.mxu1 %v17633_v1  ;;  %16601 = vmatprep.subr.mxu0 %v17633_v1 }
 0x111   : > { %16589 = vmatmul.mubr.f32.vlgmr.msra.gmra.mxu1 %v17778_v56  ;;  %16594 = vmatmul.mubr.f32.vlgmr.msra.gmra.mxu0 %v17814_v7 }
 0x112   : > { %16597 = vmatpush3.xpose.msra.mxu1 %v1647_v16  ;;  %16602 = vmatpush3.xpose.msra.mxu0 %v17819_v10 }
 0x113   : > { %16598 = vmatprep.mubr.msk.f32.mxu1 %vm17634_vm1, %v17633_v1  ;;  %16603 = vmatprep.mubr.msk.f32.mxu0 %vm17634_vm1, %v17633_v1 }
 0x114   : > { %16606 = vmatprep.subr.mxu1 %v17633_v1  ;;  %16611 = vmatprep.subr.mxu0 %v17633_v1 }
 0x115   : > { %16599 = vmatmul.mubr.f32.vlgmr.msra.gmra.mxu1 %v17778_v56  ;;  %16604 = vmatmul.mubr.f32.vlgmr.msra.gmra.mxu0 %v17789_v61 }
 0x116   : > { %16607 = vmatpush3.xpose.msra.mxu1 %v17808_v3  ;;  %16612 = vmatpush3.xpose.msra.mxu0 %v17828_v11 }
 0x117   : > { %16608 = vmatprep.mubr.msk.f32.mxu1 %vm17634_vm1, %v17633_v1  ;;  %16613 = vmatprep.mubr.msk.f32.mxu0 %vm17634_vm1, %v17633_v1 }
 0x118   : > { %16616 = vmatprep.subr.mxu1 %v17633_v1  ;;  %16621 = vmatprep.subr.mxu0 %v17633_v1 }
 0x119   : > { %16609 = vmatmul.mubr.f32.vlgmr.msra.gmra.mxu1 %v17803_v0  ;;  %16614 = vmatmul.mubr.f32.vlgmr.msra.gmra.mxu0 %v17778_v56 }
 0x11a   : > { %16617 = vmatpush3.xpose.msra.mxu1 %v17808_v3  ;;  %16622 = vmatpush3.xpose.msra.mxu0 %v17782_v58 }
 0x11b   : > { %16618 = vmatprep.mubr.msk.f32.mxu1 %vm17634_vm1, %v17633_v1  ;;  %16623 = vmatprep.mubr.msk.f32.mxu0 %vm17634_vm1, %v17633_v1 }
 0x11c   : > { %16626 = vmatprep.subr.mxu1 %v17633_v1  ;;  %16631 = vmatprep.subr.mxu0 %v17633_v1 }
 0x11d   : > { %16619 = vmatmul.mubr.f32.vlgmr.msra.gmra.mxu1 %v17778_v56  ;;  %16624 = vmatmul.mubr.f32.vlgmr.msra.gmra.mxu0 %v17891_v20 }
 0x11e   : > { %16627 = vmatpush3.xpose.msra.mxu1 %v1197_v9  ;;  %16632 = vmatpush3.xpose.msra.mxu0 %v17799_v63 }
 0x11f   : > { %16628 = vmatprep.mubr.msk.f32.mxu1 %vm17634_vm1, %v17633_v1  ;;  %16633 = vmatprep.mubr.msk.f32.mxu0 %vm17634_vm1, %v17633_v1 }
 0x120   : > { %16636 = vmatprep.subr.mxu1 %v17633_v1  ;;  %16641 = vmatprep.subr.mxu0 %v17633_v1 }
 0x121   : > { %16629 = vmatmul.mubr.f32.vlgmr.msra.gmra.mxu1 %v17840_v13  ;;  %16634 = vmatmul.mubr.f32.vlgmr.msra.gmra.mxu0 %v17855_v15 }
 0x122   : > { %16637 = vmatpush3.xpose.msra.mxu1 %v17782_v58  ;;  %16642 = vmatpush3.xpose.msra.mxu0 %v17806_v2 }
 0x123   : > { %16638 = vmatprep.mubr.msk.f32.mxu1 %vm17634_vm1, %v17633_v1  ;;  %16643 = vmatprep.mubr.msk.f32.mxu0 %vm17634_vm1, %v17633_v1 }
 0x124   : > { %16646 = vmatprep.subr.mxu1 %v17633_v1  ;;  %16651 = vmatprep.subr.mxu0 %v17633_v1 }
 0x125   : > { %16639 = vmatmul.mubr.f32.vlgmr.msra.gmra.mxu1 %v17867_v17  ;;  %16644 = vmatmul.mubr.f32.vlgmr.msra.gmra.mxu0 %v17840_v13 }
 0x126   : > { %16647 = vmatpush3.xpose.msra.mxu1 %v17782_v58  ;;  %16652 = vmatpush3.xpose.msra.mxu0 %v17808_v3 }
 0x127   : > { %16648 = vmatprep.mubr.msk.f32.mxu1 %vm17634_vm1, %v17633_v1  ;;  %16653 = vmatprep.mubr.msk.f32.mxu0 %vm17634_vm1, %v17633_v1 }
 0x128   : > { %16656 = vmatprep.subr.mxu1 %v17633_v1  ;;  %16661 = vmatprep.subr.mxu0 %v17633_v1 }
 0x129   : > { %16649 = vmatmul.mubr.f32.vlgmr.msra.gmra.mxu1 %v17840_v13  ;;  %16654 = vmatmul.mubr.f32.vlgmr.msra.gmra.mxu0 %v17891_v20 }
 0x12a   : > { %16657 = vmatpush3.xpose.msra.mxu1 %v1647_v16  ;;  %16662 = vmatpush3.xpose.msra.mxu0 %v17819_v10 }
 0x12b   : > { %16658 = vmatprep.mubr.msk.f32.mxu1 %vm17634_vm1, %v17633_v1  ;;  %16663 = vmatprep.mubr.msk.f32.mxu0 %vm17634_vm1, %v17633_v1 }
 0x12c   : > { %16666 = vmatprep.subr.mxu1 %v17633_v1  ;;  %16671 = vmatprep.subr.mxu0 %v17633_v1 }
 0x12d   : > { %16659 = vmatmul.mubr.f32.vlgmr.msra.gmra.mxu1 %v17840_v13  ;;  %16664 = vmatmul.mubr.f32.vlgmr.msra.gmra.mxu0 %v17855_v15 }
 0x12e   : > { %16667 = vmatpush3.xpose.msra.mxu1 %v17808_v3  ;;  %16672 = vmatpush3.xpose.msra.mxu0 %v17828_v11 }
 0x12f   : > { %16668 = vmatprep.mubr.msk.f32.mxu1 %vm17634_vm1, %v17633_v1  ;;  %16673 = vmatprep.mubr.msk.f32.mxu0 %vm17634_vm1, %v17633_v1 }
 0x130   : > { %16676 = vmatprep.subr.mxu1 %v17633_v1  ;;  %16681 = vmatprep.subr.mxu0 %v17633_v1 }
 0x131   : > { %16669 = vmatmul.mubr.f32.vlgmr.msra.gmra.mxu1 %v17867_v17  ;;  %16674 = vmatmul.mubr.f32.vlgmr.msra.gmra.mxu0 %v17840_v13 }
 0x132   : > { %16677 = vmatpush3.xpose.msra.mxu1 %v17808_v3  ;;  %16678 = vmatprep.mubr.msk.f32.mxu1 %vm17634_vm1, %v17633_v1  ;;  %v17991_v3 = vand.u32 4294901760, %v17982_v51 }
 0x133   : > { %16686 = vmatprep.subr.mxu1 %v17633_v1  ;;  %16682 = vmatpush3.msra.mxu0 %v17944_v21 }
 0x134   : > { %16683 = vmatprep.mubr.msk.f32.mxu0 %vm17634_vm1, %v17633_v1  ;;  %16691 = vmatprep.subr.mxu0 %v17633_v1  ;;  %v3444_v19 = vsub.f32 %v17982_v51, %v17991_v3 }
 0x135   : > { %16679 = vmatmul.mubr.f32.vlgmr.msra.gmra.mxu1 %v17840_v13 }
 0x136   : > { %16688 = vmatprep.mubr.msk.f32.mxu1 %vm17634_vm1, %v17633_v1  ;;  %16687 = vmatpush3.msra.mxu1 %v17968_v25 }
 0x137   : > { %16696 = vmatprep.subr.mxu1 %v17633_v1 }
 0x1c5   : > { %v1158_v26 = vpop.f32.mrf.mxu0 }
 0x1c7   : > { %v16565_v27 = vpop.f32.mrf.mxu0 }
 0x1c9   : > { %v1234_v28 = vpop.f32.mrf.mxu1  ;;  %v1308_v29 = vpop.f32.mrf.mxu0 }
 0x1ca   : > { %v1235_v31 = vadd.f32 %v1234_v28, %v1158_v26 }
 0x1cb   : > { %v16570_v33 = vpop.f32.mrf.mxu1  ;;  %v16575_v34 = vpop.f32.mrf.mxu0 }
 0x1cc   : > { %v1309_v35 = vadd.f32 %v1308_v29, %v1235_v31  ;;  %v18008_v34 = vand.u32 4294901760, %v3444_v19 }
 0x1cd   : > { %v1382_v36 = vpop.f32.mrf.mxu1  ;;  %v1456_v37 = vpop.f32.mrf.mxu0 }
 0x1ce   : > { %v1383_v43 = vadd.f32 %v1382_v36, %v1309_v35  ;;  %v3451_v35 = vsub.f32 %v17994_v4, %v18002_v24 }
 0x1cf   : > { %v16580_v45 = vpop.f32.mrf.mxu1  ;;  %v16585_v46 = vpop.f32.mrf.mxu0 }
 0x1d0   : > { %v1457_v47 = vadd.f32 %v1456_v37, %v1383_v43  ;;  %v18017_v46 = vand.u32 4294901760, %v3451_v35 }
 0x1d1   : > { %v1528_v49 = vpop.f32.mrf.mxu1  ;;  %v1608_v50 = vpop.f32.mrf.mxu0 }
 0x1d2   : > { %v1529_v41 = vadd.f32 %v1528_v49, %v1457_v47 }
 0x1d3   : > { %v16590_v55 = vpop.f32.mrf.mxu1  ;;  %v16595_v57 = vpop.f32.mrf.mxu0 }
 0x1d4   : > { %v1532_v58 = vsel %vm593_vm4, %v1529_v41, 0.0 }
 0x1d5   : > { %v2881_v62 = vsel %vm596_vm0, %v1532_v58, 0  ;;  %v1684_v63 = vpop.f32.mrf.mxu1  ;;  %v1758_v2 = vpop.f32.mrf.mxu0 }
 0x1d6   : > { %v2949_v5 = vand.u32 4294901760, %v2881_v62  ;;  %v1685_v6 = vadd.f32 %v1684_v63, %v1608_v50 }
 0x1d7   : > { %v16600_v9 = vpop.f32.mrf.mxu1  ;;  %v16605_v10 = vpop.f32.mrf.mxu0 }
 0x1d8   : > { %v2950_v11 = vsub.f32 %v2881_v62, %v2949_v5  ;;  %v1759_v12 = vadd.f32 %v1758_v2, %v1685_v6  ;;  %16689 = vmatmul.mubr.f32.vlgmr.msra.gmra.mxu1 %v2949_v5 }
 0x1d9   : > { %v1832_v14 = vpop.f32.mrf.mxu1  ;;  %16697 = vmatpush3.msra.mxu1 %v17944_v21  ;;  %v1906_v16 = vpop.f32.mrf.mxu0  ;;  %16698 = vmatprep.mubr.msk.f32.mxu1 %vm17634_vm1, %v17633_v1 }
 0x1da   : > { %v1833_v26 = vadd.f32 %v1832_v14, %v1759_v12  ;;  %16706 = vmatprep.subr.mxu1 %v17633_v1  ;;  %v2951_v27 = vand.u32 4294901760, %v2950_v11 }
 0x1db   : > { %v16610_v28 = vpop.f32.mrf.mxu1  ;;  %v16615_v29 = vpop.f32.mrf.mxu0 }
 0x1dc   : > { %v1907_v30 = vadd.f32 %v1906_v16, %v1833_v26  ;;  %16699 = vmatmul.mubr.f32.vlgmr.msra.gmra.mxu1 %v2951_v27  ;;  %v2952_v31 = vsub.f32 %v2950_v11, %v2951_v27 }
 0x1dd   : > { %16707 = vmatpush3.msra.mxu1 %v17944_v21  ;;  %v1978_v32 = vpop.f32.mrf.mxu1  ;;  %v2058_v33 = vpop.f32.mrf.mxu0  ;;  %16708 = vmatprep.mubr.msk.f32.mxu1 %vm17634_vm1, %v17633_v1 }
 0x1de   : > { %v18012_v36 = vadd.f32 %v1978_v32, %v1907_v30  ;;  %16718 = vmatprep.subr.mxu1 %v17633_v1  ;;  %v2953_v37 = vand.u32 4294901760, %v2952_v31 }
 0x1df   : > { %v16620_v40 = vpop.f32.mrf.mxu1  ;;  %v16625_v43 = vpop.f32.mrf.mxu0 }
 0x1e0   : > { %16684 = vmatmul.mubr.f32.vlgmr.msra.gmra.mxu0 %v2953_v37  ;;  %16709 = vmatmul.mubr.f32.vlgmr.msra.gmra.mxu1 %v2949_v5 }
 0x1e1   : > { %16692 = vmatpush3.msra.mxu0 %v17961_v22  ;;  %16719 = vmatpush3.xpose.msra.mxu1 %v18008_v34  ;;  %v2134_v44 = vpop.f32.mrf.mxu1  ;;  %v2208_v45 = vpop.f32.mrf.mxu0 }
 0x1e2   : > { %v2135_v47 = vadd.f32 %v2134_v44, %v2058_v33  ;;  %16693 = vmatprep.mubr.msk.f32.mxu0 %vm17634_vm1, %v17633_v1  ;;  %16701 = vmatprep.subr.mxu0 %v17633_v1 }
 0x1e3   : > { %v16630_v49 = vpop.f32.mrf.mxu1  ;;  %16720 = vmatprep.subr.mxu1 %v17633_v1  ;;  %v16635_v50 = vpop.f32.mrf.mxu0  ;;  %16722 = vmatprep.mubr.msk.f32.mxu1 %vm17634_vm1, %v17633_v1 }
 0x1e4   : > { %v2209_v41 = vadd.f32 %v2208_v45, %v2135_v47  ;;  %16694 = vmatmul.mubr.f32.vlgmr.msra.gmra.mxu0 %v2950_v11 }
 0x1e5   : > { %16702 = vmatpush3.msra.mxu0 %v17964_v23  ;;  %16721 = vmatpush3.xpose.msra.mxu1 %v18017_v46  ;;  %v2282_v55 = vpop.f32.mrf.mxu1  ;;  %v2356_v57 = vpop.f32.mrf.mxu0 }
 0x1e6   : > { %v2283_v58 = vadd.f32 %v2282_v55, %v2209_v41  ;;  %16703 = vmatprep.mubr.msk.f32.mxu0 %vm17634_vm1, %v17633_v1  ;;  %16711 = vmatprep.subr.mxu0 %v17633_v1 }
 0x1e7   : > { %v16640_v62 = vpop.f32.mrf.mxu1  ;;  %16732 = vmatprep.subr.mxu1 %v17633_v1  ;;  %v16645_v63 = vpop.f32.mrf.mxu0 }
 0x1e8   : > { %v2357_v2 = vadd.f32 %v2356_v57, %v2283_v58  ;;  %16723 = vmatmul.mubr.f32.vlgmr.msra.gmra.mxu1 %v17778_v56  ;;  %16704 = vmatmul.mubr.f32.vlgmr.msra.gmra.mxu0 %v2949_v5 }
 0x1e9   : > { %16712 = vmatpush3.xpose.msra.mxu0 %v17976_v39  ;;  %16733 = vmatpush3.xpose.msra.mxu1 %v17976_v39  ;;  %v2428_v6 = vpop.f32.mrf.mxu1  ;;  %v2505_v9 = vpop.f32.mrf.mxu0 }
 0x1ea   : > { %v18034_v10 = vadd.f32 %v2428_v6, %v2357_v2  ;;  %16713 = vmatprep.subr.mxu0 %v17633_v1  ;;  %16734 = vmatprep.subr.mxu1 %v17633_v1 }
 0x1eb   : > { %v16650_v11 = vpop.f32.mrf.mxu1  ;;  %v16655_v12 = vpop.f32.mrf.mxu0  ;;  %16715 = vmatprep.mubr.msk.f32.mxu0 %vm17634_vm1, %v17633_v1  ;;  %16736 = vmatprep.mubr.msk.f32.mxu1 %vm17634_vm1, %v17633_v1 }
 0x1ed   : > { %16714 = vmatpush3.xpose.msra.mxu0 %v17984_v54  ;;  %16735 = vmatpush3.xpose.msra.mxu1 %v17984_v54  ;;  %v2581_v5 = vpop.f32.mrf.mxu1  ;;  %v2655_v14 = vpop.f32.mrf.mxu0 }
 0x1ee   : > { %v2582_v16 = vadd.f32 %v2581_v5, %v2505_v9  ;;  %16725 = vmatprep.subr.mxu0 %v17633_v1  ;;  %16746 = vmatprep.subr.mxu1 %v17633_v1  ;;  %v1982_v9 = vsel %vm593_vm4, %v18012_v36, 0.0 }
 0x1ef   : > { %v16660_v19 = vpop.f32.mrf.mxu1  ;;  %v16665_v26 = vpop.f32.mrf.mxu0 }
 0x1f0   : > { %v2656_v27 = vadd.f32 %v2655_v14, %v2582_v16  ;;  %16716 = vmatmul.mubr.f32.vlgmr.msra.gmra.mxu0 %v17814_v7  ;;  %16737 = vmatmul.mubr.f32.vlgmr.msra.gmra.mxu1 %v17803_v0  ;;  %v3795_v16 = vsel %vm596_vm0, %v1982_v9, 0 }
 0x1f1   : > { %16726 = vmatpush3.xpose.msra.mxu0 %v17982_v51  ;;  %16747 = vmatpush3.xpose.msra.mxu1 %v17976_v39  ;;  %v2729_v28 = vpop.f32.mrf.mxu1  ;;  %v2803_v29 = vpop.f32.mrf.mxu0 }
 0x1f2   : > { %v2730_v30 = vadd.f32 %v2729_v28, %v2656_v27  ;;  %16727 = vmatprep.subr.mxu0 %v17633_v1  ;;  %16748 = vmatprep.subr.mxu1 %v17633_v1  ;;  %v18080_v27 = vand.u32 4294901760, %v3795_v16 }
 0x1f3   : > { %v16670_v31 = vpop.f32.mrf.mxu1  ;;  %v16675_v32 = vpop.f32.mrf.mxu0  ;;  %16729 = vmatprep.mubr.msk.f32.mxu0 %vm17634_vm1, %v17633_v1  ;;  %16750 = vmatprep.mubr.msk.f32.mxu1 %vm17634_vm1, %v17633_v1 }
 0x1f4   : > { %v2804_v0 = vadd.f32 %v2803_v29, %v2730_v30  ;;  %v3864_v31 = vsub.f32 %v3795_v16, %v18080_v27 }
 0x1f5   : > { %16728 = vmatpush3.xpose.msra.mxu0 %v17994_v4  ;;  %16749 = vmatpush3.xpose.msra.mxu1 %v17984_v54  ;;  %v2875_v7 = vpop.f32.mrf.mxu1 }
 0x1f6   : > { %v18058_v33 = vadd.f32 %v2875_v7, %v2804_v0  ;;  %16739 = vmatprep.subr.mxu0 %v17633_v1  ;;  %16758 = vmatprep.subr.mxu1 %v17633_v1 }
 0x1f7   : > { %v16680_v35 = vpop.f32.mrf.mxu1 }
 0x1f8   : > { %16730 = vmatmul.mubr.f32.vlgmr.msra.gmra.mxu0 %v17789_v61  ;;  %16751 = vmatmul.mubr.f32.vlgmr.msra.gmra.mxu1 %v17778_v56  ;;  %v3865_v35 = vand.u32 4294901760, %v3864_v31 }
 0x1f9   : > { %16740 = vmatpush3.xpose.msra.mxu0 %v17991_v3  ;;  %16743 = vmatprep.mubr.msk.f32.mxu0 %vm17634_vm1, %v17633_v1 }
 0x1fa   : > { %16741 = vmatprep.subr.mxu0 %v17633_v1  ;;  %16760 = vmatprep.mubr.msk.f32.mxu1 %vm17634_vm1, %v17633_v1 }
 0x1fd   : > { %16742 = vmatpush3.xpose.msra.mxu0 %v18002_v24 }
 0x1fe   : > { %16753 = vmatprep.subr.mxu0 %v17633_v1 }
 0x200   : > { %16744 = vmatmul.mubr.f32.vlgmr.msra.gmra.mxu0 %v17778_v56 }
 0x201   : > { %16755 = vmatprep.mubr.msk.f32.mxu0 %vm17634_vm1, %v17633_v1 }
 0x298   : > { %v3031_v61 = vpop.f32.mrf.mxu1 }
 0x29a   : > { %v16690_v37 = vpop.f32.mrf.mxu1 }
 0x29c   : > { %v3179_v40 = vpop.f32.mrf.mxu1 }
 0x29e   : > { %v16700_v43 = vpop.f32.mrf.mxu1 }
 0x29f   : > { %v3866_v43 = vsub.f32 %v3864_v31, %v3865_v35 }
 0x2a0   : > { %v2955_v44 = vpop.f32.mrf.mxu0  ;;  %v3325_v45 = vpop.f32.mrf.mxu1 }
 0x2a1   : > { %v3032_v41 = vadd.f32 %v3031_v61, %v2955_v44 }
 0x2a2   : > { %v16685_v47 = vpop.f32.mrf.mxu0  ;;  %v16710_v49 = vpop.f32.mrf.mxu1 }
 0x2a3   : > { %v3867_v47 = vand.u32 4294901760, %v3866_v43  ;;  %v4275_v49 = vand.u32 4294901760, %v1982_v9 }
 0x2a4   : > { %v3105_v50 = vpop.f32.mrf.mxu0 }
 0x2a5   : > { %v3106_v57 = vadd.f32 %v3105_v50, %v3032_v41 }
 0x2a6   : > { %v16695_v55 = vpop.f32.mrf.mxu0 }
 0x2a7   : > { %v3180_v56 = vadd.f32 %v3179_v40, %v3106_v57  ;;  %v4352_v55 = vsub.f32 %v1982_v9, %v4275_v49 }
 0x2a8   : > { %v3489_v58 = vpop.f32.mrf.mxu1  ;;  %v3253_v62 = vpop.f32.mrf.mxu0 }
 0x2a9   : > { %v3254_v6 = vadd.f32 %v3253_v62, %v3180_v56  ;;  %v4353_v62 = vand.u32 4294901760, %v4352_v55 }
 0x2aa   : > { %v16724_v63 = vpop.f32.mrf.mxu1  ;;  %v16705_v2 = vpop.f32.mrf.mxu0 }
 0x2ab   : > { %v3326_v19 = vadd.f32 %v3325_v45, %v3254_v6  ;;  %v4354_v63 = vsub.f32 %v4352_v55, %v4353_v62 }
 0x2ad   : > { %v4355_v2 = vand.u32 4294901760, %v4354_v63 }
 0x2b0   : > { %v3408_v11 = vpop.f32.mrf.mxu0  ;;  %v3640_v12 = vpop.f32.mrf.mxu1 }
 0x2b1   : > { %v3409_v26 = vadd.f32 %v3408_v11, %v3326_v19 }
 0x2b2   : > { %v16717_v5 = vpop.f32.mrf.mxu0  ;;  %v16738_v14 = vpop.f32.mrf.mxu1 }
 0x2b3   : > { %v3490_v30 = vadd.f32 %v3489_v58, %v3409_v26 }
 0x2b8   : > { %v3565_v28 = vpop.f32.mrf.mxu0  ;;  %v3790_v29 = vpop.f32.mrf.mxu1 }
 0x2b9   : > { %v3566_v7 = vadd.f32 %v3565_v28, %v3490_v30 }
 0x2ba   : > { %v16731_v32 = vpop.f32.mrf.mxu0  ;;  %v16752_v0 = vpop.f32.mrf.mxu1 }
 0x2bb   : > { %v3641_v36 = vadd.f32 %v3640_v12, %v3566_v7 }
 0x2c0   : > { %v3717_v61 = vpop.f32.mrf.mxu0 }
 0x2c1   : > { %v3718_v37 = vadd.f32 %v3717_v61, %v3641_v36 }
 0x2c2   : > { %v16745_v40 = vpop.f32.mrf.mxu0 }
 0x2c3   : > { %v18083_v44 = vadd.f32 %v3790_v29, %v3718_v37 }
 0x2c5   : > { %v3828_v45 = vand.u32 4294901760, %v18083_v44 }
 0x2c7   : > { %v3905_v50 = vsub.f32 %v18083_v44, %v3828_v45  ;;  %16754 = vmatpush3.msra.mxu0 %v3828_v45 }
 0x2c8   : > { %16756 = vmatmul.mubr.f32.vlgmr.msra.gmra.mxu0 %v3867_v47  ;;  %16763 = vmatprep.subr.mxu0 %v17633_v1 }
 0x2c9   : > { %16764 = vmatpush3.msra.mxu0 %v3905_v50  ;;  %16765 = vmatprep.mubr.msk.f32.mxu0 %vm17634_vm1, %v17633_v1  ;;  %v3906_v41 = vand.u32 4294901760, %v3905_v50 }
 0x2ca   : > { %16773 = vmatprep.subr.mxu0 %v17633_v1 }
 0x2cb   : > { %v3907_v57 = vsub.f32 %v3905_v50, %v3906_v41 }
 0x2cc   : > { %16766 = vmatmul.mubr.f32.vlgmr.msra.gmra.mxu0 %v3864_v31 }
 0x2cd   : > { %16774 = vmatpush3.msra.mxu0 %v3906_v41  ;;  %v3908_v58 = vand.u32 4294901760, %v3907_v57  ;;  %16775 = vmatprep.mubr.msk.f32.mxu0 %vm17634_vm1, %v17633_v1 }
 0x2ce   : > { %16783 = vmatprep.subr.mxu0 %v17633_v1 }
 0x2cf   : > { %16759 = vmatpush3.msra.mxu1 %v3908_v58 }
 0x2d0   : > { %16761 = vmatmul.mubr.f32.vlgmr.msra.gmra.mxu1 %v18080_v27  ;;  %16768 = vmatprep.subr.mxu1 %v17633_v1 }
 0x2d1   : > { %16776 = vmatmul.mubr.f32.vlgmr.msra.gmra.mxu0 %v18080_v27  ;;  %16769 = vmatpush3.msra.mxu1 %v3828_v45 }
 0x2d2   : > { %16784 = vmatpush3.msra.mxu0 %v4275_v49  ;;  %16770 = vmatprep.mubr.msk.f32.mxu1 %vm17634_vm1, %v17633_v1 }
 0x2d3   : > { %16778 = vmatprep.subr.mxu1 %v17633_v1  ;;  %16785 = vmatprep.mubr.msk.f32.mxu0 %vm17634_vm1, %v17633_v1 }
 0x2d4   : > { %16793 = vmatprep.subr.mxu0 %v17633_v1  ;;  %16771 = vmatmul.mubr.f32.vlgmr.msra.gmra.mxu1 %v3865_v35 }
 0x2d5   : > { %16779 = vmatpush3.msra.mxu1 %v3828_v45  ;;  %16786 = vmatmul.mubr.f32.vlgmr.msra.gmra.mxu0 %v3867_v47 }
 0x2d6   : > { %16794 = vmatpush3.msra.mxu0 %v4352_v55  ;;  %16780 = vmatprep.mubr.msk.f32.mxu1 %vm17634_vm1, %v17633_v1 }
 0x2d7   : > { %16788 = vmatprep.subr.mxu1 %v17633_v1  ;;  %16795 = vmatprep.mubr.msk.f32.mxu0 %vm17634_vm1, %v17633_v1 }
 0x2d8   : > { %16803 = vmatprep.subr.mxu0 %v17633_v1  ;;  %16781 = vmatmul.mubr.f32.vlgmr.msra.gmra.mxu1 %v18080_v27 }
 0x2d9   : > { %16789 = vmatpush3.msra.mxu1 %v4355_v2  ;;  %16796 = vmatmul.mubr.f32.vlgmr.msra.gmra.mxu0 %v3864_v31 }
 0x2da   : > { %16804 = vmatpush3.msra.mxu0 %v4353_v62  ;;  %16790 = vmatprep.mubr.msk.f32.mxu1 %vm17634_vm1, %v17633_v1 }
 0x2db   : > { %16798 = vmatprep.subr.mxu1 %v17633_v1  ;;  %16805 = vmatprep.mubr.msk.f32.mxu0 %vm17634_vm1, %v17633_v1 }
 0x2dc   : > { %16791 = vmatmul.mubr.f32.vlgmr.msra.gmra.mxu1 %v18080_v27  ;;  %16813 = vmatprep.subr.mxu0 %v17633_v1 }
 0x2dd   : > { %16799 = vmatpush3.msra.mxu1 %v4275_v49  ;;  %16806 = vmatmul.mubr.f32.vlgmr.msra.gmra.mxu0 %v18080_v27 }
 0x2de   : > { %16800 = vmatprep.mubr.msk.f32.mxu1 %vm17634_vm1, %v17633_v1  ;;  %16808 = vmatprep.subr.mxu1 %v17633_v1 }
 0x2df   : > { %16815 = vmatprep.mubr.msk.f32.mxu0 %vm17634_vm1, %v17633_v1 }
 0x2e0   : > { %16801 = vmatmul.mubr.f32.vlgmr.msra.gmra.mxu1 %v3865_v35 }
 0x2e1   : > { %16809 = vmatpush3.msra.mxu1 %v4275_v49  ;;  %16810 = vmatprep.mubr.msk.f32.mxu1 %vm17634_vm1, %v17633_v1 }
 0x2e2   : > { %16818 = vmatprep.subr.mxu1 %v17633_v1 }
 0x2e4   : > { %16811 = vmatmul.mubr.f32.vlgmr.msra.gmra.mxu1 %v18080_v27 }
 0x2e5   : > { %16820 = vmatprep.mubr.msk.f32.mxu1 %vm17634_vm1, %v17633_v1 }
 0x388   : > { %v3869_v56 = vpop.f32.mrf.mxu0 }
 0x38a   : > { %v16757_v6 = vpop.f32.mrf.mxu0 }
 0x38c   : > { %v4019_v9 = vpop.f32.mrf.mxu0 }
 0x38e   : > { %v16767_v11 = vpop.f32.mrf.mxu0 }
 0x390   : > { %v3945_v12 = vpop.f32.mrf.mxu1 }
 0x391   : > { %v3946_v5 = vadd.f32 %v3945_v12, %v3869_v56  ;;  %v4167_v14 = vpop.f32.mrf.mxu0 }
 0x392   : > { %v16762_v16 = vpop.f32.mrf.mxu1 }
 0x393   : > { %v16777_v19 = vpop.f32.mrf.mxu0  ;;  %v4020_v26 = vadd.f32 %v4019_v9, %v3946_v5 }
 0x394   : > { %v4093_v28 = vpop.f32.mrf.mxu1 }
 0x395   : > { %v4094_v29 = vadd.f32 %v4093_v28, %v4020_v26  ;;  %v4316_v30 = vpop.f32.mrf.mxu0 }
 0x396   : > { %v16772_v31 = vpop.f32.mrf.mxu1 }
 0x397   : > { %v16787_v32 = vpop.f32.mrf.mxu0  ;;  %v4168_v0 = vadd.f32 %v4167_v14, %v4094_v29 }
 0x398   : > { %v4239_v27 = vpop.f32.mrf.mxu1 }
 0x399   : > { %v4240_v7 = vadd.f32 %v4239_v27, %v4168_v0  ;;  %v4466_v35 = vpop.f32.mrf.mxu0 }
 0x39a   : > { %v16782_v36 = vpop.f32.mrf.mxu1 }
 0x39b   : > { %v18130_v61 = vadd.f32 %v4240_v7, %v18083_v44  ;;  %v16797_v37 = vpop.f32.mrf.mxu0 }
 0x39c   : > { %v4392_v40 = vpop.f32.mrf.mxu1 }
 0x39d   : > { %v4724_v43 = vand.u32 4294901760, %v18130_v61  ;;  %v4393_v45 = vadd.f32 %v4392_v40, %v4316_v30  ;;  %v4614_v47 = vpop.f32.mrf.mxu0 }
 0x39e   : > { %v16792_v49 = vpop.f32.mrf.mxu1 }
 0x39f   : > { %v4801_v50 = vsub.f32 %v18130_v61, %v4724_v43  ;;  %v16807_v41 = vpop.f32.mrf.mxu0  ;;  %16814 = vmatpush3.msra.mxu0 %v4724_v43  ;;  %v4467_v55 = vadd.f32 %v4466_v35, %v4393_v45 }
 0x3a0   : > { %v4540_v57 = vpop.f32.mrf.mxu1  ;;  %16823 = vmatprep.subr.mxu0 %v17633_v1 }
 0x3a1   : > { %v4541_v58 = vadd.f32 %v4540_v57, %v4467_v55  ;;  %v4802_v62 = vand.u32 4294901760, %v4801_v50 }
 0x3a2   : > { %v16802_v63 = vpop.f32.mrf.mxu1 }
 0x3a3   : > { %v4615_v44 = vadd.f32 %v4614_v47, %v4541_v58  ;;  %v4803_v2 = vsub.f32 %v4801_v50, %v4802_v62 }
 0x3a4   : > { %v4686_v56 = vpop.f32.mrf.mxu1 }
 0x3a5   : > { %v4687_v6 = vadd.f32 %v4686_v56, %v4615_v44  ;;  %v4804_v9 = vand.u32 4294901760, %v4803_v2 }
 0x3a6   : > { %v16812_v11 = vpop.f32.mrf.mxu1 }
 0x3a7   : > { %v4691_v12 = vsel %vm596_vm0, %v4687_v6, 0  ;;  %v5171_v5 = vand.u32 4294901760, %v4687_v6  ;;  %16819 = vmatpush3.msra.mxu1 %v4804_v9 }
 0x3a8   : > { %v4759_v14 = vand.u32 4294901760, %v4691_v12  ;;  %16828 = vmatprep.subr.mxu1 %v17633_v1 }
 0x3a9   : > { %v5248_v16 = vsub.f32 %v4687_v6, %v5171_v5 }
 0x3aa   : > { %v4760_v19 = vsub.f32 %v4691_v12, %v4759_v14  ;;  %16821 = vmatmul.mubr.f32.vlgmr.msra.gmra.mxu1 %v4759_v14 }
 0x3ab   : > { %v5249_v26 = vand.u32 4294901760, %v5248_v16  ;;  %16829 = vmatpush3.msra.mxu1 %v4724_v43  ;;  %16830 = vmatprep.mubr.msk.f32.mxu1 %vm17634_vm1, %v17633_v1 }
 0x3ac   : > { %16838 = vmatprep.subr.mxu1 %v17633_v1  ;;  %v4761_v28 = vand.u32 4294901760, %v4760_v19 }
 0x3ad   : > { %v5250_v29 = vsub.f32 %v5248_v16, %v5249_v26 }
 0x3ae   : > { %16831 = vmatmul.mubr.f32.vlgmr.msra.gmra.mxu1 %v4761_v28  ;;  %v4762_v30 = vsub.f32 %v4760_v19, %v4761_v28 }
 0x3af   : > { %16839 = vmatpush3.msra.mxu1 %v4724_v43  ;;  %16840 = vmatprep.mubr.msk.f32.mxu1 %vm17634_vm1, %v17633_v1  ;;  %v5251_v31 = vand.u32 4294901760, %v5250_v29 }
 0x3b0   : > { %16848 = vmatprep.subr.mxu1 %v17633_v1  ;;  %v4763_v32 = vand.u32 4294901760, %v4762_v30 }
 0x3b2   : > { %16816 = vmatmul.mubr.f32.vlgmr.msra.gmra.mxu0 %v4763_v32  ;;  %16841 = vmatmul.mubr.f32.vlgmr.msra.gmra.mxu1 %v4759_v14 }
 0x3b3   : > { %16824 = vmatpush3.msra.mxu0 %v4801_v50  ;;  %16849 = vmatpush3.msra.mxu1 %v5251_v31 }
 0x3b4   : > { %16825 = vmatprep.mubr.msk.f32.mxu0 %vm17634_vm1, %v17633_v1  ;;  %16833 = vmatprep.subr.mxu0 %v17633_v1 }
 0x3b5   : > { %16850 = vmatprep.mubr.msk.f32.mxu1 %vm17634_vm1, %v17633_v1  ;;  %16858 = vmatprep.subr.mxu1 %v17633_v1 }
 0x3b6   : > { %16826 = vmatmul.mubr.f32.vlgmr.msra.gmra.mxu0 %v4760_v19  ;;  %16851 = vmatmul.mubr.f32.vlgmr.msra.gmra.mxu1 %v4759_v14 }
 0x3b7   : > { %16834 = vmatpush3.msra.mxu0 %v4802_v62  ;;  %16859 = vmatpush3.msra.mxu1 %v5171_v5 }
 0x3b8   : > { %16835 = vmatprep.mubr.msk.f32.mxu0 %vm17634_vm1, %v17633_v1  ;;  %16843 = vmatprep.subr.mxu0 %v17633_v1 }
 0x3b9   : > { %16860 = vmatprep.mubr.msk.f32.mxu1 %vm17634_vm1, %v17633_v1  ;;  %16868 = vmatprep.subr.mxu1 %v17633_v1 }
 0x3ba   : > { %16836 = vmatmul.mubr.f32.vlgmr.msra.gmra.mxu0 %v4759_v14  ;;  %16861 = vmatmul.mubr.f32.vlgmr.msra.gmra.mxu1 %v4761_v28 }
 0x3bb   : > { %16844 = vmatpush3.msra.mxu0 %v5171_v5  ;;  %16869 = vmatpush3.msra.mxu1 %v5171_v5 }
 0x3bc   : > { %16845 = vmatprep.mubr.msk.f32.mxu0 %vm17634_vm1, %v17633_v1  ;;  %16853 = vmatprep.subr.mxu0 %v17633_v1 }
 0x3bd   : > { %16870 = vmatprep.mubr.msk.f32.mxu1 %vm17634_vm1, %v17633_v1  ;;  %16878 = vmatprep.subr.mxu1 %v17633_v1 }
 0x3be   : > { %16846 = vmatmul.mubr.f32.vlgmr.msra.gmra.mxu0 %v4763_v32  ;;  %16871 = vmatmul.mubr.f32.vlgmr.msra.gmra.mxu1 %v4759_v14 }
 0x3bf   : > { %16854 = vmatpush3.msra.mxu0 %v5248_v16  ;;  %16855 = vmatprep.mubr.msk.f32.mxu0 %vm17634_vm1, %v17633_v1 }
 0x3c0   : > { %16863 = vmatprep.subr.mxu0 %v17633_v1  ;;  %16880 = vmatprep.mubr.msk.f32.mxu1 %vm17634_vm1, %v17633_v1 }
 0x3c2   : > { %16856 = vmatmul.mubr.f32.vlgmr.msra.gmra.mxu0 %v4760_v19 }
 0x3c3   : > { %16864 = vmatpush3.msra.mxu0 %v5249_v26  ;;  %16865 = vmatprep.mubr.msk.f32.mxu0 %vm17634_vm1, %v17633_v1 }
 0x3c4   : > { %16873 = vmatprep.subr.mxu0 %v17633_v1 }
 0x3c6   : > { %16866 = vmatmul.mubr.f32.vlgmr.msra.gmra.mxu0 %v4759_v14 }
 0x3c7   : > { %16875 = vmatprep.mubr.msk.f32.mxu0 %vm17634_vm1, %v17633_v1 }
 0x46a   : > { %v4841_v0 = vpop.f32.mrf.mxu1 }
 0x46c   : > { %v16822_v27 = vpop.f32.mrf.mxu1 }
 0x46e   : > { %v4989_v7 = vpop.f32.mrf.mxu1 }
 0x470   : > { %v16832_v35 = vpop.f32.mrf.mxu1 }
 0x472   : > { %v4765_v36 = vpop.f32.mrf.mxu0  ;;  %v5135_v37 = vpop.f32.mrf.mxu1 }
 0x473   : > { %v4842_v45 = vadd.f32 %v4841_v0, %v4765_v36  ;;  %v2432_v36 = vsel %vm592_vm5, %v18034_v10, 0.0 }
 0x474   : > { %v16817_v40 = vpop.f32.mrf.mxu0  ;;  %v16842_v43 = vpop.f32.mrf.mxu1 }
 0x475   : > { %v6037_v43 = vsel %vm596_vm0, %v2432_v36, 0  ;;  %v18293_v36 = vand.u32 4294901760, %v17784_v59 }
 0x476   : > { %v4915_v47 = vpop.f32.mrf.mxu0  ;;  %v5288_v49 = vpop.f32.mrf.mxu1 }
 0x477   : > { %v4916_v50 = vadd.f32 %v4915_v47, %v4842_v45  ;;  %v6105_v47 = vand.u32 4294901760, %v6037_v43 }
 0x478   : > { %v16827_v41 = vpop.f32.mrf.mxu0  ;;  %v16852_v55 = vpop.f32.mrf.mxu1 }
 0x479   : > { %v4990_v57 = vadd.f32 %v4989_v7, %v4916_v50  ;;  %v6106_v50 = vsub.f32 %v6037_v43, %v6105_v47 }
 0x47a   : > { %v5063_v58 = vpop.f32.mrf.mxu0  ;;  %v5436_v62 = vpop.f32.mrf.mxu1 }
 0x47b   : > { %v5064_v63 = vadd.f32 %v5063_v58, %v4990_v57  ;;  %v6107_v55 = vand.u32 4294901760, %v6106_v50 }
 0x47c   : > { %v16837_v44 = vpop.f32.mrf.mxu0  ;;  %v16862_v2 = vpop.f32.mrf.mxu1 }
 0x47d   : > { %v5136_v56 = vadd.f32 %v5135_v37, %v5064_v63 }
 0x47e   : > { %v5212_v6 = vpop.f32.mrf.mxu0  ;;  %v5582_v9 = vpop.f32.mrf.mxu1 }
 0x47f   : > { %v18172_v11 = vadd.f32 %v5136_v56, %v18130_v61  ;;  %v5289_v14 = vadd.f32 %v5288_v49, %v5212_v6 }
 0x480   : > { %v16847_v12 = vpop.f32.mrf.mxu0  ;;  %v16872_v5 = vpop.f32.mrf.mxu1 }
 0x481   : > { %v5620_v16 = vand.u32 4294901760, %v18172_v11 }
 0x482   : > { %v5362_v19 = vpop.f32.mrf.mxu0 }
 0x483   : > { %v5363_v26 = vadd.f32 %v5362_v19, %v5289_v14  ;;  %16874 = vmatpush3.msra.mxu0 %v5620_v16  ;;  %v5697_v28 = vsub.f32 %v18172_v11, %v5620_v16 }
 0x484   : > { %v16857_v29 = vpop.f32.mrf.mxu0  ;;  %16883 = vmatprep.subr.mxu0 %v17633_v1 }
 0x485   : > { %v5437_v30 = vadd.f32 %v5436_v62, %v5363_v26  ;;  %v5698_v31 = vand.u32 4294901760, %v5697_v28 }
 0x486   : > { %v5510_v32 = vpop.f32.mrf.mxu0 }
 0x487   : > { %v5511_v61 = vadd.f32 %v5510_v32, %v5437_v30  ;;  %v5699_v0 = vsub.f32 %v5697_v28, %v5698_v31 }
 0x488   : > { %v16867_v27 = vpop.f32.mrf.mxu0 }
 0x489   : > { %v5583_v7 = vadd.f32 %v5582_v9, %v5511_v61  ;;  %v5700_v35 = vand.u32 4294901760, %v5699_v0 }
 0x48b   : > { %v5587_v37 = vsel %vm596_vm0, %v5583_v7, 0  ;;  %16879 = vmatpush3.msra.mxu1 %v5700_v35 }
 0x48c   : > { %v5655_v40 = vand.u32 4294901760, %v5587_v37  ;;  %16888 = vmatprep.subr.mxu1 %v17633_v1 }
 0x48e   : > { %v5656_v45 = vsub.f32 %v5587_v37, %v5655_v40  ;;  %16881 = vmatmul.mubr.f32.vlgmr.msra.gmra.mxu1 %v5655_v40 }
 0x48f   : > { %16889 = vmatpush3.msra.mxu1 %v5620_v16  ;;  %16890 = vmatprep.mubr.msk.f32.mxu1 %vm17634_vm1, %v17633_v1 }
 0x490   : > { %16898 = vmatprep.subr.mxu1 %v17633_v1  ;;  %v5657_v49 = vand.u32 4294901760, %v5656_v45 }
 0x492   : > { %16891 = vmatmul.mubr.f32.vlgmr.msra.gmra.mxu1 %v5657_v49  ;;  %v5658_v10 = vsub.f32 %v5656_v45, %v5657_v49 }
 0x493   : > { %16899 = vmatpush3.msra.mxu1 %v5620_v16  ;;  %16900 = vmatprep.mubr.msk.f32.mxu1 %vm17634_vm1, %v17633_v1 }
 0x494   : > { %16908 = vmatprep.subr.mxu1 %v17633_v1  ;;  %v5659_v41 = vand.u32 4294901760, %v5658_v10 }
 0x496   : > { %16876 = vmatmul.mubr.f32.vlgmr.msra.gmra.mxu0 %v5659_v41  ;;  %16901 = vmatmul.mubr.f32.vlgmr.msra.gmra.mxu1 %v5655_v40 }
 0x497   : > { %16884 = vmatpush3.msra.mxu0 %v5697_v28  ;;  %16909 = vmatpush3.msra.mxu1 %v17968_v25  ;;  %v6108_v25 = vsub.f32 %v6106_v50, %v6107_v55 }
 0x498   : > { %16885 = vmatprep.mubr.msk.f32.mxu0 %vm17634_vm1, %v17633_v1  ;;  %16893 = vmatprep.subr.mxu0 %v17633_v1 }
 0x499   : > { %16910 = vmatprep.mubr.msk.f32.mxu1 %vm17634_vm1, %v17633_v1  ;;  %16918 = vmatprep.subr.mxu1 %v17633_v1  ;;  %v6109_v57 = vand.u32 4294901760, %v6108_v25 }
 0x49a   : > { %16886 = vmatmul.mubr.f32.vlgmr.msra.gmra.mxu0 %v5656_v45  ;;  %16911 = vmatmul.mubr.f32.vlgmr.msra.gmra.mxu1 %v6105_v47 }
 0x49b   : > { %16894 = vmatpush3.msra.mxu0 %v5698_v31  ;;  %16919 = vmatpush3.msra.mxu1 %v17944_v21 }
 0x49c   : > { %16895 = vmatprep.mubr.msk.f32.mxu0 %vm17634_vm1, %v17633_v1  ;;  %16903 = vmatprep.subr.mxu0 %v17633_v1 }
 0x49d   : > { %16920 = vmatprep.mubr.msk.f32.mxu1 %vm17634_vm1, %v17633_v1  ;;  %16928 = vmatprep.subr.mxu1 %v17633_v1 }
 0x49e   : > { %16896 = vmatmul.mubr.f32.vlgmr.msra.gmra.mxu0 %v5655_v40  ;;  %16921 = vmatmul.mubr.f32.vlgmr.msra.gmra.mxu1 %v6107_v55 }
 0x49f   : > { %16904 = vmatpush3.msra.mxu0 %v17944_v21  ;;  %16929 = vmatpush3.msra.mxu1 %v17944_v21 }
 0x4a0   : > { %16905 = vmatprep.mubr.msk.f32.mxu0 %vm17634_vm1, %v17633_v1  ;;  %16913 = vmatprep.subr.mxu0 %v17633_v1 }
 0x4a1   : > { %16930 = vmatprep.mubr.msk.f32.mxu1 %vm17634_vm1, %v17633_v1  ;;  %16940 = vmatprep.subr.mxu1 %v17633_v1 }
 0x4a2   : > { %16906 = vmatmul.mubr.f32.vlgmr.msra.gmra.mxu0 %v6109_v57  ;;  %16931 = vmatmul.mubr.f32.vlgmr.msra.gmra.mxu1 %v6105_v47 }
 0x4a3   : > { %16914 = vmatpush3.msra.mxu0 %v17961_v22  ;;  %16941 = vmatpush3.xpose.msra.mxu1 %v18008_v34 }
 0x4a4   : > { %16915 = vmatprep.mubr.msk.f32.mxu0 %vm17634_vm1, %v17633_v1  ;;  %16923 = vmatprep.subr.mxu0 %v17633_v1 }
 0x4a5   : > { %16942 = vmatprep.subr.mxu1 %v17633_v1  ;;  %16944 = vmatprep.mubr.msk.f32.mxu1 %vm17634_vm1, %v17633_v1 }
 0x4a6   : > { %16916 = vmatmul.mubr.f32.vlgmr.msra.gmra.mxu0 %v6106_v50  ;;  %v7553_v50 = vsub.f32 %v17784_v59, %v18293_v36 }
 0x4a7   : > { %16924 = vmatpush3.msra.mxu0 %v17964_v23  ;;  %16943 = vmatpush3.xpose.msra.mxu1 %v18017_v46 }
 0x4a8   : > { %16925 = vmatprep.mubr.msk.f32.mxu0 %vm17634_vm1, %v17633_v1  ;;  %16933 = vmatprep.subr.mxu0 %v17633_v1 }
 0x4a9   : > { %16954 = vmatprep.subr.mxu1 %v17633_v1 }
 0x4aa   : > { %16945 = vmatmul.mubr.f32.vlgmr.msra.gmra.mxu1 %v17840_v13  ;;  %16926 = vmatmul.mubr.f32.vlgmr.msra.gmra.mxu0 %v6105_v47 }
 0x4ab   : > { %16934 = vmatpush3.xpose.msra.mxu0 %v17976_v39  ;;  %16955 = vmatpush3.xpose.msra.mxu1 %v17976_v39 }
 0x4ac   : > { %16935 = vmatprep.subr.mxu0 %v17633_v1  ;;  %16956 = vmatprep.subr.mxu1 %v17633_v1 }
 0x4ad   : > { %16937 = vmatprep.mubr.msk.f32.mxu0 %vm17634_vm1, %v17633_v1  ;;  %16958 = vmatprep.mubr.msk.f32.mxu1 %vm17634_vm1, %v17633_v1 }
 0x4af   : > { %16936 = vmatpush3.xpose.msra.mxu0 %v17984_v54  ;;  %16957 = vmatpush3.xpose.msra.mxu1 %v17984_v54 }
 0x4b0   : > { %16947 = vmatprep.subr.mxu0 %v17633_v1  ;;  %16968 = vmatprep.subr.mxu1 %v17633_v1 }
 0x4b2   : > { %16938 = vmatmul.mubr.f32.vlgmr.msra.gmra.mxu0 %v17891_v20  ;;  %16959 = vmatmul.mubr.f32.vlgmr.msra.gmra.mxu1 %v17867_v17  ;;  %v2879_v17 = vsel %vm592_vm5, %v18058_v33, 0.0 }
 0x4b3   : > { %16948 = vmatpush3.xpose.msra.mxu0 %v17982_v51  ;;  %16969 = vmatpush3.xpose.msra.mxu1 %v17976_v39  ;;  %v6945_v22 = vsel %vm596_vm0, %v2879_v17, 0 }
 0x4b4   : > { %16949 = vmatprep.subr.mxu0 %v17633_v1  ;;  %16970 = vmatprep.subr.mxu1 %v17633_v1  ;;  %v18273_v39 = vand.u32 4294901760, %v6945_v22 }
 0x4b5   : > { %16951 = vmatprep.mubr.msk.f32.mxu0 %vm17634_vm1, %v17633_v1  ;;  %16972 = vmatprep.mubr.msk.f32.mxu1 %vm17634_vm1, %v17633_v1 }
 0x4b6   : > { %v18276_v34 = vsub.f32 %v6945_v22, %v18273_v39 }
 0x4b7   : > { %16950 = vmatpush3.xpose.msra.mxu0 %v17994_v4  ;;  %16971 = vmatpush3.xpose.msra.mxu1 %v17984_v54 }
 0x4b8   : > { %16961 = vmatprep.subr.mxu0 %v17633_v1  ;;  %16980 = vmatprep.subr.mxu1 %v17633_v1  ;;  %v7015_v9 = vand.u32 4294901760, %v18276_v34 }
 0x4ba   : > { %16952 = vmatmul.mubr.f32.vlgmr.msra.gmra.mxu0 %v17855_v15  ;;  %16973 = vmatmul.mubr.f32.vlgmr.msra.gmra.mxu1 %v17840_v13  ;;  %v7016_v32 = vsub.f32 %v18276_v34, %v7015_v9 }
 0x4bb   : > { %16962 = vmatpush3.xpose.msra.mxu0 %v17991_v3  ;;  %16965 = vmatprep.mubr.msk.f32.mxu0 %vm17634_vm1, %v17633_v1  ;;  %v7413_v3 = vpop.trf.xlu0 }
 0x4bc   : > { %16963 = vmatprep.subr.mxu0 %v17633_v1  ;;  %16982 = vmatprep.mubr.msk.f32.mxu1 %vm17634_vm1, %v17633_v1  ;;  %v7430_v44 = vsel %vm596_vm0, %v7413_v3, 0  ;;  %v7017_v45 = vand.u32 4294901760, %v7016_v32 }
 0x4bd   : > { %v18281_v16 = vand.u32 4294901760, %v7430_v44 }
 0x4bf   : > { %16964 = vmatpush3.xpose.msra.mxu0 %v18002_v24  ;;  %v7414_v2 = vpop.trf.xlu0  ;;  %v18290_v27 = vsub.f32 %v7430_v44, %v18281_v16 }
 0x4c0   : > { %16975 = vmatprep.subr.mxu0 %v17633_v1  ;;  %v7433_v6 = vsel %vm596_vm0, %v7414_v2, 0 }
 0x4c1   : > { %v18283_v28 = vand.u32 4294901760, %v7433_v6 }
 0x4c2   : > { %16966 = vmatmul.mubr.f32.vlgmr.msra.gmra.mxu0 %v17840_v13 }
 0x4c3   : > { %16977 = vmatprep.mubr.msk.f32.mxu0 %vm17634_vm1, %v17633_v1  ;;  %v18296_v37 = vsub.f32 %v7433_v6, %v18283_v28 }
 0x4c5   : > { %v7513_v41 = vand.u32 4294901760, %v18296_v37 }
 0x54e   : > { %v5737_v15 = vpop.f32.mrf.mxu1 }
 0x550   : > { %v16882_v20 = vpop.f32.mrf.mxu1 }
 0x552   : > { %v5885_v21 = vpop.f32.mrf.mxu1 }
 0x554   : > { %v16892_v23 = vpop.f32.mrf.mxu1 }
 0x556   : > { %v5661_v51 = vpop.f32.mrf.mxu0  ;;  %v6031_v54 = vpop.f32.mrf.mxu1 }
 0x557   : > { %v5738_v24 = vadd.f32 %v5737_v15, %v5661_v51  ;;  %v7554_v51 = vand.u32 4294901760, %v7553_v50 }
 0x558   : > { %v16877_v13 = vpop.f32.mrf.mxu0  ;;  %v16902_v4 = vpop.f32.mrf.mxu1 }
 0x55a   : > { %v5811_v46 = vpop.f32.mrf.mxu0  ;;  %v6187_v58 = vpop.f32.mrf.mxu1 }
 0x55b   : > { %v5812_v62 = vadd.f32 %v5811_v46, %v5738_v24  ;;  %v7555_v24 = vsub.f32 %v7553_v50, %v7554_v51  ;;  %v18319_v46 = vand.u32 4294901760, %v17786_v60 }
 0x55c   : > { %v16887_v33 = vpop.f32.mrf.mxu0  ;;  %v16912_v63 = vpop.f32.mrf.mxu1 }
 0x55d   : > { %v5886_v56 = vadd.f32 %v5885_v21, %v5812_v62  ;;  %v18330_v6 = vsub.f32 %v17786_v60, %v18319_v46 }
 0x55e   : > { %v5959_v12 = vpop.f32.mrf.mxu0  ;;  %v6335_v5 = vpop.f32.mrf.mxu1 }
 0x55f   : > { %v5960_v14 = vadd.f32 %v5959_v12, %v5886_v56  ;;  %v7556_v56 = vand.u32 4294901760, %v7555_v24 }
 0x560   : > { %v16897_v19 = vpop.f32.mrf.mxu0  ;;  %v16922_v26 = vpop.f32.mrf.mxu1 }
 0x561   : > { %v6032_v29 = vadd.f32 %v6031_v54, %v5960_v14  ;;  %v7514_v54 = vsub.f32 %v18296_v37, %v7513_v41 }
 0x562   : > { %v6111_v30 = vpop.f32.mrf.mxu0  ;;  %v6481_v31 = vpop.f32.mrf.mxu1 }
 0x563   : > { %v6188_v61 = vadd.f32 %v6187_v58, %v6111_v30  ;;  %v6035_v0 = vadd.f32 %v6032_v29, %v18172_v11  ;;  %v7503_v11 = vand.u32 4294901760, %v18290_v27  ;;  %v7515_v58 = vand.u32 4294901760, %v7514_v54 }
 0x564   : > { %v16907_v7 = vpop.f32.mrf.mxu0  ;;  %v16932_v35 = vpop.f32.mrf.mxu1 }
 0x565   : > { %7926 = vxpose.xlu1.b32.start.end [1/1] (short) (narrow) %v6035_v0, 16  ;;  %v6978_v40 = vand.u32 4294901760, %v6035_v0  ;;  %v7504_v23 = vsub.f32 %v18290_v27, %v7503_v11 }
 0x566   : > { %v6261_v43 = vpop.f32.mrf.mxu0 }
 0x567   : > { %v6262_v47 = vadd.f32 %v6261_v43, %v6188_v61  ;;  %16976 = vmatpush3.msra.mxu0 %v6978_v40  ;;  %v7055_v49 = vsub.f32 %v6035_v0, %v6978_v40  ;;  %v7505_v4 = vand.u32 4294901760, %v7504_v23 }
 0x568   : > { %v16917_v10 = vpop.f32.mrf.mxu0  ;;  %16978 = vmatmul.mubr.f32.vlgmr.msra.gmra.mxu0 %v7017_v45  ;;  %16985 = vmatprep.subr.mxu0 %v17633_v1 }
 0x569   : > { %16986 = vmatpush3.msra.mxu0 %v7055_v49  ;;  %v6336_v55 = vadd.f32 %v6335_v5, %v6262_v47  ;;  %16987 = vmatprep.mubr.msk.f32.mxu0 %vm17634_vm1, %v17633_v1  ;;  %v7056_v25 = vand.u32 4294901760, %v7055_v49 }
 0x56a   : > { %v6639_v57 = vpop.f32.mrf.mxu1  ;;  %v6409_v15 = vpop.f32.mrf.mxu0  ;;  %16995 = vmatprep.subr.mxu0 %v17633_v1 }
 0x56b   : > { %v6410_v17 = vadd.f32 %v6409_v15, %v6336_v55  ;;  %v7057_v20 = vsub.f32 %v7055_v49, %v7056_v25 }
 0x56c   : > { %v16946_v21 = vpop.f32.mrf.mxu1  ;;  %v16927_v22 = vpop.f32.mrf.mxu0  ;;  %16988 = vmatmul.mubr.f32.vlgmr.msra.gmra.mxu0 %v18276_v34  ;;  %v18337_v34 = vand.u32 4294901760, %v18330_v6 }
 0x56d   : > { %16996 = vmatpush3.msra.mxu0 %v7056_v25  ;;  %v7058_v3 = vand.u32 4294901760, %v7057_v20  ;;  %16997 = vmatprep.mubr.msk.f32.mxu0 %vm17634_vm1, %v17633_v1  ;;  %v6482_v13 = vadd.f32 %v6481_v31, %v6410_v17 }
 0x56e   : > { %17005 = vmatprep.subr.mxu0 %v18293_v36 }
 0x56f   : > { %16981 = vmatpush3.msra.mxu1 %v7058_v3 }
 0x570   : > { %16983 = vmatmul.mubr.f32.vlgmr.msra.gmra.mxu1 %v18273_v39  ;;  %16990 = vmatprep.subr.mxu1 %v17633_v1 }
 0x571   : > { %16998 = vmatmul.mubr.f32.vlgmr.msra.gmra.mxu0 %v18273_v39  ;;  %16991 = vmatpush3.msra.mxu1 %v6978_v40 }
 0x572   : > { %17006 = vmatpush3.msra.mxu0 %v18293_v36  ;;  %v6558_v62 = vpop.f32.mrf.mxu0  ;;  %v6790_v33 = vpop.f32.mrf.mxu1  ;;  %16992 = vmatprep.mubr.msk.f32.mxu1 %vm17634_vm1, %v17633_v1 }
 0x573   : > { %v6559_v63 = vadd.f32 %v6558_v62, %v6482_v13  ;;  %17015 = vmatprep.subr.mxu0 %v7553_v50  ;;  %17000 = vmatprep.subr.mxu1 %v17633_v1 }
 0x574   : > { %v16939_v44 = vpop.f32.mrf.mxu0  ;;  %v16960_v2 = vpop.f32.mrf.mxu1  ;;  %17007 = vmatprep.mubr.f32.mxu0 %v7505_v4  ;;  %16993 = vmatmul.mubr.f32.vlgmr.msra.gmra.mxu1 %v7015_v9 }
 0x575   : > { %17001 = vmatpush3.msra.mxu1 %v6978_v40  ;;  %17008 = vmatmul.mubr.f32.vlgmr.msra.gmra.mxu0 %v7515_v58  ;;  %v6640_v12 = vadd.f32 %v6639_v57, %v6559_v63  ;;  %v8460_v40 = vpop.permute.xlu0 %8459 }
 0x576   : > { %17016 = vmatpush3.msra.mxu0 %v7553_v50  ;;  %17010 = vmatprep.subr.mxu1 %v7556_v56 }
 0x577   : > { %17025 = vmatprep.subr.mxu0 %v7554_v51  ;;  %17002 = vmatprep.mubr.msk.f32.mxu1 %vm17634_vm1, %v17633_v1 }
 0x578   : > { %17017 = vmatprep.mubr.f32.mxu0 %v18290_v27  ;;  %17003 = vmatmul.mubr.f32.vlgmr.msra.gmra.mxu1 %v18273_v39  ;;  %v8084_v39 = vsub.f32 %v18330_v6, %v18337_v34 }
 0x579   : > { %17011 = vmatpush3.msra.mxu1 %v7556_v56  ;;  %17018 = vmatmul.mubr.f32.vlgmr.msra.gmra.mxu0 %v18296_v37 }
 0x57a   : > { %17026 = vmatpush3.msra.mxu0 %v7554_v51  ;;  %v6715_v9 = vpop.f32.mrf.mxu0  ;;  %v6940_v5 = vpop.f32.mrf.mxu1  ;;  %17020 = vmatprep.subr.mxu1 %v18293_v36  ;;  %v8085_v30 = vand.u32 4294901760, %v8084_v39 }
 0x57b   : > { %v6716_v14 = vadd.f32 %v6715_v9, %v6640_v12  ;;  %17035 = vmatprep.subr.mxu0 %v18319_v46  ;;  %17012 = vmatprep.mubr.f32.mxu1 %v18281_v16 }
 0x57c   : > { %v16953_v19 = vpop.f32.mrf.mxu0  ;;  %v16974_v26 = vpop.f32.mrf.mxu1  ;;  %17027 = vmatprep.mubr.f32.mxu0 %v18281_v16  ;;  %17013 = vmatmul.mubr.f32.vlgmr.msra.gmra.mxu1 %v18283_v28 }
 0x57d   : > { %17021 = vmatpush3.msra.mxu1 %v18293_v36  ;;  %17028 = vmatmul.mubr.f32.vlgmr.msra.gmra.mxu0 %v18283_v28  ;;  %v6791_v29 = vadd.f32 %v6790_v33, %v6716_v14 }
 0x57e   : > { %17036 = vmatpush3.msra.mxu0 %v18319_v46  ;;  %17030 = vmatprep.subr.mxu1 %v18293_v36 }
 0x57f   : > { %17045 = vmatprep.subr.mxu0 %v18330_v6  ;;  %17022 = vmatprep.mubr.f32.mxu1 %v7503_v11 }
 0x580   : > { %17023 = vmatmul.mubr.f32.vlgmr.msra.gmra.mxu1 %v7513_v41 }
 0x581   : > { %17031 = vmatpush3.msra.mxu1 %v18293_v36  ;;  %17032 = vmatprep.mubr.f32.mxu1 %v18281_v16 }
 0x582   : > { %v6867_v31 = vpop.f32.mrf.mxu0  ;;  %17040 = vmatprep.subr.mxu1 %v8085_v30 }
 0x583   : > { %v6868_v32 = vadd.f32 %v6867_v31, %v6791_v29 }
 0x584   : > { %v16967_v61 = vpop.f32.mrf.mxu0  ;;  %17033 = vmatmul.mubr.f32.vlgmr.msra.gmra.mxu1 %v18283_v28 }
 0x585   : > { %v18359_v0 = vadd.f32 %v6940_v5, %v6868_v32  ;;  %17041 = vmatpush3.msra.mxu1 %v8085_v30 }
 0x586   : > { %17050 = vmatprep.subr.mxu1 %v18319_v46 }
 0x587   : > { %8461 = vrot.lane.b32.xlu1 %v17771_v52, %s17636_s12 }
 0x58b   : > { %8914 = vrot.lane.b32.xlu1 %v17773_v53, %s17636_s12 }
 0x58f   : > { %9365 = vrot.lane.b32.xlu1 %v17816_v8, %s17636_s12 }
 0x593   : > { %10264 = vrot.lane.b32.xlu1 %v17749_v18, %s17636_s12  ;;  %v8463_v18 = vsel %vm1079_vm3, %v8460_v40, 0 }
 0x594   : > { %v18375_v49 = vand.u32 4294901760, %v8463_v18 }
 0x596   : > { %v18380_v10 = vsub.f32 %v8463_v18, %v18375_v49 }
 0x598   : > { %v18387_v50 = vand.u32 4294901760, %v18380_v10 }
 0x59a   : > { %v8536_v25 = vsub.f32 %v18380_v10, %v18387_v50 }
 0x59c   : > { %v18403_v21 = vand.u32 4294901760, %v8536_v25 }
 0x5e1   : > { %v7942_v16 = vpop.trf.xlu1 }
 0x5e2   : > { %v7959_v28 = vsel %vm596_vm0, %v7942_v16, 0 }
 0x5e3   : > { %v8030_v27 = vand.u32 4294901760, %v7959_v28 }
 0x5e5   : > { %v8031_v7 = vsub.f32 %v7959_v28, %v8030_v27  ;;  %v7943_v35 = vpop.trf.xlu1  ;;  %17042 = vmatprep.mubr.f32.mxu1 %v8030_v27 }
 0x5e6   : > { %v7962_v36 = vsel %vm596_vm0, %v7943_v35, 0 }
 0x5e7   : > { %v8040_v37 = vand.u32 4294901760, %v7962_v36  ;;  %v8032_v52 = vand.u32 4294901760, %v8031_v7 }
 0x5e9   : > { %v8041_v43 = vsub.f32 %v7962_v36, %v8040_v37  ;;  %17043 = vmatmul.mubr.f32.vlgmr.msra.gmra.mxu1 %v8040_v37  ;;  %v8033_v53 = vsub.f32 %v8031_v7, %v8032_v52 }
 0x5ea   : > { %17051 = vmatpush3.msra.mxu1 %v18319_v46  ;;  %17052 = vmatprep.mubr.f32.mxu1 %v8032_v52 }
 0x5eb   : > { %v8042_v8 = vand.u32 4294901760, %v8041_v43  ;;  %17060 = vmatprep.subr.mxu1 %v18319_v46  ;;  %v8034_v45 = vand.u32 4294901760, %v8033_v53 }
 0x5ed   : > { %v8043_v47 = vsub.f32 %v8041_v43, %v8042_v8  ;;  %17037 = vmatprep.mubr.f32.mxu0 %v8034_v45  ;;  %17053 = vmatmul.mubr.f32.vlgmr.msra.gmra.mxu1 %v8042_v8 }
 0x5ee   : > { %17061 = vmatpush3.msra.mxu1 %v18319_v46  ;;  %17062 = vmatprep.mubr.f32.mxu1 %v8030_v27 }
 0x5ef   : > { %v8044_v11 = vand.u32 4294901760, %v8043_v47  ;;  %17070 = vmatprep.subr.mxu1 %v17633_v1 }
 0x5f1   : > { %17038 = vmatmul.mubr.f32.vlgmr.msra.gmra.mxu0 %v8044_v11  ;;  %17063 = vmatmul.mubr.f32.vlgmr.msra.gmra.mxu1 %v8040_v37 }
 0x5f2   : > { %17046 = vmatpush3.msra.mxu0 %v18330_v6  ;;  %17047 = vmatprep.mubr.f32.mxu0 %v8031_v7 }
 0x5f3   : > { %17055 = vmatprep.subr.mxu0 %v18337_v34  ;;  %17072 = vmatprep.mubr.msk.f32.mxu1 %vm17634_vm1, %v17633_v1 }
 0x5f5   : > { %17048 = vmatmul.mubr.f32.vlgmr.msra.gmra.mxu0 %v8041_v43 }
 0x5f6   : > { %17056 = vmatpush3.msra.mxu0 %v18337_v34  ;;  %17057 = vmatprep.mubr.f32.mxu0 %v8030_v27 }
 0x5f7   : > { %17065 = vmatprep.subr.mxu0 %v17633_v1 }
 0x5f9   : > { %v8462_v41 = vpop.permute.xlu1 %8461  ;;  %17058 = vmatmul.mubr.f32.vlgmr.msra.gmra.mxu0 %v8040_v37 }
 0x5fa   : > { %v8465_v55 = vsel %vm1079_vm3, %v8462_v41, 0  ;;  %17067 = vmatprep.mubr.msk.f32.mxu0 %vm17634_vm1, %v17633_v1 }
 0x5fb   : > { %v18396_v57 = vand.u32 4294901760, %v8465_v55 }
 0x5fd   : > { %v18399_v15 = vsub.f32 %v8465_v55, %v18396_v57  ;;  %v8915_v17 = vpop.permute.xlu1 %8914  ;;  %17066 = vmatpush3.xpose.msra.mxu0 %v18396_v57 }
 0x5fe   : > { %v8916_v20 = vsel %vm1079_vm3, %v8915_v17, 0  ;;  %17075 = vmatprep.subr.mxu0 %v17633_v1 }
 0x5ff   : > { %v18407_v22 = vand.u32 4294901760, %v18399_v15  ;;  %v18409_v23 = vand.u32 4294901760, %v8916_v20 }
 0x600   : > { %17068 = vmatmul.mubr.f32.vlgmr.msra.gmra.mxu0 %v18403_v21 }
 0x601   : > { %v9366_v51 = vpop.permute.xlu1 %9365  ;;  %17076 = vmatpush3.xpose.msra.mxu0 %v18399_v15  ;;  %17077 = vmatprep.mubr.msk.f32.mxu0 %vm17634_vm1, %v17633_v1  ;;  %v8577_v54 = vsub.f32 %v18399_v15, %v18407_v22  ;;  %v18419_v3 = vsub.f32 %v8916_v20, %v18409_v23 }
 0x602   : > { %17085 = vmatprep.subr.mxu0 %v17633_v1  ;;  %v9367_v13 = vsel %vm1079_vm3, %v9366_v51, 0 }
 0x603   : > { %v8578_v4 = vand.u32 4294901760, %v8577_v54  ;;  %v18424_v24 = vand.u32 4294901760, %v9367_v13  ;;  %v18430_v46 = vand.u32 4294901760, %v18419_v3 }
 0x604   : > { %17078 = vmatmul.mubr.f32.vlgmr.msra.gmra.mxu0 %v18380_v10 }
 0x605   : > { %17071 = vmatpush3.xpose.msra.mxu1 %v8578_v4  ;;  %17086 = vmatpush3.xpose.msra.mxu0 %v18407_v22  ;;  %v18438_v58 = vsub.f32 %v9367_v13, %v18424_v24  ;;  %v9028_v62 = vsub.f32 %v18419_v3, %v18430_v46  ;;  %v18503_v56 = vpop.permute.xlu1 %10264 }
 0x606   : > { %17087 = vmatprep.mubr.msk.f32.mxu0 %vm17634_vm1, %v17633_v1  ;;  %17080 = vmatprep.subr.mxu1 %v17633_v1  ;;  %v18514_v6 = vand.u32 4294901760, %v18503_v56 }
 0x607   : > { %17095 = vmatprep.subr.mxu0 %v17633_v1  ;;  %v18453_v33 = vand.u32 4294901760, %v18438_v58  ;;  %v9029_v63 = vand.u32 4294901760, %v9028_v62 }
 0x608   : > { %17073 = vmatmul.mubr.f32.vlgmr.msra.gmra.mxu1 %v18375_v49  ;;  %17088 = vmatmul.mubr.f32.vlgmr.msra.gmra.mxu0 %v18375_v49  ;;  %v18528_v12 = vsub.f32 %v18503_v56, %v18514_v6 }
 0x609   : > { %17081 = vmatpush3.xpose.msra.mxu1 %v18396_v57  ;;  %17096 = vmatpush3.xpose.msra.mxu0 %v18409_v23  ;;  %v9438_v44 = vsub.f32 %v18438_v58, %v18453_v33 }
 0x60a   : > { %17082 = vmatprep.mubr.msk.f32.mxu1 %vm17634_vm1, %v17633_v1  ;;  %17097 = vmatprep.mubr.msk.f32.mxu0 %vm17634_vm1, %v17633_v1  ;;  %v18540_v5 = vand.u32 4294901760, %v18528_v12 }
 0x60b   : > { %17090 = vmatprep.subr.mxu1 %v17633_v1  ;;  %17105 = vmatprep.subr.mxu0 %v17633_v1  ;;  %v18480_v2 = vand.u32 4294901760, %v9438_v44 }
 0x60c   : > { %17083 = vmatmul.mubr.f32.vlgmr.msra.gmra.mxu1 %v18387_v50  ;;  %17098 = vmatmul.mubr.f32.vlgmr.msra.gmra.mxu0 %v18403_v21  ;;  %v10380_v26 = vsub.f32 %v18528_v12, %v18540_v5 }
 0x60d   : > { %17091 = vmatpush3.xpose.msra.mxu1 %v18396_v57  ;;  %17106 = vmatpush3.xpose.msra.mxu0 %v18419_v3 }
 0x60e   : > { %17092 = vmatprep.mubr.msk.f32.mxu1 %vm17634_vm1, %v17633_v1  ;;  %17107 = vmatprep.mubr.msk.f32.mxu0 %vm17634_vm1, %v17633_v1  ;;  %v18561_v16 = vand.u32 4294901760, %v10380_v26 }
 0x60f   : > { %17100 = vmatprep.subr.mxu1 %v17633_v1  ;;  %17115 = vmatprep.subr.mxu0 %v17633_v1 }
 0x610   : > { %17093 = vmatmul.mubr.f32.vlgmr.msra.gmra.mxu1 %v18375_v49  ;;  %17108 = vmatmul.mubr.f32.vlgmr.msra.gmra.mxu0 %v18380_v10 }
 0x611   : > { %17101 = vmatpush3.xpose.msra.mxu1 %v9029_v63  ;;  %17116 = vmatpush3.xpose.msra.mxu0 %v18430_v46 }
 0x612   : > { %17102 = vmatprep.mubr.msk.f32.mxu1 %vm17634_vm1, %v17633_v1  ;;  %17117 = vmatprep.mubr.msk.f32.mxu0 %vm17634_vm1, %v17633_v1 }
 0x613   : > { %17110 = vmatprep.subr.mxu1 %v17633_v1  ;;  %17125 = vmatprep.subr.mxu0 %v17633_v1 }
 0x614   : > { %17103 = vmatmul.mubr.f32.vlgmr.msra.gmra.mxu1 %v18375_v49  ;;  %17118 = vmatmul.mubr.f32.vlgmr.msra.gmra.mxu0 %v18375_v49 }
 0x615   : > { %17111 = vmatpush3.xpose.msra.mxu1 %v18409_v23  ;;  %17126 = vmatpush3.xpose.msra.mxu0 %v18396_v57 }
 0x616   : > { %17112 = vmatprep.mubr.msk.f32.mxu1 %vm17634_vm1, %v17633_v1  ;;  %17127 = vmatprep.mubr.msk.f32.mxu0 %vm17634_vm1, %v17633_v1 }
 0x617   : > { %17120 = vmatprep.subr.mxu1 %v17633_v1  ;;  %17135 = vmatprep.subr.mxu0 %v17633_v1 }
 0x618   : > { %17113 = vmatmul.mubr.f32.vlgmr.msra.gmra.mxu1 %v18387_v50  ;;  %17128 = vmatmul.mubr.f32.vlgmr.msra.gmra.mxu0 %v18480_v2 }
 0x619   : > { %17121 = vmatpush3.xpose.msra.mxu1 %v18409_v23  ;;  %17136 = vmatpush3.xpose.msra.mxu0 %v18399_v15 }
 0x61a   : > { %17122 = vmatprep.mubr.msk.f32.mxu1 %vm17634_vm1, %v17633_v1  ;;  %17137 = vmatprep.mubr.msk.f32.mxu0 %vm17634_vm1, %v17633_v1 }
 0x61b   : > { %17130 = vmatprep.subr.mxu1 %v17633_v1  ;;  %17145 = vmatprep.subr.mxu0 %v17633_v1 }
 0x61c   : > { %17123 = vmatmul.mubr.f32.vlgmr.msra.gmra.mxu1 %v18375_v49  ;;  %17138 = vmatmul.mubr.f32.vlgmr.msra.gmra.mxu0 %v18438_v58 }
 0x61d   : > { %17131 = vmatpush3.xpose.msra.mxu1 %v8578_v4  ;;  %17146 = vmatpush3.xpose.msra.mxu0 %v18407_v22 }
 0x61e   : > { %17132 = vmatprep.mubr.msk.f32.mxu1 %vm17634_vm1, %v17633_v1  ;;  %17147 = vmatprep.mubr.msk.f32.mxu0 %vm17634_vm1, %v17633_v1 }
 0x61f   : > { %17140 = vmatprep.subr.mxu1 %v17633_v1  ;;  %17155 = vmatprep.subr.mxu0 %v17633_v1 }
 0x620   : > { %17133 = vmatmul.mubr.f32.vlgmr.msra.gmra.mxu1 %v18424_v24  ;;  %17148 = vmatmul.mubr.f32.vlgmr.msra.gmra.mxu0 %v18424_v24 }
 0x621   : > { %17141 = vmatpush3.xpose.msra.mxu1 %v18396_v57  ;;  %17156 = vmatpush3.xpose.msra.mxu0 %v18409_v23 }
 0x622   : > { %17142 = vmatprep.mubr.msk.f32.mxu1 %vm17634_vm1, %v17633_v1  ;;  %17157 = vmatprep.mubr.msk.f32.mxu0 %vm17634_vm1, %v17633_v1 }
 0x623   : > { %17150 = vmatprep.subr.mxu1 %v17633_v1  ;;  %17165 = vmatprep.subr.mxu0 %v17633_v1 }
 0x624   : > { %17143 = vmatmul.mubr.f32.vlgmr.msra.gmra.mxu1 %v18453_v33  ;;  %17158 = vmatmul.mubr.f32.vlgmr.msra.gmra.mxu0 %v18480_v2 }
 0x625   : > { %17151 = vmatpush3.xpose.msra.mxu1 %v18396_v57  ;;  %17166 = vmatpush3.xpose.msra.mxu0 %v18419_v3 }
 0x626   : > { %17152 = vmatprep.mubr.msk.f32.mxu1 %vm17634_vm1, %v17633_v1  ;;  %17167 = vmatprep.mubr.msk.f32.mxu0 %vm17634_vm1, %v17633_v1 }
 0x627   : > { %17160 = vmatprep.subr.mxu1 %v17633_v1  ;;  %17175 = vmatprep.subr.mxu0 %v17633_v1 }
 0x628   : > { %v7019_v34 = vpop.f32.mrf.mxu0  ;;  %17153 = vmatmul.mubr.f32.vlgmr.msra.gmra.mxu1 %v18424_v24  ;;  %17168 = vmatmul.mubr.f32.vlgmr.msra.gmra.mxu0 %v18438_v58 }
 0x629   : > { %17161 = vmatpush3.xpose.msra.mxu1 %v9029_v63  ;;  %17176 = vmatpush3.xpose.msra.mxu0 %v18430_v46 }
 0x62a   : > { %v16979_v9 = vpop.f32.mrf.mxu0  ;;  %17162 = vmatprep.mubr.msk.f32.mxu1 %vm17634_vm1, %v17633_v1  ;;  %17177 = vmatprep.mubr.msk.f32.mxu0 %vm17634_vm1, %v17633_v1 }
 0x62b   : > { %17170 = vmatprep.subr.mxu1 %v17633_v1  ;;  %17185 = vmatprep.subr.mxu0 %v17633_v1 }
 0x62c   : > { %v7169_v14 = vpop.f32.mrf.mxu0  ;;  %17163 = vmatmul.mubr.f32.vlgmr.msra.gmra.mxu1 %v18424_v24  ;;  %17178 = vmatmul.mubr.f32.vlgmr.msra.gmra.mxu0 %v18424_v24 }
 0x62d   : > { %17171 = vmatpush3.xpose.msra.mxu1 %v18409_v23  ;;  %17186 = vmatpush3.msra.mxu0 %v18514_v6 }
 0x62e   : > { %v16989_v19 = vpop.f32.mrf.mxu0  ;;  %17172 = vmatprep.mubr.msk.f32.mxu1 %vm17634_vm1, %v17633_v1  ;;  %17180 = vmatprep.subr.mxu1 %v17633_v1 }
 0x62f   : > { %17187 = vmatprep.mubr.msk.f32.mxu0 %vm17634_vm1, %v17633_v1  ;;  %17195 = vmatprep.subr.mxu0 %v17633_v1 }
 0x630   : > { %v7095_v39 = vpop.f32.mrf.mxu1  ;;  %17173 = vmatmul.mubr.f32.vlgmr.msra.gmra.mxu1 %v18453_v33 }
 0x631   : > { %v7096_v29 = vadd.f32 %v7095_v39, %v7019_v34  ;;  %v7317_v30 = vpop.f32.mrf.mxu0  ;;  %17181 = vmatpush3.xpose.msra.mxu1 %v18409_v23  ;;  %17182 = vmatprep.mubr.msk.f32.mxu1 %vm17634_vm1, %v17633_v1 }
 0x632   : > { %v16984_v31 = vpop.f32.mrf.mxu1  ;;  %17190 = vmatprep.subr.mxu1 %v17633_v1 }
 0x633   : > { %v16999_v32 = vpop.f32.mrf.mxu0  ;;  %v7170_v61 = vadd.f32 %v7169_v14, %v7096_v29 }
 0x634   : > { %v7243_v28 = vpop.f32.mrf.mxu1  ;;  %17183 = vmatmul.mubr.f32.vlgmr.msra.gmra.mxu1 %v18424_v24 }
 0x635   : > { %v7244_v27 = vadd.f32 %v7243_v28, %v7170_v61  ;;  %17191 = vmatpush3.msra.mxu1 %v18561_v16  ;;  %17192 = vmatprep.mubr.msk.f32.mxu1 %vm17634_vm1, %v17633_v1  ;;  %v17009_v18 = vpop.f32.mrf.mxu0  ;;  %v17605_v61 = vld [vmem:[#allocation2 + $0x8] sm:$0xff] }
 0x636   : > { %v16994_v7 = vpop.f32.mrf.mxu1  ;;  %17200 = vmatprep.subr.mxu1 %v17633_v1  ;;  %v7396_v28 = vmul.f32 %v17605_v61, %v17769_v48 }
 0x637   : > { %v7318_v35 = vadd.f32 %v7317_v30, %v7244_v27  ;;  %v7507_v45 = vpop.f32.mrf.mxu0 }
 0x638   : > { %v7389_v36 = vpop.f32.mrf.mxu1 }
 0x639   : > { %v7390_v37 = vadd.f32 %v7389_v36, %v7318_v35  ;;  %v17019_v11 = vpop.f32.mrf.mxu0 }
 0x63a   : > { %v17004_v52 = vpop.f32.mrf.mxu1 }
 0x63b   : > { %v7393_v40 = vadd.f32 %v7390_v37, %v18359_v0  ;;  %v7673_v55 = vpop.f32.mrf.mxu0  ;;  %v17606_v52 = vld [vmem:[#allocation2] sm:$0xff] }
 0x63c   : > { %v17014_v43 = vpop.f32.mrf.mxu1 }
 0x63d   : > { %7394 = vst.msk [vmem:[%s18572_s18] sm:$0xff] %vm1079_vm3, %v7393_v40  ;;  %v7600_v57 = vadd.f32 %v17014_v43, %v17009_v18  ;;  %v17029_v20 = vpop.f32.mrf.mxu0  ;;  %v7395_v40 = vmul.f32 %v17606_v52, %v17769_v48 }
 0x63e   : > { %v7593_v53 = vpop.f32.mrf.mxu1 }
 0x63f   : > { %v7594_v17 = vadd.f32 %v7593_v53, %v7507_v45  ;;  %v7681_v22 = vadd.f32 %v17019_v11, %v7600_v57  ;;  %v7836_v0 = vpop.f32.mrf.mxu0 }
 0x640   : > { %v17024_v8 = vpop.f32.mrf.mxu1 }
 0x641   : > { %v7674_v51 = vadd.f32 %v7673_v55, %v7594_v17  ;;  %v7763_v54 = vadd.f32 %v17024_v8, %v7681_v22 }
 0x642   : > { %v7754_v47 = vpop.f32.mrf.mxu1 }
 0x643   : > { %v7755_v4 = vadd.f32 %v7754_v47, %v7674_v51  ;;  %v7843_v62 = vadd.f32 %v17029_v20, %v7763_v54 }
 0x644   : > { %v17034_v41 = vpop.f32.mrf.mxu1 }
 0x645   : > { %v7837_v9 = vadd.f32 %v7836_v0, %v7755_v4  ;;  %v7921_v39 = vadd.f32 %v17034_v41, %v7843_v62 }
 0x646   : > { %v7914_v25 = vpop.f32.mrf.mxu1 }
 0x647   : > { %v7915_v27 = vadd.f32 %v7914_v25, %v7837_v9  ;;  %v7925_v37 = vadd.f32 %v7921_v39, %v7396_v28 }
 0x649   : > { %v7924_v8 = vadd.f32 %v7915_v27, %v7395_v40 }
 0x6a9   : > { %v17044_v15 = vpop.f32.mrf.mxu1 }
 0x6ab   : > { %v8122_v23 = vpop.f32.mrf.mxu1 }
 0x6ad   : > { %v17054_v3 = vpop.f32.mrf.mxu1 }
 0x6af   : > { %v8283_v44 = vpop.f32.mrf.mxu1 }
 0x6b1   : > { %v17039_v13 = vpop.f32.mrf.mxu0  ;;  %v17064_v31 = vpop.f32.mrf.mxu1 }
 0x6b2   : > { %v8129_v63 = vadd.f32 %v17044_v15, %v17039_v13 }
 0x6b3   : > { %v8036_v46 = vpop.f32.mrf.mxu0  ;;  %v8443_v18 = vpop.f32.mrf.mxu1 }
 0x6b4   : > { %v8123_v14 = vadd.f32 %v8122_v23, %v8036_v46 }
 0x6b5   : > { %v17049_v34 = vpop.f32.mrf.mxu0 }
 0x6b6   : > { %v8210_v19 = vadd.f32 %v17049_v34, %v8129_v63 }
 0x6b7   : > { %v8202_v26 = vpop.f32.mrf.mxu0 }
 0x6b8   : > { %v8203_v29 = vadd.f32 %v8202_v26, %v8123_v14  ;;  %v8292_v30 = vadd.f32 %v17054_v3, %v8210_v19 }
 0x6b9   : > { %v17059_v32 = vpop.f32.mrf.mxu0 }
 0x6ba   : > { %v8372_v7 = vadd.f32 %v17059_v32, %v8292_v30  ;;  %v8284_v35 = vadd.f32 %v8283_v44, %v8203_v29 }
 0x6bb   : > { %v8365_v36 = vpop.f32.mrf.mxu0 }
 0x6bc   : > { %v8450_v43 = vadd.f32 %v17064_v31, %v8372_v7  ;;  %v8366_v53 = vadd.f32 %v8365_v36, %v8284_v35 }
 0x6be   : > { %v8454_v45 = vadd.f32 %v8450_v43, %v7925_v37  ;;  %v8444_v47 = vadd.f32 %v8443_v18, %v8366_v53 }
 0x6c0   : > { %8456 = vst.msk [vmem:[#allocation2 + $0x8] sm:$0xff] %vm1079_vm3, %v8454_v45  ;;  %v8453_v11 = vadd.f32 %v8444_v47, %v7924_v8  ;;  %v8539_v41 = vpop.f32.mrf.mxu0 }
 0x6c2   : > { %8455 = vst.msk [vmem:[#allocation2] sm:$0xff] %vm1079_vm3, %v8453_v11  ;;  %v17069_v55 = vpop.f32.mrf.mxu0 }
 0x6c4   : > { %v8689_v25 = vpop.f32.mrf.mxu0 }
 0x6c6   : > { %v17079_v57 = vpop.f32.mrf.mxu0 }
 0x6c7   : > { %v8458_v15 = vld [vmem:[#allocation2 + $0x8] sm:$0xff] }
 0x6c8   : > { %v8615_v17 = vpop.f32.mrf.mxu1  ;;  %10720 = vrot.lane.b32.xlu1 %v8458_v15, %s17636_s12  ;;  %v8837_v20 = vpop.f32.mrf.mxu0 }
 0x6c9   : > { %v8616_v22 = vadd.f32 %v8615_v17, %v8539_v41  ;;  %v8457_v54 = vld [vmem:[#allocation2] sm:$0xff] }
 0x6ca   : > { %v17074_v23 = vpop.f32.mrf.mxu1  ;;  %v17089_v51 = vpop.f32.mrf.mxu0 }
 0x6cb   : > { %v8690_v0 = vadd.f32 %v8689_v25, %v8616_v22 }
 0x6cc   : > { %v8763_v3 = vpop.f32.mrf.mxu1  ;;  %v8990_v13 = vpop.f32.mrf.mxu0  ;;  %10718 = vrot.lane.b32.xlu1 %v8457_v54, %s17636_s12 }
 0x6cd   : > { %v8764_v4 = vadd.f32 %v8763_v3, %v8690_v0 }
 0x6ce   : > { %v17084_v46 = vpop.f32.mrf.mxu1  ;;  %v17099_v62 = vpop.f32.mrf.mxu0 }
 0x6cf   : > { %v8838_v63 = vadd.f32 %v8837_v20, %v8764_v4 }
 0x6d0   : > { %v8909_v44 = vpop.f32.mrf.mxu1  ;;  %v9140_v34 = vpop.f32.mrf.mxu0  ;;  %14826 = vrot.lane.b32.xlu1 %v17784_v59, %s17636_s12 }
 0x6d1   : > { %v8910_v9 = vadd.f32 %v8909_v44, %v8838_v63 }
 0x6d2   : > { %v17094_v14 = vpop.f32.mrf.mxu1  ;;  %v17109_v19 = vpop.f32.mrf.mxu0 }
 0x6d3   : > { %v8913_v26 = vsel %vm593_vm4, %v8910_v9, 0.0 }
 0x6d4   : > { %v10268_v39 = vsel %vm596_vm0, %v8913_v26, 0  ;;  %v9066_v29 = vpop.f32.mrf.mxu1  ;;  %v9288_v30 = vpop.f32.mrf.mxu0  ;;  %15367 = vrot.lane.b32.xlu1 %v17786_v60, %s17636_s12 }
 0x6d5   : > { %v10336_v31 = vand.u32 4294901760, %v10268_v39  ;;  %v9067_v32 = vadd.f32 %v9066_v29, %v8990_v13 }
 0x6d6   : > { %v17104_v61 = vpop.f32.mrf.mxu1  ;;  %v17119_v28 = vpop.f32.mrf.mxu0 }
 0x6d7   : > { %v10337_v27 = vsub.f32 %v10268_v39, %v10336_v31  ;;  %17193 = vmatmul.mubr.f32.vlgmr.msra.gmra.mxu1 %v10336_v31  ;;  %v9141_v59 = vadd.f32 %v9140_v34, %v9067_v32 }
 0x6d8   : > { %17201 = vmatpush3.msra.mxu1 %v18514_v6  ;;  %v9214_v7 = vpop.f32.mrf.mxu1  ;;  %v9441_v35 = vpop.f32.mrf.mxu0  ;;  %17202 = vmatprep.mubr.msk.f32.mxu1 %vm17634_vm1, %v17633_v1 }
 0x6d9   : > { %v10338_v36 = vand.u32 4294901760, %v10337_v27  ;;  %v9215_v37 = vadd.f32 %v9214_v7, %v9141_v59  ;;  %17210 = vmatprep.subr.mxu1 %v17633_v1 }
 0x6da   : > { %v17114_v52 = vpop.f32.mrf.mxu1  ;;  %v17129_v60 = vpop.f32.mrf.mxu0 }
 0x6db   : > { %v10339_v40 = vsub.f32 %v10337_v27, %v10338_v36  ;;  %17203 = vmatmul.mubr.f32.vlgmr.msra.gmra.mxu1 %v10338_v36  ;;  %v9289_v43 = vadd.f32 %v9288_v30, %v9215_v37 }
 0x6dc   : > { %17211 = vmatpush3.msra.mxu1 %v18514_v6  ;;  %v9360_v53 = vpop.f32.mrf.mxu1  ;;  %v9591_v18 = vpop.f32.mrf.mxu0  ;;  %17212 = vmatprep.mubr.msk.f32.mxu1 %vm17634_vm1, %v17633_v1 }
 0x6dd   : > { %v10340_v8 = vand.u32 4294901760, %v10339_v40  ;;  %v18598_v45 = vadd.f32 %v9360_v53, %v9289_v43  ;;  %17222 = vmatprep.subr.mxu1 %v17633_v1 }
 0x6de   : > { %v17124_v47 = vpop.f32.mrf.mxu1  ;;  %v17139_v11 = vpop.f32.mrf.mxu0 }
 0x6df   : > { %17188 = vmatmul.mubr.f32.vlgmr.msra.gmra.mxu0 %v10340_v8  ;;  %17213 = vmatmul.mubr.f32.vlgmr.msra.gmra.mxu1 %v10336_v31 }
 0x6e0   : > { %17196 = vmatpush3.msra.mxu0 %v18528_v12  ;;  %v9517_v41 = vpop.f32.mrf.mxu1  ;;  %v9739_v55 = vpop.f32.mrf.mxu0  ;;  %17197 = vmatprep.mubr.msk.f32.mxu0 %vm17634_vm1, %v17633_v1 }
 0x6e1   : > { %v9518_v25 = vadd.f32 %v9517_v41, %v9441_v35  ;;  %17205 = vmatprep.subr.mxu0 %v17633_v1  ;;  %17226 = vmatprep.mubr.msk.f32.mxu1 %vm17634_vm1, %v17633_v1 }
 0x6e2   : > { %v17134_v57 = vpop.f32.mrf.mxu1  ;;  %v17149_v15 = vpop.f32.mrf.mxu0 }
 0x6e3   : > { %17198 = vmatmul.mubr.f32.vlgmr.msra.gmra.mxu0 %v10337_v27  ;;  %v9592_v17 = vadd.f32 %v9591_v18, %v9518_v25 }
 0x6e4   : > { %17206 = vmatpush3.msra.mxu0 %v18540_v5  ;;  %v9665_v20 = vpop.f32.mrf.mxu1  ;;  %v9888_v22 = vpop.f32.mrf.mxu0  ;;  %17207 = vmatprep.mubr.msk.f32.mxu0 %vm17634_vm1, %v17633_v1 }
 0x6e5   : > { %v9666_v23 = vadd.f32 %v9665_v20, %v9592_v17  ;;  %17215 = vmatprep.subr.mxu0 %v17633_v1 }
 0x6e6   : > { %v17144_v51 = vpop.f32.mrf.mxu1  ;;  %v17159_v0 = vpop.f32.mrf.mxu0 }
 0x6e7   : > { %17208 = vmatmul.mubr.f32.vlgmr.msra.gmra.mxu0 %v10336_v31  ;;  %v9740_v54 = vadd.f32 %v9739_v55, %v9666_v23 }
 0x6e8   : > { %v9811_v3 = vpop.f32.mrf.mxu1  ;;  %v10038_v13 = vpop.f32.mrf.mxu0  ;;  %17219 = vmatprep.mubr.msk.f32.mxu0 %vm17634_vm1, %v17633_v1 }
 0x6e9   : > { %v18613_v4 = vadd.f32 %v9811_v3, %v9740_v54  ;;  %v9364_v3 = vsel %vm593_vm4, %v18598_v45, 0.0 }
 0x6ea   : > { %v17154_v46 = vpop.f32.mrf.mxu1  ;;  %v17169_v62 = vpop.f32.mrf.mxu0 }
 0x6eb   : > { %v11186_v62 = vsel %vm596_vm0, %v9364_v3, 0 }
 0x6ec   : > { %v9964_v63 = vpop.f32.mrf.mxu1  ;;  %v10186_v44 = vpop.f32.mrf.mxu0 }
 0x6ed   : > { %v9965_v34 = vadd.f32 %v9964_v63, %v9888_v22 }
 0x6ee   : > { %v17164_v9 = vpop.f32.mrf.mxu1  ;;  %v17179_v14 = vpop.f32.mrf.mxu0 }
 0x6ef   : > { %v10039_v19 = vadd.f32 %v10038_v13, %v9965_v34  ;;  %v18691_v9 = vand.u32 4294901760, %v11186_v62 }
 0x6f0   : > { %v10112_v26 = vpop.f32.mrf.mxu1 }
 0x6f1   : > { %v10113_v39 = vadd.f32 %v10112_v26, %v10039_v19  ;;  %v11255_v19 = vsub.f32 %v11186_v62, %v18691_v9 }
 0x6f2   : > { %v17174_v29 = vpop.f32.mrf.mxu1 }
 0x6f3   : > { %v10187_v30 = vadd.f32 %v10186_v44, %v10113_v39 }
 0x6f4   : > { %v10258_v31 = vpop.f32.mrf.mxu1 }
 0x6f5   : > { %v18615_v32 = vadd.f32 %v10258_v31, %v10187_v30 }
 0x6f6   : > { %v17184_v61 = vpop.f32.mrf.mxu1 }
 0x6fd   : > { %14793 = vxpose.xlu1.b32.start.end [1/1] (short) (narrow) %v18503_v56, 16 }
 0x73a   : > { %v10721_v28 = vpop.permute.xlu1 %10720 }
 0x73b   : > { %v10724_v27 = vsel %vm1079_vm3, %v10721_v28, 0  ;;  %v11256_v28 = vand.u32 4294901760, %v11255_v19 }
 0x73c   : > { %v18619_v59 = vand.u32 4294901760, %v10724_v27 }
 0x73e   : > { %v18622_v7 = vsub.f32 %v10724_v27, %v18619_v59  ;;  %17216 = vmatpush3.xpose.msra.mxu0 %v18619_v59  ;;  %v10719_v35 = vpop.permute.xlu1 %10718 }
 0x73f   : > { %v10722_v36 = vsel %vm1079_vm3, %v10719_v35, 0  ;;  %17217 = vmatprep.subr.mxu0 %v17633_v1  ;;  %v11257_v35 = vsub.f32 %v11255_v19, %v11256_v28 }
 0x740   : > { %v18628_v37 = vand.u32 4294901760, %v18622_v7  ;;  %v18630_v52 = vand.u32 4294901760, %v10722_v36 }
 0x742   : > { %v18633_v56 = vsub.f32 %v10722_v36, %v18630_v52  ;;  %17218 = vmatpush3.xpose.msra.mxu0 %v18630_v52  ;;  %v10835_v60 = vsub.f32 %v18622_v7, %v18628_v37 }
 0x743   : > { %17229 = vmatprep.subr.mxu0 %v17633_v1 }
 0x744   : > { %v18640_v40 = vand.u32 4294901760, %v18633_v56  ;;  %v18642_v43 = vand.u32 4294901760, %v10835_v60 }
 0x745   : > { %17220 = vmatmul.mubr.f32.vlgmr.msra.gmra.mxu0 %v18403_v21 }
 0x746   : > { %17223 = vmatpush3.xpose.msra.mxu1 %v18642_v43  ;;  %17230 = vmatpush3.xpose.msra.mxu0 %v18622_v7  ;;  %v10842_v53 = vsub.f32 %v18633_v56, %v18640_v40 }
 0x747   : > { %17224 = vmatprep.subr.mxu1 %v17633_v1  ;;  %17231 = vmatprep.subr.mxu0 %v17633_v1 }
 0x748   : > { %v18651_v18 = vand.u32 4294901760, %v10842_v53  ;;  %17233 = vmatprep.mubr.msk.f32.mxu0 %vm17634_vm1, %v17633_v1 }
 0x74a   : > { %17225 = vmatpush3.xpose.msra.mxu1 %v18651_v18  ;;  %17232 = vmatpush3.xpose.msra.mxu0 %v18633_v56 }
 0x74b   : > { %17236 = vmatprep.subr.mxu1 %v17633_v1  ;;  %17243 = vmatprep.subr.mxu0 %v17633_v1 }
 0x74d   : > { %17227 = vmatmul.mubr.f32.vlgmr.msra.gmra.mxu1 %v18375_v49  ;;  %17234 = vmatmul.mubr.f32.vlgmr.msra.gmra.mxu0 %v18380_v10 }
 0x74e   : > { %17237 = vmatpush3.xpose.msra.mxu1 %v18619_v59  ;;  %17244 = vmatpush3.xpose.msra.mxu0 %v18628_v37 }
 0x74f   : > { %17238 = vmatprep.subr.mxu1 %v17633_v1  ;;  %17245 = vmatprep.subr.mxu0 %v17633_v1 }
 0x750   : > { %17240 = vmatprep.mubr.msk.f32.mxu1 %vm17634_vm1, %v17633_v1  ;;  %17247 = vmatprep.mubr.msk.f32.mxu0 %vm17634_vm1, %v17633_v1 }
 0x752   : > { %17239 = vmatpush3.xpose.msra.mxu1 %v18630_v52  ;;  %17246 = vmatpush3.xpose.msra.mxu0 %v18640_v40 }
 0x753   : > { %17250 = vmatprep.subr.mxu1 %v17633_v1  ;;  %17257 = vmatprep.subr.mxu0 %v17633_v1 }
 0x755   : > { %17241 = vmatmul.mubr.f32.vlgmr.msra.gmra.mxu1 %v18387_v50  ;;  %17248 = vmatmul.mubr.f32.vlgmr.msra.gmra.mxu0 %v18375_v49 }
 0x756   : > { %17251 = vmatpush3.xpose.msra.mxu1 %v18619_v59  ;;  %17254 = vmatprep.mubr.msk.f32.mxu1 %vm17634_vm1, %v17633_v1 }
 0x757   : > { %17252 = vmatprep.subr.mxu1 %v17633_v1  ;;  %17259 = vmatprep.mubr.msk.f32.mxu0 %vm17634_vm1, %v17633_v1 }
 0x75a   : > { %17253 = vmatpush3.xpose.msra.mxu1 %v18630_v52 }
 0x75b   : > { %17262 = vmatprep.subr.mxu1 %v17633_v1 }
 0x75d   : > { %17255 = vmatmul.mubr.f32.vlgmr.msra.gmra.mxu1 %v18375_v49 }
 0x75e   : > { %17264 = vmatprep.mubr.msk.f32.mxu1 %vm17634_vm1, %v17633_v1 }
 0x797   : > { %v10418_v10 = vpop.f32.mrf.mxu1 }
 0x799   : > { %v17194_v50 = vpop.f32.mrf.mxu1 }
 0x79a   : > { %v11666_v50 = vand.u32 4294901760, %v9364_v3 }
 0x79b   : > { %v10566_v21 = vpop.f32.mrf.mxu1 }
 0x79d   : > { %v17204_v8 = vpop.f32.mrf.mxu1 }
 0x79f   : > { %v10342_v47 = vpop.f32.mrf.mxu0  ;;  %v10712_v11 = vpop.f32.mrf.mxu1 }
 0x7a0   : > { %v10419_v41 = vadd.f32 %v10418_v10, %v10342_v47  ;;  %v11258_v10 = vand.u32 4294901760, %v11257_v35  ;;  %v11743_v47 = vsub.f32 %v9364_v3, %v11666_v50 }
 0x7a1   : > { %v17189_v55 = vpop.f32.mrf.mxu0  ;;  %v17214_v25 = vpop.f32.mrf.mxu1 }
 0x7a2   : > { %v11744_v55 = vand.u32 4294901760, %v11743_v47 }
 0x7a3   : > { %v10492_v57 = vpop.f32.mrf.mxu0 }
 0x7a4   : > { %v10493_v15 = vadd.f32 %v10492_v57, %v10419_v41  ;;  %v11745_v25 = vsub.f32 %v11743_v47, %v11744_v55 }
 0x7a5   : > { %v17199_v17 = vpop.f32.mrf.mxu0 }
 0x7a6   : > { %v10567_v20 = vadd.f32 %v10566_v21, %v10493_v15  ;;  %v11746_v57 = vand.u32 4294901760, %v11745_v25 }
 0x7a7   : > { %v10640_v22 = vpop.f32.mrf.mxu0 }
 0x7a8   : > { %v10641_v23 = vadd.f32 %v10640_v22, %v10567_v20 }
 0x7a9   : > { %v17209_v51 = vpop.f32.mrf.mxu0 }
 0x7aa   : > { %v10713_v49 = vadd.f32 %v10712_v11, %v10641_v23 }
 0x805   : > { %v10799_v0 = vpop.f32.mrf.mxu0 }
 0x806   : > { %v10800_v34 = vadd.f32 %v10799_v0, %v10713_v49 }
 0x807   : > { %v17221_v54 = vpop.f32.mrf.mxu0 }
 0x80d   : > { %v10880_v13 = vpop.f32.mrf.mxu1  ;;  %v10956_v46 = vpop.f32.mrf.mxu0 }
 0x80e   : > { %v10881_v14 = vadd.f32 %v10880_v13, %v10800_v34 }
 0x80f   : > { %v17228_v63 = vpop.f32.mrf.mxu1  ;;  %v17235_v44 = vpop.f32.mrf.mxu0 }
 0x810   : > { %v10957_v29 = vadd.f32 %v10956_v46, %v10881_v14 }
 0x815   : > { %v11031_v26 = vpop.f32.mrf.mxu1  ;;  %v11108_v39 = vpop.f32.mrf.mxu0 }
 0x816   : > { %v11032_v61 = vadd.f32 %v11031_v26, %v10957_v29 }
 0x817   : > { %v17242_v30 = vpop.f32.mrf.mxu1  ;;  %v17249_v31 = vpop.f32.mrf.mxu0 }
 0x818   : > { %v11109_v45 = vadd.f32 %v11108_v39, %v11032_v61 }
 0x81d   : > { %v11181_v27 = vpop.f32.mrf.mxu1 }
 0x81e   : > { %v18694_v36 = vadd.f32 %v11181_v27, %v11109_v45 }
 0x81f   : > { %v17256_v60 = vpop.f32.mrf.mxu1 }
 0x820   : > { %v11219_v53 = vand.u32 4294901760, %v18694_v36 }
 0x822   : > { %v11296_v21 = vsub.f32 %v18694_v36, %v11219_v53  ;;  %17258 = vmatpush3.msra.mxu0 %v11219_v53 }
 0x823   : > { %17260 = vmatmul.mubr.f32.vlgmr.msra.gmra.mxu0 %v11258_v10  ;;  %17267 = vmatprep.subr.mxu0 %v17633_v1 }
 0x824   : > { %17268 = vmatpush3.msra.mxu0 %v11296_v21  ;;  %17269 = vmatprep.mubr.msk.f32.mxu0 %vm17634_vm1, %v17633_v1  ;;  %v11297_v8 = vand.u32 4294901760, %v11296_v21 }
 0x825   : > { %17277 = vmatprep.subr.mxu0 %v17633_v1 }
 0x826   : > { %v11298_v11 = vsub.f32 %v11296_v21, %v11297_v8 }
 0x827   : > { %17270 = vmatmul.mubr.f32.vlgmr.msra.gmra.mxu0 %v11255_v19 }
 0x828   : > { %17278 = vmatpush3.msra.mxu0 %v11297_v8  ;;  %v11299_v41 = vand.u32 4294901760, %v11298_v11  ;;  %17279 = vmatprep.mubr.msk.f32.mxu0 %vm17634_vm1, %v17633_v1 }
 0x829   : > { %17287 = vmatprep.subr.mxu0 %v17633_v1 }
 0x82a   : > { %17263 = vmatpush3.msra.mxu1 %v11299_v41 }
 0x82b   : > { %17265 = vmatmul.mubr.f32.vlgmr.msra.gmra.mxu1 %v18691_v9  ;;  %17272 = vmatprep.subr.mxu1 %v17633_v1 }
 0x82c   : > { %17280 = vmatmul.mubr.f32.vlgmr.msra.gmra.mxu0 %v18691_v9  ;;  %17273 = vmatpush3.msra.mxu1 %v11219_v53 }
 0x82d   : > { %17288 = vmatpush3.msra.mxu0 %v11666_v50  ;;  %17274 = vmatprep.mubr.msk.f32.mxu1 %vm17634_vm1, %v17633_v1 }
 0x82e   : > { %17282 = vmatprep.subr.mxu1 %v17633_v1  ;;  %17289 = vmatprep.mubr.msk.f32.mxu0 %vm17634_vm1, %v17633_v1 }
 0x82f   : > { %17297 = vmatprep.subr.mxu0 %v17633_v1  ;;  %17275 = vmatmul.mubr.f32.vlgmr.msra.gmra.mxu1 %v11256_v28 }
 0x830   : > { %17283 = vmatpush3.msra.mxu1 %v11219_v53  ;;  %17290 = vmatmul.mubr.f32.vlgmr.msra.gmra.mxu0 %v11258_v10 }
 0x831   : > { %17298 = vmatpush3.msra.mxu0 %v11743_v47  ;;  %17284 = vmatprep.mubr.msk.f32.mxu1 %vm17634_vm1, %v17633_v1 }
 0x832   : > { %17292 = vmatprep.subr.mxu1 %v17633_v1  ;;  %17299 = vmatprep.mubr.msk.f32.mxu0 %vm17634_vm1, %v17633_v1 }
 0x833   : > { %17307 = vmatprep.subr.mxu0 %v17633_v1  ;;  %17285 = vmatmul.mubr.f32.vlgmr.msra.gmra.mxu1 %v18691_v9 }
 0x834   : > { %17293 = vmatpush3.msra.mxu1 %v11746_v57  ;;  %17300 = vmatmul.mubr.f32.vlgmr.msra.gmra.mxu0 %v11255_v19 }
 0x835   : > { %17308 = vmatpush3.msra.mxu0 %v11744_v55  ;;  %17294 = vmatprep.mubr.msk.f32.mxu1 %vm17634_vm1, %v17633_v1 }
 0x836   : > { %17302 = vmatprep.subr.mxu1 %v17633_v1  ;;  %17309 = vmatprep.mubr.msk.f32.mxu0 %vm17634_vm1, %v17633_v1 }
 0x837   : > { %17295 = vmatmul.mubr.f32.vlgmr.msra.gmra.mxu1 %v18691_v9  ;;  %17317 = vmatprep.subr.mxu0 %v17633_v1 }
 0x838   : > { %17303 = vmatpush3.msra.mxu1 %v11666_v50  ;;  %17310 = vmatmul.mubr.f32.vlgmr.msra.gmra.mxu0 %v18691_v9 }
 0x839   : > { %17304 = vmatprep.mubr.msk.f32.mxu1 %vm17634_vm1, %v17633_v1  ;;  %17312 = vmatprep.subr.mxu1 %v17633_v1 }
 0x83a   : > { %17319 = vmatprep.mubr.msk.f32.mxu0 %vm17634_vm1, %v17633_v1 }
 0x83b   : > { %17305 = vmatmul.mubr.f32.vlgmr.msra.gmra.mxu1 %v11256_v28 }
 0x83c   : > { %17313 = vmatpush3.msra.mxu1 %v11666_v50  ;;  %17314 = vmatprep.mubr.msk.f32.mxu1 %vm17634_vm1, %v17633_v1 }
 0x83d   : > { %17322 = vmatprep.subr.mxu1 %v17633_v1 }
 0x83f   : > { %17315 = vmatmul.mubr.f32.vlgmr.msra.gmra.mxu1 %v18691_v9 }
 0x840   : > { %17324 = vmatprep.mubr.msk.f32.mxu1 %vm17634_vm1, %v17633_v1 }
 0x8e3   : > { %v11260_v15 = vpop.f32.mrf.mxu0 }
 0x8e5   : > { %v17261_v17 = vpop.f32.mrf.mxu0 }
 0x8e7   : > { %v11410_v20 = vpop.f32.mrf.mxu0 }
 0x8e9   : > { %v17271_v22 = vpop.f32.mrf.mxu0 }
 0x8eb   : > { %v11336_v23 = vpop.f32.mrf.mxu1 }
 0x8ec   : > { %v11337_v51 = vadd.f32 %v11336_v23, %v11260_v15  ;;  %v11558_v49 = vpop.f32.mrf.mxu0 }
 0x8ed   : > { %v17266_v0 = vpop.f32.mrf.mxu1 }
 0x8ee   : > { %v17281_v54 = vpop.f32.mrf.mxu0  ;;  %v11411_v3 = vadd.f32 %v11410_v20, %v11337_v51 }
 0x8ef   : > { %v11484_v13 = vpop.f32.mrf.mxu1 }
 0x8f0   : > { %v11485_v46 = vadd.f32 %v11484_v13, %v11411_v3  ;;  %v11707_v62 = vpop.f32.mrf.mxu0 }
 0x8f1   : > { %v17276_v63 = vpop.f32.mrf.mxu1 }
 0x8f2   : > { %v17291_v44 = vpop.f32.mrf.mxu0  ;;  %v11559_v34 = vadd.f32 %v11558_v49, %v11485_v46 }
 0x8f3   : > { %v11630_v9 = vpop.f32.mrf.mxu1 }
 0x8f4   : > { %v11631_v14 = vadd.f32 %v11630_v9, %v11559_v34  ;;  %v11857_v19 = vpop.f32.mrf.mxu0 }
 0x8f5   : > { %v17286_v26 = vpop.f32.mrf.mxu1 }
 0x8f6   : > { %v18741_v39 = vadd.f32 %v11631_v14, %v18694_v36  ;;  %v17301_v29 = vpop.f32.mrf.mxu0 }
 0x8f7   : > { %v11783_v30 = vpop.f32.mrf.mxu1 }
 0x8f8   : > { %v12115_v31 = vand.u32 4294901760, %v18741_v39  ;;  %v11784_v61 = vadd.f32 %v11783_v30, %v11707_v62  ;;  %v12005_v28 = vpop.f32.mrf.mxu0 }
 0x8f9   : > { %v17296_v45 = vpop.f32.mrf.mxu1 }
 0x8fa   : > { %v12192_v27 = vsub.f32 %v18741_v39, %v12115_v31  ;;  %v17311_v35 = vpop.f32.mrf.mxu0  ;;  %17318 = vmatpush3.msra.mxu0 %v12115_v31  ;;  %v11858_v60 = vadd.f32 %v11857_v19, %v11784_v61 }
 0x8fb   : > { %v11931_v53 = vpop.f32.mrf.mxu1  ;;  %17327 = vmatprep.subr.mxu0 %v17633_v1 }
 0x8fc   : > { %v11932_v10 = vadd.f32 %v11931_v53, %v11858_v60  ;;  %v12193_v50 = vand.u32 4294901760, %v12192_v27 }
 0x8fd   : > { %v17306_v21 = vpop.f32.mrf.mxu1 }
 0x8fe   : > { %v12006_v36 = vadd.f32 %v12005_v28, %v11932_v10  ;;  %v12194_v8 = vsub.f32 %v12192_v27, %v12193_v50 }
 0x8ff   : > { %v12077_v47 = vpop.f32.mrf.mxu1 }
 0x900   : > { %v12078_v11 = vadd.f32 %v12077_v47, %v12006_v36  ;;  %v12195_v41 = vand.u32 4294901760, %v12194_v8 }
 0x901   : > { %v17316_v55 = vpop.f32.mrf.mxu1 }
 0x902   : > { %v12082_v25 = vsel %vm596_vm0, %v12078_v11, 0  ;;  %v12562_v57 = vand.u32 4294901760, %v12078_v11  ;;  %17323 = vmatpush3.msra.mxu1 %v12195_v41 }
 0x903   : > { %v12150_v15 = vand.u32 4294901760, %v12082_v25  ;;  %17332 = vmatprep.subr.mxu1 %v17633_v1 }
 0x904   : > { %v12639_v17 = vsub.f32 %v12078_v11, %v12562_v57 }
 0x905   : > { %v12151_v20 = vsub.f32 %v12082_v25, %v12150_v15  ;;  %17325 = vmatmul.mubr.f32.vlgmr.msra.gmra.mxu1 %v12150_v15 }
 0x906   : > { %v12640_v22 = vand.u32 4294901760, %v12639_v17  ;;  %17333 = vmatpush3.msra.mxu1 %v12115_v31  ;;  %17334 = vmatprep.mubr.msk.f32.mxu1 %vm17634_vm1, %v17633_v1 }
 0x907   : > { %17342 = vmatprep.subr.mxu1 %v17633_v1  ;;  %v12152_v23 = vand.u32 4294901760, %v12151_v20 }
 0x908   : > { %v12641_v51 = vsub.f32 %v12639_v17, %v12640_v22 }
 0x909   : > { %17335 = vmatmul.mubr.f32.vlgmr.msra.gmra.mxu1 %v12152_v23  ;;  %v12153_v49 = vsub.f32 %v12151_v20, %v12152_v23 }
 0x90a   : > { %17343 = vmatpush3.msra.mxu1 %v12115_v31  ;;  %17344 = vmatprep.mubr.msk.f32.mxu1 %vm17634_vm1, %v17633_v1  ;;  %v12642_v0 = vand.u32 4294901760, %v12641_v51 }
 0x90b   : > { %17352 = vmatprep.subr.mxu1 %v17633_v1  ;;  %v12154_v54 = vand.u32 4294901760, %v12153_v49 }
 0x90d   : > { %17320 = vmatmul.mubr.f32.vlgmr.msra.gmra.mxu0 %v12154_v54  ;;  %17345 = vmatmul.mubr.f32.vlgmr.msra.gmra.mxu1 %v12150_v15 }
 0x90e   : > { %17328 = vmatpush3.msra.mxu0 %v12192_v27  ;;  %17353 = vmatpush3.msra.mxu1 %v12642_v0  ;;  %v9815_v0 = vsel %vm592_vm5, %v18613_v4, 0.0 }
 0x90f   : > { %17329 = vmatprep.mubr.msk.f32.mxu0 %vm17634_vm1, %v17633_v1  ;;  %17337 = vmatprep.subr.mxu0 %v17633_v1 }
 0x910   : > { %17354 = vmatprep.mubr.msk.f32.mxu1 %vm17634_vm1, %v17633_v1  ;;  %17362 = vmatprep.subr.mxu1 %v17633_v1 }
 0x911   : > { %17330 = vmatmul.mubr.f32.vlgmr.msra.gmra.mxu0 %v12151_v20  ;;  %17355 = vmatmul.mubr.f32.vlgmr.msra.gmra.mxu1 %v12150_v15 }
 0x912   : > { %17338 = vmatpush3.msra.mxu0 %v12193_v50  ;;  %17363 = vmatpush3.msra.mxu1 %v12562_v57 }
 0x913   : > { %17339 = vmatprep.mubr.msk.f32.mxu0 %vm17634_vm1, %v17633_v1  ;;  %17347 = vmatprep.subr.mxu0 %v17633_v1 }
 0x914   : > { %17364 = vmatprep.mubr.msk.f32.mxu1 %vm17634_vm1, %v17633_v1  ;;  %17372 = vmatprep.subr.mxu1 %v17633_v1 }
 0x915   : > { %17340 = vmatmul.mubr.f32.vlgmr.msra.gmra.mxu0 %v12150_v15  ;;  %17365 = vmatmul.mubr.f32.vlgmr.msra.gmra.mxu1 %v12152_v23 }
 0x916   : > { %17348 = vmatpush3.msra.mxu0 %v12562_v57  ;;  %17373 = vmatpush3.msra.mxu1 %v12562_v57 }
 0x917   : > { %17349 = vmatprep.mubr.msk.f32.mxu0 %vm17634_vm1, %v17633_v1  ;;  %17357 = vmatprep.subr.mxu0 %v17633_v1 }
 0x918   : > { %17374 = vmatprep.mubr.msk.f32.mxu1 %vm17634_vm1, %v17633_v1  ;;  %17382 = vmatprep.subr.mxu1 %v17633_v1 }
 0x919   : > { %17350 = vmatmul.mubr.f32.vlgmr.msra.gmra.mxu0 %v12154_v54  ;;  %17375 = vmatmul.mubr.f32.vlgmr.msra.gmra.mxu1 %v12150_v15 }
 0x91a   : > { %17358 = vmatpush3.msra.mxu0 %v12639_v17  ;;  %17359 = vmatprep.mubr.msk.f32.mxu0 %vm17634_vm1, %v17633_v1 }
 0x91b   : > { %17367 = vmatprep.subr.mxu0 %v17633_v1  ;;  %17384 = vmatprep.mubr.msk.f32.mxu1 %vm17634_vm1, %v17633_v1 }
 0x91d   : > { %17360 = vmatmul.mubr.f32.vlgmr.msra.gmra.mxu0 %v12151_v20 }
 0x91e   : > { %17368 = vmatpush3.msra.mxu0 %v12640_v22  ;;  %17369 = vmatprep.mubr.msk.f32.mxu0 %vm17634_vm1, %v17633_v1 }
 0x91f   : > { %17377 = vmatprep.subr.mxu0 %v17633_v1 }
 0x921   : > { %17370 = vmatmul.mubr.f32.vlgmr.msra.gmra.mxu0 %v12150_v15 }
 0x922   : > { %17379 = vmatprep.mubr.msk.f32.mxu0 %vm17634_vm1, %v17633_v1 }
 0x9c5   : > { %v12232_v3 = vpop.f32.mrf.mxu1 }
 0x9c7   : > { %v17326_v13 = vpop.f32.mrf.mxu1 }
 0x9c8   : > { %v13428_v13 = vsel %vm596_vm0, %v9815_v0, 0 }
 0x9c9   : > { %v12380_v46 = vpop.f32.mrf.mxu1 }
 0x9cb   : > { %v17336_v62 = vpop.f32.mrf.mxu1 }
 0x9cc   : > { %v13496_v62 = vand.u32 4294901760, %v13428_v13 }
 0x9cd   : > { %v12156_v63 = vpop.f32.mrf.mxu0  ;;  %v12526_v44 = vpop.f32.mrf.mxu1 }
 0x9ce   : > { %v12233_v14 = vadd.f32 %v12232_v3, %v12156_v63  ;;  %v13497_v4 = vsub.f32 %v13428_v13, %v13496_v62 }
 0x9cf   : > { %v17321_v34 = vpop.f32.mrf.mxu0  ;;  %v17346_v9 = vpop.f32.mrf.mxu1 }
 0x9d0   : > { %v13498_v9 = vand.u32 4294901760, %v13497_v4 }
 0x9d1   : > { %v12306_v19 = vpop.f32.mrf.mxu0  ;;  %v12679_v26 = vpop.f32.mrf.mxu1 }
 0x9d2   : > { %v12307_v29 = vadd.f32 %v12306_v19, %v12233_v14  ;;  %v13499_v14 = vsub.f32 %v13497_v4, %v13498_v9 }
 0x9d3   : > { %v17331_v30 = vpop.f32.mrf.mxu0  ;;  %v17356_v31 = vpop.f32.mrf.mxu1 }
 0x9d4   : > { %v12381_v61 = vadd.f32 %v12380_v46, %v12307_v29 }
 0x9d5   : > { %v12454_v28 = vpop.f32.mrf.mxu0  ;;  %v12827_v45 = vpop.f32.mrf.mxu1 }
 0x9d6   : > { %v12455_v27 = vadd.f32 %v12454_v28, %v12381_v61 }
 0x9d7   : > { %v17341_v35 = vpop.f32.mrf.mxu0  ;;  %v17366_v60 = vpop.f32.mrf.mxu1 }
 0x9d8   : > { %v12527_v53 = vadd.f32 %v12526_v44, %v12455_v27 }
 0x9d9   : > { %v12603_v10 = vpop.f32.mrf.mxu0  ;;  %v12973_v50 = vpop.f32.mrf.mxu1 }
 0x9da   : > { %v18783_v21 = vadd.f32 %v12527_v53, %v18741_v39  ;;  %v12680_v47 = vadd.f32 %v12679_v26, %v12603_v10 }
 0x9db   : > { %v17351_v36 = vpop.f32.mrf.mxu0  ;;  %v17376_v8 = vpop.f32.mrf.mxu1 }
 0x9dc   : > { %v13011_v11 = vand.u32 4294901760, %v18783_v21 }
 0x9dd   : > { %v12753_v41 = vpop.f32.mrf.mxu0 }
 0x9de   : > { %v12754_v55 = vadd.f32 %v12753_v41, %v12680_v47  ;;  %17378 = vmatpush3.msra.mxu0 %v13011_v11  ;;  %v13088_v25 = vsub.f32 %v18783_v21, %v13011_v11 }
 0x9df   : > { %v17361_v57 = vpop.f32.mrf.mxu0  ;;  %17387 = vmatprep.subr.mxu0 %v17633_v1 }
 0x9e0   : > { %v12828_v15 = vadd.f32 %v12827_v45, %v12754_v55  ;;  %v13089_v17 = vand.u32 4294901760, %v13088_v25 }
 0x9e1   : > { %v12901_v20 = vpop.f32.mrf.mxu0 }
 0x9e2   : > { %v12902_v22 = vadd.f32 %v12901_v20, %v12828_v15  ;;  %v13090_v23 = vsub.f32 %v13088_v25, %v13089_v17 }
 0x9e3   : > { %v17371_v39 = vpop.f32.mrf.mxu0 }
 0x9e4   : > { %v12974_v51 = vadd.f32 %v12973_v50, %v12902_v22  ;;  %v13091_v49 = vand.u32 4294901760, %v13090_v23 }
 0x9e6   : > { %v12978_v54 = vsel %vm596_vm0, %v12974_v51, 0  ;;  %17383 = vmatpush3.msra.mxu1 %v13091_v49 }
 0x9e7   : > { %v13046_v3 = vand.u32 4294901760, %v12978_v54  ;;  %17392 = vmatprep.subr.mxu1 %v17633_v1 }
 0x9e9   : > { %v13047_v46 = vsub.f32 %v12978_v54, %v13046_v3  ;;  %17385 = vmatmul.mubr.f32.vlgmr.msra.gmra.mxu1 %v13046_v3 }
 0x9ea   : > { %17393 = vmatpush3.msra.mxu1 %v13011_v11  ;;  %17394 = vmatprep.mubr.msk.f32.mxu1 %vm17634_vm1, %v17633_v1 }
 0x9eb   : > { %v13048_v63 = vand.u32 4294901760, %v13047_v46  ;;  %17402 = vmatprep.subr.mxu1 %v17633_v1 }
 0x9ed   : > { %v13049_v44 = vsub.f32 %v13047_v46, %v13048_v63  ;;  %17395 = vmatmul.mubr.f32.vlgmr.msra.gmra.mxu1 %v13048_v63 }
 0x9ee   : > { %17403 = vmatpush3.msra.mxu1 %v13011_v11  ;;  %17404 = vmatprep.mubr.msk.f32.mxu1 %vm17634_vm1, %v17633_v1 }
 0x9ef   : > { %v13050_v34 = vand.u32 4294901760, %v13049_v44  ;;  %17412 = vmatprep.subr.mxu1 %v17633_v1 }
 0x9f1   : > { %17380 = vmatmul.mubr.f32.vlgmr.msra.gmra.mxu0 %v13050_v34  ;;  %17405 = vmatmul.mubr.f32.vlgmr.msra.gmra.mxu1 %v13046_v3 }
 0x9f2   : > { %17388 = vmatpush3.msra.mxu0 %v13088_v25  ;;  %17413 = vmatpush3.msra.mxu1 %v18561_v16  ;;  %v13500_v16 = vand.u32 4294901760, %v13499_v14 }
 0x9f3   : > { %17389 = vmatprep.mubr.msk.f32.mxu0 %vm17634_vm1, %v17633_v1  ;;  %17397 = vmatprep.subr.mxu0 %v17633_v1 }
 0x9f4   : > { %17414 = vmatprep.mubr.msk.f32.mxu1 %vm17634_vm1, %v17633_v1  ;;  %17422 = vmatprep.subr.mxu1 %v17633_v1 }
 0x9f5   : > { %17390 = vmatmul.mubr.f32.vlgmr.msra.gmra.mxu0 %v13047_v46  ;;  %17415 = vmatmul.mubr.f32.vlgmr.msra.gmra.mxu1 %v13496_v62 }
 0x9f6   : > { %17398 = vmatpush3.msra.mxu0 %v13089_v17  ;;  %17423 = vmatpush3.msra.mxu1 %v18514_v6 }
 0x9f7   : > { %17399 = vmatprep.mubr.msk.f32.mxu0 %vm17634_vm1, %v17633_v1  ;;  %17407 = vmatprep.subr.mxu0 %v17633_v1 }
 0x9f8   : > { %17424 = vmatprep.mubr.msk.f32.mxu1 %vm17634_vm1, %v17633_v1  ;;  %17432 = vmatprep.subr.mxu1 %v17633_v1 }
 0x9f9   : > { %17400 = vmatmul.mubr.f32.vlgmr.msra.gmra.mxu0 %v13046_v3  ;;  %17425 = vmatmul.mubr.f32.vlgmr.msra.gmra.mxu1 %v13498_v9 }
 0x9fa   : > { %17408 = vmatpush3.msra.mxu0 %v18514_v6  ;;  %17433 = vmatpush3.msra.mxu1 %v18514_v6 }
 0x9fb   : > { %17409 = vmatprep.mubr.msk.f32.mxu0 %vm17634_vm1, %v17633_v1  ;;  %17417 = vmatprep.subr.mxu0 %v17633_v1 }
 0x9fc   : > { %17434 = vmatprep.mubr.msk.f32.mxu1 %vm17634_vm1, %v17633_v1  ;;  %17444 = vmatprep.subr.mxu1 %v17633_v1 }
 0x9fd   : > { %17410 = vmatmul.mubr.f32.vlgmr.msra.gmra.mxu0 %v13500_v16  ;;  %17435 = vmatmul.mubr.f32.vlgmr.msra.gmra.mxu1 %v13496_v62 }
 0x9fe   : > { %17418 = vmatpush3.msra.mxu0 %v18528_v12  ;;  %17445 = vmatpush3.xpose.msra.mxu1 %v18642_v43 }
 0x9ff   : > { %17419 = vmatprep.mubr.msk.f32.mxu0 %vm17634_vm1, %v17633_v1  ;;  %17427 = vmatprep.subr.mxu0 %v17633_v1 }
 0xa00   : > { %17446 = vmatprep.subr.mxu1 %v17633_v1  ;;  %17448 = vmatprep.mubr.msk.f32.mxu1 %vm17634_vm1, %v17633_v1 }
 0xa01   : > { %17420 = vmatmul.mubr.f32.vlgmr.msra.gmra.mxu0 %v13497_v4 }
 0xa02   : > { %17428 = vmatpush3.msra.mxu0 %v18540_v5  ;;  %17447 = vmatpush3.xpose.msra.mxu1 %v18651_v18 }
 0xa03   : > { %17429 = vmatprep.mubr.msk.f32.mxu0 %vm17634_vm1, %v17633_v1  ;;  %17437 = vmatprep.subr.mxu0 %v17633_v1 }
 0xa04   : > { %17458 = vmatprep.subr.mxu1 %v17633_v1 }
 0xa05   : > { %17449 = vmatmul.mubr.f32.vlgmr.msra.gmra.mxu1 %v18424_v24  ;;  %17430 = vmatmul.mubr.f32.vlgmr.msra.gmra.mxu0 %v13496_v62 }
 0xa06   : > { %17438 = vmatpush3.xpose.msra.mxu0 %v18619_v59  ;;  %17459 = vmatpush3.xpose.msra.mxu1 %v18619_v59 }
 0xa07   : > { %17439 = vmatprep.subr.mxu0 %v17633_v1  ;;  %17460 = vmatprep.subr.mxu1 %v17633_v1 }
 0xa08   : > { %17441 = vmatprep.mubr.msk.f32.mxu0 %vm17634_vm1, %v17633_v1  ;;  %17462 = vmatprep.mubr.msk.f32.mxu1 %vm17634_vm1, %v17633_v1 }
 0xa0a   : > { %17440 = vmatpush3.xpose.msra.mxu0 %v18630_v52  ;;  %17461 = vmatpush3.xpose.msra.mxu1 %v18630_v52 }
 0xa0b   : > { %17451 = vmatprep.subr.mxu0 %v17633_v1  ;;  %17472 = vmatprep.subr.mxu1 %v17633_v1 }
 0xa0d   : > { %17442 = vmatmul.mubr.f32.vlgmr.msra.gmra.mxu0 %v18480_v2  ;;  %17463 = vmatmul.mubr.f32.vlgmr.msra.gmra.mxu1 %v18453_v33  ;;  %v10262_v2 = vsel %vm592_vm5, %v18615_v32, 0.0 }
 0xa0e   : > { %17452 = vmatpush3.xpose.msra.mxu0 %v18622_v7  ;;  %17473 = vmatpush3.xpose.msra.mxu1 %v18619_v59  ;;  %v14336_v59 = vsel %vm596_vm0, %v10262_v2, 0 }
 0xa0f   : > { %17453 = vmatprep.subr.mxu0 %v17633_v1  ;;  %17474 = vmatprep.subr.mxu1 %v17633_v1 }
 0xa10   : > { %17455 = vmatprep.mubr.msk.f32.mxu0 %vm17634_vm1, %v17633_v1  ;;  %17476 = vmatprep.mubr.msk.f32.mxu1 %vm17634_vm1, %v17633_v1 }
 0xa12   : > { %17454 = vmatpush3.xpose.msra.mxu0 %v18633_v56  ;;  %17475 = vmatpush3.xpose.msra.mxu1 %v18630_v52  ;;  %v18884_v52 = vand.u32 4294901760, %v14336_v59 }
 0xa13   : > { %17465 = vmatprep.subr.mxu0 %v17633_v1  ;;  %17484 = vmatprep.subr.mxu1 %v17633_v1 }
 0xa14   : > { %v18887_v19 = vsub.f32 %v14336_v59, %v18884_v52 }
 0xa15   : > { %17456 = vmatmul.mubr.f32.vlgmr.msra.gmra.mxu0 %v18438_v58  ;;  %17477 = vmatmul.mubr.f32.vlgmr.msra.gmra.mxu1 %v18424_v24  ;;  %v14827_v58 = vpop.permute.xlu1 %14826 }
 0xa16   : > { %17466 = vmatpush3.xpose.msra.mxu0 %v18628_v37  ;;  %17469 = vmatprep.mubr.msk.f32.mxu0 %vm17634_vm1, %v17633_v1  ;;  %v14406_v28 = vand.u32 4294901760, %v18887_v19  ;;  %v18900_v57 = vand.u32 4294901760, %v14827_v58 }
 0xa17   : > { %17467 = vmatprep.subr.mxu0 %v17633_v1  ;;  %17486 = vmatprep.mubr.msk.f32.mxu1 %vm17634_vm1, %v17633_v1 }
 0xa18   : > { %v14407_v47 = vsub.f32 %v18887_v19, %v14406_v28 }
 0xa19   : > { %v18881_v12 = vpop.permute.xlu1 %15367 }
 0xa1a   : > { %17468 = vmatpush3.xpose.msra.mxu0 %v18640_v40  ;;  %v14408_v39 = vand.u32 4294901760, %v14407_v47 }
 0xa1b   : > { %17479 = vmatprep.subr.mxu0 %v17633_v1 }
 0xa1d   : > { %17470 = vmatmul.mubr.f32.vlgmr.msra.gmra.mxu0 %v18424_v24  ;;  %v14809_v37 = vpop.trf.xlu1 }
 0xa1e   : > { %17481 = vmatprep.mubr.msk.f32.mxu0 %vm17634_vm1, %v17633_v1  ;;  %v14830_v61 = vsel %vm596_vm0, %v14809_v37, 0 }
 0xa1f   : > { %v18892_v50 = vand.u32 4294901760, %v14830_v61 }
 0xa21   : > { %v14810_v26 = vpop.trf.xlu1  ;;  %v18903_v20 = vsub.f32 %v14830_v61, %v18892_v50 }
 0xa22   : > { %v14833_v35 = vsel %vm596_vm0, %v14810_v26, 0 }
 0xa23   : > { %v18894_v8 = vand.u32 4294901760, %v14833_v35  ;;  %v14903_v54 = vand.u32 4294901760, %v18903_v20 }
 0xa25   : > { %v18906_v23 = vsub.f32 %v14833_v35, %v18894_v8  ;;  %v14904_v16 = vsub.f32 %v18903_v20, %v14903_v54 }
 0xa27   : > { %v14913_v13 = vand.u32 4294901760, %v18906_v23  ;;  %v14905_v59 = vand.u32 4294901760, %v14904_v16 }
 0xaa9   : > { %v13128_v33 = vpop.f32.mrf.mxu1 }
 0xaab   : > { %v17386_v6 = vpop.f32.mrf.mxu1 }
 0xaad   : > { %v13276_v5 = vpop.f32.mrf.mxu1 }
 0xaaf   : > { %v17396_v7 = vpop.f32.mrf.mxu1 }
 0xab1   : > { %v13052_v24 = vpop.f32.mrf.mxu0  ;;  %v13422_v56 = vpop.f32.mrf.mxu1 }
 0xab2   : > { %v13129_v18 = vadd.f32 %v13128_v33, %v13052_v24  ;;  %v14914_v33 = vsub.f32 %v18906_v23, %v14913_v13 }
 0xab3   : > { %v17381_v40 = vpop.f32.mrf.mxu0  ;;  %v17406_v43 = vpop.f32.mrf.mxu1 }
 0xab4   : > { %v14915_v37 = vand.u32 4294901760, %v14914_v33 }
 0xab5   : > { %v13202_v42 = vpop.f32.mrf.mxu0  ;;  %v13578_v38 = vpop.f32.mrf.mxu1 }
 0xab6   : > { %v13203_v32 = vadd.f32 %v13202_v42, %v13129_v18 }
 0xab7   : > { %v17391_v29 = vpop.f32.mrf.mxu0  ;;  %v17416_v30 = vpop.f32.mrf.mxu1 }
 0xab8   : > { %v13277_v31 = vadd.f32 %v13276_v5, %v13203_v32  ;;  %v18926_v5 = vand.u32 4294901760, %v18881_v12 }
 0xab9   : > { %v13350_v45 = vpop.f32.mrf.mxu0  ;;  %v13726_v27 = vpop.f32.mrf.mxu1 }
 0xaba   : > { %v13351_v60 = vadd.f32 %v13350_v45, %v13277_v31  ;;  %v18937_v43 = vsub.f32 %v18881_v12, %v18926_v5 }
 0xabb   : > { %v17401_v53 = vpop.f32.mrf.mxu0  ;;  %v17426_v10 = vpop.f32.mrf.mxu1 }
 0xabc   : > { %v13423_v36 = vadd.f32 %v13422_v56, %v13351_v60  ;;  %v15495_v12 = vand.u32 4294901760, %v18937_v43 }
 0xabd   : > { %v13502_v11 = vpop.f32.mrf.mxu0  ;;  %v13872_v41 = vpop.f32.mrf.mxu1 }
 0xabe   : > { %v13426_v55 = vadd.f32 %v13423_v36, %v18783_v21  ;;  %v13579_v25 = vadd.f32 %v13578_v38, %v13502_v11  ;;  %v14953_v21 = vsub.f32 %v14827_v58, %v18900_v57 }
 0xabf   : > { %v17411_v15 = vpop.f32.mrf.mxu0  ;;  %v17436_v17 = vpop.f32.mrf.mxu1 }
 0xac0   : > { %15334 = vxpose.xlu0.b32.start.end [1/1] (short) (narrow) %v13426_v55, 16  ;;  %v14369_v22 = vand.u32 4294901760, %v13426_v55  ;;  %v14954_v58 = vand.u32 4294901760, %v14953_v21 }
 0xac1   : > { %v13652_v51 = vpop.f32.mrf.mxu0 }
 0xac2   : > { %v13653_v49 = vadd.f32 %v13652_v51, %v13579_v25  ;;  %17480 = vmatpush3.msra.mxu0 %v14369_v22  ;;  %v14446_v0 = vsub.f32 %v13426_v55, %v14369_v22  ;;  %v14955_v7 = vsub.f32 %v14953_v21, %v14954_v58 }
 0xac3   : > { %v17421_v3 = vpop.f32.mrf.mxu0  ;;  %17482 = vmatmul.mubr.f32.vlgmr.msra.gmra.mxu0 %v14408_v39  ;;  %17489 = vmatprep.subr.mxu0 %v17633_v1 }
 0xac4   : > { %17490 = vmatpush3.msra.mxu0 %v14446_v0  ;;  %v13727_v46 = vadd.f32 %v13726_v27, %v13653_v49  ;;  %17491 = vmatprep.mubr.msk.f32.mxu0 %vm17634_vm1, %v17633_v1  ;;  %v14447_v62 = vand.u32 4294901760, %v14446_v0  ;;  %v14956_v38 = vand.u32 4294901760, %v14955_v7 }
 0xac5   : > { %v14030_v63 = vpop.f32.mrf.mxu1  ;;  %v13800_v44 = vpop.f32.mrf.mxu0  ;;  %17499 = vmatprep.subr.mxu0 %v17633_v1 }
 0xac6   : > { %v13801_v4 = vadd.f32 %v13800_v44, %v13727_v46  ;;  %v14448_v34 = vsub.f32 %v14446_v0, %v14447_v62 }
 0xac7   : > { %v17450_v9 = vpop.f32.mrf.mxu1  ;;  %v17431_v14 = vpop.f32.mrf.mxu0  ;;  %17492 = vmatmul.mubr.f32.vlgmr.msra.gmra.mxu0 %v18887_v19 }
 0xac8   : > { %17500 = vmatpush3.msra.mxu0 %v14447_v62  ;;  %v14449_v2 = vand.u32 4294901760, %v14448_v34  ;;  %17501 = vmatprep.mubr.msk.f32.mxu0 %vm17634_vm1, %v17633_v1  ;;  %v13873_v6 = vadd.f32 %v13872_v41, %v13801_v4 }
 0xac9   : > { %17509 = vmatprep.subr.mxu0 %v18900_v57 }
 0xaca   : > { %17485 = vmatpush3.msra.mxu1 %v14449_v2 }
 0xacb   : > { %17487 = vmatmul.mubr.f32.vlgmr.msra.gmra.mxu1 %v18884_v52  ;;  %17494 = vmatprep.subr.mxu1 %v17633_v1 }
 0xacc   : > { %17502 = vmatmul.mubr.f32.vlgmr.msra.gmra.mxu0 %v18884_v52  ;;  %17495 = vmatpush3.msra.mxu1 %v14369_v22 }
 0xacd   : > { %17510 = vmatpush3.msra.mxu0 %v18900_v57  ;;  %v13949_v24 = vpop.f32.mrf.mxu0  ;;  %v14181_v56 = vpop.f32.mrf.mxu1  ;;  %17496 = vmatprep.mubr.msk.f32.mxu1 %vm17634_vm1, %v17633_v1 }
 0xace   : > { %v13950_v40 = vadd.f32 %v13949_v24, %v13873_v6  ;;  %17519 = vmatprep.subr.mxu0 %v14953_v21  ;;  %17504 = vmatprep.subr.mxu1 %v17633_v1 }
 0xacf   : > { %v17443_v18 = vpop.f32.mrf.mxu0  ;;  %v17464_v42 = vpop.f32.mrf.mxu1  ;;  %17511 = vmatprep.mubr.f32.mxu0 %v14905_v59  ;;  %17497 = vmatmul.mubr.f32.vlgmr.msra.gmra.mxu1 %v14406_v28 }
 0xad0   : > { %17505 = vmatpush3.msra.mxu1 %v14369_v22  ;;  %17512 = vmatmul.mubr.f32.vlgmr.msra.gmra.mxu0 %v14915_v37  ;;  %v14031_v32 = vadd.f32 %v14030_v63, %v13950_v40 }
 0xad1   : > { %17520 = vmatpush3.msra.mxu0 %v14953_v21  ;;  %17514 = vmatprep.subr.mxu1 %v14956_v38 }
 0xad2   : > { %17529 = vmatprep.subr.mxu0 %v14954_v58  ;;  %17506 = vmatprep.mubr.msk.f32.mxu1 %vm17634_vm1, %v17633_v1 }
 0xad3   : > { %17521 = vmatprep.mubr.f32.mxu0 %v18903_v20  ;;  %17507 = vmatmul.mubr.f32.vlgmr.msra.gmra.mxu1 %v18884_v52  ;;  %v15496_v52 = vsub.f32 %v18937_v43, %v15495_v12 }
 0xad4   : > { %17515 = vmatpush3.msra.mxu1 %v14956_v38  ;;  %17522 = vmatmul.mubr.f32.vlgmr.msra.gmra.mxu0 %v18906_v23 }
 0xad5   : > { %17530 = vmatpush3.msra.mxu0 %v14954_v58  ;;  %v14106_v19 = vpop.f32.mrf.mxu0  ;;  %v14331_v26 = vpop.f32.mrf.mxu1  ;;  %17524 = vmatprep.subr.mxu1 %v18900_v57  ;;  %v15497_v61 = vand.u32 4294901760, %v15496_v52 }
 0xad6   : > { %v14107_v29 = vadd.f32 %v14106_v19, %v14031_v32  ;;  %17539 = vmatprep.subr.mxu0 %v18926_v5  ;;  %17516 = vmatprep.mubr.f32.mxu1 %v18892_v50 }
 0xad7   : > { %v17457_v1 = vpop.f32.mrf.mxu0  ;;  %v17478_v30 = vpop.f32.mrf.mxu1  ;;  %17531 = vmatprep.mubr.f32.mxu0 %v18892_v50  ;;  %17517 = vmatmul.mubr.f32.vlgmr.msra.gmra.mxu1 %v18894_v8 }
 0xad8   : > { %17525 = vmatpush3.msra.mxu1 %v18900_v57  ;;  %17532 = vmatmul.mubr.f32.vlgmr.msra.gmra.mxu0 %v18894_v8  ;;  %v14182_v31 = vadd.f32 %v14181_v56, %v14107_v29 }
 0xad9   : > { %17540 = vmatpush3.msra.mxu0 %v18926_v5  ;;  %17534 = vmatprep.subr.mxu1 %v18900_v57 }
 0xada   : > { %17549 = vmatprep.subr.mxu0 %v18937_v43  ;;  %17526 = vmatprep.mubr.f32.mxu1 %v14903_v54 }
 0xadb   : > { %17527 = vmatmul.mubr.f32.vlgmr.msra.gmra.mxu1 %v14913_v13 }
 0xadc   : > { %17535 = vmatpush3.msra.mxu1 %v18900_v57  ;;  %17536 = vmatprep.mubr.f32.mxu1 %v18892_v50 }
 0xadd   : > { %v14258_v28 = vpop.f32.mrf.mxu0  ;;  %17544 = vmatprep.subr.mxu1 %v15497_v61 }
 0xade   : > { %v14259_v45 = vadd.f32 %v14258_v28, %v14182_v31 }
 0xadf   : > { %v17471_v27 = vpop.f32.mrf.mxu0  ;;  %17537 = vmatmul.mubr.f32.vlgmr.msra.gmra.mxu1 %v18894_v8 }
 0xae0   : > { %v14332_v35 = vadd.f32 %v14331_v26, %v14259_v45  ;;  %17545 = vmatpush3.msra.mxu1 %v15497_v61 }
 0xae1   : > { %17554 = vmatprep.subr.mxu1 %v18926_v5 }
 0xb3c   : > { %v15350_v60 = vpop.trf.xlu0 }
 0xb3d   : > { %v15371_v53 = vsel %vm596_vm0, %v15350_v60, 0 }
 0xb3e   : > { %v15442_v10 = vand.u32 4294901760, %v15371_v53 }
 0xb40   : > { %v15443_v36 = vsub.f32 %v15371_v53, %v15442_v10  ;;  %v15351_v47 = vpop.trf.xlu0  ;;  %17546 = vmatprep.mubr.f32.mxu1 %v15442_v10 }
 0xb41   : > { %v15374_v11 = vsel %vm596_vm0, %v15351_v47, 0 }
 0xb42   : > { %v15452_v50 = vand.u32 4294901760, %v15374_v11  ;;  %v15444_v41 = vand.u32 4294901760, %v15443_v36 }
 0xb44   : > { %v15453_v55 = vsub.f32 %v15374_v11, %v15452_v50  ;;  %17547 = vmatmul.mubr.f32.vlgmr.msra.gmra.mxu1 %v15452_v50  ;;  %v15445_v25 = vsub.f32 %v15443_v36, %v15444_v41 }
 0xb45   : > { %17555 = vmatpush3.msra.mxu1 %v18926_v5  ;;  %17556 = vmatprep.mubr.f32.mxu1 %v15444_v41 }
 0xb46   : > { %v15454_v8 = vand.u32 4294901760, %v15453_v55  ;;  %17564 = vmatprep.subr.mxu1 %v18926_v5  ;;  %v15446_v57 = vand.u32 4294901760, %v15445_v25 }
 0xb48   : > { %v15455_v15 = vsub.f32 %v15453_v55, %v15454_v8  ;;  %17541 = vmatprep.mubr.f32.mxu0 %v15446_v57  ;;  %17557 = vmatmul.mubr.f32.vlgmr.msra.gmra.mxu1 %v15454_v8 }
 0xb49   : > { %17565 = vmatpush3.msra.mxu1 %v18926_v5  ;;  %17566 = vmatprep.mubr.f32.mxu1 %v15442_v10 }
 0xb4a   : > { %v15456_v17 = vand.u32 4294901760, %v15455_v15 }
 0xb4c   : > { %17542 = vmatmul.mubr.f32.vlgmr.msra.gmra.mxu0 %v15456_v17  ;;  %17567 = vmatmul.mubr.f32.vlgmr.msra.gmra.mxu1 %v15452_v50 }
 0xb4d   : > { %17550 = vmatpush3.msra.mxu0 %v18937_v43  ;;  %17551 = vmatprep.mubr.f32.mxu0 %v15443_v36 }
 0xb4e   : > { %17559 = vmatprep.subr.mxu0 %v15495_v12 }
 0xb50   : > { %17552 = vmatmul.mubr.f32.vlgmr.msra.gmra.mxu0 %v15453_v55 }
 0xb51   : > { %17560 = vmatpush3.msra.mxu0 %v15495_v12  ;;  %17561 = vmatprep.mubr.f32.mxu0 %v15442_v10 }
 0xb54   : > { %17562 = vmatmul.mubr.f32.vlgmr.msra.gmra.mxu0 %v15452_v50 }
 0xb83   : > { %v14410_v20 = vpop.f32.mrf.mxu0 }
 0xb85   : > { %v17483_v22 = vpop.f32.mrf.mxu0 }
 0xb87   : > { %v14560_v23 = vpop.f32.mrf.mxu0 }
 0xb89   : > { %v17493_v39 = vpop.f32.mrf.mxu0 }
 0xb8b   : > { %v14486_v51 = vpop.f32.mrf.mxu1 }
 0xb8c   : > { %v14487_v49 = vadd.f32 %v14486_v51, %v14410_v20  ;;  %v14708_v0 = vpop.f32.mrf.mxu0 }
 0xb8d   : > { %v17488_v21 = vpop.f32.mrf.mxu1 }
 0xb8e   : > { %v17503_v54 = vpop.f32.mrf.mxu0  ;;  %v14561_v3 = vadd.f32 %v14560_v23, %v14487_v49  ;;  %v17607_v23 = vld [vmem:[#allocation2] sm:$0xff] }
 0xb8f   : > { %v14634_v13 = vpop.f32.mrf.mxu1  ;;  %v14791_v39 = vmul.f32 %v17607_v23, %v17769_v48 }
 0xb90   : > { %v14635_v46 = vadd.f32 %v14634_v13, %v14561_v3  ;;  %v17513_v62 = vpop.f32.mrf.mxu0 }
 0xb91   : > { %v17498_v63 = vpop.f32.mrf.mxu1 }
 0xb92   : > { %v14709_v44 = vadd.f32 %v14708_v0, %v14635_v46  ;;  %v14907_v4 = vpop.f32.mrf.mxu0  ;;  %v17608_v0 = vld [vmem:[#allocation2 + $0x8] sm:$0xff] }
 0xb93   : > { %v14780_v34 = vpop.f32.mrf.mxu1  ;;  %v14792_v21 = vmul.f32 %v17608_v0, %v17769_v48 }
 0xb94   : > { %v14781_v9 = vadd.f32 %v14780_v34, %v14709_v44  ;;  %v17523_v14 = vpop.f32.mrf.mxu0 }
 0xb95   : > { %v17508_v16 = vpop.f32.mrf.mxu1 }
 0xb96   : > { %v14784_v58 = vadd.f32 %v14781_v9, %v14332_v35  ;;  %v15073_v33 = vpop.f32.mrf.mxu0 }
 0xb97   : > { %v17518_v2 = vpop.f32.mrf.mxu1 }
 0xb98   : > { %v15000_v6 = vadd.f32 %v17518_v2, %v17513_v62  ;;  %14786 = vrot.lane.b32.xlu1 %v14784_v58, %s17637_s11  ;;  %v17533_v59 = vpop.f32.mrf.mxu0 }
 0xb99   : > { %v14993_v5 = vpop.f32.mrf.mxu1 }
 0xb9a   : > { %v14994_v7 = vadd.f32 %v14993_v5, %v14907_v4  ;;  %v15081_v37 = vadd.f32 %v17523_v14, %v15000_v6  ;;  %v15236_v18 = vpop.f32.mrf.mxu0 }
 0xb9b   : > { %v17528_v24 = vpop.f32.mrf.mxu1 }
 0xb9c   : > { %v15074_v56 = vadd.f32 %v15073_v33, %v14994_v7  ;;  %v15163_v40 = vadd.f32 %v17528_v24, %v15081_v37 }
 0xb9d   : > { %v15154_v43 = vpop.f32.mrf.mxu1 }
 0xb9e   : > { %v15155_v42 = vadd.f32 %v15154_v43, %v15074_v56  ;;  %v15243_v38 = vadd.f32 %v17533_v59, %v15163_v40 }
 0xb9f   : > { %v17538_v32 = vpop.f32.mrf.mxu1 }
 0xba0   : > { %v15237_v12 = vadd.f32 %v15236_v18, %v15155_v42  ;;  %v15321_v19 = vadd.f32 %v17538_v32, %v15243_v38 }
 0xba1   : > { %v15314_v26 = vpop.f32.mrf.mxu1 }
 0xba2   : > { %v15315_v29 = vadd.f32 %v15314_v26, %v15237_v12  ;;  %15328 = vrot.lane.b32.xlu1 %v15321_v19, %s17637_s11 }
 0xba4   : > { %15326 = vrot.lane.b32.xlu0 %v15315_v29, %s17637_s11 }
 0xc04   : > { %v17548_v1 = vpop.f32.mrf.mxu1 }
 0xc06   : > { %v15534_v30 = vpop.f32.mrf.mxu1 }
 0xc08   : > { %v17558_v31 = vpop.f32.mrf.mxu1 }
 0xc0a   : > { %v14787_v52 = vpop.permute.xlu1 %14786  ;;  %v15695_v27 = vpop.f32.mrf.mxu1 }
 0xc0b   : > { %14790 = vst.msk [vmem:[%s18572_s18] sm:$0xff] %vm14789_vm6, %v14787_v52 }
 0xc0c   : > { %v17543_v61 = vpop.f32.mrf.mxu0  ;;  %v17568_v47 = vpop.f32.mrf.mxu1 }
 0xc0d   : > { %v15541_v45 = vadd.f32 %v17548_v1, %v17543_v61 }
 0xc0e   : > { %v15448_v28 = vpop.f32.mrf.mxu0  ;;  %v15855_v8 = vpop.f32.mrf.mxu1 }
 0xc0f   : > { %v15535_v60 = vadd.f32 %v15534_v30, %v15448_v28 }
 0xc10   : > { %v17553_v35 = vpop.f32.mrf.mxu0 }
 0xc11   : > { %v15622_v53 = vadd.f32 %v17553_v35, %v15541_v45 }
 0xc12   : > { %v15614_v10 = vpop.f32.mrf.mxu0 }
 0xc13   : > { %v15615_v36 = vadd.f32 %v15614_v10, %v15535_v60  ;;  %v15704_v50 = vadd.f32 %v17558_v31, %v15622_v53 }
 0xc14   : > { %v17563_v11 = vpop.f32.mrf.mxu0  ;;  %v15329_v20 = vpop.permute.xlu1 %15328 }
 0xc15   : > { %v15696_v41 = vadd.f32 %v15695_v27, %v15615_v36  ;;  %v15784_v57 = vadd.f32 %v17563_v11, %v15704_v50  ;;  %v15333_v3 = vadd.f32 %v15329_v20, %v14792_v21 }
 0xc16   : > { %v15777_v55 = vpop.f32.mrf.mxu0  ;;  %v15327_v22 = vpop.permute.xlu0 %15326 }
 0xc17   : > { %v15778_v25 = vadd.f32 %v15777_v55, %v15696_v41  ;;  %v15862_v17 = vadd.f32 %v17568_v47, %v15784_v57  ;;  %v15332_v51 = vadd.f32 %v15327_v22, %v14791_v39 }
 0xc19   : > { %v15856_v15 = vadd.f32 %v15855_v8, %v15778_v25 }
 0xc1b   : > { %15867 = vrot.lane.b32.xlu1 %v15856_v15, %s17637_s11 }
 0xc1f   : > { %15869 = vrot.lane.b32.xlu1 %v15862_v17, %s17637_s11 }
 0xc8d   : > { %v15868_v49 = vpop.permute.xlu1 %15867 }
 0xc8e   : > { %v15873_v54 = vadd.f32 %v15868_v49, %v15332_v51 }
 0xc90   : > { %15875 = vst.msk [vmem:[#allocation2] sm:$0xff] %vm14789_vm6, %v15873_v54 }
 0xc91   : > { %v15870_v13 = vpop.permute.xlu1 %15869 }
 0xc92   : > { %v15874_v46 = vadd.f32 %v15870_v13, %v15333_v3 }
 0xc94   : > { %15876 = vst.msk [vmem:[#allocation2 + $0x8] sm:$0xff] %vm14789_vm6, %v15874_v46 }
 0xc95 PF: > { %s18_s29 = sadd.s32 1, %s17631_s29   ;;  %s19001_s27 = smov %s17627_s28 }
 0xc96   : > { %p15_p5 = scmp.ge.s32.totalorder %s18_s29, 4   ;;  %s19002_s28 = smov %s19004_s30 }
 0xc98   :  { %17 = sbr.rel (!%p15_p5) target bundleno = 2 (0x2), region = 104 }

</bundles_post_ra>
